<compile_context>
chip_gen: v7x
topology: tpu7x:2x2x1
jax: 0.10.0
libtpu: 0.0.40
codegen_flags: <defaults>
</compile_context>

<pallas_src>
import functools

import jax
import jax.numpy as jnp
from jax import lax
from jax.experimental import pallas as pl
from jax.experimental.pallas import tpu as pltpu


def _round_up(x, m):
    return (x + m - 1) // m * m


def residual_block_kernel(xm_ref, xh_ref, w1_ref, b1_ref, w2_ref, b2_ref, wr_ref,
                          o_ref, *, H, W, TH):
    # xm_ref: (1, TH, Wp, Cin_p)        bf16 main row block (padded rows [t*TH, t*TH+TH))
    # xh_ref: (1, 4, Wp, Cin_p)         bf16 bottom halo block (next 4 padded rows)
    # w1_ref: (3, 3*Cin_p, Cout_p)      bf16, kw folded into K, BN1 scale folded in
    # w2_ref: (3, 3*Cout_p, Cout_p)     bf16, kw folded into K, BN2 scale folded in
    # wr_ref: (Cin_p, Cout_p)           bf16 1x1 shortcut conv
    # b1/b2 : (1, Cout_p)               f32 folded BN shifts
    # o_ref : (1, TH, Wp, Cout_p)       bf16 lane-dense output tile
    Wp = xm_ref.shape[2]
    Cout_p = o_ref.shape[3]
    R1 = TH + 2                       # rows of h1 (1-row halo each side for conv2)

    t = pl.program_id(1)              # row-tile index
    r0 = t * TH                       # first image row of this tile

    # Full (TH+4)-row slab: main block + 4-row halo block.  Column Wp-1 and all rows
    # outside the image are guaranteed zero (wrapper zero-padding).
    slab_bf = jnp.concatenate([xm_ref[0], xh_ref[0]], axis=0)     # (TH+4, Wp, Cin_p) bf16
    slab_f32 = slab_bf.astype(jnp.float32)                        # 32-bit roll source

    def conv3x3(src_f32, mid_bf, wcat_ref, out_rows):
        """3x3 'same' conv as 3 deep (K = 3*C) bf16 MXU matmuls, f32 accumulation.

        kw taps = cyclic rolls along W (XLU); the wrap-around column is a guaranteed
        zero and doubles as the left/right zero padding.  The 3 kw operands are
        lane-concatenated into the contraction dim; kh taps are free outer-dim slices.
        Casts: one per rolled operand (the centre operand reuses `mid_bf` directly).
        """
        left = pltpu.roll(src_f32, 1, axis=1).astype(jnp.bfloat16)        # x[w-1]
        right = pltpu.roll(src_f32, Wp - 1, axis=1).astype(jnp.bfloat16)  # x[w+1]
        cat = jnp.concatenate([left, mid_bf, right], axis=-1)             # (R, Wp, 3*C)
        K = cat.shape[-1]
        acc = None
        for kh in range(3):
            a = cat[kh:kh + out_rows].reshape(out_rows * Wp, K)
            part = jnp.dot(a, wcat_ref[kh], preferred_element_type=jnp.float32)
            acc = part if acc is None else acc + part
        return acc                                     # (out_rows*Wp, Cout_p) f32

    # ---- conv1 (+ folded BN1 scale) + bias + ReLU over TH+2 rows ----
    h1 = jnp.maximum(conv3x3(slab_f32, slab_bf, w1_ref, R1) + b1_ref[...], 0.0)
    h1 = h1.reshape(R1, Wp, Cout_p)

    # Zero the halo rows outside the image and the width-padding columns so conv2 sees
    # proper 'same' zero padding (keeps the roll wrap-around column zero as well).
    row_img = r0 - 1 + lax.broadcasted_iota(jnp.int32, (R1, Wp, 1), 0)
    col = lax.broadcasted_iota(jnp.int32, (R1, Wp, 1), 1)
    h1 = jnp.where((row_img >= 0) & (row_img < H) & (col < W), h1, 0.0)

    # ---- conv2 (+ folded BN2 scale) + bias ----
    out = conv3x3(h1, h1.astype(jnp.bfloat16), w2_ref, TH) + b2_ref[...]

    # ---- 1x1 shortcut conv on the identity, read directly from the bf16 slab ----
    ident = slab_bf[2:2 + TH].reshape(TH * Wp, slab_bf.shape[2])
    out = out + jnp.dot(ident, wr_ref[...], preferred_element_type=jnp.float32)

    # ---- final ReLU; bf16 lane-dense store (padding stripped / upcast in wrapper) ----
    o_ref[0] = jnp.maximum(out, 0.0).astype(jnp.bfloat16).reshape(TH, Wp, Cout_p)


def residual_block_pallas(x_nchw, w1, g1, be1, m1, v1,
                          w2, g2, be2, m2, v2, wr, eps=1e-5, row_tile=16):
    """x_nchw: (N, Cin, H, W); PyTorch OIHW conv weights; returns NCHW float32."""
    N, Cin, H, W = x_nchw.shape
    Cout = w1.shape[0]

    LANE = 128
    Cin_p = _round_up(max(Cin, LANE), LANE)
    Cout_p = _round_up(max(Cout, LANE), LANE)
    Wp = _round_up(W + 1, 16)          # >=1 trailing zero col; bf16 sublane packing

    # Row tile: multiple of 4 (halo block is 4 rows); pad H up to a multiple of TH.
    TH = max(4, min(_round_up(row_tile, 4), _round_up(H, 4)))
    n_tiles = (H + TH - 1) // TH
    H_p = n_tiles * TH

    # ---- fold eval-mode BN into the conv weights / biases (plain JAX, one-time) ----
    inv1 = g1 / jnp.sqrt(v1 + eps)
    inv2 = g2 / jnp.sqrt(v2 + eps)
    w1h = jnp.transpose(w1, (2, 3, 1, 0)) * inv1        # (kh,kw,Cin,Cout) * scale[co]
    w2h = jnp.transpose(w2, (2, 3, 1, 0)) * inv2        # (kh,kw,Cout,Cout)
    if wr is None:                                      # identity shortcut (Cin == Cout)
        wrh = jnp.eye(Cin, dtype=jnp.float32)
    else:
        wrh = jnp.transpose(wr[:, :, 0, 0], (1, 0))     # (Cin, Cout)
    b1 = be1 - m1 * inv1
    b2 = be2 - m2 * inv2

    # ---- pad channels to full lane width; fold kw into the contraction dim (K=3*C) ----
    w1p = jnp.pad(w1h, ((0, 0), (0, 0), (0, Cin_p - Cin), (0, Cout_p - Cout)))
    w1p = w1p.reshape(3, 3 * Cin_p, Cout_p).astype(jnp.bfloat16)
    w2p = jnp.pad(w2h, ((0, 0), (0, 0), (0, Cout_p - Cout), (0, Cout_p - Cout)))
    w2p = w2p.reshape(3, 3 * Cout_p, Cout_p).astype(jnp.bfloat16)
    wrp = jnp.pad(wrh, ((0, Cin_p - Cin), (0, Cout_p - Cout))).astype(jnp.bfloat16)
    b1p = jnp.pad(b1, (0, Cout_p - Cout)).reshape(1, Cout_p).astype(jnp.float32)
    b2p = jnp.pad(b2, (0, Cout_p - Cout)).reshape(1, Cout_p).astype(jnp.float32)

    # ---- NHWC, zero-pad: 2 halo rows top, 2 + (H_p-H) bottom, W -> Wp, C -> Cin_p ----
    x = jnp.transpose(x_nchw, (0, 2, 3, 1))
    xp = jnp.pad(x, ((0, 0), (2, 2 + H_p - H), (0, Wp - W),
                     (0, Cin_p - Cin))).astype(jnp.bfloat16)   # (N, H_p+4, Wp, Cin_p)

    kernel = functools.partial(residual_block_kernel, H=H, W=W, TH=TH)

    out = pl.pallas_call(
        kernel,
        out_shape=jax.ShapeDtypeStruct((N, H_p, Wp, Cout_p), jnp.bfloat16),
        grid_spec=pltpu.PrefetchScalarGridSpec(
            num_scalar_prefetch=0,
            grid=(N, n_tiles),
            in_specs=[
                # main TH-row block of the padded input
                pl.BlockSpec((1, TH, Wp, Cin_p), lambda n, t: (n, t, 0, 0)),
                # 4-row bottom halo block of the SAME padded input (TH % 4 == 0)
                pl.BlockSpec((1, 4, Wp, Cin_p),
                             lambda n, t: (n, (t + 1) * (TH // 4), 0, 0)),
                pl.BlockSpec((3, 3 * Cin_p, Cout_p), lambda n, t: (0, 0, 0)),
                pl.BlockSpec((1, Cout_p), lambda n, t: (0, 0)),
                pl.BlockSpec((3, 3 * Cout_p, Cout_p), lambda n, t: (0, 0, 0)),
                pl.BlockSpec((1, Cout_p), lambda n, t: (0, 0)),
                pl.BlockSpec((Cin_p, Cout_p), lambda n, t: (0, 0)),
            ],
            out_specs=pl.BlockSpec((1, TH, Wp, Cout_p), lambda n, t: (n, t, 0, 0)),
        ),
        compiler_params=pltpu.CompilerParams(
            dimension_semantics=("parallel", "parallel"),
            # Explicit limit (v5e scoped default is 16 MiB); per-step use scales with
            # TH*Wp*C -- re-derive if row_tile / image width is raised substantially.
            vmem_limit_bytes=32 * 1024 * 1024),
    )(xp, xp, w1p, b1p, w2p, b2p, wrp)

    out = out[:, :H, :W, :Cout].astype(jnp.float32)   # strip padding, upcast
    return jnp.transpose(out, (0, 3, 1, 2))           # back to NCHW


def residual_block_reference(x, w1, g1, be1, m1, v1,
                             w2, g2, be2, m2, v2, wr, eps=1e-5):
    """Pure-JAX (XLA conv) reference in NCHW for correctness checking."""
    dn = ('NCHW', 'OIHW', 'NCHW')

    def bn(h, g, be, m, v):
        inv = g / jnp.sqrt(v + eps)
        return h * inv[None, :, None, None] + (be - m * inv)[None, :, None, None]

    h = lax.conv_general_dilated(x, w1, (1, 1), 'SAME', dimension_numbers=dn)
    h = jnp.maximum(bn(h, g1, be1, m1, v1), 0.0)
    h = lax.conv_general_dilated(h, w2, (1, 1), 'SAME', dimension_numbers=dn)
    h = bn(h, g2, be2, m2, v2)
    ident = lax.conv_general_dilated(x, wr, (1, 1), 'SAME', dimension_numbers=dn)
    return jnp.maximum(h + ident, 0.0)


if __name__ == "__main__":
    N, Cin, Cout, H, W = 2, 4, 8, 16, 16   # Cin != Cout -> 1x1 shortcut conv is used

    key = jax.random.PRNGKey(0)
    keys = jax.random.split(key, 12)

    x = jax.random.normal(keys[0], (N, Cin, H, W), jnp.float32)

    # Deterministic synthetic parameters (PyTorch shapes).
    w1 = 0.1 * jax.random.normal(keys[1], (Cout, Cin, 3, 3), jnp.float32)
    w2 = 0.1 * jax.random.normal(keys[2], (Cout, Cout, 3, 3), jnp.float32)
    wr = 0.1 * jax.random.normal(keys[3], (Cout, Cin, 1, 1), jnp.float32)

    g1 = 1.0 + 0.1 * jax.random.normal(keys[4], (Cout,), jnp.float32)
    be1 = 0.1 * jax.random.normal(keys[5], (Cout,), jnp.float32)
    m1 = 0.05 * jax.random.normal(keys[6], (Cout,), jnp.float32)
    v1 = 1.0 + 0.1 * jnp.abs(jax.random.normal(keys[7], (Cout,), jnp.float32))

    g2 = 1.0 + 0.1 * jax.random.normal(keys[8], (Cout,), jnp.float32)
    be2 = 0.1 * jax.random.normal(keys[9], (Cout,), jnp.float32)
    m2 = 0.05 * jax.random.normal(keys[10], (Cout,), jnp.float32)
    v2 = 1.0 + 0.1 * jnp.abs(jax.random.normal(keys[11], (Cout,), jnp.float32))

    params = (w1, g1, be1, m1, v1, w2, g2, be2, m2, v2, wr)

    out = jax.block_until_ready(jax.jit(residual_block_pallas)(x, *params))
    ref = jax.block_until_ready(jax.jit(residual_block_reference)(x, *params))

    assert out.shape == (N, Cout, H, W), out.shape
    # bf16 matmul inputs / bf16 output with f32 accumulation -> relaxed tolerance.
    max_err = jnp.max(jnp.abs(out - ref))
    assert jnp.allclose(out, ref, atol=3e-2, rtol=3e-2), f"max abs err {max_err}"

    print("KERNEL_OK")
</pallas_src>

<mosaic_0001>
module attributes {stable_mosaic.version = 11 : i64} {
  func.func @residual_block_kernel(%arg0: i32, %arg1: i32, %arg2: memref<1x16x32x128xbf16, #tpu.memory_space<vmem>>, %arg3: memref<1x4x32x128xbf16, #tpu.memory_space<vmem>>, %arg4: memref<3x384x128xbf16, #tpu.memory_space<vmem>>, %arg5: memref<1x128xf32, #tpu.memory_space<vmem>>, %arg6: memref<3x384x128xbf16, #tpu.memory_space<vmem>>, %arg7: memref<1x128xf32, #tpu.memory_space<vmem>>, %arg8: memref<128x128xbf16, #tpu.memory_space<vmem>>, %arg9: memref<1x16x32x128xbf16, #tpu.memory_space<vmem>>) attributes {dimension_semantics = [#tpu.dimension_semantics<parallel>, #tpu.dimension_semantics<parallel>], iteration_bounds = array<i64: 2, 1>, scalar_prefetch = 0 : i64, scratch_operands = 0 : i64, tpu.core_type = #tpu.core_type<tc>, window_params = [{transform_indices = @transform_0, window_bounds = array<i64: 1, 16, 32, 128>}, {transform_indices = @transform_1, window_bounds = array<i64: 1, 4, 32, 128>}, {pipeline_mode = #tpu.pipeline_mode<synchronous>, transform_indices = @transform_2, window_bounds = array<i64: 3, 384, 128>}, {pipeline_mode = #tpu.pipeline_mode<synchronous>, transform_indices = @transform_3, window_bounds = array<i64: 1, 128>}, {pipeline_mode = #tpu.pipeline_mode<synchronous>, transform_indices = @transform_4, window_bounds = array<i64: 3, 384, 128>}, {pipeline_mode = #tpu.pipeline_mode<synchronous>, transform_indices = @transform_5, window_bounds = array<i64: 1, 128>}, {pipeline_mode = #tpu.pipeline_mode<synchronous>, transform_indices = @transform_6, window_bounds = array<i64: 128, 128>}, {transform_indices = @transform_7, window_bounds = array<i64: 1, 16, 32, 128>}]} {
    %c16_i32 = arith.constant 16 : i32
    %0 = arith.muli %arg1, %c16_i32 : i32
    %c0 = arith.constant 0 : index
    %c0_0 = arith.constant 0 : index
    %c0_1 = arith.constant 0 : index
    %c0_2 = arith.constant 0 : index
    %1 = vector.load %arg2[%c0, %c0_0, %c0_1, %c0_2] : memref<1x16x32x128xbf16, #tpu.memory_space<vmem>>, vector<1x16x32x128xbf16>
    %2 = vector.shape_cast %1 : vector<1x16x32x128xbf16> to vector<16x32x128xbf16>
    %c0_3 = arith.constant 0 : index
    %c0_4 = arith.constant 0 : index
    %c0_5 = arith.constant 0 : index
    %c0_6 = arith.constant 0 : index
    %3 = vector.load %arg3[%c0_3, %c0_4, %c0_5, %c0_6] : memref<1x4x32x128xbf16, #tpu.memory_space<vmem>>, vector<1x4x32x128xbf16>
    %4 = vector.shape_cast %3 : vector<1x4x32x128xbf16> to vector<4x32x128xbf16>
    %5 = tpu.concatenate %2, %4 in 0 : vector<16x32x128xbf16>, vector<4x32x128xbf16> -> vector<20x32x128xbf16>
    %6 = arith.extf %5 : vector<20x32x128xbf16> to vector<20x32x128xf32>
    %c1_i32 = arith.constant 1 : i32
    %7 = tpu.dynamic_rotate %6 by %c1_i32 dim 1 : vector<20x32x128xf32>, i32 -> vector<20x32x128xf32>
    %8 = arith.truncf %7 : vector<20x32x128xf32> to vector<20x32x128xbf16>
    %c31_i32 = arith.constant 31 : i32
    %9 = tpu.dynamic_rotate %6 by %c31_i32 dim 1 : vector<20x32x128xf32>, i32 -> vector<20x32x128xf32>
    %10 = arith.truncf %9 : vector<20x32x128xf32> to vector<20x32x128xbf16>
    %11 = tpu.concatenate %8, %5, %10 in 2 : vector<20x32x128xbf16>, vector<20x32x128xbf16>, vector<20x32x128xbf16> -> vector<20x32x384xbf16>
    %12 = vector.extract_strided_slice %11 {offsets = [0, 0, 0], sizes = [18, 32, 384], strides = [1, 1, 1]} : vector<20x32x384xbf16> to vector<18x32x384xbf16>
    %13 = vector.shape_cast %12 : vector<18x32x384xbf16> to vector<576x384xbf16>
    %c0_7 = arith.constant 0 : index
    %c0_8 = arith.constant 0 : index
    %c0_9 = arith.constant 0 : index
    %14 = vector.load %arg4[%c0_7, %c0_8, %c0_9] : memref<3x384x128xbf16, #tpu.memory_space<vmem>>, vector<1x384x128xbf16>
    %15 = vector.shape_cast %14 : vector<1x384x128xbf16> to vector<384x128xbf16>
    %cst = arith.constant dense<0.000000e+00> : vector<576x128xf32>
    %16 = tpu.matmul %13, %15, %cst {dimension_numbers = #tpu.dot_dimension_numbers<[1], [0], [0], [1], [0, 0, 1, 1], [], []>} : vector<576x384xbf16>, vector<384x128xbf16>, vector<576x128xf32> -> vector<576x128xf32>
    %17 = vector.extract_strided_slice %11 {offsets = [1, 0, 0], sizes = [18, 32, 384], strides = [1, 1, 1]} : vector<20x32x384xbf16> to vector<18x32x384xbf16>
    %18 = vector.shape_cast %17 : vector<18x32x384xbf16> to vector<576x384xbf16>
    %c1 = arith.constant 1 : index
    %c0_10 = arith.constant 0 : index
    %c0_11 = arith.constant 0 : index
    %19 = vector.load %arg4[%c1, %c0_10, %c0_11] : memref<3x384x128xbf16, #tpu.memory_space<vmem>>, vector<1x384x128xbf16>
    %20 = vector.shape_cast %19 : vector<1x384x128xbf16> to vector<384x128xbf16>
    %cst_12 = arith.constant dense<0.000000e+00> : vector<576x128xf32>
    %21 = tpu.matmul %18, %20, %cst_12 {dimension_numbers = #tpu.dot_dimension_numbers<[1], [0], [0], [1], [0, 0, 1, 1], [], []>} : vector<576x384xbf16>, vector<384x128xbf16>, vector<576x128xf32> -> vector<576x128xf32>
    %22 = arith.addf %16, %21 : vector<576x128xf32>
    %23 = vector.extract_strided_slice %11 {offsets = [2, 0, 0], sizes = [18, 32, 384], strides = [1, 1, 1]} : vector<20x32x384xbf16> to vector<18x32x384xbf16>
    %24 = vector.shape_cast %23 : vector<18x32x384xbf16> to vector<576x384xbf16>
    %c2 = arith.constant 2 : index
    %c0_13 = arith.constant 0 : index
    %c0_14 = arith.constant 0 : index
    %25 = vector.load %arg4[%c2, %c0_13, %c0_14] : memref<3x384x128xbf16, #tpu.memory_space<vmem>>, vector<1x384x128xbf16>
    %26 = vector.shape_cast %25 : vector<1x384x128xbf16> to vector<384x128xbf16>
    %cst_15 = arith.constant dense<0.000000e+00> : vector<576x128xf32>
    %27 = tpu.matmul %24, %26, %cst_15 {dimension_numbers = #tpu.dot_dimension_numbers<[1], [0], [0], [1], [0, 0, 1, 1], [], []>} : vector<576x384xbf16>, vector<384x128xbf16>, vector<576x128xf32> -> vector<576x128xf32>
    %28 = arith.addf %22, %27 : vector<576x128xf32>
    %c0_16 = arith.constant 0 : index
    %c0_17 = arith.constant 0 : index
    %29 = vector.load %arg5[%c0_16, %c0_17] : memref<1x128xf32, #tpu.memory_space<vmem>>, vector<1x128xf32>
    %30 = vector.broadcast %29 : vector<1x128xf32> to vector<576x128xf32>
    %31 = arith.addf %28, %30 : vector<576x128xf32>
    %cst_18 = arith.constant 0.000000e+00 : f32
    %32 = vector.broadcast %cst_18 : f32 to vector<576x128xf32>
    %33 = arith.maximumf %31, %32 : vector<576x128xf32>
    %34 = vector.shape_cast %33 : vector<576x128xf32> to vector<18x32x128xf32>
    %c1_i32_19 = arith.constant 1 : i32
    %35 = arith.subi %0, %c1_i32_19 : i32
    %36 = tpu.iota {dimensions = array<i32: 0>} : vector<18x32x1xi32>
    %37 = vector.broadcast %35 : i32 to vector<18x32x1xi32>
    %38 = arith.addi %37, %36 : vector<18x32x1xi32>
    %39 = tpu.iota {dimensions = array<i32: 1>} : vector<18x32x1xi32>
    %c0_i32 = arith.constant 0 : i32
    %40 = vector.broadcast %c0_i32 : i32 to vector<18x32x1xi32>
    %41 = arith.cmpi sge, %38, %40 : vector<18x32x1xi32>
    %c16_i32_20 = arith.constant 16 : i32
    %42 = vector.broadcast %c16_i32_20 : i32 to vector<18x32x1xi32>
    %43 = arith.cmpi slt, %38, %42 : vector<18x32x1xi32>
    %44 = arith.andi %41, %43 : vector<18x32x1xi1>
    %c16_i32_21 = arith.constant 16 : i32
    %45 = vector.broadcast %c16_i32_21 : i32 to vector<18x32x1xi32>
    %46 = arith.cmpi slt, %39, %45 : vector<18x32x1xi32>
    %47 = arith.andi %44, %46 : vector<18x32x1xi1>
    %cst_22 = arith.constant 0.000000e+00 : f32
    %48 = vector.shape_cast %47 : vector<18x32x1xi1> to vector<18x32x1xi1>
    %49 = vector.broadcast %48 : vector<18x32x1xi1> to vector<18x32x128xi1>
    %50 = vector.broadcast %cst_22 : f32 to vector<18x32x128xf32>
    %51 = arith.select %49, %34, %50 : vector<18x32x128xi1>, vector<18x32x128xf32>
    %52 = arith.truncf %51 : vector<18x32x128xf32> to vector<18x32x128xbf16>
    %c1_i32_23 = arith.constant 1 : i32
    %53 = tpu.dynamic_rotate %51 by %c1_i32_23 dim 1 : vector<18x32x128xf32>, i32 -> vector<18x32x128xf32>
    %54 = arith.truncf %53 : vector<18x32x128xf32> to vector<18x32x128xbf16>
    %c31_i32_24 = arith.constant 31 : i32
    %55 = tpu.dynamic_rotate %51 by %c31_i32_24 dim 1 : vector<18x32x128xf32>, i32 -> vector<18x32x128xf32>
    %56 = arith.truncf %55 : vector<18x32x128xf32> to vector<18x32x128xbf16>
    %57 = tpu.concatenate %54, %52, %56 in 2 : vector<18x32x128xbf16>, vector<18x32x128xbf16>, vector<18x32x128xbf16> -> vector<18x32x384xbf16>
    %58 = vector.extract_strided_slice %57 {offsets = [0, 0, 0], sizes = [16, 32, 384], strides = [1, 1, 1]} : vector<18x32x384xbf16> to vector<16x32x384xbf16>
    %59 = vector.shape_cast %58 : vector<16x32x384xbf16> to vector<512x384xbf16>
    %c0_25 = arith.constant 0 : index
    %c0_26 = arith.constant 0 : index
    %c0_27 = arith.constant 0 : index
    %60 = vector.load %arg6[%c0_25, %c0_26, %c0_27] : memref<3x384x128xbf16, #tpu.memory_space<vmem>>, vector<1x384x128xbf16>
    %61 = vector.shape_cast %60 : vector<1x384x128xbf16> to vector<384x128xbf16>
    %cst_28 = arith.constant dense<0.000000e+00> : vector<512x128xf32>
    %62 = tpu.matmul %59, %61, %cst_28 {dimension_numbers = #tpu.dot_dimension_numbers<[1], [0], [0], [1], [0, 0, 1, 1], [], []>} : vector<512x384xbf16>, vector<384x128xbf16>, vector<512x128xf32> -> vector<512x128xf32>
    %63 = vector.extract_strided_slice %57 {offsets = [1, 0, 0], sizes = [16, 32, 384], strides = [1, 1, 1]} : vector<18x32x384xbf16> to vector<16x32x384xbf16>
    %64 = vector.shape_cast %63 : vector<16x32x384xbf16> to vector<512x384xbf16>
    %c1_29 = arith.constant 1 : index
    %c0_30 = arith.constant 0 : index
    %c0_31 = arith.constant 0 : index
    %65 = vector.load %arg6[%c1_29, %c0_30, %c0_31] : memref<3x384x128xbf16, #tpu.memory_space<vmem>>, vector<1x384x128xbf16>
    %66 = vector.shape_cast %65 : vector<1x384x128xbf16> to vector<384x128xbf16>
    %cst_32 = arith.constant dense<0.000000e+00> : vector<512x128xf32>
    %67 = tpu.matmul %64, %66, %cst_32 {dimension_numbers = #tpu.dot_dimension_numbers<[1], [0], [0], [1], [0, 0, 1, 1], [], []>} : vector<512x384xbf16>, vector<384x128xbf16>, vector<512x128xf32> -> vector<512x128xf32>
    %68 = arith.addf %62, %67 : vector<512x128xf32>
    %69 = vector.extract_strided_slice %57 {offsets = [2, 0, 0], sizes = [16, 32, 384], strides = [1, 1, 1]} : vector<18x32x384xbf16> to vector<16x32x384xbf16>
    %70 = vector.shape_cast %69 : vector<16x32x384xbf16> to vector<512x384xbf16>
    %c2_33 = arith.constant 2 : index
    %c0_34 = arith.constant 0 : index
    %c0_35 = arith.constant 0 : index
    %71 = vector.load %arg6[%c2_33, %c0_34, %c0_35] : memref<3x384x128xbf16, #tpu.memory_space<vmem>>, vector<1x384x128xbf16>
    %72 = vector.shape_cast %71 : vector<1x384x128xbf16> to vector<384x128xbf16>
    %cst_36 = arith.constant dense<0.000000e+00> : vector<512x128xf32>
    %73 = tpu.matmul %70, %72, %cst_36 {dimension_numbers = #tpu.dot_dimension_numbers<[1], [0], [0], [1], [0, 0, 1, 1], [], []>} : vector<512x384xbf16>, vector<384x128xbf16>, vector<512x128xf32> -> vector<512x128xf32>
    %74 = arith.addf %68, %73 : vector<512x128xf32>
    %c0_37 = arith.constant 0 : index
    %c0_38 = arith.constant 0 : index
    %75 = vector.load %arg7[%c0_37, %c0_38] : memref<1x128xf32, #tpu.memory_space<vmem>>, vector<1x128xf32>
    %76 = vector.broadcast %75 : vector<1x128xf32> to vector<512x128xf32>
    %77 = arith.addf %74, %76 : vector<512x128xf32>
    %78 = vector.extract_strided_slice %5 {offsets = [2, 0, 0], sizes = [16, 32, 128], strides = [1, 1, 1]} : vector<20x32x128xbf16> to vector<16x32x128xbf16>
    %79 = vector.shape_cast %78 : vector<16x32x128xbf16> to vector<512x128xbf16>
    %c0_39 = arith.constant 0 : index
    %c0_40 = arith.constant 0 : index
    %80 = vector.load %arg8[%c0_39, %c0_40] : memref<128x128xbf16, #tpu.memory_space<vmem>>, vector<128x128xbf16>
    %cst_41 = arith.constant dense<0.000000e+00> : vector<512x128xf32>
    %81 = tpu.matmul %79, %80, %cst_41 {dimension_numbers = #tpu.dot_dimension_numbers<[1], [0], [0], [1], [0, 0, 1, 1], [], []>} : vector<512x128xbf16>, vector<128x128xbf16>, vector<512x128xf32> -> vector<512x128xf32>
    %82 = arith.addf %77, %81 : vector<512x128xf32>
    %cst_42 = arith.constant 0.000000e+00 : f32
    %83 = vector.broadcast %cst_42 : f32 to vector<512x128xf32>
    %84 = arith.maximumf %82, %83 : vector<512x128xf32>
    %85 = arith.truncf %84 : vector<512x128xf32> to vector<512x128xbf16>
    %86 = vector.shape_cast %85 : vector<512x128xbf16> to vector<16x32x128xbf16>
    %c0_43 = arith.constant 0 : index
    %c0_44 = arith.constant 0 : index
    %c0_45 = arith.constant 0 : index
    %c0_46 = arith.constant 0 : index
    %87 = vector.load %arg9[%c0_43, %c0_44, %c0_45, %c0_46] : memref<1x16x32x128xbf16, #tpu.memory_space<vmem>>, vector<1x16x32x128xbf16>
    %88 = vector.shape_cast %87 : vector<1x16x32x128xbf16> to vector<16x32x128xbf16>
    %89 = vector.shape_cast %86 : vector<16x32x128xbf16> to vector<1x16x32x128xbf16>
    tpu.vector_store %arg9[%c0_43, %c0_44, %c0_45, %c0_46], %89 {strides = array<i32>} : memref<1x16x32x128xbf16, #tpu.memory_space<vmem>>, vector<1x16x32x128xbf16>,
    return
  }
  func.func @transform_0(%arg0: i32, %arg1: i32) -> (i32, i32, i32, i32) {
    %c0_i32 = arith.constant 0 : i32
    %c0_i32_0 = arith.constant 0 : i32
    %c0_i32_1 = arith.constant 0 : i32
    return %arg0, %arg1, %c0_i32, %c0_i32_0 : i32, i32, i32, i32
  }
  func.func @transform_1(%arg0: i32, %arg1: i32) -> (i32, i32, i32, i32) {
    %c1_i32 = arith.constant 1 : i32
    %0 = arith.addi %arg1, %c1_i32 : i32
    %c4_i32 = arith.constant 4 : i32
    %1 = arith.muli %0, %c4_i32 : i32
    %c0_i32 = arith.constant 0 : i32
    %c0_i32_0 = arith.constant 0 : i32
    %c0_i32_1 = arith.constant 0 : i32
    return %arg0, %1, %c0_i32, %c0_i32_0 : i32, i32, i32, i32
  }
  func.func @transform_2(%arg0: i32, %arg1: i32) -> (i32, i32, i32) {
    %c0_i32 = arith.constant 0 : i32
    %c0_i32_0 = arith.constant 0 : i32
    %c0_i32_1 = arith.constant 0 : i32
    %c0_i32_2 = arith.constant 0 : i32
    return %c0_i32, %c0_i32_0, %c0_i32_1 : i32, i32, i32
  }
  func.func @transform_3(%arg0: i32, %arg1: i32) -> (i32, i32) {
    %c0_i32 = arith.constant 0 : i32
    %c0_i32_0 = arith.constant 0 : i32
    %c0_i32_1 = arith.constant 0 : i32
    return %c0_i32, %c0_i32_0 : i32, i32
  }
  func.func @transform_4(%arg0: i32, %arg1: i32) -> (i32, i32, i32) {
    %c0_i32 = arith.constant 0 : i32
    %c0_i32_0 = arith.constant 0 : i32
    %c0_i32_1 = arith.constant 0 : i32
    %c0_i32_2 = arith.constant 0 : i32
    return %c0_i32, %c0_i32_0, %c0_i32_1 : i32, i32, i32
  }
  func.func @transform_5(%arg0: i32, %arg1: i32) -> (i32, i32) {
    %c0_i32 = arith.constant 0 : i32
    %c0_i32_0 = arith.constant 0 : i32
    %c0_i32_1 = arith.constant 0 : i32
    return %c0_i32, %c0_i32_0 : i32, i32
  }
  func.func @transform_6(%arg0: i32, %arg1: i32) -> (i32, i32) {
    %c0_i32 = arith.constant 0 : i32
    %c0_i32_0 = arith.constant 0 : i32
    %c0_i32_1 = arith.constant 0 : i32
    return %c0_i32, %c0_i32_0 : i32, i32
  }
  func.func @transform_7(%arg0: i32, %arg1: i32) -> (i32, i32, i32, i32) {
    %c0_i32 = arith.constant 0 : i32
    %c0_i32_0 = arith.constant 0 : i32
    %c0_i32_1 = arith.constant 0 : i32
    return %arg0, %arg1, %c0_i32, %c0_i32_0 : i32, i32, i32, i32
  }
}

</mosaic_0001>

<bundles_post_ra>
// kernel: residual_block_pallas.1
= control target key start
LH: loop header
LB: loop body
LE: loop exit
PB: predicated region body
PF: predicated region fallthrough
CT: control target
= control target key end

     0   :  { %s10026_s24 = smov 0   ;;  %s10028_s25 = smov 0   ;;  %s14621_s0 = inlined_call_operand.vmem [shape: bf16[2,20,32,128], index: 0, kind: input, shape index: {}, may-alias: {0,1}]   ;;  %s14622_s1 = inlined_call_operand.vmem [shape: bf16[2,20,32,128], index: 1, kind: input, shape index: {}, may-alias: {0,1}]   ;;  %s14623_s2 = inlined_call_operand.vmem [shape: bf16[3,384,128], index: 2, kind: input, shape index: {}]   ;;  %s14624_s3 = inlined_call_operand.vmem [shape: f32[1,128], index: 3, kind: input, shape index: {}]   ;;  %s14625_s4 = inlined_call_operand.vmem [shape: bf16[3,384,128], index: 4, kind: input, shape index: {}]   ;;  %s14626_s5 = inlined_call_operand.vmem [shape: f32[1,128], index: 5, kind: input, shape index: {}]   ;;  %s14627_s6 = inlined_call_operand.vmem [shape: bf16[128,128], index: 6, kind: input, shape index: {}]   ;;  %s14628_s7 = inlined_call_operand.vmem [shape: bf16[2,16,32,128], index: 7, kind: output, shape index: {}]  }
   0x1   :  { %s10030_s26 = smov 0  }
   0x2 LB: > { %s29_s27 = sadd.s32 1, %s9977_s25  ;;  %p8067_p0 = scmp.ge.s32.totalorder %s9981_s26, 1  ;;  %s9981_s26 = sphi %s10030_s26, %s17_s26   ;;  %s9977_s25 = sphi %s10028_s25, %s15732_s25   ;;  %s9973_s24 = sphi %s10026_s24, %s15731_s24  }
   0x3   : > { %p31_p1 = scmp.ge.s32.totalorder %s29_s27, 2  ;;  %p295_p2 = scmp.lt.s32.totalorder %s9981_s26, 3 }
   0x5   : > { %s15734_s27 = smov (%p31_p1, %s29_s27), 0  ;;  %p296_p3 = pnand %p8067_p0, %p295_p2 }
   0x7   : > { %299 = sbr.rel (%p296_p3) target bundleno = 1662 (0x67e), region = 48 }
   0xe   : > { %v9704_v0 = vld [vmem:[%s14623_s2 + $0xc0] sm:$0xff]   ;;  %v14658_v1 = vmov 0   ;;  %p360_p4 = scmp.lt.s32.totalorder %s9973_s24, 1  ;;  %v9706_v3 = vld [vmem:[%s14623_s2 + $0xc8] sm:$0xff]   ;;  %v10070_v5 = vld [vmem:[%s14623_s2 + $0x150] sm:$0xff]   ;;  %v643_v9 = vlaneseq }
   0xf   : > { %1448 = vmatprep.subr.bf16.mxu0 %v14658_v1  ;;  %v10051_v2 = vld [vmem:[%s14623_s2 + $0x140] sm:$0xff]   ;;  %v10061_v4 = vld [vmem:[%s14623_s2 + $0x148] sm:$0xff]   ;;  %v9708_v6 = vld [vmem:[%s14623_s2 + $0xd0] sm:$0xff]  }
  0x10   : > { %1449 = vmatpush1.bf16.msra.mxu0 %v9704_v0  ;;  %9658 = vmatprep.subr.bf16.mxu1 %v10051_v2  ;;  %s15736_s24 = smov (!%p360_p4, %s9973_s24), 1  ;;  %v10081_v7 = vld [vmem:[%s14623_s2 + $0x158] sm:$0xff]   ;;  %v10093_v10 = vld [vmem:[%s14623_s2 + $0x160] sm:$0xff]   ;;  %v10105_v12 = vshrl.u32 %v643_v9, 7  ;;  %v10119_v15 = vld [vmem:[%s14623_s2 + $0x168] sm:$0xff]  }
  0x11   : > { %1450 = vmatprep.subr.bf16.mxu0 %v14658_v1  ;;  %9666 = vmatpush3.bf16.msra.mxu1 %v10051_v2  ;;  %s9674_s19 = smul.u32 320, %s15736_s24  ;;  %v9710_v8 = vld [vmem:[%s14623_s2 + $0xd8] sm:$0xff]   ;;  %v9712_v11 = vld [vmem:[%s14623_s2 + $0xe0] sm:$0xff]   ;;  %v9714_v19 = vld [vmem:[%s14623_s2 + $0xe8] sm:$0xff]   ;;  %s8526_s13 = sshll.u32 %s15736_s24, 8 }
  0x12   : > { %9659 = vmatprep.subr.bf16.mxu1 %v10061_v4  ;;  %14946 = vst [vmem:[#allocation2_spill] sm:$0xff] %v10105_v12  ;;  %vm846_vm0 = vcmp.lt.s32.totalorder %v10105_v12, 7  ;;  %v10148_v27 = vld [vmem:[%s14623_s2 + $0x170] sm:$0xff]   ;;  %v10166_v34 = vld [vmem:[%s14623_s2 + $0x178] sm:$0xff]   ;;  %v9720_v52 = vld [vmem:[%s14623_s2 + $0x100] sm:$0xff]   ;;  %vm645_vm1 = vcmp.lt.s32.totalorder %v10105_v12, 1  ;;  %s14368_s16 = scalar_lea.vmem %s14628_s7, %s8526_s13 }
  0x13   : > { %s10100_s30 = scalar_lea.vmem %s14621_s0, %s9674_s19  ;;  %v9716_v32 = vld [vmem:[%s14623_s2 + $0xf0] sm:$0xff]   ;;  %v9718_v40 = vld [vmem:[%s14623_s2 + $0xf8] sm:$0xff]   ;;  %v9726_v57 = vld [vmem:[%s14623_s2] sm:$0xff]   ;;  %s10452_s21 = sadd.s32 256, %s9674_s19 }
  0x14   : > { %1451 = vmatpush1.bf16.msra.mxu0 %v9706_v3  ;;  %v10110_v13 = vld [vmem:[%s10100_s30 + $0x80] sm:$0xff]   ;;  %v10113_v14 = vld [vmem:[%s10100_s30 + $0x88] sm:$0xff]   ;;  %v10129_v20 = vld [vmem:[%s10100_s30 + $0x90] sm:$0xff]   ;;  %s10524_s9 = scalar_lea.vmem %s14622_s1, %s10452_s21 }
  0x15   : > { %1452 = vmatprep.subr.bf16.mxu0 %v14658_v1  ;;  %9667 = vmatpush3.bf16.msra.mxu1 %v10061_v4  ;;  %v14652_v16 = vunpack.c.l.bf16 %v10110_v13  ;;  %v14651_v17 = vunpack.c.h.bf16 %v10110_v13  ;;  %v14649_v18 = vunpack.c.l.bf16 %v10113_v14  ;;  %v10139_v24 = vld [vmem:[%s10100_s30 + $0x98] sm:$0xff]   ;;  %v14650_v25 = vunpack.c.h.bf16 %v10113_v14  ;;  %v10179_v39 = vld [vmem:[%s10100_s30 + $0xa0] sm:$0xff]   ;;  %v10186_v42 = vld [vmem:[%s10100_s30 + $0xa8] sm:$0xff]  }
  0x16   : > { %9660 = vmatprep.subr.bf16.mxu1 %v10070_v5  ;;  %v14648_v26 = vunpack.c.l.bf16 %v10129_v20  ;;  %v14645_v30 = vunpack.c.h.bf16 %v10129_v20  ;;  %v14640_v31 = vunpack.c.l.bf16 %v10139_v24  ;;  %v14641_v41 = vunpack.c.h.bf16 %v10139_v24  ;;  %v10203_v50 = vld [vmem:[%s10100_s30 + $0x10] sm:$0xff]   ;;  %v10206_v51 = vld [vmem:[%s10100_s30 + $0x18] sm:$0xff]   ;;  %v9721_v0 = vld [vmem:[%s14623_s2 + $0x108] sm:$0xff]  }
  0x17   : > { %v774_v21 = vrot.slane %v14652_v16, 1  ;;  %v794_v22 = vrot.slane %v14651_v17, 1  ;;  %v814_v23 = vrot.slane %v14649_v18, 1  ;;  %v834_v35 = vrot.slane %v14650_v25, 1  ;;  %v10232_v62 = vld [vmem:[%s10100_s30 + $0xb0] sm:$0xff]   ;;  %v10235_v63 = vld [vmem:[%s10100_s30 + $0xb8] sm:$0xff]   ;;  %1480 = vmatprep.mubr.bf16.mxu0 %v10203_v50 }
  0x18   : > { %1453 = vmatpush1.bf16.msra.mxu0 %v9708_v6  ;;  %v775_v36 = vrot.slane %v14648_v26, 1  ;;  %v795_v37 = vrot.slane %v14645_v30, 1  ;;  %v815_v38 = vrot.slane %v14640_v31, 1  ;;  %v14639_v45 = vunpack.c.l.bf16 %v10179_v39  ;;  %v10388_v31 = vld [vmem:[%s10100_s30 + $0xe0] sm:$0xff]   ;;  %v10434_v26 = vld [vmem:[%s10100_s30 + $0x28] sm:$0xff]  }
  0x19   : > { %1454 = vmatprep.subr.bf16.mxu0 %v14658_v1  ;;  %9668 = vmatpush3.bf16.msra.mxu1 %v10070_v5  ;;  %v875_v28 = vsel %vm846_vm0, %v794_v22, %v814_v23  ;;  %v895_v29 = vsel %vm846_vm0, %v774_v21, %v794_v22  ;;  %v855_v43 = vsel %vm846_vm0, %v814_v23, %v834_v35  ;;  %v14638_v48 = vunpack.c.h.bf16 %v10179_v39  ;;  %v9728_v22 = vld [vmem:[%s14623_s2 + $0x8] sm:$0xff]  }
  0x1a   : > { %9661 = vmatprep.subr.bf16.mxu1 %v10081_v7  ;;  %v10159_v33 = vpack.c.bf16 %v875_v28, %v895_v29  ;;  %v915_v44 = vsel %vm846_vm0, %v834_v35, %v774_v21  ;;  %v876_v46 = vsel %vm846_vm0, %v795_v37, %v815_v38  ;;  %v896_v47 = vsel %vm846_vm0, %v775_v36, %v795_v37 }
  0x1b   : > { %v14632_v49 = vunpack.c.l.bf16 %v10186_v42  ;;  %v835_v53 = vrot.slane %v14641_v41, 1  ;;  %v10214_v54 = vpack.c.bf16 %v915_v44, %v855_v43  ;;  %v10217_v55 = vpack.c.bf16 %v876_v46, %v896_v47  ;;  %v9731_v47 = vld [vmem:[%s14623_s2 + $0x10] sm:$0xff]   ;;  %14957 = vst [vmem:[#allocation13_spill] sm:$0xff] %v10434_v26 }
  0x1c   : > { %1455 = vmatpush1.bf16.msra.mxu0 %v9710_v8  ;;  %14947 = vst [vmem:[#allocation3_spill] sm:$0xff] %v10159_v33  ;;  %9118 = vmatprep.mubr.bf16.mxu1 %v10159_v33  ;;  %v776_v56 = vrot.slane %v14639_v45, 1  ;;  %v487_v58 = vunpack.c.l.bf16 %v10203_v50  ;;  %v490_v59 = vunpack.c.h.bf16 %v10206_v51  ;;  %v796_v60 = vrot.slane %v14638_v48, 1  ;;  %v9727_v48 = vld [vmem:[%s14623_s2 + $0x130] sm:$0xff]  }
  0x1d   : > { %1456 = vmatprep.subr.bf16.mxu0 %v14658_v1  ;;  %9669 = vmatpush3.bf16.msra.mxu1 %v10081_v7  ;;  %14948 = vst [vmem:[#allocation4_spill] sm:$0xff] %v10214_v54  ;;  %14949 = vst [vmem:[#allocation5_spill] sm:$0xff] %v10217_v55  ;;  %v816_v61 = vrot.slane %v14632_v49, 1  ;;  %v856_v8 = vsel %vm846_vm0, %v815_v38, %v835_v53  ;;  %v916_v9 = vsel %vm846_vm0, %v835_v53, %v775_v36  ;;  %v9722_v36 = vld [vmem:[%s14623_s2 + $0x110] sm:$0xff]   ;;  %v9723_v53 = vld [vmem:[%s14623_s2 + $0x118] sm:$0xff]  }
  0x1e   : > { %9662 = vmatprep.subr.bf16.mxu1 %v10093_v10  ;;  %v10243_v3 = vrot.slane %v487_v58, 1  ;;  %v827_v6 = vrot.slane %v490_v59, 1  ;;  %v14629_v21 = vunpack.c.l.bf16 %v10235_v63  ;;  %v489_v28 = vunpack.c.l.bf16 %v10206_v51 }
  0x1f   : > { %v877_v29 = vsel %vm846_vm0, %v796_v60, %v816_v61  ;;  %v14631_v35 = vunpack.c.l.bf16 %v10232_v62  ;;  %v10280_v38 = vpack.c.bf16 %v916_v9, %v856_v8  ;;  %v14654_v30 = vunpack.c.l.bf16 %v10388_v31 }
  0x20   : > { %1457 = vmatpush1.bf16.msra.mxu0 %v9712_v11  ;;  %v14637_v11 = vunpack.c.h.bf16 %v10186_v42  ;;  %v10263_v23 = vsel %vm846_vm0, %v827_v6, %v10243_v3  ;;  %v10277_v37 = vrot.slane %v489_v28, 1  ;;  %v817_v46 = vrot.slane %v14629_v21, 1  ;;  %v10336_v21 = vld [vmem:[%s10100_s30 + $0xd0] sm:$0xff]  }
  0x21   : > { %1458 = vmatprep.subr.bf16.mxu0 %v14658_v1  ;;  %9670 = vmatpush3.bf16.msra.mxu1 %v10093_v10  ;;  %14950 = vst [vmem:[#allocation6_spill] sm:$0xff] %v10280_v38  ;;  %v14657_v25 = vunpack.c.h.bf16 %v10388_v31  ;;  %v10460_v17 = vrot.slane %v14654_v30, 1 }
  0x22   : > { %9663 = vmatprep.subr.bf16.mxu1 %v10119_v15 }
  0x24   : > { %1459 = vmatpush1.bf16.msra.mxu0 %v9714_v19  ;;  %v14630_v19 = vunpack.c.h.bf16 %v10232_v62 }
  0x25   : > { %1460 = vmatprep.subr.bf16.mxu0 %v14658_v1  ;;  %9671 = vmatpush3.bf16.msra.mxu1 %v10119_v15 }
  0x26   : > { %9664 = vmatprep.subr.bf16.mxu1 %v10148_v27  ;;  %v797_v44 = vrot.slane %v14630_v19, 1 }
  0x28   : > { %1461 = vmatpush1.bf16.msra.mxu0 %v9716_v32  ;;  %v897_v32 = vsel %vm846_vm0, %v776_v56, %v796_v60  ;;  %v10305_v60 = vld [vmem:[%s10100_s30 + $0xc0] sm:$0xff]   ;;  %v878_v9 = vsel %vm846_vm0, %v797_v44, %v817_v46 }
  0x29   : > { %1462 = vmatprep.subr.bf16.mxu0 %v14658_v1  ;;  %9672 = vmatpush3.bf16.msra.mxu1 %v10148_v27  ;;  %v10284_v43 = vpack.c.bf16 %v877_v29, %v897_v32  ;;  %v9732_v29 = vld [vmem:[%s14623_s2 + $0x18] sm:$0xff]  }
  0x2a   : > { %9665 = vmatprep.subr.bf16.mxu1 %v10166_v34 }
  0x2b   : > { %14951 = vst [vmem:[#allocation7_spill] sm:$0xff] %v10284_v43 }
  0x2c   : > { %1463 = vmatpush1.bf16.msra.mxu0 %v9718_v40  ;;  %v836_v40 = vrot.slane %v14637_v11, 1  ;;  %v9735_v11 = vld [vmem:[%s14623_s2 + $0x28] sm:$0xff]  }
  0x2d   : > { %1464 = vmatprep.subr.bf16.mxu0 %v14658_v1  ;;  %9673 = vmatpush3.bf16.msra.mxu1 %v10166_v34 }
  0x2e   : > { %2234 = vmatprep.subr.bf16.mxu1 %v14658_v1  ;;  %v917_v8 = vsel %vm846_vm0, %v836_v40, %v776_v56 }
  0x30   : > { %1465 = vmatpush1.bf16.msra.mxu0 %v9720_v52  ;;  %9119 = vmatmul.mubr.bf16.vlgmr.msra.gmra.mrb[0].mxu1 %v10214_v54  ;;  %v10296_v52 = vsel %vm846_vm0, %v10277_v37, %v827_v6  ;;  %v857_v6 = vsel %vm846_vm0, %v816_v61, %v836_v40  ;;  %v14633_v61 = vunpack.c.h.bf16 %v10305_v60  ;;  %v9724_v40 = vld [vmem:[%s14623_s2 + $0x120] sm:$0xff]  }
  0x31   : > { %1466 = vmatprep.subr.bf16.mxu0 %v14658_v1  ;;  %9122 = vmatprep.mubr.bf16.mxu1 %v10217_v55 }
  0x32   : > { %2235 = vmatpush1.bf16.msra.mxu1 %v9726_v57  ;;  %v777_v57 = vrot.slane %v14631_v35, 1  ;;  %v798_v49 = vrot.slane %v14633_v61, 1  ;;  %v14643_v61 = vunpack.c.l.bf16 %v10336_v21 }
  0x33   : > { %2236 = vmatprep.subr.bf16.mxu1 %v14658_v1 }
  0x34   : > { %1467 = vmatpush1.bf16.msra.mxu0 %v9721_v0  ;;  %v10308_v0 = vld [vmem:[%s10100_s30 + $0xc8] sm:$0xff]   ;;  %v898_v32 = vsel %vm846_vm0, %v777_v57, %v797_v44 }
  0x35   : > { %1468 = vmatprep.subr.bf16.mxu0 %v14658_v1  ;;  %v14634_v56 = vunpack.c.l.bf16 %v10308_v0  ;;  %v10338_v44 = vpack.c.bf16 %v878_v9, %v898_v32  ;;  %v9725_v9 = vld [vmem:[%s14623_s2 + $0x128] sm:$0xff]   ;;  %v14642_v32 = vunpack.c.h.bf16 %v10308_v0 }
  0x36   : > { %2237 = vmatpush1.bf16.msra.mxu1 %v9728_v22  ;;  %v14636_v22 = vunpack.c.h.bf16 %v10235_v63 }
  0x37   : > { %2238 = vmatprep.subr.bf16.mxu1 %v14658_v1  ;;  %14953 = vst [vmem:[#allocation9_spill] sm:$0xff] %v10338_v44 }
  0x38   : > { %1469 = vmatpush1.bf16.msra.mxu0 %v9722_v36  ;;  %9123 = vmatmul.mubr.bf16.gmra.mrb[4].mxu1 %v10280_v38  ;;  %v14635_v36 = vunpack.c.l.bf16 %v10305_v60  ;;  %v837_v19 = vrot.slane %v14636_v22, 1 }
  0x39   : > { %1470 = vmatprep.subr.bf16.mxu0 %v14658_v1  ;;  %9126 = vmatprep.mubr.bf16.mxu1 %v10284_v43 }
  0x3a   : > { %2239 = vmatpush1.bf16.msra.mxu1 %v9731_v47  ;;  %v10333_v47 = vpack.c.bf16 %v917_v8, %v857_v6  ;;  %v778_v35 = vrot.slane %v14635_v36, 1  ;;  %v818_v6 = vrot.slane %v14634_v56, 1  ;;  %v10352_v8 = vld [vmem:[%s10100_s30 + $0xd8] sm:$0xff]   ;;  %v918_v56 = vsel %vm846_vm0, %v837_v19, %v777_v57 }
  0x3b   : > { %2240 = vmatprep.subr.bf16.mxu1 %v14658_v1  ;;  %v14646_v36 = vunpack.c.h.bf16 %v10336_v21  ;;  %v14647_v22 = vunpack.c.l.bf16 %v10352_v8 }
  0x3c   : > { %1471 = vmatpush1.bf16.msra.mxu0 %v9723_v53  ;;  %14952 = vst [vmem:[#allocation8_spill] sm:$0xff] %v10333_v47  ;;  %v9734_v53 = vld [vmem:[%s14623_s2 + $0x20] sm:$0xff]   ;;  %v879_v45 = vsel %vm846_vm0, %v798_v49, %v818_v6 }
  0x3d   : > { %1472 = vmatprep.subr.bf16.mxu0 %v14658_v1 }
  0x3e   : > { %2241 = vmatpush1.bf16.msra.mxu1 %v9732_v29  ;;  %v14644_v29 = vunpack.c.h.bf16 %v10203_v50 }
  0x3f   : > { %2242 = vmatprep.subr.bf16.mxu1 %v14658_v1 }
  0x40   : > { %1473 = vmatpush1.bf16.msra.mxu0 %v9724_v40  ;;  %9127 = vmatmul.mubr.bf16.gmra.mrb[8].mxu1 %v10333_v47  ;;  %v858_v40 = vsel %vm846_vm0, %v817_v46, %v837_v19  ;;  %v899_v46 = vsel %vm846_vm0, %v778_v35, %v798_v49  ;;  %v564_v19 = vrot.slane %v487_v58, 7  ;;  %v584_v57 = vrot.slane %v14644_v29, 7  ;;  %v10414_v29 = vld [vmem:[%s10100_s30 + $0xe8] sm:$0xff]  }
  0x41   : > { %1474 = vmatprep.subr.bf16.mxu0 %v14658_v1  ;;  %9130 = vmatprep.mubr.bf16.mxu1 %v10338_v44  ;;  %v10391_v41 = vpack.c.bf16 %v918_v56, %v858_v40  ;;  %v838_v49 = vrot.slane %v14642_v32, 1  ;;  %v10398_v58 = vrot.slane %v14643_v61, 1  ;;  %v10406_v56 = vpack.c.bf16 %v879_v45, %v899_v46  ;;  %v10581_v44 = vld [vmem:[%s10100_s30 + $0x30] sm:$0xff]  }
  0x42   : > { %2243 = vmatpush1.bf16.msra.mxu1 %v9734_v53  ;;  %v624_v53 = vrot.slane %v490_v59, 7  ;;  %v9737_v59 = vld [vmem:[%s14623_s2 + $0x30] sm:$0xff]   ;;  %v799_v40 = vrot.slane %v14646_v36, 1  ;;  %v819_v32 = vrot.slane %v14647_v22, 1  ;;  %v14653_v61 = vunpack.c.h.bf16 %v10352_v8  ;;  %v10423_v36 = vld [vmem:[%s10100_s30 + $0x20] sm:$0xff]   ;;  %14968 = vst [vmem:[#allocation20_spill] sm:$0xff] %v10581_v44 }
  0x43   : > { %2244 = vmatprep.subr.bf16.mxu1 %v14658_v1  ;;  %14954 = vst [vmem:[#allocation10_spill] sm:$0xff] %v10391_v41  ;;  %14955 = vst [vmem:[#allocation11_spill] sm:$0xff] %v10406_v56  ;;  %v687_v45 = vsel %vm645_vm1, %v564_v19, %v584_v57  ;;  %v604_v22 = vrot.slane %v489_v28, 7  ;;  %v9738_v28 = vld [vmem:[%s14623_s2 + $0x38] sm:$0xff]   ;;  %v14960_v30 = vunpack.c.l.bf16 %v10414_v29 }
  0x44   : > { %1475 = vmatpush1.bf16.msra.mxu0 %v9725_v9  ;;  %v9729_v9 = vld [vmem:[%s14623_s2 + $0x138] sm:$0xff]   ;;  %v707_v46 = vsel %vm645_vm1, %v624_v53, %v564_v19  ;;  %14956 = vst [vmem:[#allocation12_spill] sm:$0xff] %v10423_v36  ;;  %v880_v19 = vsel %vm846_vm0, %v799_v40, %v819_v32  ;;  %v900_v18 = vsel %vm846_vm0, %v10398_v58, %v799_v40  ;;  %v839_v40 = vrot.slane %v14653_v61, 1 }
  0x45   : > { %1476 = vmatprep.subr.bf16.mxu0 %v14658_v1  ;;  %v10466_v16 = vpack.c.bf16 %v880_v19, %v900_v18  ;;  %v800_v61 = vrot.slane %v14657_v25, 1  ;;  %v667_v19 = vsel %vm645_vm1, %v584_v57, %v604_v22 }
  0x46   : > { %2245 = vmatpush1.bf16.msra.mxu1 %v9735_v11  ;;  %v859_v11 = vsel %vm846_vm0, %v818_v6, %v838_v49  ;;  %v14662_v6 = vunpack.c.l.bf16 %v10423_v36  ;;  %v860_v57 = vsel %vm846_vm0, %v819_v32, %v839_v40 }
  0x47   : > { %2246 = vmatprep.subr.bf16.mxu1 %v14658_v1  ;;  %14959 = vst [vmem:[#allocation15_spill] sm:$0xff] %v10466_v16 }
  0x48   : > { %1477 = vmatpush1.bf16.msra.mxu0 %v9727_v48  ;;  %9131 = vmatmul.mubr.bf16.gmra.mrb[12].mxu1 %v10391_v41  ;;  %v919_v48 = vsel %vm846_vm0, %v838_v49, %v778_v35  ;;  %v10448_v35 = vld [vmem:[%s10100_s30 + $0xf0] sm:$0xff]   ;;  %v10454_v49 = vpack.c.bf16 %v687_v45, %v707_v46  ;;  %v14660_v45 = vunpack.c.h.bf16 %v10423_v36  ;;  %v14661_v46 = vunpack.c.h.bf16 %v10434_v26 }
  0x49   : > { %1478 = vmatprep.subr.bf16.mxu0 %v14658_v1  ;;  %9134 = vmatprep.mubr.bf16.mxu1 %v10406_v56  ;;  %v820_v56 = vrot.slane %v14960_v30, 1  ;;  %v14664_v18 = vunpack.c.l.bf16 %v10448_v35  ;;  %v647_v30 = vsel %vm645_vm1, %v604_v22, %v624_v53  ;;  %v565_v25 = vrot.slane %v14662_v6, 7  ;;  %v9741_v22 = vld [vmem:[%s14623_s2 + $0x48] sm:$0xff]  }
  0x4a   : > { %2247 = vmatpush1.bf16.msra.mxu1 %v9737_v59  ;;  %v10463_v59 = vpack.c.bf16 %v919_v48, %v859_v11  ;;  %v10477_v11 = vld [vmem:[%s10100_s30 + $0xf8] sm:$0xff]   ;;  %v9740_v48 = vld [vmem:[%s14623_s2 + $0x40] sm:$0xff]   ;;  %v10526_v32 = vpack.c.bf16 %v647_v30, %v667_v19  ;;  %v9743_v30 = vld [vmem:[%s14623_s2 + $0x50] sm:$0xff]  }
  0x4b   : > { %2248 = vmatprep.subr.bf16.mxu1 %v14658_v1  ;;  %v10518_v6 = vrot.slane %v14664_v18, 1  ;;  %v10542_v19 = vld [vmem:[%s10100_s30] sm:$0xff]  }
  0x4c   : > { %1479 = vmatpush1.bf16.msra.mxu0 %v9729_v9  ;;  %14958 = vst [vmem:[#allocation14_spill] sm:$0xff] %v10463_v59  ;;  %v14663_v9 = vunpack.c.h.bf16 %v10414_v29 }
  0x4d   : > { %9074 = vmatprep.subr.bf16.mxu0 %v10051_v2 }
  0x4e   : > { %2249 = vmatpush1.bf16.msra.mxu1 %v9738_v28  ;;  %v14669_v28 = vunpack.c.h.bf16 %v10448_v35 }
  0x4f   : > { %1481 = vmatmul.mubr.bf16.vlgmr.msra.gmra.mrb[0].mxu0 %v10454_v49  ;;  %2250 = vmatprep.subr.bf16.mxu1 %v14658_v1  ;;  %v10497_v1 = vrot.slane %v14660_v45, 7  ;;  %v920_v45 = vsel %vm846_vm0, %v839_v40, %v10398_v58  ;;  %v881_v58 = vsel %vm846_vm0, %v800_v61, %v820_v56  ;;  %v901_v40 = vsel %vm846_vm0, %v10460_v17, %v800_v61 }
  0x50   : > { %9075 = vmatpush3.bf16.msra.mxu0 %v10051_v2  ;;  %1488 = vmatprep.mubr.bf16.mxu0 %v10206_v51  ;;  %v10501_v2 = vrot.slane %v14661_v46, 7  ;;  %v840_v46 = vrot.slane %v14663_v9, 1  ;;  %v14961_v9 = vmov 0   ;;  %v10544_v53 = vpack.c.bf16 %v920_v45, %v860_v57  ;;  %v10568_v57 = vld [vmem:[%s10524_s9 + $0x8] sm:$0xff]  }
  0x51   : > { %9135 = vmatmul.mubr.bf16.gmra.mrb[16].mxu1 %v10463_v59  ;;  %9076 = vmatprep.subr.bf16.mxu0 %v10061_v4  ;;  %v14963_v61 = vunpack.c.l.bf16 %v10477_v11  ;;  %v10552_v59 = vld [vmem:[%s10524_s9] sm:$0xff]   ;;  %v10558_v41 = vpack.c.bf16 %v881_v58, %v901_v40  ;;  %14966 = vst [vmem:[#allocation19_spill] sm:$0xff] %v10568_v57  ;;  %v14967_v40 = vunpack.c.l.bf16 %v10434_v26 }
  0x52   : > { %9138 = vmatprep.mubr.bf16.mxu1 %v10466_v16  ;;  %2251 = vmatpush1.bf16.msra.mxu1 %v9740_v48  ;;  %v801_v48 = vrot.slane %v14669_v28, 1  ;;  %14962 = vst [vmem:[#allocation16_spill] sm:$0xff] %v10544_v53  ;;  %14964 = vst [vmem:[#allocation17_spill] sm:$0xff] %v10552_v59  ;;  %v10555_v28 = vld [vmem:[%s10100_s30 + $0x8] sm:$0xff]   ;;  %v708_v45 = vsel %vm645_vm1, %v10501_v2, %v565_v25  ;;  %v921_v58 = vsel %vm846_vm0, %v840_v46, %v10460_v17 }
  0x53   : > { %2252 = vmatprep.subr.bf16.mxu1 %v14961_v9  ;;  %v10548_v16 = vrot.slane %v14963_v61, 1  ;;  %14965 = vst [vmem:[#allocation18_spill] sm:$0xff] %v10558_v41  ;;  %v14682_v61 = vunpack.c.l.bf16 %v10542_v19  ;;  %v605_v18 = vrot.slane %v14967_v40, 7  ;;  %v14978_v43 = vunpack.c.h.bf16 %v10552_v59 }
  0x54   : > { %9077 = vmatpush3.bf16.msra.mxu0 %v10061_v4  ;;  %v688_v4 = vsel %vm645_vm1, %v565_v25, %v10497_v1  ;;  %v10584_v25 = vld [vmem:[%s10100_s30 + $0x38] sm:$0xff]   ;;  %v902_v17 = vsel %vm846_vm0, %v10518_v6, %v801_v48 }
  0x55   : > { %9078 = vmatprep.subr.bf16.mxu0 %v10070_v5  ;;  %14969 = vst [vmem:[#allocation21_spill] sm:$0xff] %v10584_v25  ;;  %v10599_v47 = vrot.slane %v14682_v61, 1  ;;  %v10611_v61 = vpack.c.bf16 %v688_v4, %v708_v45  ;;  %v14980_v45 = vunpack.c.l.bf16 %v10555_v28 }
  0x56   : > { %2253 = vmatpush1.bf16.msra.mxu1 %v9741_v22  ;;  %v861_v22 = vsel %vm846_vm0, %v820_v56, %v840_v46  ;;  %v882_v56 = vsel %vm846_vm0, %v801_v48, %v10548_v16  ;;  %v14970_v46 = vunpack.c.h.bf16 %v10477_v11  ;;  %v9744_v48 = vld [vmem:[%s14623_s2 + $0x58] sm:$0xff]  }
  0x57   : > { %1489 = vmatmul.mubr.bf16.gmra.mrb[4].mxu0 %v10526_v32  ;;  %2254 = vmatprep.subr.bf16.mxu1 %v14961_v9  ;;  %v10614_v55 = vpack.c.bf16 %v921_v58, %v861_v22  ;;  %v9746_v58 = vld [vmem:[%s14623_s2 + $0x60] sm:$0xff]   ;;  %v10646_v4 = vrot.slane %v14980_v45, 1 }
  0x58   : > { %1496 = vmatprep.mubr.bf16.mxu0 %v10423_v36  ;;  %9079 = vmatpush3.bf16.msra.mxu0 %v10070_v5  ;;  %v841_v40 = vrot.slane %v14970_v46, 1  ;;  %v14971_v46 = vunpack.c.h.bf16 %v10555_v28  ;;  %v10620_v5 = vld [vmem:[%s10524_s9 + $0x18] sm:$0xff]  }
  0x59   : > { %9139 = vmatmul.mubr.bf16.gmra.mrb[20].mxu1 %v10544_v53  ;;  %9080 = vmatprep.subr.bf16.mxu0 %v10081_v7  ;;  %14972 = vst [vmem:[#allocation22_spill] sm:$0xff] %v10614_v55  ;;  %14974 = vst [vmem:[#allocation24_spill] sm:$0xff] %v10620_v5  ;;  %v14977_v53 = vunpack.c.l.bf16 %v10552_v59 }
  0x5a   : > { %9142 = vmatprep.mubr.bf16.mxu1 %v10558_v41  ;;  %2255 = vmatpush1.bf16.msra.mxu1 %v9743_v30  ;;  %v826_v38 = vrot.slane %v14971_v46, 1  ;;  %v10617_v41 = vld [vmem:[%s10524_s9 + $0x10] sm:$0xff]   ;;  %v10629_v46 = vpack.c.bf16 %v882_v56, %v902_v17  ;;  %v14979_v56 = vunpack.c.l.bf16 %v10568_v57 }
  0x5b   : > { %2256 = vmatprep.subr.bf16.mxu1 %v14961_v9  ;;  %14973 = vst [vmem:[#allocation23_spill] sm:$0xff] %v10617_v41  ;;  %v782_v54 = vrot.slane %v14977_v53, 1  ;;  %v648_v53 = vsel %vm645_vm1, %v605_v18, %v10501_v2  ;;  %v14983_v2 = vunpack.c.h.bf16 %v10584_v25 }
  0x5c   : > { %v10625_v30 = vsel %vm846_vm0, %v826_v38, %v10599_v47  ;;  %9081 = vmatpush3.bf16.msra.mxu0 %v10081_v7  ;;  %14976 = vst [vmem:[#allocation26_spill] sm:$0xff] %v10629_v46  ;;  %v802_v7 = vrot.slane %v14978_v43, 1  ;;  %v822_v17 = vrot.slane %v14979_v56, 1  ;;  %v668_v43 = vsel %vm645_vm1, %v10497_v1, %v605_v18  ;;  %v9747_v1 = vld [vmem:[%s14623_s2 + $0x68] sm:$0xff]  }
  0x5d   : > { %14975 = vst [vmem:[#allocation25_spill] sm:$0xff] %v10625_v30  ;;  %9082 = vmatprep.subr.bf16.mxu0 %v10093_v10  ;;  %v10661_v45 = vsel %vm846_vm0, %v10646_v4, %v826_v38  ;;  %v14981_v56 = vunpack.c.l.bf16 %v10581_v44  ;;  %v862_v38 = vsel %vm846_vm0, %v10548_v16, %v841_v40  ;;  %v922_v18 = vsel %vm846_vm0, %v841_v40, %v10518_v6 }
  0x5e   : > { %2257 = vmatpush1.bf16.msra.mxu1 %v9744_v48  ;;  %v626_v48 = vrot.slane %v14983_v2, 7  ;;  %v14984_v6 = vunpack.c.h.bf16 %v10568_v57 }
  0x5f   : > { %1497 = vmatmul.mubr.bf16.gmra.mrb[8].mxu0 %v10611_v61  ;;  %2258 = vmatprep.subr.bf16.mxu1 %v14961_v9  ;;  %v566_v22 = vrot.slane %v14981_v56, 7  ;;  %v14982_v56 = vunpack.c.h.bf16 %v10581_v44 }
  0x60   : > { %1504 = vmatprep.mubr.bf16.mxu0 %v10434_v26  ;;  %9083 = vmatpush3.bf16.msra.mxu0 %v10093_v10  ;;  %v883_v10 = vsel %vm846_vm0, %v802_v7, %v822_v17  ;;  %v842_v40 = vrot.slane %v14984_v6, 1 }
  0x61   : > { %9143 = vmatmul.mubr.bf16.gmra.mrb[24].mxu1 %v10614_v55  ;;  %v586_v33 = vrot.slane %v14982_v56, 7  ;;  %v10683_v55 = vpack.c.bf16 %v648_v53, %v668_v43  ;;  %9084 = vmatprep.subr.bf16.mxu0 %v10119_v15  ;;  %v10697_v53 = vpack.c.bf16 %v922_v18, %v862_v38  ;;  %v14699_v43 = vunpack.c.l.bf16 %v10584_v25 }
  0x62   : > { %9146 = vmatprep.mubr.bf16.mxu1 %v10629_v46  ;;  %2259 = vmatpush1.bf16.msra.mxu1 %v9746_v58  ;;  %v903_v46 = vsel %vm846_vm0, %v782_v54, %v802_v7  ;;  %v9749_v58 = vld [vmem:[%s14623_s2 + $0x70] sm:$0xff]   ;;  %v14986_v7 = vunpack.c.h.bf16 %v10617_v41  ;;  %v14987_v56 = vunpack.c.l.bf16 %v10620_v5  ;;  %v709_v57 = vsel %vm645_vm1, %v626_v48, %v566_v22 }
  0x63   : > { %2260 = vmatprep.subr.bf16.mxu1 %v14961_v9  ;;  %14985 = vst [vmem:[#allocation27_spill] sm:$0xff] %v10697_v53  ;;  %v689_v6 = vsel %vm645_vm1, %v566_v22, %v586_v33  ;;  %v10709_v59 = vpack.c.bf16 %v883_v10, %v903_v46  ;;  %v14989_v38 = vunpack.c.l.bf16 %v10617_v41  ;;  %v606_v22 = vrot.slane %v14699_v43, 7  ;;  %v10743_v43 = vld [vmem:[%s10100_s30 + $0x40] sm:$0xff]  }
  0x64   : > { %v803_v2 = vrot.slane %v14986_v7, 1  ;;  %v823_v16 = vrot.slane %v14987_v56, 1  ;;  %9085 = vmatpush3.bf16.msra.mxu0 %v10119_v15  ;;  %v10716_v7 = vld [vmem:[%s10524_s9 + $0x20] sm:$0xff]   ;;  %v10721_v15 = vld [vmem:[%s10524_s9 + $0x28] sm:$0xff]   ;;  %v10724_v46 = vpack.c.bf16 %v689_v6, %v709_v57  ;;  %v863_v10 = vsel %vm846_vm0, %v822_v17, %v842_v40  ;;  %14993 = vst [vmem:[#allocation32_spill] sm:$0xff] %v10743_v43 }
  0x65   : > { %14988 = vst [vmem:[#allocation28_spill] sm:$0xff] %v10709_v59  ;;  %9086 = vmatprep.subr.bf16.mxu0 %v10148_v27  ;;  %v783_v18 = vrot.slane %v14989_v38, 1  ;;  %14990 = vst [vmem:[#allocation29_spill] sm:$0xff] %v10716_v7  ;;  %v923_v56 = vsel %vm846_vm0, %v842_v40, %v782_v54  ;;  %v14704_v6 = vunpack.c.h.bf16 %v10620_v5  ;;  %v649_v40 = vsel %vm645_vm1, %v606_v22, %v626_v48 }
  0x66   : > { %2261 = vmatpush1.bf16.msra.mxu1 %v9747_v1  ;;  %14991 = vst [vmem:[#allocation30_spill] sm:$0xff] %v10721_v15  ;;  %14992 = vst [vmem:[#allocation31_spill] sm:$0xff] %v10724_v46  ;;  %v9750_v1 = vld [vmem:[%s14623_s2 + $0x78] sm:$0xff]   ;;  %v884_v57 = vsel %vm846_vm0, %v803_v2, %v823_v16  ;;  %v10750_v54 = vpack.c.bf16 %v923_v56, %v863_v10  ;;  %v14710_v48 = vunpack.c.h.bf16 %v10743_v43  ;;  %v14997_v10 = vunpack.c.l.bf16 %v10716_v7 }
  0x67   : > { %1505 = vmatmul.mubr.bf16.gmra.mrb[12].mxu0 %v10683_v55  ;;  %2262 = vmatprep.subr.bf16.mxu1 %v14961_v9  ;;  %v904_v38 = vsel %vm846_vm0, %v783_v18, %v803_v2  ;;  %v669_v2 = vsel %vm645_vm1, %v586_v33, %v606_v22  ;;  %v843_v17 = vrot.slane %v14704_v6, 1  ;;  %v14999_v33 = vunpack.c.l.bf16 %v10721_v15  ;;  %v10788_v6 = vld [vmem:[%s10100_s30 + $0x50] sm:$0xff]  }
  0x68   : > { %1512 = vmatprep.mubr.bf16.mxu0 %v10581_v44  ;;  %9087 = vmatpush3.bf16.msra.mxu0 %v10148_v27  ;;  %14994 = vst [vmem:[#allocation33_spill] sm:$0xff] %v10750_v54  ;;  %v10760_v27 = vpack.c.bf16 %v884_v57, %v904_v38  ;;  %v784_v56 = vrot.slane %v14997_v10, 1  ;;  %v10778_v38 = vpack.c.bf16 %v649_v40, %v669_v2  ;;  %15001 = vst [vmem:[#allocation37_spill] sm:$0xff] %v10788_v6 }
  0x69   : > { %9147 = vmatmul.mubr.bf16.gmra.mrb[28].mxu1 %v10697_v53  ;;  %9088 = vmatprep.subr.bf16.mxu0 %v10166_v34  ;;  %v824_v22 = vrot.slane %v14999_v33, 1  ;;  %v864_v10 = vsel %vm846_vm0, %v823_v16, %v843_v17  ;;  %v587_v57 = vrot.slane %v14710_v48, 7  ;;  %v14726_v48 = vunpack.c.l.bf16 %v10788_v6 }
  0x6a   : > { %9150 = vmatprep.mubr.bf16.mxu1 %v10709_v59  ;;  %2263 = vmatpush1.bf16.msra.mxu1 %v9749_v58  ;;  %v10755_v58 = vld [vmem:[%s10100_s30 + $0x48] sm:$0xff]   ;;  %14996 = vst [vmem:[#allocation35_spill] sm:$0xff] %v10760_v27  ;;  %v14705_v59 = vunpack.c.l.bf16 %v10743_v43  ;;  %15000 = vst [vmem:[#allocation36_spill] sm:$0xff] %v10778_v38 }
  0x6b   : > { %2264 = vmatprep.subr.bf16.mxu1 %v14961_v9  ;;  %14995 = vst [vmem:[#allocation34_spill] sm:$0xff] %v10755_v58  ;;  %v14718_v16 = vunpack.c.l.bf16 %v10755_v58 }
  0x6c   : > { %9089 = vmatpush3.bf16.msra.mxu0 %v10166_v34  ;;  %v14998_v34 = vunpack.c.h.bf16 %v10716_v7  ;;  %v567_v33 = vrot.slane %v14705_v59, 7  ;;  %v14725_v7 = vunpack.c.h.bf16 %v10788_v6 }
  0x6e   : > { %2265 = vmatpush1.bf16.msra.mxu1 %v9750_v1  ;;  %v804_v53 = vrot.slane %v14998_v34, 1  ;;  %v14715_v1 = vunpack.c.h.bf16 %v10755_v58  ;;  %v924_v34 = vsel %vm846_vm0, %v843_v17, %v783_v18  ;;  %v15002_v17 = vunpack.c.h.bf16 %v10721_v15 }
  0x6f   : > { %1513 = vmatmul.mubr.bf16.gmra.mrb[16].mxu0 %v10724_v46  ;;  %3069 = vmatprep.subr.bf16.mxu1 %v14961_v9  ;;  %v588_v15 = vrot.slane %v14725_v7, 7 }
  0x70   : > { %1520 = vmatprep.mubr.bf16.mxu0 %v10584_v25  ;;  %v885_v40 = vsel %vm846_vm0, %v804_v53, %v824_v22  ;;  %v905_v2 = vsel %vm846_vm0, %v784_v56, %v804_v53  ;;  %v627_v18 = vrot.slane %v14715_v1, 7  ;;  %v844_v59 = vrot.slane %v15002_v17, 1  ;;  %v10819_v17 = vld [vmem:[%s10100_s30 + $0x58] sm:$0xff]  }
  0x71   : > { %9151 = vmatmul.mubr.bf16.gmra.mrb[32].mxu1 %v10750_v54  ;;  %v14724_v54 = vunpack.c.h.bf16 %v10542_v19  ;;  %v10806_v5 = vpack.c.bf16 %v885_v40, %v905_v2  ;;  %v607_v53 = vrot.slane %v14718_v16, 7  ;;  %v15005_v1 = vunpack.c.l.bf16 %v10542_v19  ;;  %15006 = vst [vmem:[#allocation40_spill] sm:$0xff] %v10819_v17 }
  0x72   : > { %9154 = vmatprep.mubr.bf16.mxu1 %v10760_v27  ;;  %v10801_v27 = vpack.c.bf16 %v924_v34, %v864_v10  ;;  %v690_v10 = vsel %vm645_vm1, %v567_v33, %v587_v57  ;;  %v710_v34 = vsel %vm645_vm1, %v627_v18, %v567_v33  ;;  %v15007_v2 = vunpack.c.h.bf16 %v10555_v28 }
  0x73   : > { %15004 = vst [vmem:[#allocation39_spill] sm:$0xff] %v10806_v5  ;;  %v563_v41 = vrot.slane %v15005_v1, 7  ;;  %v583_v40 = vrot.slane %v14724_v54, 7  ;;  %v568_v1 = vrot.slane %v14726_v48, 7  ;;  %v865_v33 = vsel %vm846_vm0, %v824_v22, %v844_v59  ;;  %v10847_v22 = vld [vmem:[%s10100_s30 + $0x60] sm:$0xff]  }
  0x74   : > { %15003 = vst [vmem:[#allocation38_spill] sm:$0xff] %v10801_v27  ;;  %v623_v16 = vrot.slane %v15007_v2, 7  ;;  %v10835_v30 = vpack.c.bf16 %v690_v10, %v710_v34  ;;  %v14727_v2 = vunpack.c.h.bf16 %v10819_v17  ;;  %v650_v7 = vsel %vm645_vm1, %v607_v53, %v627_v18  ;;  %15010 = vst [vmem:[#allocation43_spill] sm:$0xff] %v10847_v22 }
  0x75   : > { %v670_v48 = vsel %vm645_vm1, %v587_v57, %v607_v53  ;;  %v686_v10 = vsel %vm645_vm1, %v563_v41, %v583_v40  ;;  %v9756_v53 = vld [vmem:[%s14623_s2 + $0x180] sm:$0xff]  }
  0x76   : > { %15008 = vst [vmem:[#allocation41_spill] sm:$0xff] %v10835_v30  ;;  %v706_v18 = vsel %vm645_vm1, %v623_v16, %v563_v41  ;;  %v10859_v57 = vpack.c.bf16 %v650_v7, %v670_v48  ;;  %v691_v41 = vsel %vm645_vm1, %v568_v1, %v588_v15 }
  0x77   : > { %1521 = vmatmul.mubr.bf16.gmra.mrb[20].mxu0 %v10778_v38  ;;  %v726_v34 = vpack.c.bf16 %v686_v10, %v706_v18  ;;  %v9760_v18 = vld [vmem:[%s14623_s2 + $0x188] sm:$0xff]  }
  0x78   : > { %1528 = vmatprep.mubr.bf16.mxu0 %v10743_v43  ;;  %15012 = vst [vmem:[#allocation44_spill] sm:$0xff] %v10859_v57 }
  0x79   : > { %9155 = vmatmul.mubr.bf16.gmra.mrb[36].mxu1 %v10801_v27  ;;  %v925_v27 = vsel %vm846_vm0, %v844_v59, %v784_v56  ;;  %v628_v59 = vrot.slane %v14727_v2, 7  ;;  %v14729_v2 = vunpack.c.l.bf16 %v10847_v22 }
  0x7a   : > { %9158 = vmatprep.mubr.bf16.mxu1 %v10806_v5  ;;  %v10837_v54 = vpack.c.bf16 %v925_v27, %v865_v33  ;;  %v15011_v27 = vunpack.c.l.bf16 %v10555_v28  ;;  %v14730_v33 = vunpack.c.l.bf16 %v10819_v17  ;;  %v14738_v5 = vunpack.c.h.bf16 %v10847_v22 }
  0x7b   : > { %v711_v7 = vsel %vm645_vm1, %v628_v59, %v568_v1  ;;  %v569_v10 = vrot.slane %v14729_v2, 7  ;;  %v9763_v2 = vld [vmem:[%s14623_s2 + $0x190] sm:$0xff]  }
  0x7c   : > { %15009 = vst [vmem:[#allocation42_spill] sm:$0xff] %v10837_v54  ;;  %v603_v56 = vrot.slane %v15011_v27, 7  ;;  %v608_v48 = vrot.slane %v14730_v33, 7  ;;  %v10875_v27 = vld [vmem:[%s10100_s30 + $0x68] sm:$0xff]  }
  0x7d   : > { %15013 = vst [vmem:[#allocation45_spill] sm:$0xff] %v10875_v27 }
  0x7e   : > { %v666_v1 = vsel %vm645_vm1, %v583_v40, %v603_v56  ;;  %v671_v40 = vsel %vm645_vm1, %v588_v15, %v608_v48  ;;  %v9769_v15 = vld [vmem:[%s14623_s2 + $0x1a0] sm:$0xff]  }
  0x7f   : > { %1529 = vmatmul.mubr.bf16.gmra.mrb[24].mxu0 %v10835_v30 }
  0x80   : > { %1536 = vmatprep.mubr.bf16.mxu0 %v10755_v58 }
  0x81   : > { %9159 = vmatmul.mubr.bf16.gmra.mrb[40].mxu1 %v10837_v54  ;;  %v646_v54 = vsel %vm645_vm1, %v603_v56, %v623_v16  ;;  %v651_v16 = vsel %vm645_vm1, %v608_v48, %v628_v59  ;;  %v589_v56 = vrot.slane %v14738_v5, 7  ;;  %v14737_v59 = vunpack.c.l.bf16 %v10875_v27  ;;  %v9773_v48 = vld [vmem:[%s14623_s2 + $0x1a8] sm:$0xff]  }
  0x82   : > { %2266 = vmatprep.mubr.bf16.mxu1 %v10542_v19  ;;  %v727_v33 = vpack.c.bf16 %v646_v54, %v666_v1  ;;  %v9766_v54 = vld [vmem:[%s14623_s2 + $0x198] sm:$0xff]   ;;  %v15040_v5 = vunpack.c.h.bf16 %v10179_v39 }
  0x87   : > { %1537 = vmatmul.mubr.bf16.gmra.mrb[28].mxu0 %v10859_v57 }
  0x88   : > { %1544 = vmatprep.mubr.bf16.mxu0 %v10788_v6 }
  0x89   : > { %2267 = vmatmul.mubr.bf16.vlgmr.msra.gmra.mrb[44].mxu1 %v726_v34  ;;  %v10887_v34 = vpack.c.bf16 %v691_v41, %v711_v7  ;;  %v10910_v41 = vpack.c.bf16 %v651_v16, %v671_v40  ;;  %v609_v7 = vrot.slane %v14737_v59, 7  ;;  %v10937_v16 = vld [vmem:[%s10100_s30 + $0x78] sm:$0xff]  }
  0x8a   : > { %2274 = vmatprep.mubr.bf16.mxu1 %v10555_v28  ;;  %3070 = vmatpush1.bf16.msra.mxu1 %v9756_v53  ;;  %v14736_v28 = vunpack.c.h.bf16 %v10875_v27  ;;  %15018 = vst [vmem:[#allocation50_spill] sm:$0xff] %v10937_v16 }
  0x8b   : > { %15014 = vst [vmem:[#allocation46_spill] sm:$0xff] %v10887_v34  ;;  %3071 = vmatprep.subr.bf16.mxu1 %v14961_v9  ;;  %15015 = vst [vmem:[#allocation47_spill] sm:$0xff] %v10910_v41  ;;  %v672_v40 = vsel %vm645_vm1, %v589_v56, %v609_v7 }
  0x8c   : > { %v629_v53 = vrot.slane %v14736_v28, 7 }
  0x8e   : > { %3072 = vmatpush1.bf16.msra.mxu1 %v9760_v18  ;;  %v10932_v18 = vld [vmem:[%s10100_s30 + $0x70] sm:$0xff]  }
  0x8f   : > { %1545 = vmatmul.mubr.bf16.gmra.mrb[32].mxu0 %v10887_v34  ;;  %3073 = vmatprep.subr.bf16.mxu1 %v14961_v9  ;;  %15016 = vst [vmem:[#allocation48_spill] sm:$0xff] %v10932_v18 }
  0x90   : > { %1552 = vmatprep.mubr.bf16.mxu0 %v10819_v17 }
  0x91   : > { %2275 = vmatmul.mubr.bf16.gmra.mrb[48].mxu1 %v727_v33  ;;  %v712_v33 = vsel %vm645_vm1, %v629_v53, %v569_v10 }
  0x92   : > { %2282 = vmatprep.mubr.bf16.mxu1 %v10203_v50  ;;  %3074 = vmatpush1.bf16.msra.mxu1 %v9763_v2  ;;  %v692_v2 = vsel %vm645_vm1, %v569_v10, %v589_v56  ;;  %v14735_v10 = vunpack.c.l.bf16 %v10932_v18 }
  0x93   : > { %3075 = vmatprep.subr.bf16.mxu1 %v14961_v9  ;;  %v10934_v1 = vpack.c.bf16 %v692_v2, %v712_v33  ;;  %v9779_v2 = vld [vmem:[%s14623_s2 + $0x1b8] sm:$0xff]  }
  0x94   : > { %v570_v56 = vrot.slane %v14735_v10, 7  ;;  %v15025_v10 = vunpack.c.h.bf16 %v10113_v14 }
  0x95   : > { %15017 = vst [vmem:[#allocation49_spill] sm:$0xff] %v10934_v1 }
  0x96   : > { %3076 = vmatpush1.bf16.msra.mxu1 %v9766_v54  ;;  %v14734_v54 = vunpack.c.h.bf16 %v10932_v18 }
  0x97   : > { %1553 = vmatmul.mubr.bf16.gmra.mrb[36].mxu0 %v10910_v41  ;;  %3077 = vmatprep.subr.bf16.mxu1 %v14961_v9 }
  0x98   : > { %1560 = vmatprep.mubr.bf16.mxu0 %v10847_v22 }
  0x99   : > { %2283 = vmatmul.mubr.bf16.gmra.mrb[52].mxu1 %v10454_v49  ;;  %v9776_v49 = vld [vmem:[%s14623_s2 + $0x1b0] sm:$0xff]  }
  0x9a   : > { %2290 = vmatprep.mubr.bf16.mxu1 %v10206_v51  ;;  %3078 = vmatpush1.bf16.msra.mxu1 %v9769_v15  ;;  %v652_v51 = vsel %vm645_vm1, %v609_v7, %v629_v53  ;;  %v14732_v15 = vunpack.c.h.bf16 %v10937_v16  ;;  %v590_v53 = vrot.slane %v14734_v54, 7  ;;  %v15024_v54 = vunpack.c.h.bf16 %v10110_v13 }
  0x9b   : > { %3079 = vmatprep.subr.bf16.mxu1 %v14961_v9  ;;  %v10958_v33 = vpack.c.bf16 %v652_v51, %v672_v40 }
  0x9c   : > { %v693_v7 = vsel %vm645_vm1, %v570_v56, %v590_v53 }
  0x9d   : > { %15019 = vst [vmem:[#allocation51_spill] sm:$0xff] %v10958_v33 }
  0x9e   : > { %3080 = vmatpush1.bf16.msra.mxu1 %v9773_v48 }
  0x9f   : > { %1561 = vmatmul.mubr.bf16.gmra.mrb[40].mxu0 %v10934_v1  ;;  %3081 = vmatprep.subr.bf16.mxu1 %v14961_v9 }
  0xa0   : > { %1568 = vmatprep.mubr.bf16.mxu0 %v10875_v27 }
  0xa1   : > { %2291 = vmatmul.mubr.bf16.gmra.mrb[56].mxu1 %v10526_v32  ;;  %v630_v32 = vrot.slane %v14732_v15, 7 }
  0xa2   : > { %2298 = vmatprep.mubr.bf16.mxu1 %v10423_v36  ;;  %3082 = vmatpush1.bf16.msra.mxu1 %v9776_v49  ;;  %v14733_v49 = vunpack.c.l.bf16 %v10937_v16 }
  0xa3   : > { %3083 = vmatprep.subr.bf16.mxu1 %v14961_v9  ;;  %v713_v48 = vsel %vm645_vm1, %v630_v32, %v570_v56 }
  0xa4   : > { %v10977_v51 = vpack.c.bf16 %v693_v7, %v713_v48  ;;  %v610_v40 = vrot.slane %v14733_v49, 7  ;;  %v10996_v48 = vld [vmem:[%s10100_s30 + $0x80] sm:$0xff]  }
  0xa5   : > { %15022 = vst [vmem:[#allocation54_spill] sm:$0xff] %v10996_v48 }
  0xa6   : > { %3084 = vmatpush1.bf16.msra.mxu1 %v9779_v2  ;;  %15020 = vst [vmem:[#allocation52_spill] sm:$0xff] %v10977_v51  ;;  %v9782_v2 = vld [vmem:[%s14623_s2 + $0x1c0] sm:$0xff]   ;;  %v653_v56 = vsel %vm645_vm1, %v610_v40, %v630_v32  ;;  %v673_v15 = vsel %vm645_vm1, %v590_v53, %v610_v40  ;;  %v591_v32 = vrot.slane %v15024_v54, 7  ;;  %v631_v53 = vrot.slane %v15025_v10, 7  ;;  %v11015_v54 = vld [vmem:[%s10100_s30 + $0x88] sm:$0xff]  }
  0xa7   : > { %1569 = vmatmul.mubr.bf16.gmra.mrb[44].mxu0 %v10958_v33  ;;  %3085 = vmatprep.subr.bf16.mxu1 %v14961_v9  ;;  %v10993_v7 = vpack.c.bf16 %v653_v56, %v673_v15  ;;  %15027 = vst [vmem:[#allocation56_spill] sm:$0xff] %v11015_v54  ;;  %v15028_v10 = vunpack.c.l.bf16 %v10113_v14 }
  0xa8   : > { %1576 = vmatprep.mubr.bf16.mxu0 %v10932_v18 }
  0xa9   : > { %2299 = vmatmul.mubr.bf16.gmra.mrb[60].mxu1 %v10611_v61  ;;  %15021 = vst [vmem:[#allocation53_spill] sm:$0xff] %v10993_v7  ;;  %v611_v56 = vrot.slane %v15028_v10, 7  ;;  %v15031_v10 = vunpack.c.l.bf16 %v10129_v20 }
  0xaa   : > { %2306 = vmatprep.mubr.bf16.mxu1 %v10434_v26  ;;  %3086 = vmatpush1.bf16.msra.mxu1 %v9782_v2  ;;  %v15023_v2 = vunpack.c.l.bf16 %v10110_v13 }
  0xab   : > { %3087 = vmatprep.subr.bf16.mxu1 %v14961_v9  ;;  %v572_v28 = vrot.slane %v15031_v10, 7  ;;  %v15036_v10 = vunpack.c.l.bf16 %v10139_v24 }
  0xac   : > { %v571_v49 = vrot.slane %v15023_v2, 7  ;;  %v9786_v2 = vld [vmem:[%s14623_s2 + $0x1c8] sm:$0xff]  }
  0xae   : > { %v694_v40 = vsel %vm645_vm1, %v571_v49, %v591_v32  ;;  %v714_v15 = vsel %vm645_vm1, %v631_v53, %v571_v49  ;;  %v654_v49 = vsel %vm645_vm1, %v611_v56, %v631_v53  ;;  %3088 = vmatpush1.bf16.msra.mxu1 %v9786_v2  ;;  %v15032_v53 = vunpack.c.h.bf16 %v10129_v20 }
  0xaf   : > { %1577 = vmatmul.mubr.bf16.gmra.mrb[48].mxu0 %v10977_v51  ;;  %v11012_v13 = vpack.c.bf16 %v694_v40, %v714_v15  ;;  %v674_v40 = vsel %vm645_vm1, %v591_v32, %v611_v56  ;;  %3089 = vmatprep.subr.bf16.mxu1 %v14961_v9  ;;  %v11034_v15 = vld [vmem:[%s10100_s30 + $0x90] sm:$0xff]   ;;  %v15033_v32 = vunpack.c.h.bf16 %v10139_v24 }
  0xb0   : > { %1584 = vmatprep.mubr.bf16.mxu0 %v10937_v16  ;;  %v11030_v14 = vpack.c.bf16 %v654_v49, %v674_v40  ;;  %15030 = vst [vmem:[#allocation58_spill] sm:$0xff] %v11034_v15  ;;  %v592_v59 = vrot.slane %v15032_v53, 7  ;;  %v11053_v40 = vld [vmem:[%s10100_s30 + $0x98] sm:$0xff]   ;;  %v612_v53 = vrot.slane %v15036_v10, 7  ;;  %v15039_v10 = vunpack.c.l.bf16 %v10179_v39 }
  0xb1   : > { %2307 = vmatmul.mubr.bf16.gmra.mrb[64].mxu1 %v10683_v55  ;;  %15026 = vst [vmem:[#allocation55_spill] sm:$0xff] %v11012_v13  ;;  %v632_v56 = vrot.slane %v15033_v32, 7  ;;  %15035 = vst [vmem:[#allocation60_spill] sm:$0xff] %v11053_v40 }
  0xb2   : > { %2314 = vmatprep.mubr.bf16.mxu1 %v10581_v44  ;;  %15029 = vst [vmem:[#allocation57_spill] sm:$0xff] %v11030_v14  ;;  %v695_v2 = vsel %vm645_vm1, %v572_v28, %v592_v59 }
  0xb3   : > { %v715_v49 = vsel %vm645_vm1, %v632_v56, %v572_v28  ;;  %v655_v32 = vsel %vm645_vm1, %v612_v53, %v632_v56  ;;  %v675_v28 = vsel %vm645_vm1, %v592_v59, %v612_v53  ;;  %v573_v56 = vrot.slane %v15039_v10, 7 }
  0xb4   : > { %v11050_v20 = vpack.c.bf16 %v695_v2, %v715_v49  ;;  %v9789_v2 = vld [vmem:[%s14623_s2 + $0x1d0] sm:$0xff]   ;;  %v11068_v24 = vpack.c.bf16 %v655_v32, %v675_v28  ;;  %v11071_v49 = vld [vmem:[%s10100_s30 + $0xa0] sm:$0xff]   ;;  %v593_v59 = vrot.slane %v15040_v5, 7  ;;  %v15041_v53 = vunpack.c.h.bf16 %v10186_v42  ;;  %v11091_v5 = vld [vmem:[%s10100_s30 + $0xa8] sm:$0xff]  }
  0xb5   : > { %3090 = vmatpush1.bf16.msra.mxu1 %v9789_v2  ;;  %15038 = vst [vmem:[#allocation62_spill] sm:$0xff] %v11071_v49  ;;  %15043 = vst [vmem:[#allocation64_spill] sm:$0xff] %v11091_v5  ;;  %v15044_v2 = vunpack.c.l.bf16 %v10186_v42  ;;  %v9792_v42 = vld [vmem:[%s14623_s2 + $0x1d8] sm:$0xff]  }
  0xb6   : > { %15034 = vst [vmem:[#allocation59_spill] sm:$0xff] %v11050_v20  ;;  %15037 = vst [vmem:[#allocation61_spill] sm:$0xff] %v11068_v24  ;;  %3091 = vmatprep.subr.bf16.mxu1 %v14961_v9  ;;  %v696_v32 = vsel %vm645_vm1, %v573_v56, %v593_v59 }
  0xb7   : > { %1585 = vmatmul.mubr.bf16.gmra.mrb[52].mxu0 %v10993_v7  ;;  %v613_v10 = vrot.slane %v15044_v2, 7  ;;  %v15047_v2 = vunpack.c.l.bf16 %v10232_v62 }
  0xb8   : > { %1592 = vmatprep.mubr.bf16.mxu0 %v10996_v48 }
  0xb9   : > { %2315 = vmatmul.mubr.bf16.gmra.mrb[68].mxu1 %v10724_v46 }
  0xba   : > { %2322 = vmatprep.mubr.bf16.mxu1 %v10584_v25  ;;  %3092 = vmatpush1.bf16.msra.mxu1 %v9792_v42 }
  0xbb   : > { %3093 = vmatprep.subr.bf16.mxu1 %v14961_v9 }
  0xbf   : > { %1593 = vmatmul.mubr.bf16.gmra.mrb[56].mxu0 %v11012_v13 }
  0xc0   : > { %1600 = vmatprep.mubr.bf16.mxu0 %v11015_v54 }
  0xc1   : > { %2323 = vmatmul.mubr.bf16.gmra.mrb[72].mxu1 %v10778_v38 }
  0xc2   : > { %2330 = vmatprep.mubr.bf16.mxu1 %v10743_v43 }
  0xc7   : > { %1601 = vmatmul.mubr.bf16.gmra.mrb[60].mxu0 %v11030_v14 }
  0xc8   : > { %1608 = vmatprep.mubr.bf16.mxu0 %v11034_v15 }
  0xc9   : > { %2331 = vmatmul.mubr.bf16.gmra.mrb[76].mxu1 %v10835_v30 }
  0xca   : > { %2338 = vmatprep.mubr.bf16.mxu1 %v10755_v58 }
  0xcf   : > { %1609 = vmatmul.mubr.bf16.gmra.mrb[64].mxu0 %v11050_v20 }
  0xd0   : > { %1616 = vmatprep.mubr.bf16.mxu0 %v11053_v40 }
  0xd1   : > { %2339 = vmatmul.mubr.bf16.gmra.mrb[80].mxu1 %v10859_v57  ;;  %v633_v57 = vrot.slane %v15041_v53, 7 }
  0xd2   : > { %2346 = vmatprep.mubr.bf16.mxu1 %v10788_v6 }
  0xd3   : > { %v716_v28 = vsel %vm645_vm1, %v633_v57, %v573_v56  ;;  %v656_v53 = vsel %vm645_vm1, %v613_v10, %v633_v57  ;;  %v676_v56 = vsel %vm645_vm1, %v593_v59, %v613_v10  ;;  %v15048_v57 = vunpack.c.h.bf16 %v10232_v62 }
  0xd4   : > { %v11088_v39 = vpack.c.bf16 %v696_v32, %v716_v28  ;;  %v11103_v32 = vpack.c.bf16 %v656_v53, %v676_v56  ;;  %v11109_v28 = vld [vmem:[%s10100_s30 + $0xb0] sm:$0xff]   ;;  %v15049_v59 = vunpack.c.h.bf16 %v10235_v63  ;;  %v15050_v53 = vunpack.c.h.bf16 %v10203_v50 }
  0xd5   : > { %15046 = vst [vmem:[#allocation66_spill] sm:$0xff] %v11109_v28  ;;  %v594_v30 = vrot.slane %v15048_v57, 7  ;;  %v15053_v50 = vunpack.c.l.bf16 %v10235_v63  ;;  %v11151_v63 = vld [vmem:[%s14623_s2 + $0x80] sm:$0xff]  }
  0xd6   : > { %15042 = vst [vmem:[#allocation63_spill] sm:$0xff] %v11088_v39  ;;  %15045 = vst [vmem:[#allocation65_spill] sm:$0xff] %v11103_v32  ;;  %v634_v10 = vrot.slane %v15049_v59, 7  ;;  %v787_v56 = vrot.slane %v15050_v53, 1  ;;  %9162 = vmatprep.subr.bf16.mxu0 %v11151_v63 }
  0xd7   : > { %1617 = vmatmul.mubr.bf16.gmra.mrb[68].mxu0 %v11068_v24  ;;  %v614_v57 = vrot.slane %v15053_v50, 7  ;;  %v15057_v50 = vunpack.c.h.bf16 %v10305_v60 }
  0xd8   : > { %1624 = vmatprep.mubr.bf16.mxu0 %v11071_v49  ;;  %v868_v59 = vsel %vm846_vm0, %v787_v56, %v10277_v37 }
  0xd9   : > { %2347 = vmatmul.mubr.bf16.gmra.mrb[84].mxu1 %v10887_v34  ;;  %v574_v34 = vrot.slane %v15047_v2, 7  ;;  %v11131_v2 = vld [vmem:[%s10100_s30 + $0xb8] sm:$0xff]   ;;  %v657_v37 = vsel %vm645_vm1, %v614_v57, %v634_v10 }
  0xda   : > { %2354 = vmatprep.mubr.bf16.mxu1 %v10819_v17  ;;  %15052 = vst [vmem:[#allocation68_spill] sm:$0xff] %v11131_v2 }
  0xdb   : > { %v717_v62 = vsel %vm645_vm1, %v634_v10, %v574_v34  ;;  %v595_v10 = vrot.slane %v15057_v50, 7 }
  0xdf   : > { %1625 = vmatmul.mubr.bf16.gmra.mrb[72].mxu0 %v11088_v39 }
  0xe0   : > { %1632 = vmatprep.mubr.bf16.mxu0 %v11091_v5 }
  0xe1   : > { %2355 = vmatmul.mubr.bf16.gmra.mrb[88].mxu1 %v10910_v41  ;;  %v697_v41 = vsel %vm645_vm1, %v574_v34, %v594_v30  ;;  %v888_v34 = vsel %vm846_vm0, %v10243_v3, %v787_v56  ;;  %v677_v3 = vsel %vm645_vm1, %v594_v30, %v614_v57  ;;  %v15056_v56 = vunpack.c.l.bf16 %v10305_v60  ;;  %v9795_v57 = vld [vmem:[%s14623_s2 + $0x1e0] sm:$0xff]  }
  0xe2   : > { %2362 = vmatprep.mubr.bf16.mxu1 %v10847_v22  ;;  %v11128_v42 = vpack.c.bf16 %v697_v41, %v717_v62  ;;  %v11141_v53 = vpack.c.bf16 %v868_v59, %v888_v34  ;;  %v11145_v41 = vpack.c.bf16 %v10263_v23, %v10296_v52  ;;  %v11161_v23 = vpack.c.bf16 %v657_v37, %v677_v3  ;;  %v11164_v52 = vld [vmem:[%s10100_s30 + $0xc0] sm:$0xff]   ;;  %v11187_v3 = vld [vmem:[%s10100_s30 + $0xc8] sm:$0xff]  }
  0xe3   : > { %15055 = vst [vmem:[#allocation70_spill] sm:$0xff] %v11164_v52  ;;  %v575_v62 = vrot.slane %v15056_v56, 7  ;;  %v15058_v59 = vunpack.c.h.bf16 %v10308_v0  ;;  %3094 = vmatpush1.bf16.msra.mxu1 %v9795_v57  ;;  %15060 = vst [vmem:[#allocation72_spill] sm:$0xff] %v11187_v3  ;;  %v15061_v56 = vunpack.c.l.bf16 %v10308_v0  ;;  %v15064_v0 = vunpack.c.l.bf16 %v10336_v21 }
  0xe4   : > { %15051 = vst [vmem:[#allocation67_spill] sm:$0xff] %v11128_v42  ;;  %15054 = vst [vmem:[#allocation69_spill] sm:$0xff] %v11161_v23  ;;  %3095 = vmatprep.subr.bf16.mxu1 %v14961_v9 }
  0xe5   : > { %v635_v30 = vrot.slane %v15058_v59, 7  ;;  %v698_v34 = vsel %vm645_vm1, %v575_v62, %v595_v10  ;;  %v615_v50 = vrot.slane %v15061_v56, 7  ;;  %v15065_v56 = vunpack.c.h.bf16 %v10336_v21 }
  0xe7   : > { %1633 = vmatmul.mubr.bf16.gmra.mrb[76].mxu0 %v11103_v32  ;;  %v718_v60 = vsel %vm645_vm1, %v635_v30, %v575_v62  ;;  %v658_v62 = vsel %vm645_vm1, %v615_v50, %v635_v30  ;;  %v678_v59 = vsel %vm645_vm1, %v595_v10, %v615_v50 }
  0xe8   : > { %1640 = vmatprep.mubr.bf16.mxu0 %v11109_v28  ;;  %v11184_v37 = vpack.c.bf16 %v698_v34, %v718_v60  ;;  %v11199_v57 = vpack.c.bf16 %v658_v62, %v678_v59  ;;  %v11202_v34 = vld [vmem:[%s10100_s30 + $0xd0] sm:$0xff]   ;;  %v576_v60 = vrot.slane %v15064_v0, 7  ;;  %v9799_v59 = vld [vmem:[%s14623_s2 + $0x1e8] sm:$0xff]   ;;  %v11229_v0 = vld [vmem:[%s10100_s30 + $0xd8] sm:$0xff]  }
  0xe9   : > { %2363 = vmatmul.mubr.bf16.gmra.mrb[92].mxu1 %v10934_v1  ;;  %15063 = vst [vmem:[#allocation74_spill] sm:$0xff] %v11202_v34  ;;  %15068 = vst [vmem:[#allocation76_spill] sm:$0xff] %v11229_v0 }
  0xea   : > { %2370 = vmatprep.mubr.bf16.mxu1 %v10875_v27  ;;  %15059 = vst [vmem:[#allocation71_spill] sm:$0xff] %v11184_v37  ;;  %15062 = vst [vmem:[#allocation73_spill] sm:$0xff] %v11199_v57  ;;  %3096 = vmatpush1.bf16.msra.mxu1 %v9799_v59 }
  0xeb   : > { %3097 = vmatprep.subr.bf16.mxu1 %v14961_v9 }
  0xef   : > { %1641 = vmatmul.mubr.bf16.gmra.mrb[80].mxu0 %v11128_v42 }
  0xf0   : > { %1648 = vmatprep.mubr.bf16.mxu0 %v11131_v2 }
  0xf1   : > { %2371 = vmatmul.mubr.bf16.gmra.mrb[96].mxu1 %v10958_v33  ;;  %v15066_v33 = vunpack.c.h.bf16 %v10352_v8 }
  0xf2   : > { %2378 = vmatprep.mubr.bf16.mxu1 %v10932_v18 }
  0xf3   : > { %v636_v30 = vrot.slane %v15066_v33, 7 }
  0xf5   : > { %v719_v33 = vsel %vm645_vm1, %v636_v30, %v576_v60 }
  0xf7   : > { %1649 = vmatmul.mubr.bf16.gmra.mrb[84].mxu0 %v11161_v23 }
  0xf8   : > { %1656 = vmatprep.mubr.bf16.mxu0 %v11164_v52 }
  0xf9   : > { %2379 = vmatmul.mubr.bf16.gmra.mrb[100].mxu1 %v10977_v51  ;;  %v596_v51 = vrot.slane %v15065_v56, 7  ;;  %v15069_v56 = vunpack.c.l.bf16 %v10352_v8 }
  0xfa   : > { %2386 = vmatprep.mubr.bf16.mxu1 %v10937_v16 }
  0xfb   : > { %v699_v21 = vsel %vm645_vm1, %v576_v60, %v596_v51 }
  0xff   : > { %1657 = vmatmul.mubr.bf16.gmra.mrb[88].mxu0 %v11184_v37 }
 0x100   : > { %1664 = vmatprep.mubr.bf16.mxu0 %v11187_v3 }
 0x101   : > { %2387 = vmatmul.mubr.bf16.gmra.mrb[104].mxu1 %v10993_v7 }
 0x102   : > { %2394 = vmatprep.mubr.bf16.mxu1 %v10996_v48 }
 0x103   : > { %v9120_v1 = vpop.f32.mrb[0].mxu1 }
 0x104   : > { %v11210_v10 = vpop.f32.mrb[1].mxu1  ;;  %v11225_v1 = vpack.c.bf16 %v699_v21, %v719_v33 }
 0x105   : > { %v9121_v50 = vpop.f32.mrb[2].mxu1 }
 0x106   : > { %v11213_v62 = vpop.f32.mrb[3].mxu1  ;;  %15067 = vst [vmem:[#allocation75_spill] sm:$0xff] %v11225_v1  ;;  %v616_v50 = vrot.slane %v15069_v56, 7  ;;  %v15073_v56 = vunpack.c.h.bf16 %v10388_v31 }
 0x107   : > { %1665 = vmatmul.mubr.bf16.gmra.mrb[92].mxu0 %v11199_v57 }
 0x108   : > { %1672 = vmatprep.mubr.bf16.mxu0 %v11202_v34  ;;  %v659_v59 = vsel %vm645_vm1, %v616_v50, %v636_v30  ;;  %v679_v21 = vsel %vm645_vm1, %v596_v51, %v616_v50 }
 0x109   : > { %2395 = vmatmul.mubr.bf16.gmra.mrb[108].mxu1 %v11012_v13  ;;  %v11245_v8 = vpack.c.bf16 %v659_v59, %v679_v21  ;;  %v15074_v13 = vunpack.c.h.bf16 %v10414_v29  ;;  %v9803_v21 = vld [vmem:[%s14623_s2 + $0x1f0] sm:$0xff]  }
 0x10a   : > { %2402 = vmatprep.mubr.bf16.mxu1 %v11015_v54  ;;  %v597_v54 = vrot.slane %v15073_v56, 7  ;;  %3098 = vmatpush1.bf16.msra.mxu1 %v9803_v21  ;;  %v15078_v56 = vunpack.c.l.bf16 %v10414_v29  ;;  %v15080_v21 = vunpack.c.h.bf16 %v10542_v19 }
 0x10b   : > { %v9124_v48 = vpop.f32.mrb[4].mxu1  ;;  %15070 = vst [vmem:[#allocation77_spill] sm:$0xff] %v11245_v8  ;;  %v637_v30 = vrot.slane %v15074_v13, 7  ;;  %3099 = vmatprep.subr.bf16.mxu1 %v14961_v9 }
 0x10c   : > { %v11233_v7 = vpop.f32.mrb[5].mxu1  ;;  %v11248_v48 = vld [vmem:[%s10100_s30 + $0xe0] sm:$0xff]  }
 0x10d   : > { %v9125_v38 = vpop.f32.mrb[6].mxu1  ;;  %15071 = vst [vmem:[#allocation78_spill] sm:$0xff] %v11248_v48 }
 0x10e   : > { %v11236_v60 = vpop.f32.mrb[7].mxu1  ;;  %v15072_v38 = vunpack.c.l.bf16 %v10388_v31 }
 0x10f   : > { %1673 = vmatmul.mubr.bf16.gmra.mrb[96].mxu0 %v11225_v1 }
 0x110   : > { %1680 = vmatprep.mubr.bf16.mxu0 %v11229_v0  ;;  %v577_v33 = vrot.slane %v15072_v38, 7  ;;  %v11275_v38 = vld [vmem:[%s10100_s30 + $0xe8] sm:$0xff]  }
 0x111   : > { %2403 = vmatmul.mubr.bf16.gmra.mrb[112].mxu1 %v11030_v14  ;;  %15077 = vst [vmem:[#allocation81_spill] sm:$0xff] %v11275_v38 }
 0x112   : > { %2410 = vmatprep.mubr.bf16.mxu1 %v11034_v15  ;;  %v700_v31 = vsel %vm645_vm1, %v577_v33, %v597_v54  ;;  %v720_v13 = vsel %vm645_vm1, %v637_v30, %v577_v33 }
 0x113   : > { %v9128_v46 = vpop.f32.mrb[8].mxu1 }
 0x114   : > { %v11256_v51 = vpop.f32.mrb[9].mxu1  ;;  %v11271_v46 = vpack.c.bf16 %v700_v31, %v720_v13  ;;  %v786_v31 = vrot.slane %v15080_v21, 1  ;;  %v15083_v21 = vunpack.c.h.bf16 %v10448_v35 }
 0x115   : > { %v9129_v50 = vpop.f32.mrb[10].mxu1 }
 0x116   : > { %v11259_v59 = vpop.f32.mrb[11].mxu1  ;;  %15076 = vst [vmem:[#allocation80_spill] sm:$0xff] %v11271_v46  ;;  %v617_v50 = vrot.slane %v15078_v56, 7 }
 0x117   : > { %1681 = vmatmul.mubr.bf16.gmra.mrb[100].mxu0 %v11245_v8  ;;  %15075 = vst [vmem:[#allocation79_spill] sm:$0xff] %v11259_v59 }
 0x118   : > { %1688 = vmatprep.mubr.bf16.mxu0 %v11248_v48  ;;  %v660_v13 = vsel %vm645_vm1, %v617_v50, %v637_v30  ;;  %v680_v29 = vsel %vm645_vm1, %v597_v54, %v617_v50  ;;  %v15085_v30 = vunpack.c.h.bf16 %v10477_v11 }
 0x119   : > { %2411 = vmatmul.mubr.bf16.gmra.mrb[116].mxu1 %v11050_v20  ;;  %v11293_v56 = vpack.c.bf16 %v660_v13, %v680_v29  ;;  %v598_v20 = vrot.slane %v15083_v21, 7  ;;  %v11312_v13 = vsel %vm846_vm0, %v10599_v47, %v786_v31  ;;  %v15087_v29 = vld [vmem:[#allocation25_spill] sm:$0xff] }
 0x11a   : > { %2418 = vmatprep.mubr.bf16.mxu1 %v11053_v40  ;;  %v15082_v40 = vunpack.c.l.bf16 %v10448_v35  ;;  %v638_v54 = vrot.slane %v15085_v30, 7 }
 0x11b   : > { %v9132_v15 = vpop.f32.mrb[12].mxu1  ;;  %15081 = vst [vmem:[#allocation83_spill] sm:$0xff] %v11293_v56 }
 0x11c   : > { %v11279_v14 = vpop.f32.mrb[13].mxu1  ;;  %v578_v19 = vrot.slane %v15082_v40, 7 }
 0x11d   : > { %v9133_v59 = vpop.f32.mrb[14].mxu1 }
 0x11e   : > { %v11282_v33 = vpop.f32.mrb[15].mxu1  ;;  %v701_v47 = vsel %vm645_vm1, %v578_v19, %v598_v20 }
 0x11f   : > { %1689 = vmatmul.mubr.bf16.gmra.mrb[104].mxu0 %v11271_v46  ;;  %15079 = vst [vmem:[#allocation82_spill] sm:$0xff] %v11282_v33  ;;  %v11300_v33 = vld [vmem:[%s10100_s30 + $0xf0] sm:$0xff]  }
 0x120   : > { %1696 = vmatprep.mubr.bf16.mxu0 %v11275_v38  ;;  %15084 = vst [vmem:[#allocation84_spill] sm:$0xff] %v11300_v33 }
 0x121   : > { %2419 = vmatmul.mubr.bf16.gmra.mrb[120].mxu1 %v11068_v24 }
 0x122   : > { %v1482_v15 = vpop.f32.mrb[0].mxu0  ;;  %2426 = vmatprep.mubr.bf16.mxu1 %v11071_v49  ;;  %v15091_v49 = vunpack.c.l.bf16 %v10477_v11 }
 0x123   : > { %v1484_v59 = vpop.f32.mrb[1].mxu0  ;;  %v11307_v15 = vsel %vm846_vm0, %v786_v31, %v10646_v4  ;;  %v721_v31 = vsel %vm645_vm1, %v638_v54, %v578_v19 }
 0x124   : > { %v1485_v9 = vpop.f32.mrb[2].mxu0  ;;  %v9136_v50 = vpop.f32.mrb[16].mxu1  ;;  %v618_v24 = vrot.slane %v15091_v49, 7 }
 0x125   : > { %v1487_v40 = vpop.f32.mrb[3].mxu0  ;;  %v11314_v35 = vpop.f32.mrb[17].mxu1  ;;  %v11336_v9 = vld [vmem:[%s10100_s30 + $0xf8] sm:$0xff]  }
 0x126   : > { %15086 = vst [vmem:[#allocation85_spill] sm:$0xff] %v11314_v35  ;;  %v9137_v21 = vpop.f32.mrb[18].mxu1  ;;  %v11330_v40 = vpack.c.bf16 %v701_v47, %v721_v31  ;;  %15090 = vst [vmem:[#allocation87_spill] sm:$0xff] %v11336_v9  ;;  %v681_v11 = vsel %vm645_vm1, %v598_v20, %v618_v24  ;;  %v15101_v20 = vld [vmem:[#allocation19_spill] sm:$0xff] }
 0x127   : > { %1697 = vmatmul.mubr.bf16.gmra.mrb[108].mxu0 %v11293_v56  ;;  %v11321_v4 = vpop.f32.mrb[19].mxu1  ;;  %v9806_v21 = vld [vmem:[%s14623_s2 + $0x1f8] sm:$0xff]  }
 0x128   : > { %15088 = vst [vmem:[#allocation25_spill] sm:$0xff] %v11321_v4  ;;  %1704 = vmatprep.mubr.bf16.mxu0 %v11300_v33  ;;  %15089 = vst [vmem:[#allocation86_spill] sm:$0xff] %v11330_v40  ;;  %3100 = vmatpush1.bf16.msra.mxu1 %v9806_v21  ;;  %v11359_v21 = vld [vmem:[%s10524_s9] sm:$0xff]  }
 0x129   : > { %2427 = vmatmul.mubr.bf16.gmra.mrb[124].mxu1 %v11088_v39  ;;  %15097 = vst [vmem:[#allocation93_spill] sm:$0xff] %v11359_v21 }
 0x12a   : > { %v1490_v30 = vpop.f32.mrb[4].mxu0  ;;  %2434 = vmatprep.mubr.bf16.mxu1 %v11091_v5 }
 0x12b   : > { %v1492_v50 = vpop.f32.mrb[5].mxu0 }
 0x12c   : > { %v1493_v59 = vpop.f32.mrb[6].mxu0  ;;  %v9140_v4 = vpop.f32.mrb[20].mxu1 }
 0x12d   : > { %v1495_v19 = vpop.f32.mrb[7].mxu0  ;;  %v11340_v39 = vpop.f32.mrb[21].mxu1  ;;  %v661_v59 = vsel %vm645_vm1, %v618_v24, %v638_v54  ;;  %v15102_v24 = vunpack.c.h.bf16 %v15101_v20 }
 0x12e   : > { %15092 = vst [vmem:[#allocation88_spill] sm:$0xff] %v11340_v39  ;;  %v9141_v30 = vpop.f32.mrb[22].mxu1  ;;  %v11354_v31 = vpack.c.bf16 %v661_v59, %v681_v11  ;;  %v15098_v19 = vld [vmem:[#allocation17_spill] sm:$0xff] }
 0x12f   : > { %1705 = vmatmul.mubr.bf16.gmra.mrb[112].mxu0 %v11330_v40  ;;  %v11343_v47 = vpop.f32.mrb[23].mxu1  ;;  %v15099_v30 = vunpack.c.l.bf16 %v15098_v19  ;;  %v15100_v54 = vunpack.c.h.bf16 %v15098_v19 }
 0x130   : > { %15093 = vst [vmem:[#allocation89_spill] sm:$0xff] %v11343_v47  ;;  %1712 = vmatprep.mubr.bf16.mxu0 %v11336_v9  ;;  %15095 = vst [vmem:[#allocation91_spill] sm:$0xff] %v11354_v31 }
 0x131   : > { %2435 = vmatmul.mubr.bf16.gmra.mrb[128].mxu1 %v11103_v32  ;;  %v579_v5 = vrot.slane %v15099_v30, 7  ;;  %v599_v47 = vrot.slane %v15100_v54, 7  ;;  %v639_v32 = vrot.slane %v15102_v24, 7  ;;  %v11382_v24 = vld [vmem:[%s10524_s9 + $0x8] sm:$0xff]  }
 0x132   : > { %v11351_v49 = vpop.f32.mrb[8].mxu0  ;;  %2442 = vmatprep.mubr.bf16.mxu1 %v11109_v28  ;;  %15106 = vst [vmem:[#allocation95_spill] sm:$0xff] %v11382_v24 }
 0x133   : > { %15094 = vst [vmem:[#allocation90_spill] sm:$0xff] %v11351_v49  ;;  %v1500_v4 = vpop.f32.mrb[9].mxu0  ;;  %v722_v19 = vsel %vm645_vm1, %v639_v32, %v579_v5 }
 0x134   : > { %v11356_v50 = vpop.f32.mrb[10].mxu0  ;;  %v9144_v49 = vpop.f32.mrb[24].mxu1  ;;  %v702_v4 = vsel %vm645_vm1, %v579_v5, %v599_v47 }
 0x135   : > { %15096 = vst [vmem:[#allocation92_spill] sm:$0xff] %v11356_v50  ;;  %v1503_v39 = vpop.f32.mrb[11].mxu0  ;;  %v11367_v28 = vpop.f32.mrb[25].mxu1  ;;  %v11379_v49 = vpack.c.bf16 %v702_v4, %v722_v19 }
 0x136   : > { %15103 = vst [vmem:[#allocation17_spill] sm:$0xff] %v11367_v28  ;;  %v9145_v59 = vpop.f32.mrb[26].mxu1 }
 0x137   : > { %1713 = vmatmul.mubr.bf16.gmra.mrb[116].mxu0 %v11354_v31  ;;  %v11370_v11 = vpop.f32.mrb[27].mxu1  ;;  %15105 = vst [vmem:[#allocation94_spill] sm:$0xff] %v11379_v49  ;;  %v15107_v59 = vunpack.c.l.bf16 %v15101_v20 }
 0x138   : > { %15104 = vst [vmem:[#allocation19_spill] sm:$0xff] %v11370_v11  ;;  %1720 = vmatprep.mubr.bf16.mxu0 %v11359_v21 }
 0x139   : > { %2443 = vmatmul.mubr.bf16.gmra.mrb[132].mxu1 %v11128_v42  ;;  %v619_v50 = vrot.slane %v15107_v59, 7  ;;  %v15114_v59 = vld [vmem:[#allocation23_spill] sm:$0xff] }
 0x13a   : > { %v1506_v30 = vpop.f32.mrb[12].mxu0  ;;  %2450 = vmatprep.mubr.bf16.mxu1 %v11131_v2 }
 0x13b   : > { %v1508_v39 = vpop.f32.mrb[13].mxu0  ;;  %v662_v4 = vsel %vm645_vm1, %v619_v50, %v639_v32  ;;  %v682_v19 = vsel %vm645_vm1, %v599_v47, %v619_v50  ;;  %v15116_v32 = vunpack.c.h.bf16 %v15114_v59  ;;  %v15117_v47 = vld [vmem:[#allocation24_spill] sm:$0xff] }
 0x13c   : > { %v1509_v54 = vpop.f32.mrb[14].mxu0  ;;  %v9148_v11 = vpop.f32.mrb[28].mxu1  ;;  %v15118_v50 = vunpack.c.h.bf16 %v15117_v47 }
 0x13d   : > { %v1511_v28 = vpop.f32.mrb[15].mxu0  ;;  %v11386_v35 = vpop.f32.mrb[29].mxu1  ;;  %v11400_v11 = vpack.c.bf16 %v662_v4, %v682_v19  ;;  %v11405_v54 = vld [vmem:[%s10524_s9 + $0x10] sm:$0xff]   ;;  %v600_v42 = vrot.slane %v15116_v32, 7 }
 0x13e   : > { %15108 = vst [vmem:[#allocation96_spill] sm:$0xff] %v11386_v35  ;;  %v9149_v5 = vpop.f32.mrb[30].mxu1  ;;  %15113 = vst [vmem:[#allocation101_spill] sm:$0xff] %v11405_v54 }
 0x13f   : > { %1721 = vmatmul.mubr.bf16.gmra.mrb[120].mxu0 %v11379_v49  ;;  %v11389_v30 = vpop.f32.mrb[31].mxu1  ;;  %15111 = vst [vmem:[#allocation99_spill] sm:$0xff] %v11400_v11  ;;  %v15115_v5 = vunpack.c.l.bf16 %v15114_v59 }
 0x140   : > { %15109 = vst [vmem:[#allocation97_spill] sm:$0xff] %v11389_v30  ;;  %1728 = vmatprep.mubr.bf16.mxu0 %v11382_v24 }
 0x141   : > { %2451 = vmatmul.mubr.bf16.gmra.mrb[136].mxu1 %v11161_v23  ;;  %v580_v2 = vrot.slane %v15115_v5, 7  ;;  %v640_v23 = vrot.slane %v15118_v50, 7  ;;  %v11428_v50 = vld [vmem:[%s10524_s9 + $0x18] sm:$0xff]  }
 0x142   : > { %v11397_v20 = vpop.f32.mrb[16].mxu0  ;;  %2458 = vmatprep.mubr.bf16.mxu1 %v11164_v52  ;;  %15121 = vst [vmem:[#allocation102_spill] sm:$0xff] %v11428_v50 }
 0x143   : > { %15110 = vst [vmem:[#allocation98_spill] sm:$0xff] %v11397_v20  ;;  %v1516_v28 = vpop.f32.mrb[17].mxu0  ;;  %v723_v59 = vsel %vm645_vm1, %v640_v23, %v580_v2 }
 0x144   : > { %v11402_v39 = vpop.f32.mrb[18].mxu0  ;;  %v9152_v20 = vpop.f32.mrb[32].mxu1  ;;  %v703_v28 = vsel %vm645_vm1, %v580_v2, %v600_v42 }
 0x145   : > { %15112 = vst [vmem:[#allocation100_spill] sm:$0xff] %v11402_v39  ;;  %v1519_v30 = vpop.f32.mrb[19].mxu0  ;;  %v11413_v52 = vpop.f32.mrb[33].mxu1  ;;  %v11425_v20 = vpack.c.bf16 %v703_v28, %v723_v59 }
 0x146   : > { %15119 = vst [vmem:[#allocation23_spill] sm:$0xff] %v11413_v52  ;;  %v9153_v4 = vpop.f32.mrb[34].mxu1 }
 0x147   : > { %1729 = vmatmul.mubr.bf16.gmra.mrb[124].mxu0 %v11400_v11  ;;  %v11416_v19 = vpop.f32.mrb[35].mxu1  ;;  %v15122_v4 = vunpack.c.l.bf16 %v15117_v47 }
 0x148   : > { %15120 = vst [vmem:[#allocation24_spill] sm:$0xff] %v11416_v19  ;;  %1736 = vmatprep.mubr.bf16.mxu0 %v11405_v54 }
 0x149   : > { %2459 = vmatmul.mubr.bf16.gmra.mrb[140].mxu1 %v11184_v37  ;;  %v620_v39 = vrot.slane %v15122_v4, 7  ;;  %v15129_v4 = vld [vmem:[#allocation29_spill] sm:$0xff] }
 0x14a   : > { %v1522_v5 = vpop.f32.mrb[20].mxu0  ;;  %2466 = vmatprep.mubr.bf16.mxu1 %v11187_v3 }
 0x14b   : > { %v1524_v30 = vpop.f32.mrb[21].mxu0  ;;  %v663_v28 = vsel %vm645_vm1, %v620_v39, %v640_v23  ;;  %v683_v59 = vsel %vm645_vm1, %v600_v42, %v620_v39  ;;  %v15131_v23 = vunpack.c.h.bf16 %v15129_v4  ;;  %v15132_v42 = vld [vmem:[#allocation30_spill] sm:$0xff] }
 0x14c   : > { %v1525_v32 = vpop.f32.mrb[22].mxu0  ;;  %v9156_v19 = vpop.f32.mrb[36].mxu1  ;;  %v15133_v39 = vunpack.c.h.bf16 %v15132_v42 }
 0x14d   : > { %v1527_v52 = vpop.f32.mrb[23].mxu0  ;;  %v11432_v35 = vpop.f32.mrb[37].mxu1  ;;  %v11446_v19 = vpack.c.bf16 %v663_v28, %v683_v59  ;;  %v11451_v32 = vld [vmem:[%s10524_s9 + $0x20] sm:$0xff]   ;;  %v601_v37 = vrot.slane %v15131_v23, 7  ;;  %v11470_v23 = vld [vmem:[%s10524_s9 + $0x28] sm:$0xff]  }
 0x14e   : > { %15123 = vst [vmem:[#allocation103_spill] sm:$0xff] %v11432_v35  ;;  %v9157_v2 = vpop.f32.mrb[38].mxu1  ;;  %15128 = vst [vmem:[#allocation108_spill] sm:$0xff] %v11451_v32 }
 0x14f   : > { %1737 = vmatmul.mubr.bf16.gmra.mrb[128].mxu0 %v11425_v20  ;;  %v11435_v5 = vpop.f32.mrb[39].mxu1  ;;  %15126 = vst [vmem:[#allocation106_spill] sm:$0xff] %v11446_v19  ;;  %v15130_v2 = vunpack.c.l.bf16 %v15129_v4  ;;  %15135 = vst [vmem:[#allocation30_spill] sm:$0xff] %v11470_v23 }
 0x150   : > { %15124 = vst [vmem:[#allocation104_spill] sm:$0xff] %v11435_v5  ;;  %1744 = vmatprep.mubr.bf16.mxu0 %v11428_v50 }
 0x151   : > { %2467 = vmatmul.mubr.bf16.gmra.mrb[144].mxu1 %v11199_v57  ;;  %v581_v3 = vrot.slane %v15130_v2, 7  ;;  %v641_v57 = vrot.slane %v15133_v39, 7  ;;  %v15136_v39 = vunpack.c.l.bf16 %v15132_v42 }
 0x152   : > { %v11443_v47 = vpop.f32.mrb[24].mxu0  ;;  %2474 = vmatprep.mubr.bf16.mxu1 %v11202_v34 }
 0x153   : > { %15125 = vst [vmem:[#allocation105_spill] sm:$0xff] %v11443_v47  ;;  %v1532_v52 = vpop.f32.mrb[25].mxu0  ;;  %v704_v59 = vsel %vm645_vm1, %v581_v3, %v601_v37  ;;  %v724_v4 = vsel %vm645_vm1, %v641_v57, %v581_v3 }
 0x154   : > { %v11448_v30 = vpop.f32.mrb[26].mxu0  ;;  %v9160_v47 = vpop.f32.mrb[40].mxu1 }
 0x155   : > { %15127 = vst [vmem:[#allocation107_spill] sm:$0xff] %v11448_v30  ;;  %v1535_v5 = vpop.f32.mrb[27].mxu0  ;;  %v2075_v34 = vpop.f32.mrb[41].mxu1 }
 0x156   : > { %v9161_v52 = vpop.f32.mrb[42].mxu1  ;;  %v11467_v5 = vpack.c.bf16 %v704_v59, %v724_v4 }
 0x157   : > { %1745 = vmatmul.mubr.bf16.gmra.mrb[132].mxu0 %v11446_v19  ;;  %v2078_v28 = vpop.f32.mrb[43].mxu1  ;;  %v621_v52 = vrot.slane %v15136_v39, 7 }
 0x158   : > { %1752 = vmatprep.mubr.bf16.mxu0 %v11451_v32  ;;  %15134 = vst [vmem:[#allocation29_spill] sm:$0xff] %v11467_v5 }
 0x159   : > { %2475 = vmatmul.mubr.bf16.gmra.mrb[148].mxu1 %v11225_v1  ;;  %v684_v59 = vsel %vm645_vm1, %v601_v37, %v621_v52  ;;  %v15142_v37 = vunpack.c.l.bf16 %v10434_v26 }
 0x15a   : > { %v1538_v2 = vpop.f32.mrb[28].mxu0  ;;  %2482 = vmatprep.mubr.bf16.mxu1 %v11229_v0 }
 0x15b   : > { %v1540_v47 = vpop.f32.mrb[29].mxu0  ;;  %v664_v2 = vsel %vm645_vm1, %v621_v52, %v641_v57  ;;  %v15141_v57 = vunpack.c.h.bf16 %v10423_v36  ;;  %v808_v52 = vrot.slane %v15142_v37, 1 }
 0x15c   : > { %v1541_v34 = vpop.f32.mrb[30].mxu0  ;;  %v2268_v28 = vpop.f32.mrb[44].mxu1 }
 0x15d   : > { %v1543_v32 = vpop.f32.mrb[31].mxu0  ;;  %v2270_v30 = vpop.f32.mrb[45].mxu1  ;;  %v15140_v34 = vunpack.c.l.bf16 %v10423_v36  ;;  %v788_v28 = vrot.slane %v15141_v57, 1 }
 0x15e   : > { %v2271_v35 = vpop.f32.mrb[46].mxu1  ;;  %v11484_v30 = vpack.c.bf16 %v664_v2, %v684_v59 }
 0x15f   : > { %1753 = vmatmul.mubr.bf16.gmra.mrb[136].mxu0 %v11467_v5  ;;  %v2273_v3 = vpop.f32.mrb[47].mxu1  ;;  %v768_v39 = vrot.slane %v15140_v34, 1  ;;  %v869_v2 = vsel %vm846_vm0, %v788_v28, %v808_v52  ;;  %v15144_v5 = vunpack.c.l.bf16 %v10581_v44 }
 0x160   : > { %1760 = vmatprep.mubr.bf16.mxu0 %v11470_v23  ;;  %15138 = vst [vmem:[#allocation110_spill] sm:$0xff] %v11484_v30 }
 0x161   : > { %2483 = vmatmul.mubr.bf16.gmra.mrb[152].mxu1 %v11245_v8  ;;  %v889_v59 = vsel %vm846_vm0, %v768_v39, %v788_v28  ;;  %v769_v28 = vrot.slane %v15144_v5, 1  ;;  %v15161_v8 = vunpack.c.l.bf16 %v10847_v22 }
 0x162   : > { %v11481_v4 = vpop.f32.mrb[32].mxu0  ;;  %2490 = vmatprep.mubr.bf16.mxu1 %v11248_v48  ;;  %v11502_v57 = vpack.c.bf16 %v869_v2, %v889_v59 }
 0x163   : > { %15137 = vst [vmem:[#allocation109_spill] sm:$0xff] %v11481_v4  ;;  %v1548_v32 = vpop.f32.mrb[33].mxu0  ;;  %v772_v0 = vrot.slane %v15161_v8, 1  ;;  %v11626_v8 = vld [vmem:[%s14625_s4 + $0x140] sm:$0xff]  }
 0x164   : > { %v11486_v35 = vpop.f32.mrb[34].mxu0  ;;  %v2276_v42 = vpop.f32.mrb[48].mxu1  ;;  %9338 = vmatprep.subr.bf16.mxu1 %v11626_v8 }
 0x165   : > { %15139 = vst [vmem:[#allocation111_spill] sm:$0xff] %v11486_v35  ;;  %v1551_v47 = vpop.f32.mrb[35].mxu0  ;;  %v2278_v3 = vpop.f32.mrb[49].mxu1 }
 0x166   : > { %v2279_v23 = vpop.f32.mrb[50].mxu1 }
 0x167   : > { %1761 = vmatmul.mubr.bf16.gmra.mrb[140].mxu0 %v11484_v30  ;;  %v2281_v32 = vpop.f32.mrb[51].mxu1  ;;  %v15143_v23 = vunpack.c.h.bf16 %v10434_v26  ;;  %v9796_v30 = vld [vmem:[%s14623_s2 + $0x88] sm:$0xff]  }
 0x168   : > { %9090 = vmatprep.mubr.bf16.mxu0 %v11141_v53 }
 0x169   : > { %2491 = vmatmul.mubr.bf16.gmra.mrb[156].mxu1 %v11271_v46  ;;  %v828_v37 = vrot.slane %v15143_v23, 1 }
 0x16a   : > { %v1554_v42 = vpop.f32.mrb[36].mxu0  ;;  %2498 = vmatprep.mubr.bf16.mxu1 %v11275_v38 }
 0x16b   : > { %v1556_v47 = vpop.f32.mrb[37].mxu0  ;;  %v15145_v42 = vunpack.c.h.bf16 %v10581_v44  ;;  %v909_v5 = vsel %vm846_vm0, %v828_v37, %v768_v39 }
 0x16c   : > { %v1557_v34 = vpop.f32.mrb[38].mxu0  ;;  %v11506_v3 = vpop.f32.mrb[52].mxu1  ;;  %v15146_v47 = vunpack.c.l.bf16 %v10584_v25 }
 0x16d   : > { %v1559_v32 = vpop.f32.mrb[39].mxu0  ;;  %v789_v38 = vrot.slane %v15145_v42, 1  ;;  %v2286_v59 = vpop.f32.mrb[53].mxu1  ;;  %v9797_v42 = vld [vmem:[%s14623_s2 + $0x90] sm:$0xff]  }
 0x16e   : > { %v809_v2 = vrot.slane %v15146_v47, 1  ;;  %v11517_v34 = vpop.f32.mrb[54].mxu1  ;;  %v849_v32 = vsel %vm846_vm0, %v808_v52, %v828_v37 }
 0x16f   : > { %9091 = vmatmul.mubr.bf16.vlgmr.msra.gmra.mrb[144].mxu0 %v11145_v41  ;;  %v2289_v23 = vpop.f32.mrb[55].mxu1 }
 0x170   : > { %9163 = vmatpush3.bf16.msra.mxu0 %v11151_v63  ;;  %9094 = vmatprep.mubr.bf16.mxu0 %v11502_v57  ;;  %v870_v47 = vsel %vm846_vm0, %v789_v38, %v809_v2  ;;  %v890_v63 = vsel %vm846_vm0, %v769_v28, %v789_v38  ;;  %v11537_v23 = vpack.c.bf16 %v909_v5, %v849_v32  ;;  %v9798_v38 = vld [vmem:[%s14623_s2 + $0x98] sm:$0xff]   ;;  %v15151_v32 = vunpack.c.h.bf16 %v10743_v43 }
 0x171   : > { %2499 = vmatmul.mubr.bf16.gmra.mrb[160].mxu1 %v11293_v56  ;;  %9164 = vmatprep.subr.bf16.mxu0 %v9796_v30  ;;  %v11541_v37 = vpack.c.bf16 %v870_v47, %v890_v63  ;;  %v15149_v56 = vunpack.c.h.bf16 %v10584_v25 }
 0x172   : > { %v11534_v59 = vpop.f32.mrb[40].mxu0  ;;  %2506 = vmatprep.mubr.bf16.mxu1 %v11300_v33  ;;  %v15150_v33 = vunpack.c.l.bf16 %v10743_v43  ;;  %v790_v5 = vrot.slane %v15151_v32, 1  ;;  %v9800_v32 = vld [vmem:[%s14623_s2 + $0xa0] sm:$0xff]  }
 0x173   : > { %15147 = vst [vmem:[#allocation112_spill] sm:$0xff] %v11534_v59  ;;  %v1564_v52 = vpop.f32.mrb[41].mxu0  ;;  %v829_v46 = vrot.slane %v15149_v56, 1  ;;  %v15154_v59 = vunpack.c.l.bf16 %v10788_v6 }
 0x174   : > { %v11539_v39 = vpop.f32.mrb[42].mxu0  ;;  %9165 = vmatpush3.bf16.msra.mxu0 %v9796_v30  ;;  %v2292_v35 = vpop.f32.mrb[56].mxu1  ;;  %v770_v52 = vrot.slane %v15150_v33, 1  ;;  %v15152_v30 = vunpack.c.l.bf16 %v10755_v58 }
 0x175   : > { %15148 = vst [vmem:[#allocation113_spill] sm:$0xff] %v11539_v39  ;;  %v1567_v4 = vpop.f32.mrb[43].mxu0  ;;  %9166 = vmatprep.subr.bf16.mxu0 %v9797_v42  ;;  %v2294_v63 = vpop.f32.mrb[57].mxu1  ;;  %v910_v33 = vsel %vm846_vm0, %v829_v46, %v769_v28  ;;  %v771_v48 = vrot.slane %v15154_v59, 1 }
 0x176   : > { %v810_v47 = vrot.slane %v15152_v30, 1  ;;  %v2295_v39 = vpop.f32.mrb[58].mxu1  ;;  %v850_v4 = vsel %vm846_vm0, %v809_v2, %v829_v46  ;;  %v15153_v63 = vunpack.c.h.bf16 %v10755_v58 }
 0x177   : > { %9095 = vmatmul.mubr.bf16.gmra.mrb[148].mxu0 %v11537_v23  ;;  %v2297_v56 = vpop.f32.mrb[59].mxu1  ;;  %v891_v39 = vsel %vm846_vm0, %v770_v52, %v790_v5  ;;  %v11569_v30 = vpack.c.bf16 %v910_v33, %v850_v4  ;;  %v15156_v4 = vunpack.c.l.bf16 %v10819_v17 }
 0x178   : > { %9098 = vmatprep.mubr.bf16.mxu0 %v11541_v37  ;;  %9167 = vmatpush3.bf16.msra.mxu0 %v9797_v42  ;;  %v871_v35 = vsel %vm846_vm0, %v790_v5, %v810_v47  ;;  %v830_v56 = vrot.slane %v15153_v63, 1 }
 0x179   : > { %2507 = vmatmul.mubr.bf16.gmra.mrb[164].mxu1 %v11330_v40  ;;  %9168 = vmatprep.subr.bf16.mxu0 %v9798_v38  ;;  %v11571_v28 = vpack.c.bf16 %v871_v35, %v891_v39  ;;  %v811_v33 = vrot.slane %v15156_v4, 1 }
 0x17a   : > { %v1570_v42 = vpop.f32.mrb[44].mxu0  ;;  %2514 = vmatprep.mubr.bf16.mxu1 %v11336_v9  ;;  %v851_v59 = vsel %vm846_vm0, %v810_v47, %v830_v56 }
 0x17b   : > { %v1572_v2 = vpop.f32.mrb[45].mxu0  ;;  %v15155_v42 = vunpack.c.h.bf16 %v10788_v6 }
 0x17c   : > { %v1573_v46 = vpop.f32.mrb[46].mxu0  ;;  %9169 = vmatpush3.bf16.msra.mxu0 %v9798_v38  ;;  %v11575_v40 = vpop.f32.mrb[60].mxu1  ;;  %v9801_v38 = vld [vmem:[%s14623_s2 + $0xa8] sm:$0xff]  }
 0x17d   : > { %v1575_v5 = vpop.f32.mrb[47].mxu0  ;;  %9170 = vmatprep.subr.bf16.mxu0 %v9800_v32  ;;  %v791_v9 = vrot.slane %v15155_v42, 1  ;;  %v2302_v2 = vpop.f32.mrb[61].mxu1  ;;  %v911_v46 = vsel %vm846_vm0, %v830_v56, %v770_v52  ;;  %v9802_v42 = vld [vmem:[%s14623_s2 + $0xb0] sm:$0xff]  }
 0x17e   : > { %v11586_v35 = vpop.f32.mrb[62].mxu1  ;;  %v11605_v52 = vpack.c.bf16 %v911_v46, %v851_v59  ;;  %v15160_v2 = vunpack.c.h.bf16 %v10819_v17 }
 0x17f   : > { %15157 = vst [vmem:[#allocation114_spill] sm:$0xff] %v11586_v35  ;;  %9099 = vmatmul.mubr.bf16.gmra.mrb[152].mxu0 %v11569_v30  ;;  %v2305_v39 = vpop.f32.mrb[63].mxu1  ;;  %v872_v63 = vsel %vm846_vm0, %v791_v9, %v811_v33  ;;  %v892_v5 = vsel %vm846_vm0, %v771_v48, %v791_v9 }
 0x180   : > { %9102 = vmatprep.mubr.bf16.mxu0 %v11571_v28  ;;  %9171 = vmatpush3.bf16.msra.mxu0 %v9800_v32  ;;  %v11609_v56 = vpack.c.bf16 %v872_v63, %v892_v5  ;;  %v831_v39 = vrot.slane %v15160_v2, 1  ;;  %v9804_v63 = vld [vmem:[%s14623_s2 + $0xb8] sm:$0xff]  }
 0x181   : > { %2515 = vmatmul.mubr.bf16.gmra.mrb[168].mxu1 %v11354_v31  ;;  %9172 = vmatprep.subr.bf16.mxu0 %v9801_v38 }
 0x182   : > { %v11602_v4 = vpop.f32.mrb[48].mxu0  ;;  %2522 = vmatprep.mubr.bf16.mxu1 %v11359_v21  ;;  %v15166_v21 = vunpack.c.l.bf16 %v10932_v18 }
 0x183   : > { %15158 = vst [vmem:[#allocation115_spill] sm:$0xff] %v11602_v4  ;;  %v1580_v47 = vpop.f32.mrb[49].mxu0  ;;  %v15162_v4 = vunpack.c.h.bf16 %v10847_v22 }
 0x184   : > { %v11607_v32 = vpop.f32.mrb[50].mxu0  ;;  %9173 = vmatpush3.bf16.msra.mxu0 %v9801_v38  ;;  %v2308_v9 = vpop.f32.mrb[64].mxu1  ;;  %v15163_v47 = vunpack.c.l.bf16 %v10875_v27 }
 0x185   : > { %15159 = vst [vmem:[#allocation116_spill] sm:$0xff] %v11607_v32  ;;  %v1583_v31 = vpop.f32.mrb[51].mxu0  ;;  %v792_v1 = vrot.slane %v15162_v4, 1  ;;  %v2310_v46 = vpop.f32.mrb[65].mxu1  ;;  %9174 = vmatprep.subr.bf16.mxu0 %v9802_v42  ;;  %v912_v4 = vsel %vm846_vm0, %v831_v39, %v771_v48 }
 0x186   : > { %v812_v59 = vrot.slane %v15163_v47, 1  ;;  %v2311_v5 = vpop.f32.mrb[66].mxu1  ;;  %v852_v31 = vsel %vm846_vm0, %v811_v33, %v831_v39  ;;  %v11641_v47 = vld [vmem:[%s14623_s2 + $0x200] sm:$0xff]  }
 0x187   : > { %9103 = vmatmul.mubr.bf16.gmra.mrb[156].mxu0 %v11605_v52  ;;  %v2313_v38 = vpop.f32.mrb[67].mxu1  ;;  %v893_v9 = vsel %vm846_vm0, %v772_v0, %v792_v1  ;;  %v11645_v33 = vpack.c.bf16 %v912_v4, %v852_v31  ;;  %v15164_v5 = vunpack.c.h.bf16 %v10875_v27 }
 0x188   : > { %9106 = vmatprep.mubr.bf16.mxu0 %v11609_v56  ;;  %9175 = vmatpush3.bf16.msra.mxu0 %v9802_v42  ;;  %v873_v2 = vsel %vm846_vm0, %v792_v1, %v812_v59 }
 0x189   : > { %2523 = vmatmul.mubr.bf16.gmra.mrb[172].mxu1 %v11379_v49  ;;  %9176 = vmatprep.subr.bf16.mxu0 %v9804_v63  ;;  %v11647_v39 = vpack.c.bf16 %v873_v2, %v893_v9  ;;  %v832_v1 = vrot.slane %v15164_v5, 1 }
 0x18a   : > { %v1586_v46 = vpop.f32.mrb[52].mxu0  ;;  %2530 = vmatprep.mubr.bf16.mxu1 %v11382_v24  ;;  %v15167_v24 = vunpack.c.h.bf16 %v10932_v18 }
 0x18b   : > { %v1588_v48 = vpop.f32.mrb[53].mxu0  ;;  %v773_v46 = vrot.slane %v15166_v21, 1  ;;  %v913_v21 = vsel %vm846_vm0, %v832_v1, %v772_v0  ;;  %v15170_v0 = vunpack.c.h.bf16 %v10937_v16 }
 0x18c   : > { %v1589_v42 = vpop.f32.mrb[54].mxu0  ;;  %v11651_v38 = vpop.f32.mrb[68].mxu1  ;;  %9177 = vmatpush3.bf16.msra.mxu0 %v9804_v63  ;;  %v793_v32 = vrot.slane %v15167_v24, 1  ;;  %v15168_v48 = vunpack.c.l.bf16 %v10937_v16 }
 0x18d   : > { %15165 = vst [vmem:[#allocation117_spill] sm:$0xff] %v11651_v38  ;;  %v1591_v49 = vpop.f32.mrb[55].mxu0  ;;  %v2318_v4 = vpop.f32.mrb[69].mxu1  ;;  %9250 = vmatprep.subr.bf16.mxu0 %v11641_v47 }
 0x18e   : > { %v813_v31 = vrot.slane %v15168_v48, 1  ;;  %v11660_v2 = vpop.f32.mrb[70].mxu1  ;;  %v853_v49 = vsel %vm846_vm0, %v812_v59, %v832_v1  ;;  %v894_v63 = vsel %vm846_vm0, %v773_v46, %v793_v32  ;;  %v833_v1 = vrot.slane %v15170_v0, 1 }
 0x18f   : > { %15169 = vst [vmem:[#allocation118_spill] sm:$0xff] %v11660_v2  ;;  %9107 = vmatmul.mubr.bf16.gmra.mrb[160].mxu0 %v11645_v33  ;;  %v2321_v9 = vpop.f32.mrb[71].mxu1  ;;  %v11677_v4 = vpack.c.bf16 %v913_v21, %v853_v49 }
 0x190   : > { %9110 = vmatprep.mubr.bf16.mxu0 %v11647_v39  ;;  %v874_v24 = vsel %vm846_vm0, %v793_v32, %v813_v31  ;;  %v854_v49 = vsel %vm846_vm0, %v813_v31, %v833_v1  ;;  %v914_v21 = vsel %vm846_vm0, %v833_v1, %v773_v46  ;;  %v15171_v46 = vpack.c.bf16 %v11307_v15, %v11312_v13  ;;  %v9807_v15 = vld [vmem:[%s14623_s2 + $0x208] sm:$0xff]  }
 0x191   : > { %2531 = vmatmul.mubr.bf16.gmra.mrb[176].mxu1 %v11400_v11  ;;  %v11679_v9 = vpack.c.bf16 %v874_v24, %v894_v63 }
 0x192   : > { %v1594_v42 = vpop.f32.mrb[56].mxu0  ;;  %2538 = vmatprep.mubr.bf16.mxu1 %v11405_v54 }
 0x193   : > { %v11675_v5 = vadd.f32 %v11210_v10, %v1594_v42  ;;  %v1596_v48 = vpop.f32.mrb[57].mxu0 }
 0x194   : > { %v1597_v59 = vpop.f32.mrb[58].mxu0  ;;  %v2324_v2 = vpop.f32.mrb[72].mxu1 }
 0x195   : > { %v11684_v32 = vadd.f32 %v11213_v62, %v1597_v59  ;;  %v1599_v11 = vpop.f32.mrb[59].mxu0  ;;  %v2326_v38 = vpop.f32.mrb[73].mxu1 }
 0x196   : > { %v2327_v35 = vpop.f32.mrb[74].mxu1  ;;  %v11694_v11 = vpack.c.bf16 %v914_v21, %v854_v49 }
 0x197   : > { %9111 = vmatmul.mubr.bf16.gmra.mrb[164].mxu0 %v11677_v4  ;;  %v2329_v10 = vpop.f32.mrb[75].mxu1 }
 0x198   : > { %9114 = vmatprep.mubr.bf16.mxu0 %v11679_v9 }
 0x199   : > { %2539 = vmatmul.mubr.bf16.gmra.mrb[180].mxu1 %v11425_v20 }
 0x19a   : > { %v1602_v2 = vpop.f32.mrb[60].mxu0  ;;  %2546 = vmatprep.mubr.bf16.mxu1 %v11428_v50 }
 0x19b   : > { %v1604_v62 = vpop.f32.mrb[61].mxu0 }
 0x19c   : > { %v1605_v35 = vpop.f32.mrb[62].mxu0  ;;  %v11696_v38 = vpop.f32.mrb[76].mxu1  ;;  %v15172_v62 = vpack.c.bf16 %v15087_v29, %v10661_v45 }
 0x19d   : > { %v1607_v24 = vpop.f32.mrb[63].mxu0  ;;  %v2334_v63 = vpop.f32.mrb[77].mxu1 }
 0x19e   : > { %v11698_v42 = vpop.f32.mrb[78].mxu1 }
 0x19f   : > { %9115 = vmatmul.mubr.bf16.gmra.mrb[168].mxu0 %v11694_v11  ;;  %v2337_v31 = vpop.f32.mrb[79].mxu1 }
 0x1a0   : > { %9178 = vmatprep.mubr.bf16.mxu0 %v15171_v46  ;;  %v9810_v46 = vld [vmem:[%s14623_s2 + $0x220] sm:$0xff]  }
 0x1a1   : > { %2547 = vmatmul.mubr.bf16.gmra.mrb[184].mxu1 %v11446_v19  ;;  %v15237_v19 = vld [vmem:[#allocation35_spill] sm:$0xff] }
 0x1a2   : > { %v1610_v48 = vpop.f32.mrb[64].mxu0  ;;  %3101 = vmatprep.mubr.bf16.mxu1 %v10423_v36 }
 0x1a3   : > { %v11707_v59 = vadd.f32 %v11233_v7, %v1610_v48  ;;  %v1612_v0 = vpop.f32.mrb[65].mxu0  ;;  %v9808_v7 = vld [vmem:[%s14623_s2 + $0x210] sm:$0xff]  }
 0x1a4   : > { %v1613_v1 = vpop.f32.mrb[66].mxu0  ;;  %v2340_v10 = vpop.f32.mrb[80].mxu1 }
 0x1a5   : > { %v11710_v49 = vadd.f32 %v11236_v60, %v1613_v1  ;;  %v1615_v21 = vpop.f32.mrb[67].mxu0  ;;  %v2342_v2 = vpop.f32.mrb[81].mxu1 }
 0x1a6   : > { %v2343_v13 = vpop.f32.mrb[82].mxu1  ;;  %v15173_v21 = vld [vmem:[#allocation79_spill] sm:$0xff] }
 0x1a7   : > { %9179 = vmatmul.mubr.bf16.vlgmr.msra.gmra.mrb[172].mxu0 %v15172_v62  ;;  %v2345_v35 = vpop.f32.mrb[83].mxu1  ;;  %v9811_v13 = vld [vmem:[%s14623_s2 + $0x228] sm:$0xff]  }
 0x1a8   : > { %9251 = vmatpush3.bf16.msra.mxu0 %v11641_v47  ;;  %9182 = vmatprep.mubr.bf16.mxu0 %v11141_v53  ;;  %v9815_v53 = vld [vmem:[%s14625_s4 + $0x148] sm:$0xff]  }
 0x1a9   : > { %3102 = vmatmul.mubr.bf16.vlgmr.msra.gmra.mrb[188].mxu1 %v10611_v61  ;;  %9252 = vmatprep.subr.bf16.mxu0 %v9807_v15  ;;  %v9809_v61 = vld [vmem:[%s14623_s2 + $0x218] sm:$0xff]  }
 0x1aa   : > { %v1618_v60 = vpop.f32.mrb[68].mxu0  ;;  %3109 = vmatprep.mubr.bf16.mxu1 %v10434_v26  ;;  %9339 = vmatpush3.bf16.msra.mxu1 %v11626_v8 }
 0x1ab   : > { %v1620_v24 = vpop.f32.mrb[69].mxu0  ;;  %9340 = vmatprep.subr.bf16.mxu1 %v9815_v53 }
 0x1ac   : > { %v1621_v45 = vpop.f32.mrb[70].mxu0  ;;  %9253 = vmatpush3.bf16.msra.mxu0 %v9807_v15  ;;  %v11726_v29 = vpop.f32.mrb[84].mxu1 }
 0x1ad   : > { %v1623_v47 = vpop.f32.mrb[71].mxu0  ;;  %v2350_v63 = vpop.f32.mrb[85].mxu1  ;;  %9254 = vmatprep.subr.bf16.mxu0 %v9808_v7 }
 0x1ae   : > { %v11734_v31 = vpop.f32.mrb[86].mxu1  ;;  %9341 = vmatpush3.bf16.msra.mxu1 %v9815_v53  ;;  %v9814_v53 = vld [vmem:[%s14623_s2 + $0x238] sm:$0xff]  }
 0x1af   : > { %9183 = vmatmul.mubr.bf16.gmra.mrb[176].mxu0 %v11145_v41  ;;  %v2353_v8 = vpop.f32.mrb[87].mxu1 }
 0x1b0   : > { %9186 = vmatprep.mubr.bf16.mxu0 %v11502_v57  ;;  %9255 = vmatpush3.bf16.msra.mxu0 %v9808_v7  ;;  %v9813_v7 = vld [vmem:[%s14623_s2 + $0x230] sm:$0xff]  }
 0x1b1   : > { %3110 = vmatmul.mubr.bf16.gmra.mrb[192].mxu1 %v10683_v55  ;;  %9256 = vmatprep.subr.bf16.mxu0 %v9809_v61 }
 0x1b2   : > { %v1626_v48 = vpop.f32.mrb[72].mxu0  ;;  %3117 = vmatprep.mubr.bf16.mxu1 %v10581_v44  ;;  %v15207_v44 = vld [vmem:[#allocation11_spill] sm:$0xff] }
 0x1b3   : > { %v11744_v0 = vadd.f32 %v11256_v51, %v1626_v48  ;;  %v1628_v41 = vpop.f32.mrb[73].mxu0  ;;  %v15174_v51 = vld [vmem:[#allocation31_spill] sm:$0xff]  ;;  %v15175_v48 = vld [vmem:[#allocation36_spill] sm:$0xff] }
 0x1b4   : > { %v1629_v1 = vpop.f32.mrb[74].mxu0  ;;  %v2356_v10 = vpop.f32.mrb[88].mxu1  ;;  %9257 = vmatpush3.bf16.msra.mxu0 %v9809_v61 }
 0x1b5   : > { %v11747_v2 = vadd.f32 %v15173_v21, %v1629_v1  ;;  %v1631_v55 = vpop.f32.mrb[75].mxu0  ;;  %v2358_v15 = vpop.f32.mrb[89].mxu1  ;;  %9258 = vmatprep.subr.bf16.mxu0 %v9810_v46 }
 0x1b6   : > { %v2359_v62 = vpop.f32.mrb[90].mxu1  ;;  %v15176_v15 = vld [vmem:[#allocation82_spill] sm:$0xff] }
 0x1b7   : > { %9187 = vmatmul.mubr.bf16.gmra.mrb[180].mxu0 %v11537_v23  ;;  %v2361_v35 = vpop.f32.mrb[91].mxu1 }
 0x1b8   : > { %9190 = vmatprep.mubr.bf16.mxu0 %v11541_v37  ;;  %9259 = vmatpush3.bf16.msra.mxu0 %v9810_v46 }
 0x1b9   : > { %3118 = vmatmul.mubr.bf16.gmra.mrb[196].mxu1 %v15174_v51  ;;  %9260 = vmatprep.subr.bf16.mxu0 %v9811_v13  ;;  %v15177_v51 = vmov 0  }
 0x1ba   : > { %v1634_v60 = vpop.f32.mrb[76].mxu0  ;;  %3125 = vmatprep.mubr.bf16.mxu1 %v10584_v25 }
 0x1bb   : > { %v1636_v24 = vpop.f32.mrb[77].mxu0 }
 0x1bc   : > { %v1637_v45 = vpop.f32.mrb[78].mxu0  ;;  %v11759_v47 = vpop.f32.mrb[92].mxu1  ;;  %9261 = vmatpush3.bf16.msra.mxu0 %v9811_v13  ;;  %v15178_v24 = vld [vmem:[#allocation41_spill] sm:$0xff] }
 0x1bd   : > { %v1639_v63 = vpop.f32.mrb[79].mxu0  ;;  %v2366_v61 = vpop.f32.mrb[93].mxu1  ;;  %9262 = vmatprep.subr.bf16.mxu0 %v9813_v7 }
 0x1be   : > { %v11764_v8 = vpop.f32.mrb[94].mxu1 }
 0x1bf   : > { %9191 = vmatmul.mubr.bf16.gmra.mrb[184].mxu0 %v11569_v30  ;;  %v2369_v46 = vpop.f32.mrb[95].mxu1 }
 0x1c0   : > { %9194 = vmatprep.mubr.bf16.mxu0 %v11571_v28  ;;  %9263 = vmatpush3.bf16.msra.mxu0 %v9813_v7 }
 0x1c1   : > { %3126 = vmatmul.mubr.bf16.gmra.mrb[200].mxu1 %v15175_v48  ;;  %9264 = vmatprep.subr.bf16.mxu0 %v9814_v53 }
 0x1c2   : > { %v1642_v41 = vpop.f32.mrb[80].mxu0  ;;  %3133 = vmatprep.mubr.bf16.mxu1 %v10743_v43 }
 0x1c3   : > { %v11771_v1 = vadd.f32 %v11279_v14, %v1642_v41  ;;  %v1644_v10 = vpop.f32.mrb[81].mxu0 }
 0x1c4   : > { %v1645_v21 = vpop.f32.mrb[82].mxu0  ;;  %v2372_v55 = vpop.f32.mrb[96].mxu1  ;;  %9265 = vmatpush3.bf16.msra.mxu0 %v9814_v53 }
 0x1c5   : > { %v11774_v13 = vadd.f32 %v15176_v15, %v1645_v21  ;;  %v1647_v62 = vpop.f32.mrb[83].mxu0  ;;  %v2374_v35 = vpop.f32.mrb[97].mxu1  ;;  %4939 = vmatprep.subr.bf16.mxu0 %v15177_v51  ;;  %v9816_v55 = vld [vmem:[%s14625_s4 + $0x150] sm:$0xff]  }
 0x1c6   : > { %v2375_v7 = vpop.f32.mrb[98].mxu1  ;;  %v15181_v15 = vld [vmem:[#allocation44_spill] sm:$0xff]  ;;  %9342 = vmatprep.subr.bf16.mxu1 %v9816_v55  ;;  %v15182_v62 = vld [vmem:[#allocation85_spill] sm:$0xff] }
 0x1c7   : > { %9195 = vmatmul.mubr.bf16.gmra.mrb[188].mxu0 %v11605_v52  ;;  %v2377_v60 = vpop.f32.mrb[99].mxu1  ;;  %9343 = vmatpush3.bf16.msra.mxu1 %v9816_v55 }
 0x1c8   : > { %9198 = vmatprep.mubr.bf16.mxu0 %v11609_v56 }
 0x1c9   : > { %3134 = vmatmul.mubr.bf16.gmra.mrb[204].mxu1 %v15178_v24  ;;  %v15183_v24 = vld [vmem:[#allocation25_spill] sm:$0xff] }
 0x1ca   : > { %v1650_v14 = vpop.f32.mrb[84].mxu0  ;;  %3141 = vmatprep.mubr.bf16.mxu1 %v10755_v58 }
 0x1cb   : > { %v1652_v45 = vpop.f32.mrb[85].mxu0 }
 0x1cc   : > { %v2380_v63 = vpop.f32.mrb[100].mxu1  ;;  %v1653_v61 = vpop.f32.mrb[86].mxu0 }
 0x1cd   : > { %v11782_v53 = vadd.f32 %v2380_v63, %v11675_v5  ;;  %v2382_v46 = vpop.f32.mrb[101].mxu1  ;;  %v1655_v48 = vpop.f32.mrb[87].mxu0 }
 0x1ce   : > { %v2383_v41 = vpop.f32.mrb[102].mxu1  ;;  %v15184_v48 = vld [vmem:[#allocation46_spill] sm:$0xff] }
 0x1cf   : > { %15179 = vst [vmem:[#allocation79_spill] sm:$0xff] %v11782_v53  ;;  %v11785_v10 = vadd.f32 %v2383_v41, %v11684_v32  ;;  %9199 = vmatmul.mubr.bf16.gmra.mrb[192].mxu0 %v11645_v33  ;;  %v2385_v21 = vpop.f32.mrb[103].mxu1  ;;  %v15231_v53 = vld [vmem:[#allocation28_spill] sm:$0xff] }
 0x1d0   : > { %9202 = vmatprep.mubr.bf16.mxu0 %v11647_v39 }
 0x1d1   : > { %15180 = vst [vmem:[#allocation31_spill] sm:$0xff] %v11785_v10  ;;  %3142 = vmatmul.mubr.bf16.gmra.mrb[208].mxu1 %v15181_v15  ;;  %v15230_v10 = vld [vmem:[#allocation27_spill] sm:$0xff] }
 0x1d2   : > { %v1658_v5 = vpop.f32.mrb[88].mxu0  ;;  %3149 = vmatprep.mubr.bf16.mxu1 %v10788_v6  ;;  %v15197_v6 = vld [vmem:[#allocation7_spill] sm:$0xff] }
 0x1d3   : > { %v11795_v35 = vadd.f32 %v15182_v62, %v1658_v5  ;;  %v1660_v32 = vpop.f32.mrb[89].mxu0 }
 0x1d4   : > { %v1661_v7 = vpop.f32.mrb[90].mxu0  ;;  %v2388_v60 = vpop.f32.mrb[104].mxu1 }
 0x1d5   : > { %v11798_v14 = vadd.f32 %v15183_v24, %v1661_v7  ;;  %v1663_v45 = vpop.f32.mrb[91].mxu0  ;;  %v2390_v63 = vpop.f32.mrb[105].mxu1 }
 0x1d6   : > { %v2391_v61 = vpop.f32.mrb[106].mxu1  ;;  %v15187_v45 = vld [vmem:[#allocation3_spill] sm:$0xff] }
 0x1d7   : > { %9203 = vmatmul.mubr.bf16.gmra.mrb[196].mxu0 %v11677_v4  ;;  %v2393_v46 = vpop.f32.mrb[107].mxu1  ;;  %v15188_v63 = vld [vmem:[#allocation47_spill] sm:$0xff] }
 0x1d8   : > { %9206 = vmatprep.mubr.bf16.mxu0 %v11679_v9  ;;  %v15189_v46 = vld [vmem:[#allocation88_spill] sm:$0xff] }
 0x1d9   : > { %3150 = vmatmul.mubr.bf16.gmra.mrb[212].mxu1 %v15184_v48 }
 0x1da   : > { %v1666_v41 = vpop.f32.mrb[92].mxu0  ;;  %3157 = vmatprep.mubr.bf16.mxu1 %v10819_v17  ;;  %v15192_v17 = vld [vmem:[#allocation5_spill] sm:$0xff] }
 0x1db   : > { %v1668_v21 = vpop.f32.mrb[93].mxu0 }
 0x1dc   : > { %v2396_v55 = vpop.f32.mrb[108].mxu1  ;;  %v1669_v15 = vpop.f32.mrb[94].mxu0 }
 0x1dd   : > { %v11805_v5 = vadd.f32 %v2396_v55, %v11707_v59  ;;  %v2398_v62 = vpop.f32.mrb[109].mxu1  ;;  %v1671_v32 = vpop.f32.mrb[95].mxu0  ;;  %v15190_v55 = vld [vmem:[#allocation89_spill] sm:$0xff] }
 0x1de   : > { %v2399_v7 = vpop.f32.mrb[110].mxu1 }
 0x1df   : > { %15185 = vst [vmem:[#allocation36_spill] sm:$0xff] %v11805_v5  ;;  %v11808_v60 = vadd.f32 %v2399_v7, %v11710_v49  ;;  %9207 = vmatmul.mubr.bf16.gmra.mrb[200].mxu0 %v11694_v11  ;;  %v2401_v24 = vpop.f32.mrb[111].mxu1  ;;  %v15191_v7 = vld [vmem:[#allocation4_spill] sm:$0xff] }
 0x1e0   : > { %9210 = vmatprep.mubr.bf16.mxu0 %v15187_v45 }
 0x1e1   : > { %15186 = vst [vmem:[#allocation82_spill] sm:$0xff] %v11808_v60  ;;  %3158 = vmatmul.mubr.bf16.gmra.mrb[216].mxu1 %v15188_v63  ;;  %v15193_v63 = vld [vmem:[#allocation49_spill] sm:$0xff] }
 0x1e2   : > { %v1674_v61 = vpop.f32.mrb[96].mxu0  ;;  %3165 = vmatprep.mubr.bf16.mxu1 %v10847_v22 }
 0x1e3   : > { %v11815_v48 = vadd.f32 %v15189_v46, %v1674_v61  ;;  %v1676_v59 = vpop.f32.mrb[97].mxu0 }
 0x1e4   : > { %v1677_v41 = vpop.f32.mrb[98].mxu0  ;;  %v2404_v21 = vpop.f32.mrb[112].mxu1 }
 0x1e5   : > { %v11818_v15 = vadd.f32 %v15190_v55, %v1677_v41  ;;  %v1679_v49 = vpop.f32.mrb[99].mxu0  ;;  %v2406_v62 = vpop.f32.mrb[113].mxu1 }
 0x1e6   : > { %v2407_v32 = vpop.f32.mrb[114].mxu1 }
 0x1e7   : > { %9211 = vmatmul.mubr.bf16.gmra.mrb[204].mxu0 %v15191_v7  ;;  %v2409_v24 = vpop.f32.mrb[115].mxu1  ;;  %v15196_v32 = vld [vmem:[#allocation6_spill] sm:$0xff] }
 0x1e8   : > { %9214 = vmatprep.mubr.bf16.mxu0 %v15192_v17 }
 0x1e9   : > { %3166 = vmatmul.mubr.bf16.gmra.mrb[220].mxu1 %v15193_v63 }
 0x1ea   : > { %v1682_v22 = vpop.f32.mrb[100].mxu0  ;;  %3173 = vmatprep.mubr.bf16.mxu1 %v10875_v27 }
 0x1eb   : > { %v1684_v61 = vpop.f32.mrb[101].mxu0  ;;  %v15198_v22 = vld [vmem:[#allocation51_spill] sm:$0xff] }
 0x1ec   : > { %v2412_v46 = vpop.f32.mrb[116].mxu1  ;;  %v1685_v59 = vpop.f32.mrb[102].mxu0  ;;  %v15199_v61 = vld [vmem:[#allocation17_spill] sm:$0xff] }
 0x1ed   : > { %v11825_v21 = vadd.f32 %v2412_v46, %v11744_v0  ;;  %v2414_v41 = vpop.f32.mrb[117].mxu1  ;;  %v1687_v55 = vpop.f32.mrb[103].mxu0 }
 0x1ee   : > { %v2415_v49 = vpop.f32.mrb[118].mxu1  ;;  %v15200_v55 = vld [vmem:[#allocation19_spill] sm:$0xff] }
 0x1ef   : > { %15194 = vst [vmem:[#allocation41_spill] sm:$0xff] %v11825_v21  ;;  %v11828_v62 = vadd.f32 %v2415_v49, %v11747_v2  ;;  %9215 = vmatmul.mubr.bf16.gmra.mrb[208].mxu0 %v15196_v32  ;;  %v2417_v24 = vpop.f32.mrb[119].mxu1  ;;  %v9817_v2 = vld [vmem:[%s14625_s4 + $0x158] sm:$0xff]   ;;  %v15219_v21 = vld [vmem:[#allocation18_spill] sm:$0xff] }
 0x1f0   : > { %9218 = vmatprep.mubr.bf16.mxu0 %v15197_v6  ;;  %9344 = vmatprep.subr.bf16.mxu1 %v9817_v2 }
 0x1f1   : > { %15195 = vst [vmem:[#allocation44_spill] sm:$0xff] %v11828_v62  ;;  %3174 = vmatmul.mubr.bf16.gmra.mrb[224].mxu1 %v15198_v22  ;;  %v15201_v22 = vld [vmem:[#allocation8_spill] sm:$0xff] }
 0x1f2   : > { %v1690_v63 = vpop.f32.mrb[104].mxu0  ;;  %3181 = vmatprep.mubr.bf16.mxu1 %v10932_v18  ;;  %9345 = vmatpush3.bf16.msra.mxu1 %v9817_v2  ;;  %v15215_v62 = vld [vmem:[#allocation56_spill] sm:$0xff] }
 0x1f3   : > { %v11835_v59 = vadd.f32 %v15199_v61, %v1690_v63  ;;  %v1692_v0 = vpop.f32.mrb[105].mxu0  ;;  %v15202_v63 = vld [vmem:[#allocation9_spill] sm:$0xff]  ;;  %v15203_v61 = vld [vmem:[#allocation52_spill] sm:$0xff] }
 0x1f4   : > { %v1693_v46 = vpop.f32.mrb[106].mxu0  ;;  %v2420_v41 = vpop.f32.mrb[120].mxu1 }
 0x1f5   : > { %v11841_v49 = vadd.f32 %v15200_v55, %v1693_v46  ;;  %v1695_v24 = vpop.f32.mrb[107].mxu0  ;;  %v2422_v27 = vpop.f32.mrb[121].mxu1 }
 0x1f6   : > { %v2423_v58 = vpop.f32.mrb[122].mxu1 }
 0x1f7   : > { %9219 = vmatmul.mubr.bf16.gmra.mrb[212].mxu0 %v15201_v22  ;;  %v2425_v18 = vpop.f32.mrb[123].mxu1 }
 0x1f8   : > { %9222 = vmatprep.mubr.bf16.mxu0 %v15202_v63  ;;  %v15206_v18 = vld [vmem:[#allocation10_spill] sm:$0xff] }
 0x1f9   : > { %3182 = vmatmul.mubr.bf16.gmra.mrb[228].mxu1 %v15203_v61  ;;  %v15208_v61 = vld [vmem:[#allocation53_spill] sm:$0xff] }
 0x1fa   : > { %v1698_v0 = vpop.f32.mrb[108].mxu0  ;;  %3189 = vmatprep.mubr.bf16.mxu1 %v10937_v16 }
 0x1fb   : > { %v1700_v41 = vpop.f32.mrb[109].mxu0 }
 0x1fc   : > { %v2428_v43 = vpop.f32.mrb[124].mxu1  ;;  %v1701_v25 = vpop.f32.mrb[110].mxu0  ;;  %v15209_v41 = vld [vmem:[#allocation54_spill] sm:$0xff] }
 0x1fd   : > { %v11848_v46 = vadd.f32 %v2428_v43, %v11771_v1  ;;  %v2430_v27 = vpop.f32.mrb[125].mxu1  ;;  %v1703_v58 = vpop.f32.mrb[111].mxu0  ;;  %v15210_v25 = vld [vmem:[#allocation96_spill] sm:$0xff] }
 0x1fe   : > { %v2431_v55 = vpop.f32.mrb[126].mxu1  ;;  %v15211_v58 = vld [vmem:[#allocation97_spill] sm:$0xff] }
 0x1ff   : > { %15204 = vst [vmem:[#allocation85_spill] sm:$0xff] %v11848_v46  ;;  %v11851_v24 = vadd.f32 %v2431_v55, %v11774_v13  ;;  %9223 = vmatmul.mubr.bf16.gmra.mrb[216].mxu0 %v15206_v18  ;;  %v2433_v2 = vpop.f32.mrb[127].mxu1  ;;  %v15213_v46 = vld [vmem:[#allocation15_spill] sm:$0xff] }
 0x200   : > { %9226 = vmatprep.mubr.bf16.mxu0 %v15207_v44  ;;  %v15212_v2 = vld [vmem:[#allocation14_spill] sm:$0xff] }
 0x201   : > { %15205 = vst [vmem:[#allocation25_spill] sm:$0xff] %v11851_v24  ;;  %3190 = vmatmul.mubr.bf16.gmra.mrb[232].mxu1 %v15208_v61  ;;  %v15214_v61 = vld [vmem:[#allocation55_spill] sm:$0xff] }
 0x202   : > { %v1706_v0 = vpop.f32.mrb[112].mxu0  ;;  %3197 = vmatprep.mubr.bf16.mxu1 %v15209_v41 }
 0x203   : > { %v11858_v16 = vadd.f32 %v15210_v25, %v1706_v0  ;;  %v1708_v43 = vpop.f32.mrb[113].mxu0 }
 0x204   : > { %v1709_v1 = vpop.f32.mrb[114].mxu0  ;;  %v2436_v27 = vpop.f32.mrb[128].mxu1 }
 0x205   : > { %v11861_v26 = vadd.f32 %v15211_v58, %v1709_v1  ;;  %v1711_v13 = vpop.f32.mrb[115].mxu0  ;;  %v2438_v55 = vpop.f32.mrb[129].mxu1 }
 0x206   : > { %v2439_v36 = vpop.f32.mrb[130].mxu1 }
 0x207   : > { %9227 = vmatmul.mubr.bf16.gmra.mrb[220].mxu0 %v15212_v2  ;;  %v2441_v24 = vpop.f32.mrb[131].mxu1 }
 0x208   : > { %9230 = vmatprep.mubr.bf16.mxu0 %v15213_v46  ;;  %v15218_v24 = vld [vmem:[#allocation16_spill] sm:$0xff] }
 0x209   : > { %3198 = vmatmul.mubr.bf16.gmra.mrb[236].mxu1 %v15214_v61 }
 0x20a   : > { %v1714_v41 = vpop.f32.mrb[116].mxu0  ;;  %3205 = vmatprep.mubr.bf16.mxu1 %v15215_v62 }
 0x20b   : > { %v1716_v0 = vpop.f32.mrb[117].mxu0  ;;  %v15220_v41 = vld [vmem:[#allocation57_spill] sm:$0xff] }
 0x20c   : > { %v2444_v25 = vpop.f32.mrb[132].mxu1  ;;  %v1717_v43 = vpop.f32.mrb[118].mxu0  ;;  %v15221_v0 = vld [vmem:[#allocation58_spill] sm:$0xff] }
 0x20d   : > { %v11868_v27 = vadd.f32 %v2444_v25, %v11795_v35  ;;  %v2446_v1 = vpop.f32.mrb[133].mxu1  ;;  %v1719_v58 = vpop.f32.mrb[119].mxu0  ;;  %v15222_v43 = vld [vmem:[#allocation23_spill] sm:$0xff] }
 0x20e   : > { %v2447_v13 = vpop.f32.mrb[134].mxu1  ;;  %v15223_v58 = vld [vmem:[#allocation24_spill] sm:$0xff] }
 0x20f   : > { %15216 = vst [vmem:[#allocation46_spill] sm:$0xff] %v11868_v27  ;;  %v11871_v36 = vadd.f32 %v2447_v13, %v11798_v14  ;;  %9231 = vmatmul.mubr.bf16.gmra.mrb[224].mxu0 %v15218_v24  ;;  %v2449_v55 = vpop.f32.mrb[135].mxu1 }
 0x210   : > { %9234 = vmatprep.mubr.bf16.mxu0 %v15219_v21  ;;  %v15224_v55 = vld [vmem:[#allocation22_spill] sm:$0xff] }
 0x211   : > { %15217 = vst [vmem:[#allocation3_spill] sm:$0xff] %v11871_v36  ;;  %3206 = vmatmul.mubr.bf16.gmra.mrb[240].mxu1 %v15220_v41  ;;  %v9819_v41 = vld [vmem:[%s14625_s4 + $0x160] sm:$0xff]  }
 0x212   : > { %v1722_v61 = vpop.f32.mrb[120].mxu0  ;;  %3213 = vmatprep.mubr.bf16.mxu1 %v15221_v0  ;;  %v15225_v0 = vld [vmem:[#allocation26_spill] sm:$0xff]  ;;  %9346 = vmatprep.subr.bf16.mxu1 %v9819_v41 }
 0x213   : > { %v11878_v62 = vadd.f32 %v15222_v43, %v1722_v61  ;;  %v1724_v35 = vpop.f32.mrb[121].mxu0  ;;  %v15226_v61 = vld [vmem:[#allocation59_spill] sm:$0xff]  ;;  %9347 = vmatpush3.bf16.msra.mxu1 %v9819_v41 }
 0x214   : > { %v1725_v25 = vpop.f32.mrb[122].mxu0  ;;  %v2452_v1 = vpop.f32.mrb[136].mxu1  ;;  %v15227_v35 = vld [vmem:[#allocation60_spill] sm:$0xff] }
 0x215   : > { %v11881_v27 = vadd.f32 %v15223_v58, %v1725_v25  ;;  %v1727_v14 = vpop.f32.mrb[123].mxu0  ;;  %v2454_v13 = vpop.f32.mrb[137].mxu1 }
 0x216   : > { %v2455_v36 = vpop.f32.mrb[138].mxu1 }
 0x217   : > { %9235 = vmatmul.mubr.bf16.gmra.mrb[228].mxu0 %v15224_v55  ;;  %v2457_v60 = vpop.f32.mrb[139].mxu1 }
 0x218   : > { %9238 = vmatprep.mubr.bf16.mxu0 %v15225_v0 }
 0x219   : > { %3214 = vmatmul.mubr.bf16.gmra.mrb[244].mxu1 %v15226_v61 }
 0x21a   : > { %v1730_v43 = vpop.f32.mrb[124].mxu0  ;;  %3221 = vmatprep.mubr.bf16.mxu1 %v15227_v35 }
 0x21b   : > { %v1732_v25 = vpop.f32.mrb[125].mxu0  ;;  %v15232_v43 = vld [vmem:[#allocation61_spill] sm:$0xff] }
 0x21c   : > { %v2460_v1 = vpop.f32.mrb[140].mxu1  ;;  %v1733_v58 = vpop.f32.mrb[126].mxu0  ;;  %v15233_v25 = vld [vmem:[#allocation62_spill] sm:$0xff] }
 0x21d   : > { %v11891_v36 = vadd.f32 %v2460_v1, %v11815_v48  ;;  %v2462_v60 = vpop.f32.mrb[141].mxu1  ;;  %v1735_v14 = vpop.f32.mrb[127].mxu0  ;;  %v15234_v58 = vld [vmem:[#allocation103_spill] sm:$0xff] }
 0x21e   : > { %v2463_v13 = vpop.f32.mrb[142].mxu1  ;;  %v15235_v14 = vld [vmem:[#allocation104_spill] sm:$0xff] }
 0x21f   : > { %15228 = vst [vmem:[#allocation47_spill] sm:$0xff] %v11891_v36  ;;  %v11894_v5 = vadd.f32 %v2463_v13, %v11818_v15  ;;  %9239 = vmatmul.mubr.bf16.gmra.mrb[232].mxu0 %v15230_v10  ;;  %v2465_v61 = vpop.f32.mrb[143].mxu1 }
 0x220   : > { %9242 = vmatprep.mubr.bf16.mxu0 %v15231_v53  ;;  %v15236_v61 = vld [vmem:[#allocation33_spill] sm:$0xff]  ;;  %v15239_v53 = vld [vmem:[#allocation64_spill] sm:$0xff] }
 0x221   : > { %15229 = vst [vmem:[#allocation88_spill] sm:$0xff] %v11894_v5  ;;  %3222 = vmatmul.mubr.bf16.gmra.mrb[248].mxu1 %v15232_v43  ;;  %v15238_v43 = vld [vmem:[#allocation63_spill] sm:$0xff] }
 0x222   : > { %v1738_v41 = vpop.f32.mrb[128].mxu0  ;;  %3229 = vmatprep.mubr.bf16.mxu1 %v15233_v25 }
 0x223   : > { %v11901_v35 = vadd.f32 %v15234_v58, %v1738_v41  ;;  %v1740_v48 = vpop.f32.mrb[129].mxu0 }
 0x224   : > { %v1741_v1 = vpop.f32.mrb[130].mxu0  ;;  %v2468_v60 = vpop.f32.mrb[144].mxu1 }
 0x225   : > { %v11904_v36 = vadd.f32 %v15235_v14, %v1741_v1  ;;  %v1743_v15 = vpop.f32.mrb[131].mxu0  ;;  %v2470_v13 = vpop.f32.mrb[145].mxu1 }
 0x226   : > { %v2471_v5 = vpop.f32.mrb[146].mxu1 }
 0x227   : > { %9243 = vmatmul.mubr.bf16.gmra.mrb[236].mxu0 %v15236_v61  ;;  %v2473_v12 = vpop.f32.mrb[147].mxu1 }
 0x228   : > { %9246 = vmatprep.mubr.bf16.mxu0 %v15237_v19  ;;  %v15240_v12 = vld [vmem:[#allocation38_spill] sm:$0xff] }
 0x229   : > { %3230 = vmatmul.mubr.bf16.gmra.mrb[252].mxu1 %v15238_v43 }
 0x22a   : > { %v1746_v25 = vpop.f32.mrb[132].mxu0  ;;  %3237 = vmatprep.mubr.bf16.mxu1 %v15239_v53 }
 0x22b   : > { %v1748_v41 = vpop.f32.mrb[133].mxu0  ;;  %v15241_v25 = vld [vmem:[#allocation65_spill] sm:$0xff] }
 0x22c   : > { %v2476_v58 = vpop.f32.mrb[148].mxu1  ;;  %v1749_v48 = vpop.f32.mrb[134].mxu0  ;;  %v15242_v41 = vld [vmem:[#allocation66_spill] sm:$0xff] }
 0x22d   : > { %v11911_v60 = vadd.f32 %v2476_v58, %v11835_v59  ;;  %v2478_v1 = vpop.f32.mrb[149].mxu1  ;;  %v1751_v14 = vpop.f32.mrb[135].mxu0  ;;  %v9818_v58 = vld [vmem:[%s14625_s4 + $0xc0] sm:$0xff]  }
 0x22e   : > { %v2479_v15 = vpop.f32.mrb[150].mxu1 }
 0x22f   : > { %v11914_v5 = vadd.f32 %v2479_v15, %v11841_v49  ;;  %9247 = vmatmul.mubr.bf16.gmra.mrb[240].mxu0 %v15240_v12  ;;  %v2481_v13 = vpop.f32.mrb[151].mxu1 }
 0x230   : > { %9266 = vmatprep.mubr.bf16.mxu0 %v11502_v57  ;;  %v9820_v57 = vld [vmem:[%s14625_s4 + $0xc8] sm:$0xff]  }
 0x231   : > { %3238 = vmatmul.mubr.bf16.gmra.mrb[0].mxu1 %v15241_v25  ;;  %v15243_v13 = vld [vmem:[#allocation67_spill] sm:$0xff]  ;;  %v15244_v25 = vld [vmem:[#allocation68_spill] sm:$0xff] }
 0x232   : > { %v1754_v43 = vpop.f32.mrb[136].mxu0  ;;  %3245 = vmatprep.mubr.bf16.mxu1 %v15242_v41 }
 0x233   : > { %v1756_v48 = vpop.f32.mrb[137].mxu0 }
 0x234   : > { %v1757_v53 = vpop.f32.mrb[138].mxu0  ;;  %v2484_v59 = vpop.f32.mrb[152].mxu1 }
 0x235   : > { %v1759_v1 = vpop.f32.mrb[139].mxu0  ;;  %v2486_v49 = vpop.f32.mrb[153].mxu1 }
 0x236   : > { %v2487_v14 = vpop.f32.mrb[154].mxu1 }
 0x237   : > { %9267 = vmatmul.mubr.bf16.vlgmr.msra.gmra.mrb[244].mxu0 %v11537_v23  ;;  %v2489_v15 = vpop.f32.mrb[155].mxu1  ;;  %v9821_v23 = vld [vmem:[%s14625_s4 + $0xd0] sm:$0xff]  }
 0x238   : > { %9270 = vmatprep.mubr.bf16.mxu0 %v11541_v37  ;;  %4940 = vmatpush1.bf16.msra.mxu0 %v9818_v58  ;;  %v9824_v37 = vld [vmem:[%s14625_s4 + $0x168] sm:$0xff]  }
 0x239   : > { %3246 = vmatmul.mubr.bf16.gmra.mrb[4].mxu1 %v15243_v13  ;;  %4941 = vmatprep.subr.bf16.mxu0 %v15177_v51  ;;  %v15245_v13 = vld [vmem:[#allocation69_spill] sm:$0xff] }
 0x23a   : > { %v1762_v53 = vpop.f32.mrb[140].mxu0  ;;  %3253 = vmatprep.mubr.bf16.mxu1 %v15244_v25  ;;  %9348 = vmatprep.subr.bf16.mxu1 %v9824_v37 }
 0x23b   : > { %v1764_v43 = vpop.f32.mrb[141].mxu0  ;;  %9349 = vmatpush3.bf16.msra.mxu1 %v9824_v37 }
 0x23c   : > { %v2492_v48 = vpop.f32.mrb[156].mxu1  ;;  %v1765_v59 = vpop.f32.mrb[142].mxu0  ;;  %4942 = vmatpush1.bf16.msra.mxu0 %v9820_v57  ;;  %v15246_v43 = vld [vmem:[#allocation70_spill] sm:$0xff] }
 0x23d   : > { %v11938_v58 = vadd.f32 %v2492_v48, %v11858_v16  ;;  %v2494_v1 = vpop.f32.mrb[157].mxu1  ;;  %v1767_v49 = vpop.f32.mrb[143].mxu0  ;;  %4943 = vmatprep.subr.bf16.mxu0 %v15177_v51  ;;  %v9822_v16 = vld [vmem:[%s14625_s4 + $0xd8] sm:$0xff]  }
 0x23e   : > { %v2495_v14 = vpop.f32.mrb[158].mxu1  ;;  %v9825_v49 = vld [vmem:[%s14625_s4 + $0xe8] sm:$0xff]  }
 0x23f   : > { %v11942_v15 = vadd.f32 %v2495_v14, %v11861_v26  ;;  %9271 = vmatmul.mubr.bf16.gmra.mrb[248].mxu0 %v11569_v30  ;;  %v2497_v57 = vpop.f32.mrb[159].mxu1  ;;  %v9823_v30 = vld [vmem:[%s14625_s4 + $0xe0] sm:$0xff]   ;;  %v15247_v14 = vld [vmem:[#allocation71_spill] sm:$0xff] }
 0x240   : > { %9274 = vmatprep.mubr.bf16.mxu0 %v11571_v28  ;;  %4944 = vmatpush1.bf16.msra.mxu0 %v9821_v23 }
 0x241   : > { %3254 = vmatmul.mubr.bf16.gmra.mrb[8].mxu1 %v15245_v13  ;;  %4945 = vmatprep.subr.bf16.mxu0 %v15177_v51 }
 0x242   : > { %v9092_v53 = vpop.f32.mrb[144].mxu0  ;;  %3261 = vmatprep.mubr.bf16.mxu1 %v15246_v43 }
 0x243   : > { %v1803_v26 = vpop.f32.mrb[145].mxu0  ;;  %v15249_v53 = vld [vmem:[#allocation90_spill] sm:$0xff] }
 0x244   : > { %v9093_v48 = vpop.f32.mrb[146].mxu0  ;;  %v2500_v59 = vpop.f32.mrb[160].mxu1  ;;  %4946 = vmatpush1.bf16.msra.mxu0 %v9822_v16  ;;  %v15248_v16 = vld [vmem:[#allocation72_spill] sm:$0xff] }
 0x245   : > { %v1806_v28 = vpop.f32.mrb[147].mxu0  ;;  %v2502_v23 = vpop.f32.mrb[161].mxu1  ;;  %4947 = vmatprep.subr.bf16.mxu0 %v15177_v51 }
 0x246   : > { %v2503_v37 = vpop.f32.mrb[162].mxu1  ;;  %v15250_v23 = vld [vmem:[#allocation92_spill] sm:$0xff] }
 0x247   : > { %9275 = vmatmul.mubr.bf16.gmra.mrb[252].mxu0 %v11605_v52  ;;  %v2505_v1 = vpop.f32.mrb[163].mxu1 }
 0x248   : > { %9278 = vmatprep.mubr.bf16.mxu0 %v11609_v56  ;;  %4948 = vmatpush1.bf16.msra.mxu0 %v9823_v30  ;;  %v9826_v56 = vld [vmem:[%s14625_s4 + $0xf0] sm:$0xff]  }
 0x249   : > { %3262 = vmatmul.mubr.bf16.gmra.mrb[12].mxu1 %v15247_v14  ;;  %4949 = vmatprep.subr.bf16.mxu0 %v15177_v51 }
 0x24a   : > { %v9096_v57 = vpop.f32.mrb[148].mxu0  ;;  %3269 = vmatprep.mubr.bf16.mxu1 %v15248_v16 }
 0x24b   : > { %v1819_v13 = vpop.f32.mrb[149].mxu0 }
 0x24c   : > { %v1820_v26 = vadd.f32 %v1819_v13, %v15249_v53  ;;  %v2508_v48 = vpop.f32.mrb[164].mxu1  ;;  %v9097_v52 = vpop.f32.mrb[150].mxu0  ;;  %4950 = vmatpush1.bf16.msra.mxu0 %v9825_v49  ;;  %v15251_v13 = vld [vmem:[#allocation73_spill] sm:$0xff] }
 0x24d   : > { %v11969_v59 = vadd.f32 %v2508_v48, %v11878_v62  ;;  %v2510_v30 = vpop.f32.mrb[165].mxu1  ;;  %v1822_v28 = vpop.f32.mrb[151].mxu0  ;;  %4951 = vmatprep.subr.bf16.mxu0 %v15177_v51  ;;  %v15252_v48 = vld [vmem:[#allocation74_spill] sm:$0xff] }
 0x24e   : > { %v1823_v37 = vadd.f32 %v1822_v28, %v15250_v23  ;;  %v2511_v1 = vpop.f32.mrb[166].mxu1  ;;  %v11974_v14 = vadd.f32 %v11506_v3, %v1820_v26  ;;  %v15253_v26 = vld [vmem:[#allocation98_spill] sm:$0xff]  ;;  %v15254_v28 = vld [vmem:[#allocation100_spill] sm:$0xff] }
 0x24f   : > { %v11977_v57 = vadd.f32 %v2511_v1, %v11881_v27  ;;  %9279 = vmatmul.mubr.bf16.gmra.mrb[0].mxu0 %v11645_v33  ;;  %v2513_v49 = vpop.f32.mrb[167].mxu1  ;;  %v9827_v33 = vld [vmem:[%s14625_s4 + $0xf8] sm:$0xff]  }
 0x250   : > { %9282 = vmatprep.mubr.bf16.mxu0 %v11647_v39  ;;  %v11982_v62 = vadd.f32 %v11517_v34, %v1823_v37  ;;  %4952 = vmatpush1.bf16.msra.mxu0 %v9826_v56  ;;  %v15255_v49 = vld [vmem:[#allocation114_spill] sm:$0xff] }
 0x251   : > { %3270 = vmatmul.mubr.bf16.gmra.mrb[16].mxu1 %v15251_v13  ;;  %4953 = vmatprep.subr.bf16.mxu0 %v15177_v51 }
 0x252   : > { %v9100_v53 = vpop.f32.mrb[152].mxu0  ;;  %3277 = vmatprep.mubr.bf16.mxu1 %v15252_v48 }
 0x253   : > { %v1835_v3 = vpop.f32.mrb[153].mxu0  ;;  %v15256_v53 = vld [vmem:[#allocation75_spill] sm:$0xff] }
 0x254   : > { %v1836_v27 = vadd.f32 %v1835_v3, %v15253_v26  ;;  %v9101_v52 = vpop.f32.mrb[154].mxu0  ;;  %v2516_v30 = vpop.f32.mrb[168].mxu1  ;;  %4954 = vmatpush1.bf16.msra.mxu0 %v9827_v33  ;;  %v15257_v26 = vld [vmem:[#allocation76_spill] sm:$0xff] }
 0x255   : > { %v1838_v39 = vpop.f32.mrb[155].mxu0  ;;  %v2518_v34 = vpop.f32.mrb[169].mxu1  ;;  %4955 = vmatprep.subr.bf16.mxu0 %v15177_v51  ;;  %v15258_v30 = vld [vmem:[#allocation105_spill] sm:$0xff] }
 0x256   : > { %v1839_v56 = vadd.f32 %v1838_v39, %v15254_v28  ;;  %v2519_v23 = vpop.f32.mrb[170].mxu1  ;;  %v11993_v37 = vadd.f32 %v11575_v40, %v1836_v27  ;;  %v15259_v28 = vld [vmem:[#allocation107_spill] sm:$0xff] }
 0x257   : > { %9283 = vmatmul.mubr.bf16.gmra.mrb[4].mxu0 %v11677_v4  ;;  %v2521_v1 = vpop.f32.mrb[171].mxu1  ;;  %v9828_v4 = vld [vmem:[%s14625_s4 + $0x100] sm:$0xff]  }
 0x258   : > { %9286 = vmatprep.mubr.bf16.mxu0 %v11679_v9  ;;  %v11999_v13 = vadd.f32 %v15255_v49, %v1839_v56  ;;  %v15260_v1 = vld [vmem:[#allocation117_spill] sm:$0xff]  ;;  %4956 = vmatpush1.bf16.msra.mxu0 %v9828_v4 }
 0x259   : > { %3278 = vmatmul.mubr.bf16.gmra.mrb[20].mxu1 %v15256_v53  ;;  %v9829_v53 = vld [vmem:[%s14625_s4 + $0x170] sm:$0xff]   ;;  %4957 = vmatprep.subr.bf16.mxu0 %v15177_v51 }
 0x25a   : > { %v9104_v3 = vpop.f32.mrb[156].mxu0  ;;  %3285 = vmatprep.mubr.bf16.mxu1 %v15257_v26  ;;  %9350 = vmatprep.subr.bf16.mxu1 %v9829_v53 }
 0x25b   : > { %v1851_v52 = vpop.f32.mrb[157].mxu0  ;;  %9351 = vmatpush3.bf16.msra.mxu1 %v9829_v53 }
 0x25c   : > { %v1852_v40 = vadd.f32 %v1851_v52, %v15258_v30  ;;  %v2524_v27 = vpop.f32.mrb[172].mxu1  ;;  %v9105_v33 = vpop.f32.mrb[158].mxu0  ;;  %v15261_v52 = vld [vmem:[#allocation118_spill] sm:$0xff] }
 0x25d   : > { %v12008_v39 = vadd.f32 %v2524_v27, %v11901_v35  ;;  %v2526_v9 = vpop.f32.mrb[173].mxu1  ;;  %v1854_v34 = vpop.f32.mrb[159].mxu0  ;;  %v15263_v33 = vld [vmem:[#allocation78_spill] sm:$0xff] }
 0x25e   : > { %v1855_v56 = vadd.f32 %v1854_v34, %v15259_v28  ;;  %v2527_v23 = vpop.f32.mrb[174].mxu1  ;;  %v12012_v49 = vadd.f32 %v15260_v1, %v1852_v40  ;;  %v15262_v40 = vld [vmem:[#allocation77_spill] sm:$0xff]  ;;  %v15265_v1 = vld [vmem:[#allocation111_spill] sm:$0xff] }
 0x25f   : > { %v12018_v3 = vadd.f32 %v2527_v23, %v11904_v36  ;;  %9287 = vmatmul.mubr.bf16.gmra.mrb[8].mxu0 %v11694_v11  ;;  %v2529_v35 = vpop.f32.mrb[175].mxu1  ;;  %v15264_v36 = vld [vmem:[#allocation109_spill] sm:$0xff] }
 0x260   : > { %9290 = vmatprep.mubr.bf16.mxu0 %v15187_v45  ;;  %v12024_v30 = vadd.f32 %v15261_v52, %v1855_v56  ;;  %v9830_v52 = vld [vmem:[%s14625_s4 + $0x108] sm:$0xff]  }
 0x261   : > { %3286 = vmatmul.mubr.bf16.gmra.mrb[24].mxu1 %v15262_v40  ;;  %4958 = vmatpush1.bf16.msra.mxu0 %v9830_v52 }
 0x262   : > { %v9108_v27 = vpop.f32.mrb[160].mxu0  ;;  %3293 = vmatprep.mubr.bf16.mxu1 %v15263_v33  ;;  %4959 = vmatprep.subr.bf16.mxu0 %v15177_v51 }
 0x263   : > { %v1867_v4 = vpop.f32.mrb[161].mxu0  ;;  %v15266_v27 = vld [vmem:[#allocation80_spill] sm:$0xff] }
 0x264   : > { %v1868_v9 = vadd.f32 %v1867_v4, %v15264_v36  ;;  %v9109_v34 = vpop.f32.mrb[162].mxu0  ;;  %v2532_v11 = vpop.f32.mrb[176].mxu1 }
 0x265   : > { %v1870_v28 = vpop.f32.mrb[163].mxu0  ;;  %v2534_v23 = vpop.f32.mrb[177].mxu1 }
 0x266   : > { %v1871_v35 = vadd.f32 %v1870_v28, %v15265_v1  ;;  %v2535_v45 = vpop.f32.mrb[178].mxu1  ;;  %v12031_v56 = vadd.f32 %v11696_v38, %v1868_v9  ;;  %v15267_v38 = vld [vmem:[#allocation81_spill] sm:$0xff]  ;;  %v15268_v9 = vld [vmem:[#allocation112_spill] sm:$0xff] }
 0x267   : > { %9291 = vmatmul.mubr.bf16.gmra.mrb[12].mxu0 %v15191_v7  ;;  %v2537_v53 = vpop.f32.mrb[179].mxu1  ;;  %v15269_v1 = vld [vmem:[#allocation113_spill] sm:$0xff] }
 0x268   : > { %9294 = vmatprep.mubr.bf16.mxu0 %v15192_v17  ;;  %v12039_v40 = vadd.f32 %v11698_v42, %v1871_v35  ;;  %v9831_v35 = vld [vmem:[%s14625_s4 + $0x110] sm:$0xff]  }
 0x269   : > { %3294 = vmatmul.mubr.bf16.gmra.mrb[28].mxu1 %v15266_v27  ;;  %4960 = vmatpush1.bf16.msra.mxu0 %v9831_v35  ;;  %v15270_v27 = vld [vmem:[#allocation83_spill] sm:$0xff] }
 0x26a   : > { %v9112_v4 = vpop.f32.mrb[164].mxu0  ;;  %3301 = vmatprep.mubr.bf16.mxu1 %v15267_v38  ;;  %4961 = vmatprep.subr.bf16.mxu0 %v15177_v51  ;;  %v15291_v38 = vld [vmem:[#allocation42_spill] sm:$0xff] }
 0x26b   : > { %v1883_v36 = vpop.f32.mrb[165].mxu0 }
 0x26c   : > { %v1884_v34 = vadd.f32 %v1883_v36, %v15268_v9  ;;  %v9113_v11 = vpop.f32.mrb[166].mxu0  ;;  %v2540_v28 = vpop.f32.mrb[180].mxu1  ;;  %v15272_v9 = vld [vmem:[#allocation115_spill] sm:$0xff] }
 0x26d   : > { %v1886_v7 = vpop.f32.mrb[167].mxu0  ;;  %v2542_v23 = vpop.f32.mrb[181].mxu1 }
 0x26e   : > { %v1887_v17 = vadd.f32 %v1886_v7, %v15269_v1  ;;  %v2543_v45 = vpop.f32.mrb[182].mxu1  ;;  %v12047_v42 = vadd.f32 %v11726_v29, %v1884_v34  ;;  %v15271_v29 = vld [vmem:[#allocation84_spill] sm:$0xff] }
 0x26f   : > { %9295 = vmatmul.mubr.bf16.gmra.mrb[16].mxu0 %v15196_v32  ;;  %v2545_v52 = vpop.f32.mrb[183].mxu1  ;;  %v15273_v23 = vld [vmem:[#allocation116_spill] sm:$0xff] }
 0x270   : > { %9298 = vmatprep.mubr.bf16.mxu0 %v15197_v6  ;;  %v12055_v53 = vadd.f32 %v11734_v31, %v1887_v17  ;;  %v9832_v17 = vld [vmem:[%s14625_s4 + $0x118] sm:$0xff]   ;;  %v15274_v52 = vld [vmem:[#allocation86_spill] sm:$0xff] }
 0x271   : > { %3302 = vmatmul.mubr.bf16.gmra.mrb[32].mxu1 %v15270_v27  ;;  %4962 = vmatpush1.bf16.msra.mxu0 %v9832_v17 }
 0x272   : > { %v9116_v4 = vpop.f32.mrb[168].mxu0  ;;  %3309 = vmatprep.mubr.bf16.mxu1 %v15271_v29  ;;  %4963 = vmatprep.subr.bf16.mxu0 %v15177_v51 }
 0x273   : > { %v1899_v36 = vpop.f32.mrb[169].mxu0 }
 0x274   : > { %v1900_v34 = vadd.f32 %v1899_v36, %v15272_v9  ;;  %v9117_v11 = vpop.f32.mrb[170].mxu0  ;;  %v2548_v28 = vpop.f32.mrb[184].mxu1 }
 0x275   : > { %v1902_v32 = vpop.f32.mrb[171].mxu0  ;;  %v2550_v7 = vpop.f32.mrb[185].mxu1  ;;  %v15276_v28 = vld [vmem:[#allocation91_spill] sm:$0xff] }
 0x276   : > { %v1903_v6 = vadd.f32 %v1902_v32, %v15273_v23  ;;  %v2551_v1 = vpop.f32.mrb[186].mxu1  ;;  %v12063_v31 = vadd.f32 %v11759_v47, %v1900_v34  ;;  %v15275_v47 = vld [vmem:[#allocation87_spill] sm:$0xff]  ;;  %v15277_v7 = vld [vmem:[#allocation93_spill] sm:$0xff] }
 0x277   : > { %9299 = vmatmul.mubr.bf16.gmra.mrb[20].mxu0 %v15201_v22  ;;  %v2553_v45 = vpop.f32.mrb[187].mxu1 }
 0x278   : > { %9302 = vmatprep.mubr.bf16.mxu0 %v15202_v63  ;;  %v12071_v35 = vadd.f32 %v11764_v8, %v1903_v6  ;;  %v9833_v63 = vld [vmem:[%s14625_s4 + $0x120] sm:$0xff]  }
 0x279   : > { %3310 = vmatmul.mubr.bf16.gmra.mrb[36].mxu1 %v15274_v52  ;;  %4964 = vmatpush1.bf16.msra.mxu0 %v9833_v63  ;;  %v9835_v52 = vld [vmem:[%s14625_s4 + $0x128] sm:$0xff]  }
 0x27a   : > { %v9180_v27 = vpop.f32.mrb[172].mxu0  ;;  %3317 = vmatprep.mubr.bf16.mxu1 %v15275_v47  ;;  %4965 = vmatprep.subr.bf16.mxu0 %v15177_v51 }
 0x27b   : > { %v2589_v4 = vpop.f32.mrb[173].mxu0 }
 0x27c   : > { %v9181_v36 = vpop.f32.mrb[174].mxu0  ;;  %v3103_v9 = vpop.f32.mrb[188].mxu1 }
 0x27d   : > { %v2592_v34 = vpop.f32.mrb[175].mxu0  ;;  %v3105_v11 = vpop.f32.mrb[189].mxu1  ;;  %4966 = vmatpush1.bf16.msra.mxu0 %v9835_v52  ;;  %v15278_v36 = vld [vmem:[#allocation94_spill] sm:$0xff] }
 0x27e   : > { %v3106_v22 = vpop.f32.mrb[190].mxu1  ;;  %4967 = vmatprep.subr.bf16.mxu0 %v15177_v51  ;;  %v15279_v34 = vld [vmem:[#allocation95_spill] sm:$0xff] }
 0x27f   : > { %9303 = vmatmul.mubr.bf16.gmra.mrb[24].mxu0 %v15206_v18  ;;  %v3108_v8 = vpop.f32.mrb[191].mxu1  ;;  %v9834_v18 = vld [vmem:[%s14625_s4 + $0x178] sm:$0xff]  }
 0x280   : > { %9306 = vmatprep.mubr.bf16.mxu0 %v15207_v44  ;;  %9352 = vmatprep.subr.bf16.mxu1 %v9834_v18 }
 0x281   : > { %3318 = vmatmul.mubr.bf16.gmra.mrb[40].mxu1 %v15276_v28 }
 0x282   : > { %v9184_v32 = vpop.f32.mrb[176].mxu0  ;;  %3325 = vmatprep.mubr.bf16.mxu1 %v15277_v7  ;;  %9353 = vmatpush3.bf16.msra.mxu1 %v9834_v18 }
 0x283   : > { %v2605_v23 = vpop.f32.mrb[177].mxu0  ;;  %5661 = vmatprep.subr.bf16.mxu1 %v15177_v51 }
 0x284   : > { %v12085_v6 = vadd.f32 %v2605_v23, %v11974_v14  ;;  %v9185_v1 = vpop.f32.mrb[178].mxu0  ;;  %v3111_v17 = vpop.f32.mrb[192].mxu1  ;;  %v15280_v23 = vld [vmem:[#allocation99_spill] sm:$0xff] }
 0x285   : > { %v2608_v45 = vpop.f32.mrb[179].mxu0  ;;  %v3113_v44 = vpop.f32.mrb[193].mxu1 }
 0x286   : > { %v12094_v27 = vadd.f32 %v2608_v45, %v11982_v62  ;;  %v3114_v4 = vpop.f32.mrb[194].mxu1 }
 0x287   : > { %9307 = vmatmul.mubr.bf16.gmra.mrb[28].mxu0 %v15212_v2  ;;  %v3116_v14 = vpop.f32.mrb[195].mxu1 }
 0x288   : > { %9310 = vmatprep.mubr.bf16.mxu0 %v15213_v46 }
 0x289   : > { %3326 = vmatmul.mubr.bf16.gmra.mrb[44].mxu1 %v15278_v36 }
 0x28a   : > { %v9188_v9 = vpop.f32.mrb[180].mxu0  ;;  %3333 = vmatprep.mubr.bf16.mxu1 %v15279_v34 }
 0x28b   : > { %v2621_v62 = vpop.f32.mrb[181].mxu0 }
 0x28c   : > { %v12103_v11 = vadd.f32 %v2621_v62, %v11993_v37  ;;  %v9189_v22 = vpop.f32.mrb[182].mxu0  ;;  %v12105_v2 = vpop.f32.mrb[196].mxu1  ;;  %v9836_v37 = vld [vmem:[%s14625_s4 + $0x130] sm:$0xff]  }
 0x28d   : > { %v2624_v63 = vpop.f32.mrb[183].mxu0  ;;  %v3121_v8 = vpop.f32.mrb[197].mxu1  ;;  %4968 = vmatpush1.bf16.msra.mxu0 %v9836_v37 }
 0x28e   : > { %v12108_v46 = vadd.f32 %v2624_v63, %v11999_v13  ;;  %v12110_v28 = vpop.f32.mrb[198].mxu1  ;;  %4969 = vmatprep.subr.bf16.mxu0 %v15177_v51  ;;  %v15282_v8 = vld [vmem:[#allocation106_spill] sm:$0xff] }
 0x28f   : > { %9311 = vmatmul.mubr.bf16.gmra.mrb[32].mxu0 %v15218_v24  ;;  %v3124_v32 = vpop.f32.mrb[199].mxu1 }
 0x290   : > { %9314 = vmatprep.mubr.bf16.mxu0 %v15219_v21 }
 0x291   : > { %3334 = vmatmul.mubr.bf16.gmra.mrb[48].mxu1 %v15280_v23  ;;  %v15283_v23 = vld [vmem:[#allocation108_spill] sm:$0xff] }
 0x292   : > { %v9192_v1 = vpop.f32.mrb[184].mxu0  ;;  %3341 = vmatprep.mubr.bf16.mxu1 %v11405_v54 }
 0x293   : > { %v2637_v17 = vpop.f32.mrb[185].mxu0 }
 0x294   : > { %v12120_v13 = vadd.f32 %v2637_v17, %v12012_v49  ;;  %v9193_v18 = vpop.f32.mrb[186].mxu0  ;;  %v3127_v45 = vpop.f32.mrb[200].mxu1 }
 0x295   : > { %v2640_v24 = vpop.f32.mrb[187].mxu0  ;;  %v3129_v44 = vpop.f32.mrb[201].mxu1 }
 0x296   : > { %v12124_v21 = vadd.f32 %v2640_v24, %v12024_v30  ;;  %v3130_v52 = vpop.f32.mrb[202].mxu1  ;;  %v479_v44 = vld [vmem:[%s10524_s9 + $0x30] sm:$0xff]  }
 0x297   : > { %9315 = vmatmul.mubr.bf16.gmra.mrb[36].mxu0 %v15224_v55  ;;  %v3132_v4 = vpop.f32.mrb[203].mxu1 }
 0x298   : > { %9318 = vmatprep.mubr.bf16.mxu0 %v15225_v0  ;;  %v9839_v0 = vld [vmem:[%s14625_s4 + $0x138] sm:$0xff]  }
 0x299   : > { %3342 = vmatmul.mubr.bf16.gmra.mrb[52].mxu1 %v11425_v20  ;;  %4970 = vmatpush1.bf16.msra.mxu0 %v9839_v0  ;;  %v482_v4 = vld [vmem:[%s10524_s9 + $0x38] sm:$0xff]  }
 0x29a   : > { %v9196_v49 = vpop.f32.mrb[188].mxu0  ;;  %3349 = vmatprep.mubr.bf16.mxu1 %v11428_v50 }
 0x29b   : > { %v2653_v14 = vpop.f32.mrb[189].mxu0  ;;  %v15284_v49 = vld [vmem:[#allocation29_spill] sm:$0xff] }
 0x29c   : > { %v12131_v36 = vadd.f32 %v2653_v14, %v12031_v56  ;;  %v9197_v9 = vpop.f32.mrb[190].mxu0  ;;  %v12133_v62 = vpop.f32.mrb[204].mxu1  ;;  %v15281_v56 = vld [vmem:[#allocation28_spill] sm:$0xff]  ;;  %v559_v14 = vunpack.c.l.bf16 %v479_v44 }
 0x29d   : > { %v2656_v30 = vpop.f32.mrb[191].mxu0  ;;  %v3137_v22 = vpop.f32.mrb[205].mxu1 }
 0x29e   : > { %v12136_v63 = vadd.f32 %v2656_v30, %v12039_v40  ;;  %v12138_v55 = vpop.f32.mrb[206].mxu1  ;;  %v15285_v30 = vld [vmem:[#allocation30_spill] sm:$0xff]  ;;  %v560_v22 = vunpack.c.h.bf16 %v479_v44 }
 0x29f   : > { %9319 = vmatmul.mubr.bf16.gmra.mrb[40].mxu0 %v15230_v10  ;;  %v3140_v20 = vpop.f32.mrb[207].mxu1 }
 0x2a0   : > { %9322 = vmatprep.mubr.bf16.mxu0 %v15281_v56  ;;  %v562_v20 = vunpack.c.h.bf16 %v482_v4 }
 0x2a1   : > { %3350 = vmatmul.mubr.bf16.gmra.mrb[56].mxu1 %v15282_v8 }
 0x2a2   : > { %v9200_v32 = vpop.f32.mrb[192].mxu0  ;;  %3357 = vmatprep.mubr.bf16.mxu1 %v15283_v23  ;;  %v582_v23 = vrot.slane %v559_v14, 7 }
 0x2a3   : > { %v2669_v40 = vpop.f32.mrb[193].mxu0 }
 0x2a4   : > { %v12148_v1 = vadd.f32 %v2669_v40, %v12047_v42  ;;  %v9201_v10 = vpop.f32.mrb[194].mxu0  ;;  %v3143_v37 = vpop.f32.mrb[208].mxu1  ;;  %v561_v42 = vunpack.c.l.bf16 %v482_v4  ;;  %v805_v40 = vrot.slane %v560_v22, 1 }
 0x2a5   : > { %v2672_v17 = vpop.f32.mrb[195].mxu0  ;;  %v3145_v18 = vpop.f32.mrb[209].mxu1 }
 0x2a6   : > { %v12151_v45 = vadd.f32 %v2672_v17, %v12055_v53  ;;  %v3146_v24 = vpop.f32.mrb[210].mxu1  ;;  %v825_v10 = vrot.slane %v561_v42, 1  ;;  %v602_v18 = vrot.slane %v560_v22, 7  ;;  %v622_v29 = vrot.slane %v561_v42, 7 }
 0x2a7   : > { %9323 = vmatmul.mubr.bf16.gmra.mrb[44].mxu0 %v15236_v61  ;;  %v3148_v52 = vpop.f32.mrb[211].mxu1  ;;  %v642_v24 = vrot.slane %v562_v20, 7 }
 0x2a8   : > { %9326 = vmatprep.mubr.bf16.mxu0 %v15237_v19  ;;  %v785_v19 = vrot.slane %v559_v14, 1  ;;  %v15287_v14 = vld [vmem:[#allocation110_spill] sm:$0xff] }
 0x2a9   : > { %3358 = vmatmul.mubr.bf16.gmra.mrb[60].mxu1 %v15284_v49  ;;  %v15286_v49 = vld [vmem:[#allocation39_spill] sm:$0xff] }
 0x2aa   : > { %v9204_v9 = vpop.f32.mrb[196].mxu0  ;;  %3365 = vmatprep.mubr.bf16.mxu1 %v15285_v30  ;;  %v906_v30 = vsel %vm846_vm0, %v785_v19, %v805_v40 }
 0x2ab   : > { %v2685_v0 = vpop.f32.mrb[197].mxu0  ;;  %v886_v9 = vsel %vm846_vm0, %v805_v40, %v825_v10  ;;  %v15290_v40 = vld [vmem:[#allocation31_spill] sm:$0xff] }
 0x2ac   : > { %v12160_v53 = vadd.f32 %v2685_v0, %v12063_v31  ;;  %v9205_v56 = vpop.f32.mrb[198].mxu0  ;;  %v12162_v8 = vpop.f32.mrb[212].mxu1  ;;  %v12172_v31 = vld [vmem:[%s14625_s4 + $0x80] sm:$0xff]   ;;  %v705_v0 = vsel %vm645_vm1, %v582_v23, %v602_v18  ;;  %v965_v50 = vpack.c.bf16 %v886_v9, %v906_v30 }
 0x2ad   : > { %v2688_v61 = vpop.f32.mrb[199].mxu0  ;;  %v3153_v32 = vpop.f32.mrb[213].mxu1  ;;  %9418 = vmatprep.subr.bf16.mxu0 %v12172_v31 }
 0x2ae   : > { %v12165_v37 = vadd.f32 %v2688_v61, %v12071_v35  ;;  %v12167_v17 = vpop.f32.mrb[214].mxu1  ;;  %v15289_v61 = vld [vmem:[#allocation79_spill] sm:$0xff] }
 0x2af   : > { %9327 = vmatmul.mubr.bf16.gmra.mrb[48].mxu0 %v15240_v12  ;;  %v3156_v52 = vpop.f32.mrb[215].mxu1  ;;  %v725_v12 = vsel %vm645_vm1, %v642_v24, %v582_v23 }
 0x2b0   : > { %9330 = vmatprep.mubr.bf16.mxu0 %v15286_v49  ;;  %v764_v7 = vpack.c.bf16 %v705_v0, %v725_v12 }
 0x2b1   : > { %3366 = vmatmul.mubr.bf16.gmra.mrb[64].mxu1 %v15287_v14  ;;  %v845_v14 = vrot.slane %v562_v20, 1 }
 0x2b2   : > { %v9208_v22 = vpop.f32.mrb[200].mxu0  ;;  %3373 = vmatprep.mubr.bf16.mxu1 %v479_v44 }
 0x2b3   : > { %v2701_v56 = vpop.f32.mrb[201].mxu0  ;;  %v926_v44 = vsel %vm846_vm0, %v845_v14, %v785_v19 }
 0x2b4   : > { %v12187_v32 = vadd.f32 %v2701_v56, %v15289_v61  ;;  %v9209_v52 = vpop.f32.mrb[202].mxu0  ;;  %v3159_v49 = vpop.f32.mrb[216].mxu1  ;;  %v866_v56 = vsel %vm846_vm0, %v825_v10, %v845_v14 }
 0x2b5   : > { %v2704_v54 = vpop.f32.mrb[203].mxu0  ;;  %v3161_v34 = vpop.f32.mrb[217].mxu1  ;;  %v966_v42 = vpack.c.bf16 %v926_v44, %v866_v56  ;;  %v15295_v44 = vld [vmem:[#allocation44_spill] sm:$0xff] }
 0x2b6   : > { %v12190_v22 = vadd.f32 %v2704_v54, %v15290_v40  ;;  %v3162_v47 = vpop.f32.mrb[218].mxu1  ;;  %v665_v34 = vsel %vm645_vm1, %v622_v29, %v642_v24  ;;  %v685_v54 = vsel %vm645_vm1, %v602_v18, %v622_v29  ;;  %v15294_v18 = vld [vmem:[#allocation41_spill] sm:$0xff] }
 0x2b7   : > { %9331 = vmatmul.mubr.bf16.gmra.mrb[52].mxu0 %v15291_v38  ;;  %v3164_v23 = vpop.f32.mrb[219].mxu1  ;;  %v15292_v38 = vld [vmem:[#allocation36_spill] sm:$0xff] }
 0x2b8   : > { %9334 = vmatprep.mubr.bf16.mxu0 %v965_v50  ;;  %v765_v50 = vpack.c.bf16 %v665_v34, %v685_v54 }
 0x2b9   : > { %3374 = vmatmul.mubr.bf16.gmra.mrb[68].mxu1 %v764_v7  ;;  %v15293_v7 = vld [vmem:[#allocation82_spill] sm:$0xff] }
 0x2ba   : > { %v9212_v20 = vpop.f32.mrb[204].mxu0  ;;  %3381 = vmatprep.mubr.bf16.mxu1 %v482_v4 }
 0x2bb   : > { %v2717_v47 = vpop.f32.mrb[205].mxu0 }
 0x2bc   : > { %v12202_v9 = vadd.f32 %v2717_v47, %v15292_v38  ;;  %v9213_v30 = vpop.f32.mrb[206].mxu0  ;;  %v12204_v19 = vpop.f32.mrb[220].mxu1  ;;  %v15296_v38 = vld [vmem:[#allocation85_spill] sm:$0xff] }
 0x2bd   : > { %v2720_v0 = vpop.f32.mrb[207].mxu0  ;;  %v3169_v10 = vpop.f32.mrb[221].mxu1 }
 0x2be   : > { %v12207_v12 = vadd.f32 %v2720_v0, %v15293_v7  ;;  %v12209_v61 = vpop.f32.mrb[222].mxu1  ;;  %v15297_v7 = vld [vmem:[#allocation25_spill] sm:$0xff] }
 0x2bf   : > { %v3172_v24 = vpop.f32.mrb[223].mxu1  ;;  %9335 = vmatmul.mubr.bf16.gmra.mrb[56].mxu0 %v966_v42 }
 0x2c1   : > { %3382 = vmatmul.mubr.bf16.gmra.mrb[72].mxu1 %v765_v50 }
 0x2c2   : > { %v9216_v29 = vpop.f32.mrb[208].mxu0 }
 0x2c3   : > { %v2733_v4 = vpop.f32.mrb[209].mxu0 }
 0x2c4   : > { %v12212_v52 = vadd.f32 %v2733_v4, %v15294_v18  ;;  %v9217_v49 = vpop.f32.mrb[210].mxu0  ;;  %v3175_v14 = vpop.f32.mrb[224].mxu1 }
 0x2c5   : > { %v2736_v40 = vpop.f32.mrb[211].mxu0  ;;  %v3177_v23 = vpop.f32.mrb[225].mxu1  ;;  %v15298_v14 = vld [vmem:[#allocation46_spill] sm:$0xff] }
 0x2c6   : > { %v12215_v56 = vadd.f32 %v2736_v40, %v15295_v44  ;;  %v3178_v20 = vpop.f32.mrb[226].mxu1 }
 0x2c7   : > { %v3180_v34 = vpop.f32.mrb[227].mxu1 }
 0x2ca   : > { %v9220_v54 = vpop.f32.mrb[212].mxu0 }
 0x2cb   : > { %v2749_v47 = vpop.f32.mrb[213].mxu0  ;;  %v15299_v54 = vld [vmem:[#allocation3_spill] sm:$0xff] }
 0x2cc   : > { %v12218_v30 = vadd.f32 %v2749_v47, %v15296_v38  ;;  %v9221_v42 = vpop.f32.mrb[214].mxu0  ;;  %v12220_v0 = vpop.f32.mrb[228].mxu1 }
 0x2cd   : > { %v2752_v10 = vpop.f32.mrb[215].mxu0  ;;  %v3185_v50 = vpop.f32.mrb[229].mxu1 }
 0x2ce   : > { %v12223_v24 = vadd.f32 %v2752_v10, %v15297_v7  ;;  %v12225_v29 = vpop.f32.mrb[230].mxu1  ;;  %v15300_v7 = vld [vmem:[#allocation47_spill] sm:$0xff] }
 0x2cf   : > { %v3188_v4 = vpop.f32.mrb[231].mxu1 }
 0x2d2   : > { %v9224_v18 = vpop.f32.mrb[216].mxu0 }
 0x2d3   : > { %v2765_v49 = vpop.f32.mrb[217].mxu0 }
 0x2d4   : > { %v12228_v40 = vadd.f32 %v2765_v49, %v15298_v14  ;;  %v9225_v23 = vpop.f32.mrb[218].mxu0  ;;  %v3191_v44 = vpop.f32.mrb[232].mxu1  ;;  %v15301_v14 = vld [vmem:[#allocation88_spill] sm:$0xff] }
 0x2d5   : > { %v2768_v20 = vpop.f32.mrb[219].mxu0  ;;  %v3193_v34 = vpop.f32.mrb[233].mxu1 }
 0x2d6   : > { %v12231_v47 = vadd.f32 %v2768_v20, %v15299_v54  ;;  %v3194_v38 = vpop.f32.mrb[234].mxu1 }
 0x2d7   : > { %v3196_v42 = vpop.f32.mrb[235].mxu1 }
 0x2da   : > { %v9228_v50 = vpop.f32.mrb[220].mxu0 }
 0x2db   : > { %v2781_v10 = vpop.f32.mrb[221].mxu0 }
 0x2dc   : > { %v12234_v33 = vadd.f32 %v2781_v10, %v15300_v7  ;;  %v9229_v4 = vpop.f32.mrb[222].mxu0  ;;  %v12236_v18 = vpop.f32.mrb[236].mxu1 }
 0x2dd   : > { %v2784_v26 = vpop.f32.mrb[223].mxu0  ;;  %v3201_v49 = vpop.f32.mrb[237].mxu1 }
 0x2de   : > { %v12239_v23 = vadd.f32 %v2784_v26, %v15301_v14  ;;  %v12241_v44 = vpop.f32.mrb[238].mxu1 }
 0x2df   : > { %v3204_v34 = vpop.f32.mrb[239].mxu1 }
 0x2e2   : > { %v9232_v20 = vpop.f32.mrb[224].mxu0 }
 0x2e3   : > { %v2797_v54 = vpop.f32.mrb[225].mxu0 }
 0x2e4   : > { %v12244_v38 = vadd.f32 %v2797_v54, %v11911_v60  ;;  %v9233_v42 = vpop.f32.mrb[226].mxu0  ;;  %v3207_v50 = vpop.f32.mrb[240].mxu1 }
 0x2e5   : > { %v2800_v10 = vpop.f32.mrb[227].mxu0  ;;  %v3209_v7 = vpop.f32.mrb[241].mxu1 }
 0x2e6   : > { %v12247_v4 = vadd.f32 %v2800_v10, %v11914_v5  ;;  %v3210_v48 = vpop.f32.mrb[242].mxu1 }
 0x2e7   : > { %v3212_v49 = vpop.f32.mrb[243].mxu1 }
 0x2ea   : > { %v9236_v16 = vpop.f32.mrb[228].mxu0 }
 0x2eb   : > { %v2813_v26 = vpop.f32.mrb[229].mxu0 }
 0x2ec   : > { %v12250_v14 = vadd.f32 %v2813_v26, %v11938_v58  ;;  %v9237_v34 = vpop.f32.mrb[230].mxu0  ;;  %v12252_v20 = vpop.f32.mrb[244].mxu1 }
 0x2ed   : > { %v2816_v43 = vpop.f32.mrb[231].mxu0  ;;  %v3217_v60 = vpop.f32.mrb[245].mxu1 }
 0x2ee   : > { %v12255_v54 = vadd.f32 %v2816_v43, %v11942_v15  ;;  %v12257_v42 = vpop.f32.mrb[246].mxu1 }
 0x2ef   : > { %v3220_v50 = vpop.f32.mrb[247].mxu1 }
 0x2f0   : > { %15302 = vst [vmem:[#allocation89_spill] sm:$0xff] %v12255_v54 }
 0x2f2   : > { %v9240_v5 = vpop.f32.mrb[232].mxu0 }
 0x2f3   : > { %v2829_v10 = vpop.f32.mrb[233].mxu0 }
 0x2f4   : > { %v12260_v48 = vadd.f32 %v2829_v10, %v11969_v59  ;;  %v9241_v16 = vpop.f32.mrb[234].mxu0  ;;  %v3223_v7 = vpop.f32.mrb[248].mxu1 }
 0x2f5   : > { %v2832_v58 = vpop.f32.mrb[235].mxu0  ;;  %v3225_v49 = vpop.f32.mrb[249].mxu1 }
 0x2f6   : > { %15303 = vst [vmem:[#allocation4_spill] sm:$0xff] %v12260_v48  ;;  %v12263_v26 = vadd.f32 %v2832_v58, %v11977_v57  ;;  %v3226_v34 = vpop.f32.mrb[250].mxu1 }
 0x2f7   : > { %v3228_v60 = vpop.f32.mrb[251].mxu1 }
 0x2f8   : > { %15304 = vst [vmem:[#allocation5_spill] sm:$0xff] %v12263_v26 }
 0x2fa   : > { %v9244_v25 = vpop.f32.mrb[236].mxu0 }
 0x2fb   : > { %v2845_v15 = vpop.f32.mrb[237].mxu0 }
 0x2fc   : > { %v12266_v43 = vadd.f32 %v2845_v15, %v12008_v39  ;;  %v9245_v50 = vpop.f32.mrb[238].mxu0  ;;  %v12268_v5 = vpop.f32.mrb[252].mxu1 }
 0x2fd   : > { %v2848_v41 = vpop.f32.mrb[239].mxu0  ;;  %v3233_v59 = vpop.f32.mrb[253].mxu1 }
 0x2fe   : > { %15305 = vst [vmem:[#allocation49_spill] sm:$0xff] %v12266_v43  ;;  %v12271_v10 = vadd.f32 %v2848_v41, %v12018_v3  ;;  %v12273_v16 = vpop.f32.mrb[254].mxu1 }
 0x2ff   : > { %v3236_v7 = vpop.f32.mrb[255].mxu1 }
 0x300   : > { %15306 = vst [vmem:[#allocation6_spill] sm:$0xff] %v12271_v10 }
 0x302   : > { %v9248_v57 = vpop.f32.mrb[240].mxu0 }
 0x303   : > { %v2861_v58 = vpop.f32.mrb[241].mxu0 }
 0x304   : > { %v9249_v49 = vpop.f32.mrb[242].mxu0  ;;  %v3239_v34 = vpop.f32.mrb[0].mxu1 }
 0x305   : > { %v2864_v25 = vpop.f32.mrb[243].mxu0  ;;  %v3241_v60 = vpop.f32.mrb[1].mxu1 }
 0x306   : > { %v3242_v26 = vpop.f32.mrb[2].mxu1 }
 0x307   : > { %v3244_v39 = vpop.f32.mrb[3].mxu1  ;;  %v12283_v26 = vld [vmem:[%s14624_s3] ss:$0 sm:$0xff] }
 0x30a   : > { %v9268_v15 = vpop.f32.mrb[244].mxu0 }
 0x30b   : > { %v3424_v50 = vpop.f32.mrb[245].mxu0 }
 0x30c   : > { %v9269_v43 = vpop.f32.mrb[246].mxu0  ;;  %v12275_v48 = vpop.f32.mrb[4].mxu1 }
 0x30d   : > { %v3427_v59 = vpop.f32.mrb[247].mxu0  ;;  %v3249_v54 = vpop.f32.mrb[5].mxu1 }
 0x30e   : > { %v12277_v41 = vpop.f32.mrb[6].mxu1 }
 0x30f   : > { %v3252_v3 = vpop.f32.mrb[7].mxu1 }
 0x310   : > { %v9984_v3 = vmov 0.0  }
 0x312   : > { %v9272_v10 = vpop.f32.mrb[248].mxu0 }
 0x313   : > { %v3440_v7 = vpop.f32.mrb[249].mxu0 }
 0x314   : > { %v3441_v57 = vadd.f32 %v3440_v7, %v12105_v2  ;;  %v9273_v58 = vpop.f32.mrb[250].mxu0  ;;  %v3255_v49 = vpop.f32.mrb[8].mxu1  ;;  %v12290_v7 = vrot.slane %v9984_v3, 7 }
 0x315   : > { %v3443_v34 = vpop.f32.mrb[251].mxu0  ;;  %v3257_v43 = vpop.f32.mrb[9].mxu1  ;;  %v12292_v49 = vrot.slane %v9984_v3, 1 }
 0x316   : > { %v3715_v25 = vadd.f32 %v3441_v57, %v12085_v6  ;;  %v3444_v54 = vadd.f32 %v3443_v34, %v12110_v28  ;;  %v3258_v60 = vpop.f32.mrb[10].mxu1 }
 0x317   : > { %v3260_v39 = vpop.f32.mrb[11].mxu1 }
 0x318   : > { %v3794_v10 = vadd.f32 %v12283_v26, %v3715_v25  ;;  %v3716_v15 = vadd.f32 %v3444_v54, %v12094_v27 }
 0x31a   : > { %v3866_v2 = vmax.f32 %v3794_v10, 0.0  ;;  %v3795_v50 = vadd.f32 %v12283_v26, %v3716_v15  ;;  %v9276_v59 = vpop.f32.mrb[252].mxu0 }
 0x31b   : > { %v3456_v58 = vpop.f32.mrb[253].mxu0 }
 0x31c   : > { %v4339_v43 = vrot.slane %v3866_v2, 7  ;;  %v3867_v6 = vmax.f32 %v3795_v50, 0.0  ;;  %v3457_v28 = vadd.f32 %v3456_v58, %v12133_v62  ;;  %v9277_v57 = vpop.f32.mrb[254].mxu0  ;;  %v4519_v34 = vrot.slane %v3866_v2, 1  ;;  %v12295_v60 = vpop.f32.mrb[12].mxu1 }
 0x31d   : > { %v3459_v25 = vpop.f32.mrb[255].mxu0  ;;  %v3265_v27 = vpop.f32.mrb[13].mxu1 }
 0x31e   : > { %v4357_v54 = vrot.slane %v3867_v6, 7  ;;  %v3719_v39 = vadd.f32 %v3457_v28, %v12103_v11  ;;  %v3460_v10 = vadd.f32 %v3459_v25, %v12138_v55  ;;  %v12299_v15 = vpop.f32.mrb[14].mxu1  ;;  %v4465_v59 = vsel %vm645_vm1, %v12290_v7, %v4339_v43 }
 0x31f   : > { %v12304_v50 = vpack.c.bf16 %v3867_v6, %v3866_v2  ;;  %v4537_v62 = vrot.slane %v3867_v6, 1  ;;  %v3268_v3 = vpop.f32.mrb[15].mxu1  ;;  %v4645_v11 = vsel %vm846_vm0, %v12292_v49, %v4519_v34 }
 0x320   : > { %v4447_v58 = vsel %vm645_vm1, %v4339_v43, %v4357_v54  ;;  %v3798_v57 = vadd.f32 %v12283_v26, %v3719_v39  ;;  %v3720_v27 = vadd.f32 %v3460_v10, %v12108_v46  ;;  %v9841_v39 = vld [vmem:[%s14625_s4] sm:$0xff]   ;;  %v9845_v10 = vld [vmem:[%s14625_s4 + $0x88] sm:$0xff]   ;;  %v12332_v3 = vpack.c.bf16 %v4645_v11, %v12292_v49 }
 0x321   : > { %v12313_v55 = vpack.c.bf16 %v4447_v58, %v4465_v59  ;;  %4971 = vmatprep.mubr.bf16.mxu0 %v12304_v50  ;;  %v4609_v2 = vsel %vm846_vm0, %v4537_v62, %v12292_v49  ;;  %v4627_v6 = vsel %vm846_vm0, %v4519_v34, %v4537_v62 }
 0x322   : > { %v3870_v43 = vmax.f32 %v3798_v57, 0.0  ;;  %v3799_v28 = vadd.f32 %v12283_v26, %v3720_v27  ;;  %v9280_v25 = vpop.f32.mrb[0].mxu0  ;;  %v12322_v46 = vpack.c.bf16 %v4609_v2, %v4627_v6  ;;  %15308 = vst [vmem:[#allocation51_spill] sm:$0xff] %v12332_v3 }
 0x323   : > { %v3472_v59 = vpop.f32.mrb[1].mxu0  ;;  %4972 = vmatmul.mubr.bf16.vlgmr.msra.gmra.mrb[60].mxu0 %v12313_v55  ;;  %v14825_v25 = vmov 0.0|0.0  }
 0x324   : > { %15307 = vst [vmem:[#allocation7_spill] sm:$0xff] %v12322_v46  ;;  %v4340_v34 = vrot.slane %v3870_v43, 7  ;;  %v12334_v62 = vmax.f32 %v3799_v28, 0.0  ;;  %v3473_v58 = vadd.f32 %v3472_v59, %v12162_v8  ;;  %9354 = vmatprep.mubr.bf16.mxu1 %v12322_v46  ;;  %v9281_v57 = vpop.f32.mrb[2].mxu0  ;;  %9419 = vmatpush3.bf16.msra.mxu0 %v12172_v31  ;;  %v4520_v27 = vrot.slane %v3870_v43, 1  ;;  %v3271_v2 = vpop.f32.mrb[16].mxu1 }
 0x325   : > { %9355 = vmatmul.mubr.bf16.vlgmr.msra.gmra.mrb[76].mxu1 %v12332_v3  ;;  %v3475_v6 = vpop.f32.mrb[3].mxu0  ;;  %4979 = vmatprep.mubr.bf16.mxu0 %v14825_v25  ;;  %v3273_v11 = vpop.f32.mrb[17].mxu1  ;;  %v9850_v28 = vld [vmem:[%s14625_s4 + $0x90] sm:$0xff]   ;;  %v4429_v8 = vsel %vm645_vm1, %v4357_v54, %v12290_v7  ;;  %v9842_v2 = vld [vmem:[%s14625_s4 + $0x8] sm:$0xff]  }
 0x326   : > { %v14828_v59 = vrot.slane %v12334_v62, 7  ;;  %v3723_v31 = vadd.f32 %v3473_v58, %v12120_v13  ;;  %v3476_v57 = vadd.f32 %v3475_v6, %v12167_v17  ;;  %5662 = vmatpush1.bf16.msra.mxu1 %v9841_v39  ;;  %v3274_v11 = vpop.f32.mrb[18].mxu1  ;;  %9420 = vmatprep.subr.bf16.mxu0 %v9845_v10  ;;  %v4466_v25 = vsel %vm645_vm1, %v12290_v7, %v4340_v34 }
 0x327   : > { %v4538_v3 = vrot.slane %v12334_v62, 1  ;;  %v12358_v54 = vpack.c.bf16 %v12334_v62, %v3870_v43  ;;  %5663 = vmatprep.subr.bf16.mxu1 %v15177_v51  ;;  %v3276_v13 = vpop.f32.mrb[19].mxu1  ;;  %v4646_v6 = vsel %vm846_vm0, %v12292_v49, %v4520_v27  ;;  %v12371_v43 = vpack.c.bf16 %v12290_v7, %v4429_v8 }
 0x328   : > { %v4448_v17 = vsel %vm645_vm1, %v4340_v34, %v14828_v59  ;;  %v3802_v39 = vadd.f32 %v12283_v26, %v3723_v31  ;;  %v3724_v58 = vadd.f32 %v3476_v57, %v12124_v21  ;;  %9421 = vmatpush3.bf16.msra.mxu0 %v9845_v10  ;;  %v9843_v10 = vld [vmem:[%s14625_s4 + $0x10] sm:$0xff]  }
 0x329   : > { %15309 = vst [vmem:[#allocation17_spill] sm:$0xff] %v12358_v54  ;;  %v12373_v11 = vpack.c.bf16 %v4448_v17, %v4466_v25  ;;  %v4610_v13 = vsel %vm846_vm0, %v4538_v3, %v12292_v49  ;;  %v4628_v34 = vsel %vm846_vm0, %v4520_v27, %v4538_v3  ;;  %9422 = vmatprep.subr.bf16.mxu0 %v9850_v28  ;;  %v9855_v25 = vld [vmem:[%s14625_s4 + $0x98] sm:$0xff]  }
 0x32a   : > { %v3874_v31 = vmax.f32 %v3802_v39, 0.0  ;;  %v3803_v21 = vadd.f32 %v12283_v26, %v3724_v58  ;;  %v9284_v57 = vpop.f32.mrb[4].mxu0  ;;  %v12381_v59 = vpack.c.bf16 %v4610_v13, %v4628_v34  ;;  %5664 = vmatpush1.bf16.msra.mxu1 %v9842_v2  ;;  %v12391_v3 = vpack.c.bf16 %v4646_v6, %v12292_v49 }
 0x32b   : > { %15310 = vst [vmem:[#allocation19_spill] sm:$0xff] %v12373_v11  ;;  %v3488_v8 = vpop.f32.mrb[5].mxu0  ;;  %4980 = vmatmul.mubr.bf16.gmra.mrb[64].mxu0 %v12371_v43  ;;  %5665 = vmatprep.subr.bf16.mxu1 %v15177_v51 }
 0x32c   : > { %15311 = vst [vmem:[#allocation8_spill] sm:$0xff] %v12381_v59  ;;  %15312 = vst [vmem:[#allocation9_spill] sm:$0xff] %v12391_v3  ;;  %v4341_v27 = vrot.slane %v3874_v31, 7  ;;  %v12394_v17 = vmax.f32 %v3803_v21, 0.0  ;;  %v3489_v2 = vadd.f32 %v3488_v8, %v12204_v19  ;;  %9358 = vmatprep.mubr.bf16.mxu1 %v12381_v59  ;;  %v9285_v39 = vpop.f32.mrb[6].mxu0  ;;  %4987 = vmatprep.mubr.bf16.mxu0 %v12358_v54  ;;  %v4521_v58 = vrot.slane %v3874_v31, 1 }
 0x32d   : > { %v12399_v13 = vpop.f32.mrb[20].mxu1  ;;  %9359 = vmatmul.mubr.bf16.gmra.mrb[80].mxu1 %v12391_v3  ;;  %v3491_v34 = vpop.f32.mrb[7].mxu0  ;;  %9423 = vmatpush3.bf16.msra.mxu0 %v9850_v28  ;;  %v9844_v8 = vld [vmem:[%s14625_s4 + $0x18] sm:$0xff]   ;;  %v9860_v39 = vld [vmem:[%s14625_s4 + $0xa0] sm:$0xff]  }
 0x32e   : > { %v3281_v6 = vpop.f32.mrb[21].mxu1  ;;  %v14836_v57 = vrot.slane %v12394_v17, 7  ;;  %v3727_v21 = vadd.f32 %v3489_v2, %v12131_v36  ;;  %v3492_v46 = vadd.f32 %v3491_v34, %v12209_v61  ;;  %5666 = vmatpush1.bf16.msra.mxu1 %v9843_v10  ;;  %9424 = vmatprep.subr.bf16.mxu0 %v9855_v25  ;;  %v4467_v28 = vsel %vm645_vm1, %v12290_v7, %v4341_v27 }
 0x32f   : > { %v12405_v19 = vpop.f32.mrb[22].mxu1  ;;  %v4539_v36 = vrot.slane %v12394_v17, 1  ;;  %v12418_v61 = vpack.c.bf16 %v12394_v17, %v3874_v31  ;;  %5667 = vmatprep.subr.bf16.mxu1 %v15177_v51  ;;  %v4647_v3 = vsel %vm846_vm0, %v12292_v49, %v4521_v58 }
 0x330   : > { %v3284_v10 = vpop.f32.mrb[23].mxu1  ;;  %v4449_v2 = vsel %vm645_vm1, %v4341_v27, %v14836_v57  ;;  %v3806_v34 = vadd.f32 %v12283_v26, %v3727_v21  ;;  %v3728_v6 = vadd.f32 %v3492_v46, %v12136_v63  ;;  %v9846_v63 = vld [vmem:[%s14625_s4 + $0x20] sm:$0xff]  }
 0x331   : > { %15313 = vst [vmem:[#allocation52_spill] sm:$0xff] %v12418_v61  ;;  %v12430_v59 = vpack.c.bf16 %v4449_v2, %v4467_v28  ;;  %v4611_v31 = vsel %vm846_vm0, %v4539_v36, %v12292_v49  ;;  %v4629_v10 = vsel %vm846_vm0, %v4521_v58, %v4539_v36  ;;  %9425 = vmatpush3.bf16.msra.mxu0 %v9855_v25  ;;  %v15317_v2 = vmov 0.0|0.0  }
 0x332   : > { %v3878_v54 = vmax.f32 %v3806_v34, 0.0  ;;  %v3807_v27 = vadd.f32 %v12283_v26, %v3728_v6  ;;  %v9288_v21 = vpop.f32.mrb[8].mxu0  ;;  %v12438_v57 = vpack.c.bf16 %v4611_v31, %v4629_v10  ;;  %5668 = vmatpush1.bf16.msra.mxu1 %v9844_v8  ;;  %9426 = vmatprep.subr.bf16.mxu0 %v9860_v39  ;;  %v12445_v28 = vpack.c.bf16 %v4647_v3, %v12292_v49 }
 0x333   : > { %15314 = vst [vmem:[#allocation10_spill] sm:$0xff] %v12430_v59  ;;  %v3504_v46 = vpop.f32.mrb[9].mxu0  ;;  %4988 = vmatmul.mubr.bf16.gmra.mrb[68].mxu0 %v12373_v11  ;;  %5669 = vmatprep.subr.bf16.mxu1 %v15177_v51  ;;  %v15318_v3 = vrot.slane %v12334_v62, 7 }
 0x334   : > { %15315 = vst [vmem:[#allocation11_spill] sm:$0xff] %v12438_v57  ;;  %15316 = vst [vmem:[#allocation53_spill] sm:$0xff] %v12445_v28  ;;  %v4342_v25 = vrot.slane %v3878_v54, 7  ;;  %v12448_v58 = vmax.f32 %v3807_v27, 0.0  ;;  %v3505_v36 = vadd.f32 %v3504_v46, %v12220_v0  ;;  %9362 = vmatprep.mubr.bf16.mxu1 %v12438_v57  ;;  %v9289_v8 = vpop.f32.mrb[10].mxu0  ;;  %4995 = vmatprep.mubr.bf16.mxu0 %v15317_v2  ;;  %v4522_v34 = vrot.slane %v3878_v54, 1 }
 0x335   : > { %v3287_v6 = vpop.f32.mrb[24].mxu1  ;;  %9363 = vmatmul.mubr.bf16.gmra.mrb[84].mxu1 %v12445_v28  ;;  %v3507_v31 = vpop.f32.mrb[11].mxu0  ;;  %9427 = vmatpush3.bf16.msra.mxu0 %v9860_v39  ;;  %v4430_v27 = vsel %vm645_vm1, %v15318_v3, %v12290_v7 }
 0x336   : > { %v3289_v10 = vpop.f32.mrb[25].mxu1  ;;  %v14837_v0 = vrot.slane %v12448_v58, 7  ;;  %v3731_v21 = vadd.f32 %v3505_v36, %v12148_v1  ;;  %v3508_v46 = vadd.f32 %v3507_v31, %v12225_v29  ;;  %5670 = vmatpush1.bf16.msra.mxu1 %v9846_v63  ;;  %v9847_v6 = vld [vmem:[%s14625_s4 + $0x28] sm:$0xff]   ;;  %v4468_v39 = vsel %vm645_vm1, %v12290_v7, %v4342_v25 }
 0x337   : > { %v3290_v8 = vpop.f32.mrb[26].mxu1  ;;  %v4540_v62 = vrot.slane %v12448_v58, 1  ;;  %v12470_v3 = vpack.c.bf16 %v12448_v58, %v3878_v54  ;;  %5671 = vmatprep.subr.bf16.mxu1 %v15177_v51  ;;  %v4648_v36 = vsel %vm846_vm0, %v12292_v49, %v4522_v34  ;;  %v12483_v31 = vpack.c.bf16 %v12290_v7, %v4430_v27  ;;  %v9848_v27 = vld [vmem:[%s14625_s4 + $0x30] sm:$0xff]  }
 0x338   : > { %v3292_v10 = vpop.f32.mrb[27].mxu1  ;;  %v4450_v1 = vsel %vm645_vm1, %v4342_v25, %v14837_v0  ;;  %v3810_v29 = vadd.f32 %v12283_v26, %v3731_v21  ;;  %v3732_v63 = vadd.f32 %v3508_v46, %v12151_v45 }
 0x339   : > { %15319 = vst [vmem:[#allocation96_spill] sm:$0xff] %v12470_v3  ;;  %15320 = vst [vmem:[#allocation97_spill] sm:$0xff] %v12483_v31  ;;  %v12485_v54 = vpack.c.bf16 %v4450_v1, %v4468_v39  ;;  %v4612_v8 = vsel %vm846_vm0, %v4540_v62, %v12292_v49  ;;  %v4630_v25 = vsel %vm846_vm0, %v4522_v34, %v4540_v62 }
 0x33a   : > { %v3882_v10 = vmax.f32 %v3810_v29, 0.0  ;;  %v3811_v21 = vadd.f32 %v12283_v26, %v3732_v63  ;;  %v9292_v45 = vpop.f32.mrb[12].mxu0  ;;  %v12493_v46 = vpack.c.bf16 %v4612_v8, %v4630_v25  ;;  %5672 = vmatpush1.bf16.msra.mxu1 %v9847_v6  ;;  %v12500_v1 = vpack.c.bf16 %v4648_v36, %v12292_v49 }
 0x33b   : > { %15321 = vst [vmem:[#allocation14_spill] sm:$0xff] %v12485_v54  ;;  %v3520_v39 = vpop.f32.mrb[13].mxu0  ;;  %4996 = vmatmul.mubr.bf16.gmra.mrb[72].mxu0 %v12483_v31  ;;  %5673 = vmatprep.subr.bf16.mxu1 %v15177_v51 }
 0x33c   : > { %15322 = vst [vmem:[#allocation15_spill] sm:$0xff] %v12493_v46  ;;  %15323 = vst [vmem:[#allocation55_spill] sm:$0xff] %v12500_v1  ;;  %v4343_v34 = vrot.slane %v3882_v10, 7  ;;  %v12503_v62 = vmax.f32 %v3811_v21, 0.0  ;;  %v3521_v29 = vadd.f32 %v3520_v39, %v12236_v18  ;;  %9366 = vmatprep.mubr.bf16.mxu1 %v12493_v46  ;;  %v9293_v6 = vpop.f32.mrb[14].mxu0  ;;  %5003 = vmatprep.mubr.bf16.mxu0 %v12418_v61  ;;  %v4523_v63 = vrot.slane %v3882_v10, 1 }
 0x33d   : > { %v12508_v8 = vpop.f32.mrb[28].mxu1  ;;  %9367 = vmatmul.mubr.bf16.gmra.mrb[88].mxu1 %v12500_v1  ;;  %v3523_v25 = vpop.f32.mrb[15].mxu0  ;;  %v9849_v18 = vld [vmem:[%s14625_s4 + $0x38] sm:$0xff]  }
 0x33e   : > { %v3297_v36 = vpop.f32.mrb[29].mxu1  ;;  %v3735_v0 = vadd.f32 %v3521_v29, %v12160_v53  ;;  %v3524_v21 = vadd.f32 %v3523_v25, %v12241_v44  ;;  %5674 = vmatpush1.bf16.msra.mxu1 %v9848_v27  ;;  %v4469_v39 = vsel %vm645_vm1, %v12290_v7, %v4343_v34  ;;  %v4541_v6 = vrot.slane %v12503_v62, 1 }
 0x33f   : > { %v12514_v28 = vpop.f32.mrb[30].mxu1  ;;  %v12524_v45 = vpack.c.bf16 %v12503_v62, %v3882_v10  ;;  %5675 = vmatprep.subr.bf16.mxu1 %v15177_v51  ;;  %v15325_v53 = vrot.slane %v12503_v62, 7  ;;  %v4649_v25 = vsel %vm846_vm0, %v12292_v49, %v4523_v63 }
 0x340   : > { %v3300_v36 = vpop.f32.mrb[31].mxu1  ;;  %v3814_v27 = vadd.f32 %v12283_v26, %v3735_v0  ;;  %v3736_v29 = vadd.f32 %v3524_v21, %v12165_v37  ;;  %v4613_v10 = vsel %vm846_vm0, %v4541_v6, %v12292_v49  ;;  %v9851_v37 = vld [vmem:[%s14625_s4 + $0x40] sm:$0xff]  }
 0x341   : > { %15324 = vst [vmem:[#allocation16_spill] sm:$0xff] %v12524_v45  ;;  %v4451_v44 = vsel %vm645_vm1, %v4343_v34, %v15325_v53  ;;  %v4631_v36 = vsel %vm846_vm0, %v4523_v63, %v4541_v6  ;;  %v9862_v63 = vld [vmem:[%s14625_s4 + $0xa8] sm:$0xff]  }
 0x342   : > { %v12536_v1 = vpack.c.bf16 %v4451_v44, %v4469_v39  ;;  %v3886_v46 = vmax.f32 %v3814_v27, 0.0  ;;  %v3815_v34 = vadd.f32 %v12283_v26, %v3736_v29  ;;  %v9296_v53 = vpop.f32.mrb[16].mxu0  ;;  %v12544_v0 = vpack.c.bf16 %v4613_v10, %v4631_v36  ;;  %5676 = vmatpush1.bf16.msra.mxu1 %v9849_v18  ;;  %9428 = vmatprep.subr.bf16.mxu0 %v9862_v63 }
 0x343   : > { %v3536_v21 = vpop.f32.mrb[17].mxu0  ;;  %5004 = vmatmul.mubr.bf16.gmra.mrb[76].mxu0 %v12430_v59  ;;  %v12551_v39 = vpack.c.bf16 %v4649_v25, %v12292_v49  ;;  %5677 = vmatprep.subr.bf16.mxu1 %v15177_v51  ;;  %v15329_v53 = vrot.slane %v12394_v17, 7 }
 0x344   : > { %15326 = vst [vmem:[#allocation18_spill] sm:$0xff] %v12536_v1  ;;  %15327 = vst [vmem:[#allocation57_spill] sm:$0xff] %v12544_v0  ;;  %v4344_v6 = vrot.slane %v3886_v46, 7  ;;  %v12557_v44 = vmax.f32 %v3815_v34, 0.0  ;;  %v3537_v18 = vadd.f32 %v3536_v21, %v12252_v20  ;;  %9370 = vmatprep.mubr.bf16.mxu1 %v12544_v0  ;;  %v9297_v27 = vpop.f32.mrb[18].mxu0  ;;  %5011 = vmatprep.mubr.bf16.mxu0 %v15317_v2  ;;  %v4524_v29 = vrot.slane %v3886_v46, 1 }
 0x345   : > { %15328 = vst [vmem:[#allocation23_spill] sm:$0xff] %v12551_v39  ;;  %v3303_v10 = vpop.f32.mrb[32].mxu1  ;;  %9371 = vmatmul.mubr.bf16.gmra.mrb[92].mxu1 %v12551_v39  ;;  %v3539_v25 = vpop.f32.mrb[19].mxu0  ;;  %v4431_v34 = vsel %vm645_vm1, %v15329_v53, %v12290_v7  ;;  %9429 = vmatpush3.bf16.msra.mxu0 %v9862_v63 }
 0x346   : > { %v3305_v36 = vpop.f32.mrb[33].mxu1  ;;  %v3739_v21 = vadd.f32 %v3537_v18, %v12187_v32  ;;  %v3540_v27 = vadd.f32 %v3539_v25, %v12257_v42  ;;  %5678 = vmatpush1.bf16.msra.mxu1 %v9851_v37  ;;  %v9852_v10 = vld [vmem:[%s14625_s4 + $0x48] sm:$0xff]   ;;  %v4470_v17 = vsel %vm645_vm1, %v12290_v7, %v4344_v6  ;;  %v12579_v20 = vpack.c.bf16 %v12557_v44, %v3886_v46 }
 0x347   : > { %v3306_v0 = vpop.f32.mrb[34].mxu1  ;;  %v4542_v36 = vrot.slane %v12557_v44, 1  ;;  %5679 = vmatprep.subr.bf16.mxu1 %v15177_v51  ;;  %v15331_v32 = vrot.slane %v12557_v44, 7  ;;  %v4650_v63 = vsel %vm846_vm0, %v12292_v49, %v4524_v29  ;;  %v12592_v18 = vpack.c.bf16 %v12290_v7, %v4431_v34  ;;  %v9853_v34 = vld [vmem:[%s14625_s4 + $0x50] sm:$0xff]  }
 0x348   : > { %v3308_v53 = vpop.f32.mrb[35].mxu1  ;;  %15330 = vst [vmem:[#allocation24_spill] sm:$0xff] %v12579_v20  ;;  %v3818_v0 = vadd.f32 %v12283_v26, %v3739_v21  ;;  %v3740_v37 = vadd.f32 %v3540_v27, %v12190_v22 }
 0x349   : > { %v4452_v42 = vsel %vm645_vm1, %v4344_v6, %v15331_v32  ;;  %15332 = vst [vmem:[#allocation22_spill] sm:$0xff] %v12592_v18  ;;  %v4614_v25 = vsel %vm846_vm0, %v4542_v36, %v12292_v49  ;;  %v4632_v6 = vsel %vm846_vm0, %v4524_v29, %v4542_v36  ;;  %v12609_v32 = vpack.c.bf16 %v4650_v63, %v12292_v49 }
 0x34a   : > { %v12594_v46 = vpack.c.bf16 %v4452_v42, %v4470_v17  ;;  %v3890_v53 = vmax.f32 %v3818_v0, 0.0  ;;  %v3819_v21 = vadd.f32 %v12283_v26, %v3740_v37  ;;  %v9300_v22 = vpop.f32.mrb[20].mxu0  ;;  %v12602_v27 = vpack.c.bf16 %v4614_v25, %v4632_v6  ;;  %5680 = vmatpush1.bf16.msra.mxu1 %v9852_v10 }
 0x34b   : > { %v3552_v17 = vpop.f32.mrb[21].mxu0  ;;  %5012 = vmatmul.mubr.bf16.gmra.mrb[80].mxu0 %v12592_v18  ;;  %15335 = vst [vmem:[#allocation27_spill] sm:$0xff] %v12609_v32  ;;  %5681 = vmatprep.subr.bf16.mxu1 %v15177_v51 }
 0x34c   : > { %15333 = vst [vmem:[#allocation26_spill] sm:$0xff] %v12594_v46  ;;  %15334 = vst [vmem:[#allocation59_spill] sm:$0xff] %v12602_v27  ;;  %v4345_v29 = vrot.slane %v3890_v53, 7  ;;  %v12612_v36 = vmax.f32 %v3819_v21, 0.0  ;;  %v3553_v42 = vadd.f32 %v3552_v17, %v12268_v5  ;;  %9374 = vmatprep.mubr.bf16.mxu1 %v12602_v27  ;;  %v9301_v10 = vpop.f32.mrb[22].mxu0  ;;  %5019 = vmatprep.mubr.bf16.mxu0 %v12470_v3  ;;  %v4525_v0 = vrot.slane %v3890_v53, 1 }
 0x34d   : > { %v12617_v37 = vpop.f32.mrb[36].mxu1  ;;  %9375 = vmatmul.mubr.bf16.gmra.mrb[96].mxu1 %v12609_v32  ;;  %v3555_v25 = vpop.f32.mrb[23].mxu0  ;;  %v9854_v5 = vld [vmem:[%s14625_s4 + $0x58] sm:$0xff]  }
 0x34e   : > { %v3313_v63 = vpop.f32.mrb[37].mxu1  ;;  %v3743_v22 = vadd.f32 %v3553_v42, %v12202_v9  ;;  %v3556_v21 = vadd.f32 %v3555_v25, %v12273_v16  ;;  %5682 = vmatpush1.bf16.msra.mxu1 %v9853_v34  ;;  %v4471_v17 = vsel %vm645_vm1, %v12290_v7, %v4345_v29  ;;  %v4543_v10 = vrot.slane %v12612_v36, 1 }
 0x34f   : > { %v12623_v39 = vpop.f32.mrb[38].mxu1  ;;  %v12633_v6 = vpack.c.bf16 %v12612_v36, %v3890_v53  ;;  %5683 = vmatprep.subr.bf16.mxu1 %v15177_v51  ;;  %v15337_v9 = vrot.slane %v12612_v36, 7  ;;  %v4651_v25 = vsel %vm846_vm0, %v12292_v49, %v4525_v0 }
 0x350   : > { %v3316_v63 = vpop.f32.mrb[39].mxu1  ;;  %v3822_v34 = vadd.f32 %v12283_v26, %v3743_v22  ;;  %v3744_v42 = vadd.f32 %v3556_v21, %v12207_v12  ;;  %v4615_v53 = vsel %vm846_vm0, %v4543_v10, %v12292_v49  ;;  %v9856_v12 = vld [vmem:[%s14625_s4 + $0x60] sm:$0xff]  }
 0x351   : > { %15336 = vst [vmem:[#allocation61_spill] sm:$0xff] %v12633_v6  ;;  %v4453_v16 = vsel %vm645_vm1, %v4345_v29, %v15337_v9  ;;  %v4633_v63 = vsel %vm846_vm0, %v4525_v0, %v4543_v10 }
 0x352   : > { %v12645_v32 = vpack.c.bf16 %v4453_v16, %v4471_v17  ;;  %v3894_v27 = vmax.f32 %v3822_v34, 0.0  ;;  %v3823_v29 = vadd.f32 %v12283_v26, %v3744_v42  ;;  %v9304_v9 = vpop.f32.mrb[24].mxu0  ;;  %v12653_v22 = vpack.c.bf16 %v4615_v53, %v4633_v63  ;;  %5684 = vmatpush1.bf16.msra.mxu1 %v9854_v5 }
 0x353   : > { %v3568_v21 = vpop.f32.mrb[25].mxu0  ;;  %5020 = vmatmul.mubr.bf16.gmra.mrb[84].mxu0 %v12485_v54  ;;  %v12660_v17 = vpack.c.bf16 %v4651_v25, %v12292_v49  ;;  %5685 = vmatprep.subr.bf16.mxu1 %v15177_v51  ;;  %v15341_v25 = vrot.slane %v12448_v58, 7 }
 0x354   : > { %15338 = vst [vmem:[#allocation103_spill] sm:$0xff] %v12645_v32  ;;  %15339 = vst [vmem:[#allocation104_spill] sm:$0xff] %v12653_v22  ;;  %v4346_v0 = vrot.slane %v3894_v27, 7  ;;  %v12663_v10 = vmax.f32 %v3823_v29, 0.0  ;;  %v3569_v16 = vadd.f32 %v3568_v21, %v12275_v48  ;;  %9378 = vmatprep.mubr.bf16.mxu1 %v12653_v22  ;;  %v9305_v5 = vpop.f32.mrb[26].mxu0  ;;  %5027 = vmatprep.mubr.bf16.mxu0 %v15317_v2  ;;  %v4526_v34 = vrot.slane %v3894_v27, 1 }
 0x355   : > { %15340 = vst [vmem:[#allocation33_spill] sm:$0xff] %v12660_v17  ;;  %v3319_v42 = vpop.f32.mrb[40].mxu1  ;;  %9379 = vmatmul.mubr.bf16.gmra.mrb[100].mxu1 %v12660_v17  ;;  %v3571_v53 = vpop.f32.mrb[27].mxu0  ;;  %v4432_v29 = vsel %vm645_vm1, %v15341_v25, %v12290_v7 }
 0x356   : > { %v3321_v63 = vpop.f32.mrb[41].mxu1  ;;  %v14854_v9 = vrot.slane %v12663_v10, 7  ;;  %v3747_v48 = vadd.f32 %v3569_v16, %v12212_v52  ;;  %v3572_v21 = vadd.f32 %v3571_v53, %v12277_v41  ;;  %5686 = vmatpush1.bf16.msra.mxu1 %v9856_v12  ;;  %v9857_v42 = vld [vmem:[%s14625_s4 + $0x68] sm:$0xff]   ;;  %v4544_v58 = vrot.slane %v12663_v10, 1 }
 0x357   : > { %v3322_v5 = vpop.f32.mrb[42].mxu1  ;;  %v4472_v63 = vsel %vm645_vm1, %v12290_v7, %v4346_v0  ;;  %v12685_v25 = vpack.c.bf16 %v12663_v10, %v3894_v27  ;;  %5687 = vmatprep.subr.bf16.mxu1 %v15177_v51  ;;  %v4652_v16 = vsel %vm846_vm0, %v12292_v49, %v4526_v34 }
 0x358   : > { %v3324_v17 = vpop.f32.mrb[43].mxu1  ;;  %v4454_v52 = vsel %vm645_vm1, %v4346_v0, %v14854_v9  ;;  %v3826_v41 = vadd.f32 %v12283_v26, %v3747_v48  ;;  %v3748_v12 = vadd.f32 %v3572_v21, %v12215_v56  ;;  %v4616_v53 = vsel %vm846_vm0, %v4544_v58, %v12292_v49 }
 0x359   : > { %15342 = vst [vmem:[#allocation35_spill] sm:$0xff] %v12685_v25  ;;  %v12698_v17 = vpack.c.bf16 %v12290_v7, %v4432_v29  ;;  %v12700_v27 = vpack.c.bf16 %v4454_v52, %v4472_v63  ;;  %v4634_v0 = vsel %vm846_vm0, %v4526_v34, %v4544_v58  ;;  %v9858_v29 = vld [vmem:[%s14625_s4 + $0x70] sm:$0xff]   ;;  %v12715_v52 = vpack.c.bf16 %v4652_v16, %v12292_v49 }
 0x35a   : > { %v3898_v5 = vmax.f32 %v3826_v41, 0.0  ;;  %v3827_v48 = vadd.f32 %v12283_v26, %v3748_v12  ;;  %v9308_v56 = vpop.f32.mrb[28].mxu0  ;;  %v12708_v21 = vpack.c.bf16 %v4616_v53, %v4634_v0  ;;  %5688 = vmatpush1.bf16.msra.mxu1 %v9857_v42 }
 0x35b   : > { %15343 = vst [vmem:[#allocation63_spill] sm:$0xff] %v12698_v17  ;;  %15344 = vst [vmem:[#allocation38_spill] sm:$0xff] %v12700_v27  ;;  %v3584_v63 = vpop.f32.mrb[29].mxu0  ;;  %5028 = vmatmul.mubr.bf16.gmra.mrb[88].mxu0 %v12698_v17  ;;  %5689 = vmatprep.subr.bf16.mxu1 %v15177_v51 }
 0x35c   : > { %15345 = vst [vmem:[#allocation65_spill] sm:$0xff] %v12708_v21  ;;  %15346 = vst [vmem:[#allocation67_spill] sm:$0xff] %v12715_v52  ;;  %v4347_v34 = vrot.slane %v3898_v5, 7  ;;  %v12718_v58 = vmax.f32 %v3827_v48, 0.0  ;;  %v3585_v41 = vadd.f32 %v3584_v63, %v12295_v60  ;;  %9382 = vmatprep.mubr.bf16.mxu1 %v12708_v21  ;;  %v9309_v42 = vpop.f32.mrb[30].mxu0  ;;  %5035 = vmatprep.mubr.bf16.mxu0 %v12524_v45  ;;  %v4527_v12 = vrot.slane %v3898_v5, 1 }
 0x35d   : > { %v12723_v53 = vpop.f32.mrb[44].mxu1  ;;  %9383 = vmatmul.mubr.bf16.gmra.mrb[104].mxu1 %v12715_v52  ;;  %v3587_v0 = vpop.f32.mrb[31].mxu0  ;;  %v9859_v60 = vld [vmem:[%s14625_s4 + $0x78] sm:$0xff]  }
 0x35e   : > { %v3329_v16 = vpop.f32.mrb[45].mxu1  ;;  %v3751_v9 = vadd.f32 %v3585_v41, %v12218_v30  ;;  %v3588_v48 = vadd.f32 %v3587_v0, %v12299_v15  ;;  %5690 = vmatpush1.bf16.msra.mxu1 %v9858_v29  ;;  %v4473_v63 = vsel %vm645_vm1, %v12290_v7, %v4347_v34  ;;  %v4545_v42 = vrot.slane %v12718_v58, 1  ;;  %v12745_v30 = vld [vmem:[%s14625_s4 + $0x200] sm:$0xff]  }
 0x35f   : > { %v12729_v22 = vpop.f32.mrb[46].mxu1  ;;  %v12739_v56 = vpack.c.bf16 %v12718_v58, %v3898_v5  ;;  %5691 = vmatprep.subr.bf16.mxu1 %v15177_v51  ;;  %v15348_v15 = vrot.slane %v12718_v58, 7  ;;  %v4653_v5 = vsel %vm846_vm0, %v12292_v49, %v4527_v12 }
 0x360   : > { %v3332_v16 = vpop.f32.mrb[47].mxu1  ;;  %v3830_v41 = vadd.f32 %v12283_v26, %v3751_v9  ;;  %v3752_v0 = vadd.f32 %v3588_v48, %v12223_v24  ;;  %v4617_v52 = vsel %vm846_vm0, %v4545_v42, %v12292_v49  ;;  %v4635_v21 = vsel %vm846_vm0, %v4527_v12, %v4545_v42 }
 0x361   : > { %15347 = vst [vmem:[#allocation69_spill] sm:$0xff] %v12739_v56  ;;  %v4455_v29 = vsel %vm645_vm1, %v4347_v34, %v15348_v15  ;;  %v12764_v9 = vpack.c.bf16 %v4617_v52, %v4635_v21  ;;  %v12768_v48 = vpack.c.bf16 %v4653_v5, %v12292_v49  ;;  %v15352_v5 = vrot.slane %v12503_v62, 7 }
 0x362   : > { %v12756_v16 = vpack.c.bf16 %v4455_v29, %v4473_v63  ;;  %v3902_v57 = vmax.f32 %v3830_v41, 0.0  ;;  %v3831_v34 = vadd.f32 %v12283_v26, %v3752_v0  ;;  %v9312_v15 = vpop.f32.mrb[32].mxu0  ;;  %5692 = vmatpush1.bf16.msra.mxu1 %v9859_v60  ;;  %v9864_v63 = vld [vmem:[%s14625_s4 + $0xb0] sm:$0xff]  }
 0x363   : > { %15350 = vst [vmem:[#allocation90_spill] sm:$0xff] %v12764_v9  ;;  %v3600_v24 = vpop.f32.mrb[33].mxu0  ;;  %5036 = vmatmul.mubr.bf16.gmra.mrb[92].mxu0 %v12536_v1  ;;  %15351 = vst [vmem:[#allocation92_spill] sm:$0xff] %v12768_v48  ;;  %9498 = vmatprep.subr.bf16.mxu1 %v12745_v30 }
 0x364   : > { %15349 = vst [vmem:[#allocation71_spill] sm:$0xff] %v12756_v16  ;;  %v4348_v12 = vrot.slane %v3902_v57, 7  ;;  %v12774_v42 = vmax.f32 %v3831_v34, 0.0  ;;  %v3601_v29 = vadd.f32 %v3600_v24, %v12399_v13  ;;  %9386 = vmatprep.mubr.bf16.mxu1 %v12764_v9  ;;  %v9313_v21 = vpop.f32.mrb[34].mxu0  ;;  %5043 = vmatprep.mubr.bf16.mxu0 %v15317_v2  ;;  %v4528_v52 = vrot.slane %v3902_v57, 1  ;;  %v3335_v60 = vpop.f32.mrb[48].mxu1 }
 0x365   : > { %9387 = vmatmul.mubr.bf16.gmra.mrb[108].mxu1 %v12768_v48  ;;  %v3603_v41 = vpop.f32.mrb[35].mxu0  ;;  %v3337_v0 = vpop.f32.mrb[49].mxu1  ;;  %9430 = vmatprep.subr.bf16.mxu0 %v9864_v63  ;;  %v4433_v34 = vsel %vm645_vm1, %v15352_v5, %v12290_v7 }
 0x366   : > { %v14865_v13 = vrot.slane %v12774_v42, 7  ;;  %v3755_v15 = vadd.f32 %v3601_v29, %v12228_v40  ;;  %v3604_v24 = vadd.f32 %v3603_v41, %v12405_v19  ;;  %v3338_v21 = vpop.f32.mrb[50].mxu1  ;;  %9431 = vmatpush3.bf16.msra.mxu0 %v9864_v63  ;;  %v4474_v60 = vsel %vm645_vm1, %v12290_v7, %v4348_v12 }
 0x367   : > { %v4546_v0 = vrot.slane %v12774_v42, 1  ;;  %v3340_v48 = vpop.f32.mrb[51].mxu1  ;;  %v12793_v62 = vpack.c.bf16 %v12774_v42, %v3902_v57  ;;  %v4654_v63 = vsel %vm846_vm0, %v12292_v49, %v4528_v52  ;;  %v12805_v29 = vpack.c.bf16 %v12290_v7, %v4433_v34 }
 0x368   : > { %v4456_v5 = vsel %vm645_vm1, %v4348_v12, %v14865_v13  ;;  %v3834_v40 = vadd.f32 %v12283_v26, %v3755_v15  ;;  %v3756_v19 = vadd.f32 %v3604_v24, %v12231_v47  ;;  %v12819_v34 = vpack.c.bf16 %v4654_v63, %v12292_v49 }
 0x369   : > { %15353 = vst [vmem:[#allocation73_spill] sm:$0xff] %v12793_v62  ;;  %15354 = vst [vmem:[#allocation98_spill] sm:$0xff] %v12805_v29  ;;  %v12807_v48 = vpack.c.bf16 %v4456_v5, %v4474_v60  ;;  %v4618_v57 = vsel %vm846_vm0, %v4546_v0, %v12292_v49  ;;  %v4636_v12 = vsel %vm846_vm0, %v4528_v52, %v4546_v0 }
 0x36a   : > { %v3906_v41 = vmax.f32 %v3834_v40, 0.0  ;;  %v3835_v15 = vadd.f32 %v12283_v26, %v3756_v19  ;;  %v9316_v47 = vpop.f32.mrb[36].mxu0  ;;  %v12815_v24 = vpack.c.bf16 %v4618_v57, %v4636_v12  ;;  %15357 = vst [vmem:[#allocation75_spill] sm:$0xff] %v12819_v34 }
 0x36b   : > { %15355 = vst [vmem:[#allocation100_spill] sm:$0xff] %v12807_v48  ;;  %v3616_v21 = vpop.f32.mrb[37].mxu0  ;;  %5044 = vmatmul.mubr.bf16.gmra.mrb[96].mxu0 %v12805_v29 }
 0x36c   : > { %15356 = vst [vmem:[#allocation114_spill] sm:$0xff] %v12815_v24  ;;  %v4349_v60 = vrot.slane %v3906_v41, 7  ;;  %v12821_v5 = vmax.f32 %v3835_v15, 0.0  ;;  %v3617_v13 = vadd.f32 %v3616_v21, %v12508_v8  ;;  %9390 = vmatprep.mubr.bf16.mxu1 %v12815_v24  ;;  %v9317_v52 = vpop.f32.mrb[38].mxu0  ;;  %5051 = vmatprep.mubr.bf16.mxu0 %v12579_v20  ;;  %v4529_v0 = vrot.slane %v3906_v41, 1  ;;  %v12826_v40 = vpop.f32.mrb[52].mxu1 }
 0x36d   : > { %9391 = vmatmul.mubr.bf16.gmra.mrb[112].mxu1 %v12819_v34  ;;  %v3619_v19 = vpop.f32.mrb[39].mxu0  ;;  %v3345_v57 = vpop.f32.mrb[53].mxu1 }
 0x36e   : > { %v14870_v63 = vrot.slane %v12821_v5, 7  ;;  %v3759_v12 = vadd.f32 %v3617_v13, %v12234_v33  ;;  %v3620_v15 = vadd.f32 %v3619_v19, %v12514_v28  ;;  %v12832_v47 = vpop.f32.mrb[54].mxu1  ;;  %v4475_v8 = vsel %vm645_vm1, %v12290_v7, %v4349_v60 }
 0x36f   : > { %v4547_v21 = vrot.slane %v12821_v5, 1  ;;  %v3348_v52 = vpop.f32.mrb[55].mxu1  ;;  %v12839_v24 = vpack.c.bf16 %v12821_v5, %v3906_v41  ;;  %v4655_v13 = vsel %vm846_vm0, %v12292_v49, %v4529_v0 }
 0x370   : > { %v4457_v57 = vsel %vm645_vm1, %v4349_v60, %v14870_v63  ;;  %v3838_v33 = vadd.f32 %v12283_v26, %v3759_v12  ;;  %v3760_v28 = vadd.f32 %v3620_v15, %v12239_v23  ;;  %v12862_v15 = vpack.c.bf16 %v4655_v13, %v12292_v49 }
 0x371   : > { %15358 = vst [vmem:[#allocation105_spill] sm:$0xff] %v12839_v24  ;;  %v12850_v19 = vpack.c.bf16 %v4457_v57, %v4475_v8  ;;  %v4619_v41 = vsel %vm846_vm0, %v4547_v21, %v12292_v49  ;;  %v4637_v52 = vsel %vm846_vm0, %v4529_v0, %v4547_v21  ;;  %v15362_v13 = vrot.slane %v12557_v44, 7 }
 0x372   : > { %v3910_v34 = vmax.f32 %v3838_v33, 0.0  ;;  %v3839_v60 = vadd.f32 %v12283_v26, %v3760_v28  ;;  %v9320_v63 = vpop.f32.mrb[40].mxu0  ;;  %v12858_v12 = vpack.c.bf16 %v4619_v41, %v4637_v52  ;;  %15361 = vst [vmem:[#allocation118_spill] sm:$0xff] %v12862_v15 }
 0x373   : > { %15359 = vst [vmem:[#allocation107_spill] sm:$0xff] %v12850_v19  ;;  %v3632_v23 = vpop.f32.mrb[41].mxu0  ;;  %5052 = vmatmul.mubr.bf16.gmra.mrb[100].mxu0 %v12594_v46  ;;  %v4434_v41 = vsel %vm645_vm1, %v15362_v13, %v12290_v7 }
 0x374   : > { %15360 = vst [vmem:[#allocation117_spill] sm:$0xff] %v12858_v12  ;;  %v4350_v8 = vrot.slane %v3910_v34, 7  ;;  %v12864_v57 = vmax.f32 %v3839_v60, 0.0  ;;  %v3633_v9 = vadd.f32 %v3632_v23, %v12617_v37  ;;  %9394 = vmatprep.mubr.bf16.mxu1 %v12858_v12  ;;  %v9321_v0 = vpop.f32.mrb[42].mxu0  ;;  %5059 = vmatprep.mubr.bf16.mxu0 %v15317_v2  ;;  %v4530_v21 = vrot.slane %v3910_v34, 1  ;;  %v3351_v63 = vpop.f32.mrb[56].mxu1 }
 0x375   : > { %9395 = vmatmul.mubr.bf16.gmra.mrb[116].mxu1 %v12862_v15  ;;  %v3635_v33 = vpop.f32.mrb[43].mxu0  ;;  %v3353_v28 = vpop.f32.mrb[57].mxu1 }
 0x376   : > { %v14875_v52 = vrot.slane %v12864_v57, 7  ;;  %v3763_v37 = vadd.f32 %v3633_v9, %v12244_v38  ;;  %v3636_v60 = vadd.f32 %v3635_v33, %v12623_v39  ;;  %v3354_v23 = vpop.f32.mrb[58].mxu1  ;;  %v4476_v0 = vsel %vm645_vm1, %v12290_v7, %v4350_v8 }
 0x377   : > { %v4548_v63 = vrot.slane %v12864_v57, 1  ;;  %v3356_v28 = vpop.f32.mrb[59].mxu1  ;;  %v12883_v15 = vpack.c.bf16 %v12864_v57, %v3910_v34  ;;  %v4656_v9 = vsel %vm846_vm0, %v12292_v49, %v4530_v21  ;;  %v12895_v33 = vpack.c.bf16 %v12290_v7, %v4434_v41 }
 0x378   : > { %v4458_v44 = vsel %vm645_vm1, %v4350_v8, %v14875_v52  ;;  %v3842_v38 = vadd.f32 %v12283_v26, %v3763_v37  ;;  %v3764_v39 = vadd.f32 %v3636_v60, %v12247_v4  ;;  %v12909_v41 = vpack.c.bf16 %v4656_v9, %v12292_v49 }
 0x379   : > { %15363 = vst [vmem:[#allocation77_spill] sm:$0xff] %v12883_v15  ;;  %15364 = vst [vmem:[#allocation109_spill] sm:$0xff] %v12895_v33  ;;  %v12897_v13 = vpack.c.bf16 %v4458_v44, %v4476_v0  ;;  %v4620_v34 = vsel %vm846_vm0, %v4548_v63, %v12292_v49  ;;  %v4638_v8 = vsel %vm846_vm0, %v4530_v21, %v4548_v63 }
 0x37a   : > { %v3914_v23 = vmax.f32 %v3842_v38, 0.0  ;;  %v3843_v37 = vadd.f32 %v12283_v26, %v3764_v39  ;;  %v9324_v4 = vpop.f32.mrb[44].mxu0  ;;  %v12905_v60 = vpack.c.bf16 %v4620_v34, %v4638_v8  ;;  %15367 = vst [vmem:[#allocation112_spill] sm:$0xff] %v12909_v41 }
 0x37b   : > { %15365 = vst [vmem:[#allocation111_spill] sm:$0xff] %v12897_v13  ;;  %v3648_v28 = vpop.f32.mrb[45].mxu0  ;;  %5060 = vmatmul.mubr.bf16.gmra.mrb[104].mxu0 %v12895_v33 }
 0x37c   : > { %15366 = vst [vmem:[#allocation80_spill] sm:$0xff] %v12905_v60  ;;  %v4351_v0 = vrot.slane %v3914_v23, 7  ;;  %v12911_v44 = vmax.f32 %v3843_v37, 0.0  ;;  %v3649_v52 = vadd.f32 %v3648_v28, %v12723_v53  ;;  %9398 = vmatprep.mubr.bf16.mxu1 %v12905_v60  ;;  %v9325_v21 = vpop.f32.mrb[46].mxu0  ;;  %5067 = vmatprep.mubr.bf16.mxu0 %v12633_v6  ;;  %v4531_v63 = vrot.slane %v3914_v23, 1  ;;  %v12916_v38 = vpop.f32.mrb[60].mxu1 }
 0x37d   : > { %9399 = vmatmul.mubr.bf16.gmra.mrb[120].mxu1 %v12909_v41  ;;  %v3651_v39 = vpop.f32.mrb[47].mxu0  ;;  %v3361_v34 = vpop.f32.mrb[61].mxu1 }
 0x37e   : > { %v14882_v9 = vrot.slane %v12911_v44, 7  ;;  %v3767_v8 = vadd.f32 %v3649_v52, %v12250_v14  ;;  %v3652_v37 = vadd.f32 %v3651_v39, %v12729_v22  ;;  %v12922_v4 = vpop.f32.mrb[62].mxu1  ;;  %v4477_v53 = vsel %vm645_vm1, %v12290_v7, %v4351_v0  ;;  %v15369_v22 = vld [vmem:[#allocation89_spill] sm:$0xff] }
 0x37f   : > { %v4549_v28 = vrot.slane %v12911_v44, 1  ;;  %v3364_v21 = vpop.f32.mrb[63].mxu1  ;;  %v12929_v60 = vpack.c.bf16 %v12911_v44, %v3914_v23  ;;  %v4657_v39 = vsel %vm846_vm0, %v12292_v49, %v4531_v63 }
 0x380   : > { %v4459_v34 = vsel %vm645_vm1, %v4351_v0, %v14882_v9  ;;  %v3846_v14 = vadd.f32 %v12283_v26, %v3767_v8  ;;  %v3768_v52 = vadd.f32 %v3652_v37, %v15369_v22  ;;  %v12950_v26 = vld [vmem:[%s14624_s3] ss:$0 sm:$0xff]  ;;  %v15373_v9 = vrot.slane %v12612_v36, 7 }
 0x381   : > { %15368 = vst [vmem:[#allocation113_spill] sm:$0xff] %v12929_v60  ;;  %v12940_v41 = vpack.c.bf16 %v4459_v34, %v4477_v53  ;;  %v4621_v23 = vsel %vm846_vm0, %v4549_v28, %v12292_v49  ;;  %v4639_v21 = vsel %vm846_vm0, %v4531_v63, %v4549_v28  ;;  %v12957_v34 = vpack.c.bf16 %v4657_v39, %v12292_v49  ;;  %v9866_v63 = vld [vmem:[%s14625_s4 + $0xb8] sm:$0xff]  }
 0x382   : > { %v3918_v12 = vmax.f32 %v3846_v14, 0.0  ;;  %v3847_v0 = vadd.f32 %v12950_v26, %v3768_v52  ;;  %v9328_v8 = vpop.f32.mrb[48].mxu0  ;;  %v12953_v37 = vpack.c.bf16 %v4621_v23, %v4639_v21  ;;  %9432 = vmatprep.subr.bf16.mxu0 %v9866_v63 }
 0x383   : > { %15370 = vst [vmem:[#allocation83_spill] sm:$0xff] %v12940_v41  ;;  %v3664_v53 = vpop.f32.mrb[49].mxu0  ;;  %5068 = vmatmul.mubr.bf16.gmra.mrb[108].mxu0 %v12645_v32  ;;  %15372 = vst [vmem:[#allocation116_spill] sm:$0xff] %v12957_v34 }
 0x384   : > { %15371 = vst [vmem:[#allocation115_spill] sm:$0xff] %v12953_v37  ;;  %v4352_v28 = vrot.slane %v3918_v12, 7  ;;  %v12962_v14 = vmax.f32 %v3847_v0, 0.0  ;;  %v3665_v22 = vadd.f32 %v3664_v53, %v12826_v40  ;;  %9402 = vmatprep.mubr.bf16.mxu1 %v12953_v37  ;;  %v9329_v52 = vpop.f32.mrb[50].mxu0  ;;  %5075 = vmatprep.mubr.bf16.mxu0 %v15317_v2  ;;  %v4532_v23 = vrot.slane %v3918_v12, 1  ;;  %v3367_v21 = vpop.f32.mrb[64].mxu1 }
 0x385   : > { %9403 = vmatmul.mubr.bf16.gmra.mrb[124].mxu1 %v12957_v34  ;;  %v3667_v39 = vpop.f32.mrb[51].mxu0  ;;  %v3369_v8 = vpop.f32.mrb[65].mxu1  ;;  %v4435_v0 = vsel %vm645_vm1, %v15373_v9, %v12290_v7  ;;  %v15374_v53 = vld [vmem:[#allocation4_spill] sm:$0xff]  ;;  %9433 = vmatpush3.bf16.msra.mxu0 %v9866_v63 }
 0x386   : > { %v14889_v40 = vrot.slane %v12962_v14, 7  ;;  %v3771_v37 = vadd.f32 %v3665_v22, %v15374_v53  ;;  %v3668_v52 = vadd.f32 %v3667_v39, %v12832_v47  ;;  %v3370_v32 = vpop.f32.mrb[66].mxu1  ;;  %v4478_v21 = vsel %vm645_vm1, %v12290_v7, %v4352_v28  ;;  %6432 = vmatprep.subr.bf16.mxu0 %v15177_v51  ;;  %v15376_v47 = vld [vmem:[#allocation5_spill] sm:$0xff] }
 0x387   : > { %v4550_v8 = vrot.slane %v12962_v14, 1  ;;  %v3372_v34 = vpop.f32.mrb[67].mxu1  ;;  %v12981_v36 = vpack.c.bf16 %v12962_v14, %v3918_v12  ;;  %v4658_v22 = vsel %vm846_vm0, %v12292_v49, %v4532_v23 }
 0x388   : > { %v4460_v9 = vsel %vm645_vm1, %v4352_v28, %v14889_v40  ;;  %v3850_v32 = vadd.f32 %v12950_v26, %v3771_v37  ;;  %v3772_v63 = vadd.f32 %v3668_v52, %v15376_v47  ;;  %v12994_v34 = vpack.c.bf16 %v12290_v7, %v4435_v0 }
 0x389   : > { %15375 = vst [vmem:[#allocation86_spill] sm:$0xff] %v12981_v36  ;;  %v12996_v12 = vpack.c.bf16 %v4460_v9, %v4478_v21  ;;  %v4622_v39 = vsel %vm846_vm0, %v4550_v8, %v12292_v49  ;;  %v4640_v28 = vsel %vm846_vm0, %v4532_v23, %v4550_v8  ;;  %v13008_v0 = vpack.c.bf16 %v4658_v22, %v12292_v49  ;;  %v15380_v22 = vld [vmem:[#allocation49_spill] sm:$0xff] }
 0x38a   : > { %15377 = vst [vmem:[#allocation91_spill] sm:$0xff] %v12994_v34  ;;  %v3922_v53 = vmax.f32 %v3850_v32, 0.0  ;;  %v3851_v37 = vadd.f32 %v12950_v26, %v3772_v63  ;;  %v9332_v52 = vpop.f32.mrb[52].mxu0  ;;  %v13004_v47 = vpack.c.bf16 %v4622_v39, %v4640_v28 }
 0x38b   : > { %15378 = vst [vmem:[#allocation94_spill] sm:$0xff] %v12996_v12  ;;  %v3680_v40 = vpop.f32.mrb[53].mxu0  ;;  %5076 = vmatmul.mubr.bf16.gmra.mrb[112].mxu0 %v12994_v34  ;;  %15379 = vst [vmem:[#allocation99_spill] sm:$0xff] %v13008_v0 }
 0x38c   : > { %v4353_v21 = vrot.slane %v3922_v53, 7  ;;  %v13010_v9 = vmax.f32 %v3851_v37, 0.0  ;;  %v3681_v51 = vadd.f32 %v3680_v40, %v12916_v38  ;;  %9406 = vmatprep.mubr.bf16.mxu1 %v13004_v47  ;;  %v9333_v23 = vpop.f32.mrb[54].mxu0  ;;  %5083 = vmatprep.mubr.bf16.mxu0 %v12685_v25  ;;  %v4533_v8 = vrot.slane %v3922_v53, 1  ;;  %v3375_v32 = vpop.f32.mrb[68].mxu1 }
 0x38d   : > { %9407 = vmatmul.mubr.bf16.gmra.mrb[128].mxu1 %v13008_v0  ;;  %v3683_v63 = vpop.f32.mrb[55].mxu0  ;;  %v3377_v39 = vpop.f32.mrb[69].mxu1 }
 0x38e   : > { %v14895_v28 = vrot.slane %v13010_v9, 7  ;;  %v3775_v52 = vadd.f32 %v3681_v51, %v15380_v22  ;;  %v3684_v37 = vadd.f32 %v3683_v63, %v12922_v4  ;;  %v3378_v34 = vpop.f32.mrb[70].mxu1  ;;  %v4479_v38 = vsel %vm645_vm1, %v12290_v7, %v4353_v21  ;;  %v15382_v22 = vld [vmem:[#allocation6_spill] sm:$0xff] }
 0x38f   : > { %v4551_v40 = vrot.slane %v13010_v9, 1  ;;  %v3380_v23 = vpop.f32.mrb[71].mxu1  ;;  %v13024_v32 = vpack.c.bf16 %v13010_v9, %v3922_v53  ;;  %v4659_v34 = vsel %vm846_vm0, %v12292_v49, %v4533_v8 }
 0x390   : > { %v4461_v39 = vsel %vm645_vm1, %v4353_v21, %v14895_v28  ;;  %v3854_v51 = vadd.f32 %v12950_v26, %v3775_v52  ;;  %v3776_v4 = vadd.f32 %v3684_v37, %v15382_v22  ;;  %v13047_v37 = vpack.c.bf16 %v4659_v34, %v12292_v49 }
 0x391   : > { %15381 = vst [vmem:[#allocation28_spill] sm:$0xff] %v13024_v32  ;;  %v13035_v63 = vpack.c.bf16 %v4461_v39, %v4479_v38  ;;  %v4623_v53 = vsel %vm846_vm0, %v4551_v40, %v12292_v49  ;;  %v4641_v23 = vsel %vm846_vm0, %v4533_v8, %v4551_v40 }
 0x392   : > { %v3926_v0 = vmax.f32 %v3854_v51, 0.0  ;;  %v3855_v21 = vadd.f32 %v12950_v26, %v3776_v4  ;;  %v13043_v28 = vpack.c.bf16 %v4623_v53, %v4641_v23  ;;  %v9336_v52 = vpop.f32.mrb[56].mxu0  ;;  %v15384_v53 = vrot.slane %v12663_v10, 7 }
 0x393   : > { %15383 = vst [vmem:[#allocation106_spill] sm:$0xff] %v13035_v63  ;;  %5084 = vmatmul.mubr.bf16.gmra.mrb[116].mxu0 %v12700_v27  ;;  %v3696_v38 = vpop.f32.mrb[57].mxu0 }
 0x394   : > { %v4354_v39 = vrot.slane %v3926_v0, 7  ;;  %v13049_v22 = vmax.f32 %v3855_v21, 0.0  ;;  %9410 = vmatprep.mubr.bf16.mxu1 %v13043_v28  ;;  %5091 = vmatprep.mubr.bf16.mxu0 %v15317_v2  ;;  %v4534_v8 = vrot.slane %v3926_v0, 1  ;;  %v9337_v40 = vpop.f32.mrb[58].mxu0  ;;  %v3383_v51 = vpop.f32.mrb[72].mxu1  ;;  %v4436_v34 = vsel %vm645_vm1, %v15384_v53, %v12290_v7 }
 0x395   : > { %9411 = vmatmul.mubr.bf16.gmra.mrb[132].mxu1 %v13047_v37  ;;  %v3699_v26 = vpop.f32.mrb[59].mxu0  ;;  %v3385_v4 = vpop.f32.mrb[73].mxu1 }
 0x396   : > { %v14896_v23 = vrot.slane %v13049_v22, 7  ;;  %v4552_v21 = vrot.slane %v13049_v22, 1  ;;  %v3386_v52 = vpop.f32.mrb[74].mxu1  ;;  %v4480_v38 = vsel %vm645_vm1, %v12290_v7, %v4354_v39  ;;  %v13065_v51 = vpack.c.bf16 %v13049_v22, %v3926_v0 }
 0x397   : > { %v3388_v40 = vpop.f32.mrb[75].mxu1  ;;  %v4660_v53 = vsel %vm846_vm0, %v12292_v49, %v4534_v8  ;;  %v13080_v52 = vpack.c.bf16 %v12290_v7, %v4436_v34  ;;  %v9863_v34 = vld [vmem:[%s14625_s4 + $0x208] sm:$0xff]  }
 0x398   : > { %15385 = vst [vmem:[#allocation108_spill] sm:$0xff] %v13065_v51  ;;  %v4462_v10 = vsel %vm645_vm1, %v4354_v39, %v14896_v23  ;;  %v4624_v26 = vsel %vm846_vm0, %v4552_v21, %v12292_v49  ;;  %v4642_v4 = vsel %vm846_vm0, %v4534_v8, %v4552_v21  ;;  %v13088_v39 = vpack.c.bf16 %v4660_v53, %v12292_v49 }
 0x399   : > { %15386 = vst [vmem:[#allocation29_spill] sm:$0xff] %v13080_v52  ;;  %v13082_v0 = vpack.c.bf16 %v4462_v10, %v4480_v38  ;;  %v13084_v40 = vpack.c.bf16 %v4624_v26, %v4642_v4  ;;  %v13096_v8 = vpack.c.bf16 %v12290_v7, %v12290_v7  ;;  %v15391_v21 = vrot.slane %v12718_v58, 7  ;;  %v9865_v10 = vld [vmem:[%s14625_s4 + $0x210] sm:$0xff]   ;;  %v9867_v58 = vld [vmem:[%s14625_s4 + $0x218] sm:$0xff]  }
 0x39a   : > { %15389 = vst [vmem:[#allocation110_spill] sm:$0xff] %v13088_v39  ;;  %v15393_v4 = vrot.slane %v12774_v42, 7 }
 0x39b   : > { %15387 = vst [vmem:[#allocation30_spill] sm:$0xff] %v13082_v0  ;;  %15388 = vst [vmem:[#allocation39_spill] sm:$0xff] %v13084_v40  ;;  %5092 = vmatmul.mubr.bf16.gmra.mrb[120].mxu0 %v13080_v52  ;;  %9414 = vmatprep.mubr.bf16.mxu1 %v13084_v40  ;;  %v4437_v38 = vsel %vm645_vm1, %v15391_v21, %v12290_v7 }
 0x39c   : > { %5099 = vmatprep.mubr.bf16.mxu0 %v12739_v56  ;;  %15390 = vst [vmem:[#allocation2_spill] sm:$0xff] %v13096_v8  ;;  %v13115_v26 = vpack.c.bf16 %v12290_v7, %v4437_v38 }
 0x39d   : > { %9415 = vmatmul.mubr.bf16.gmra.mrb[136].mxu1 %v13088_v39 }
 0x39e   : > { %5693 = vmatprep.mubr.bf16.mxu1 %v15317_v2  ;;  %15392 = vst [vmem:[#allocation79_spill] sm:$0xff] %v13115_v26 }
 0x3a3   : > { %5100 = vmatmul.mubr.bf16.gmra.mrb[124].mxu0 %v12756_v16 }
 0x3a4   : > { %5107 = vmatprep.mubr.bf16.mxu0 %v15317_v2 }
 0x3a5   : > { %5694 = vmatmul.mubr.bf16.vlgmr.msra.gmra.mrb[140].mxu1 %v13096_v8 }
 0x3a6   : > { %9499 = vmatpush3.bf16.msra.mxu1 %v12745_v30  ;;  %5701 = vmatprep.mubr.bf16.mxu1 %v15317_v2  ;;  %v9869_v30 = vld [vmem:[%s14625_s4 + $0x220] sm:$0xff]  }
 0x3a7   : > { %9500 = vmatprep.subr.bf16.mxu1 %v9863_v34 }
 0x3aa   : > { %9501 = vmatpush3.bf16.msra.mxu1 %v9863_v34  ;;  %v15395_v34 = vld [vmem:[#allocation17_spill] sm:$0xff] }
 0x3ab   : > { %5108 = vmatmul.mubr.bf16.gmra.mrb[128].mxu0 %v13115_v26  ;;  %9502 = vmatprep.subr.bf16.mxu1 %v9865_v10 }
 0x3ac   : > { %5115 = vmatprep.mubr.bf16.mxu0 %v12793_v62 }
 0x3ad   : > { %5702 = vmatmul.mubr.bf16.gmra.mrb[144].mxu1 %v13096_v8 }
 0x3ae   : > { %5709 = vmatprep.mubr.bf16.mxu1 %v12304_v50  ;;  %9503 = vmatpush3.bf16.msra.mxu1 %v9865_v10  ;;  %v4438_v50 = vsel %vm645_vm1, %v15393_v4, %v12290_v7  ;;  %v9879_v4 = vld [vmem:[%s14625_s4 + $0x230] sm:$0xff]  }
 0x3af   : > { %9504 = vmatprep.subr.bf16.mxu1 %v9867_v58  ;;  %v13137_v53 = vpack.c.bf16 %v12290_v7, %v4438_v50 }
 0x3b1   : > { %15394 = vst [vmem:[#allocation31_spill] sm:$0xff] %v13137_v53 }
 0x3b2   : > { %9505 = vmatpush3.bf16.msra.mxu1 %v9867_v58 }
 0x3b3   : > { %5116 = vmatmul.mubr.bf16.gmra.mrb[132].mxu0 %v12807_v48  ;;  %9506 = vmatprep.subr.bf16.mxu1 %v9869_v30 }
 0x3b4   : > { %5123 = vmatprep.mubr.bf16.mxu0 %v15317_v2 }
 0x3b5   : > { %5710 = vmatmul.mubr.bf16.gmra.mrb[148].mxu1 %v12313_v55  ;;  %v15396_v55 = vrot.slane %v12821_v5, 7  ;;  %v15398_v5 = vrot.slane %v12864_v57, 7  ;;  %v15400_v57 = vrot.slane %v12911_v44, 7  ;;  %v15402_v44 = vrot.slane %v12962_v14, 7 }
 0x3b6   : > { %5717 = vmatprep.mubr.bf16.mxu1 %v15317_v2  ;;  %9507 = vmatpush3.bf16.msra.mxu1 %v9869_v30 }
 0x3b7   : > { %v4439_v42 = vsel %vm645_vm1, %v15396_v55, %v12290_v7  ;;  %v4440_v38 = vsel %vm645_vm1, %v15398_v5, %v12290_v7  ;;  %v4441_v58 = vsel %vm645_vm1, %v15400_v57, %v12290_v7  ;;  %v4442_v50 = vsel %vm645_vm1, %v15402_v44, %v12290_v7 }
 0x3b8   : > { %v13153_v21 = vpack.c.bf16 %v12290_v7, %v4439_v42  ;;  %v13172_v10 = vpack.c.bf16 %v12290_v7, %v4440_v38  ;;  %v13188_v30 = vpack.c.bf16 %v12290_v7, %v4441_v58  ;;  %v13207_v38 = vpack.c.bf16 %v12290_v7, %v4442_v50 }
 0x3ba   : > { %15397 = vst [vmem:[#allocation42_spill] sm:$0xff] %v13153_v21  ;;  %15399 = vst [vmem:[#allocation36_spill] sm:$0xff] %v13172_v10 }
 0x3bb   : > { %5124 = vmatmul.mubr.bf16.gmra.mrb[136].mxu0 %v13137_v53  ;;  %15401 = vst [vmem:[#allocation82_spill] sm:$0xff] %v13188_v30  ;;  %15403 = vst [vmem:[#allocation41_spill] sm:$0xff] %v13207_v38 }
 0x3bc   : > { %5131 = vmatprep.mubr.bf16.mxu0 %v12839_v24 }
 0x3bd   : > { %5718 = vmatmul.mubr.bf16.gmra.mrb[152].mxu1 %v12371_v43  ;;  %v9874_v43 = vld [vmem:[%s14625_s4 + $0x228] sm:$0xff]  }
 0x3be   : > { %5725 = vmatprep.mubr.bf16.mxu1 %v15395_v34  ;;  %9508 = vmatprep.subr.bf16.mxu1 %v9874_v43 }
 0x3bf   : > { %9509 = vmatpush3.bf16.msra.mxu1 %v9874_v43 }
 0x3c0   : > { %9510 = vmatprep.subr.bf16.mxu1 %v9879_v4 }
 0x3c3   : > { %5132 = vmatmul.mubr.bf16.gmra.mrb[140].mxu0 %v12850_v19  ;;  %9511 = vmatpush3.bf16.msra.mxu1 %v9879_v4 }
 0x3c4   : > { %5139 = vmatprep.mubr.bf16.mxu0 %v15317_v2 }
 0x3c5   : > { %5726 = vmatmul.mubr.bf16.gmra.mrb[156].mxu1 %v12373_v11 }
 0x3c6   : > { %5733 = vmatprep.mubr.bf16.mxu1 %v15317_v2 }
 0x3cb   : > { %5140 = vmatmul.mubr.bf16.gmra.mrb[144].mxu0 %v13153_v21 }
 0x3cc   : > { %5147 = vmatprep.mubr.bf16.mxu0 %v12883_v15 }
 0x3cd   : > { %5734 = vmatmul.mubr.bf16.gmra.mrb[160].mxu1 %v12483_v31  ;;  %v15418_v31 = vld [vmem:[#allocation8_spill] sm:$0xff] }
 0x3ce   : > { %5741 = vmatprep.mubr.bf16.mxu1 %v12418_v61 }
 0x3d3   : > { %5148 = vmatmul.mubr.bf16.gmra.mrb[148].mxu0 %v12897_v13 }
 0x3d4   : > { %5155 = vmatprep.mubr.bf16.mxu0 %v15317_v2 }
 0x3d5   : > { %5742 = vmatmul.mubr.bf16.gmra.mrb[164].mxu1 %v12430_v59 }
 0x3d6   : > { %5749 = vmatprep.mubr.bf16.mxu1 %v15317_v2 }
 0x3db   : > { %5156 = vmatmul.mubr.bf16.gmra.mrb[152].mxu0 %v13172_v10 }
 0x3dc   : > { %5163 = vmatprep.mubr.bf16.mxu0 %v12929_v60 }
 0x3dd   : > { %5750 = vmatmul.mubr.bf16.gmra.mrb[168].mxu1 %v12592_v18 }
 0x3de   : > { %5757 = vmatprep.mubr.bf16.mxu1 %v12470_v3 }
 0x3e3   : > { %5164 = vmatmul.mubr.bf16.gmra.mrb[156].mxu0 %v12940_v41 }
 0x3e4   : > { %5171 = vmatprep.mubr.bf16.mxu0 %v15317_v2 }
 0x3e5   : > { %5758 = vmatmul.mubr.bf16.gmra.mrb[172].mxu1 %v12485_v54 }
 0x3e6   : > { %5765 = vmatprep.mubr.bf16.mxu1 %v15317_v2 }
 0x3eb   : > { %5172 = vmatmul.mubr.bf16.gmra.mrb[160].mxu0 %v13188_v30 }
 0x3ec   : > { %5179 = vmatprep.mubr.bf16.mxu0 %v12981_v36 }
 0x3ed   : > { %5766 = vmatmul.mubr.bf16.gmra.mrb[176].mxu1 %v12698_v17 }
 0x3ee   : > { %5773 = vmatprep.mubr.bf16.mxu1 %v12524_v45 }
 0x3f3   : > { %5180 = vmatmul.mubr.bf16.gmra.mrb[164].mxu0 %v12996_v12 }
 0x3f4   : > { %5187 = vmatprep.mubr.bf16.mxu0 %v15317_v2 }
 0x3f5   : > { %5774 = vmatmul.mubr.bf16.gmra.mrb[180].mxu1 %v12536_v1 }
 0x3f6   : > { %v4973_v55 = vpop.f32.mrb[60].mxu0  ;;  %5781 = vmatprep.mubr.bf16.mxu1 %v15317_v2 }
 0x3f7   : > { %v4975_v42 = vpop.f32.mrb[61].mxu0 }
 0x3f8   : > { %v9356_v43 = vpop.f32.mrb[76].mxu1  ;;  %v4976_v5 = vpop.f32.mrb[62].mxu0 }
 0x3f9   : > { %v5262_v57 = vpop.f32.mrb[77].mxu1  ;;  %v4978_v58 = vpop.f32.mrb[63].mxu0 }
 0x3fa   : > { %v9357_v4 = vpop.f32.mrb[78].mxu1  ;;  %v13209_v23 = vadd.f32 %v5262_v57, %v4973_v55 }
 0x3fb   : > { %v5265_v8 = vpop.f32.mrb[79].mxu1  ;;  %5188 = vmatmul.mubr.bf16.gmra.mrb[168].mxu0 %v13207_v38 }
 0x3fc   : > { %5195 = vmatprep.mubr.bf16.mxu0 %v13024_v32  ;;  %v13213_v14 = vadd.f32 %v5265_v8, %v4976_v5  ;;  %v15404_v8 = vrot.slane %v13010_v9, 7  ;;  %v9884_v9 = vld [vmem:[%s14625_s4 + $0x238] sm:$0xff]  }
 0x3fd   : > { %5782 = vmatmul.mubr.bf16.gmra.mrb[184].mxu1 %v12805_v29  ;;  %9512 = vmatprep.subr.bf16.mxu1 %v9884_v9 }
 0x3fe   : > { %5789 = vmatprep.mubr.bf16.mxu1 %v12579_v20  ;;  %v4981_v44 = vpop.f32.mrb[64].mxu0  ;;  %9513 = vmatpush3.bf16.msra.mxu1 %v9884_v9  ;;  %v15406_v9 = vld [vmem:[#allocation103_spill] sm:$0xff] }
 0x3ff   : > { %v4983_v42 = vpop.f32.mrb[65].mxu0  ;;  %v13217_v50 = vadd.f32 %v9356_v43, %v4981_v44  ;;  %v4443_v43 = vsel %vm645_vm1, %v15404_v8, %v12290_v7 }
 0x400   : > { %v9360_v39 = vpop.f32.mrb[80].mxu1  ;;  %v4984_v58 = vpop.f32.mrb[66].mxu0 }
 0x401   : > { %v5278_v40 = vpop.f32.mrb[81].mxu1  ;;  %v4986_v55 = vpop.f32.mrb[67].mxu0  ;;  %v13219_v57 = vadd.f32 %v9357_v4, %v4984_v58 }
 0x402   : > { %v9361_v1 = vpop.f32.mrb[82].mxu1  ;;  %v13233_v55 = vpack.c.bf16 %v12290_v7, %v4443_v43 }
 0x403   : > { %v5281_v45 = vpop.f32.mrb[83].mxu1  ;;  %5196 = vmatmul.mubr.bf16.gmra.mrb[172].mxu0 %v13035_v63 }
 0x404   : > { %5203 = vmatprep.mubr.bf16.mxu0 %v15317_v2  ;;  %15405 = vst [vmem:[#allocation44_spill] sm:$0xff] %v13233_v55 }
 0x405   : > { %5790 = vmatmul.mubr.bf16.gmra.mrb[188].mxu1 %v12594_v46 }
 0x406   : > { %v4989_v5 = vpop.f32.mrb[68].mxu0  ;;  %5797 = vmatprep.mubr.bf16.mxu1 %v15317_v2 }
 0x407   : > { %v4991_v44 = vpop.f32.mrb[69].mxu0  ;;  %v13230_v4 = vadd.f32 %v5278_v40, %v4989_v5 }
 0x408   : > { %v9364_v42 = vpop.f32.mrb[84].mxu1  ;;  %v4992_v58 = vpop.f32.mrb[70].mxu0 }
 0x409   : > { %v5294_v20 = vpop.f32.mrb[85].mxu1  ;;  %v4994_v29 = vpop.f32.mrb[71].mxu0  ;;  %v13238_v46 = vadd.f32 %v5281_v45, %v4992_v58 }
 0x40a   : > { %v9365_v8 = vpop.f32.mrb[86].mxu1 }
 0x40b   : > { %v5297_v17 = vpop.f32.mrb[87].mxu1  ;;  %5204 = vmatmul.mubr.bf16.gmra.mrb[176].mxu0 %v13233_v55 }
 0x40c   : > { %5211 = vmatprep.mubr.bf16.mxu0 %v13065_v51 }
 0x40d   : > { %5798 = vmatmul.mubr.bf16.gmra.mrb[192].mxu1 %v12895_v33 }
 0x40e   : > { %5805 = vmatprep.mubr.bf16.mxu1 %v12633_v6  ;;  %v4997_v40 = vpop.f32.mrb[72].mxu0 }
 0x40f   : > { %v4999_v29 = vpop.f32.mrb[73].mxu0  ;;  %v13244_v43 = vadd.f32 %v9360_v39, %v4997_v40  ;;  %v15407_v39 = vrot.slane %v13049_v22, 7 }
 0x410   : > { %v13246_v5 = vpop.f32.mrb[88].mxu1  ;;  %v5000_v45 = vpop.f32.mrb[74].mxu0 }
 0x411   : > { %v5310_v44 = vpop.f32.mrb[89].mxu1  ;;  %v5002_v58 = vpop.f32.mrb[75].mxu0  ;;  %v13248_v54 = vadd.f32 %v9361_v1, %v5000_v45  ;;  %v4444_v40 = vsel %vm645_vm1, %v15407_v39, %v12290_v7 }
 0x412   : > { %v13250_v3 = vpop.f32.mrb[90].mxu1 }
 0x413   : > { %v5313_v18 = vpop.f32.mrb[91].mxu1  ;;  %5212 = vmatmul.mubr.bf16.gmra.mrb[180].mxu0 %v13082_v0  ;;  %v13267_v0 = vpack.c.bf16 %v12292_v49, %v12292_v49 }
 0x414   : > { %5219 = vmatprep.mubr.bf16.mxu0 %v15317_v2 }
 0x415   : > { %5806 = vmatmul.mubr.bf16.gmra.mrb[196].mxu1 %v15406_v9  ;;  %15408 = vst [vmem:[#allocation85_spill] sm:$0xff] %v13267_v0  ;;  %v13270_v9 = vpack.c.bf16 %v12290_v7, %v4444_v40 }
 0x416   : > { %v5005_v29 = vpop.f32.mrb[76].mxu0  ;;  %5813 = vmatprep.mubr.bf16.mxu1 %v15317_v2 }
 0x417   : > { %v5007_v1 = vpop.f32.mrb[77].mxu0  ;;  %v13261_v45 = vadd.f32 %v5294_v20, %v5005_v29  ;;  %15409 = vst [vmem:[#allocation25_spill] sm:$0xff] %v13270_v9  ;;  %v15410_v20 = vld [vmem:[#allocation91_spill] sm:$0xff] }
 0x418   : > { %v13263_v58 = vpop.f32.mrb[92].mxu1  ;;  %v5008_v51 = vpop.f32.mrb[78].mxu0 }
 0x419   : > { %v13272_v22 = vpop.f32.mrb[93].mxu1  ;;  %v5010_v35 = vpop.f32.mrb[79].mxu0  ;;  %v13274_v39 = vadd.f32 %v5297_v17, %v5008_v51  ;;  %v9868_v51 = vld [vmem:[%s14625_s4 + $0x180] sm:$0xff]  }
 0x41a   : > { %v13276_v6 = vpop.f32.mrb[94].mxu1 }
 0x41b   : > { %v13278_v1 = vpop.f32.mrb[95].mxu1  ;;  %5220 = vmatmul.mubr.bf16.gmra.mrb[184].mxu0 %v13270_v9 }
 0x41c   : > { %9434 = vmatprep.mubr.bf16.mxu0 %v13267_v0 }
 0x41d   : > { %5814 = vmatmul.mubr.bf16.gmra.mrb[200].mxu1 %v15410_v20 }
 0x41e   : > { %5821 = vmatprep.mubr.bf16.mxu1 %v12685_v25  ;;  %v5013_v49 = vpop.f32.mrb[80].mxu0 }
 0x41f   : > { %v5015_v7 = vpop.f32.mrb[81].mxu0  ;;  %v13284_v40 = vadd.f32 %v9364_v42, %v5013_v49  ;;  %v15412_v42 = vld [vmem:[#allocation7_spill] sm:$0xff] }
 0x420   : > { %v13286_v29 = vpop.f32.mrb[96].mxu1  ;;  %v5016_v17 = vpop.f32.mrb[82].mxu0  ;;  %v9870_v49 = vld [vmem:[%s14625_s4 + $0x188] sm:$0xff]   ;;  %v15413_v7 = vmov 0  }
 0x421   : > { %v13291_v35 = vpop.f32.mrb[97].mxu1  ;;  %v5018_v9 = vpop.f32.mrb[83].mxu0  ;;  %v13293_v33 = vadd.f32 %v9365_v8, %v5016_v17 }
 0x422   : > { %v13295_v59 = vpop.f32.mrb[98].mxu1 }
 0x423   : > { %15411 = vst [vmem:[#allocation46_spill] sm:$0xff] %v13293_v33  ;;  %v13297_v20 = vpop.f32.mrb[99].mxu1  ;;  %9435 = vmatmul.mubr.bf16.vlgmr.msra.gmra.mrb[188].mxu0 %v13267_v0 }
 0x424   : > { %9438 = vmatprep.mubr.bf16.mxu0 %v15412_v42  ;;  %6433 = vmatpush1.bf16.msra.mxu0 %v9868_v51  ;;  %v9871_v51 = vld [vmem:[%s14625_s4 + $0x190] sm:$0xff]  }
 0x425   : > { %5822 = vmatmul.mubr.bf16.gmra.mrb[204].mxu1 %v12700_v27  ;;  %6434 = vmatprep.subr.bf16.mxu0 %v15413_v7  ;;  %v13320_v27 = vld [vmem:[%s14627_s6] sm:$0xff]  }
 0x426   : > { %v5021_v9 = vpop.f32.mrb[84].mxu0  ;;  %5829 = vmatprep.mubr.bf16.mxu1 %v15317_v2  ;;  %15415 = vst [vmem:[#allocation47_spill] sm:$0xff] %v13320_v27  ;;  %9578 = vmatprep.subr.bf16.mxu1 %v13320_v27 }
 0x427   : > { %v5023_v8 = vpop.f32.mrb[85].mxu0  ;;  %v13307_v17 = vadd.f32 %v5310_v44, %v5021_v9 }
 0x428   : > { %v13309_v25 = vpop.f32.mrb[100].mxu1  ;;  %v5024_v0 = vpop.f32.mrb[86].mxu0  ;;  %6435 = vmatpush1.bf16.msra.mxu0 %v9870_v49  ;;  %v15417_v49 = vld [vmem:[#allocation51_spill] sm:$0xff] }
 0x429   : > { %15414 = vst [vmem:[#allocation3_spill] sm:$0xff] %v13307_v17  ;;  %v13314_v42 = vpop.f32.mrb[101].mxu1  ;;  %v5026_v61 = vpop.f32.mrb[87].mxu0  ;;  %6436 = vmatprep.subr.bf16.mxu0 %v15413_v7  ;;  %v13322_v44 = vadd.f32 %v5313_v18, %v5024_v0 }
 0x42a   : > { %v13324_v9 = vpop.f32.mrb[102].mxu1  ;;  %v9872_v61 = vld [vmem:[%s14625_s4 + $0x198] sm:$0xff]  }
 0x42b   : > { %15416 = vst [vmem:[#allocation88_spill] sm:$0xff] %v13322_v44  ;;  %v13326_v8 = vpop.f32.mrb[103].mxu1  ;;  %9439 = vmatmul.mubr.bf16.gmra.mrb[192].mxu0 %v15417_v49 }
 0x42c   : > { %9442 = vmatprep.mubr.bf16.mxu0 %v15418_v31  ;;  %6437 = vmatpush1.bf16.msra.mxu0 %v9871_v51  ;;  %v9873_v51 = vld [vmem:[%s14625_s4 + $0x1a0] sm:$0xff]  }
 0x42d   : > { %5830 = vmatmul.mubr.bf16.gmra.mrb[208].mxu1 %v13080_v52  ;;  %6438 = vmatprep.subr.bf16.mxu0 %v15413_v7 }
 0x42e   : > { %5837 = vmatprep.mubr.bf16.mxu1 %v12739_v56  ;;  %v5029_v18 = vpop.f32.mrb[88].mxu0 }
 0x42f   : > { %v5031_v0 = vpop.f32.mrb[89].mxu0  ;;  %v13338_v44 = vadd.f32 %v13246_v5, %v5029_v18  ;;  %v15421_v18 = vld [vmem:[#allocation9_spill] sm:$0xff] }
 0x430   : > { %v13340_v49 = vpop.f32.mrb[104].mxu1  ;;  %v5032_v17 = vpop.f32.mrb[90].mxu0  ;;  %6439 = vmatpush1.bf16.msra.mxu0 %v9872_v61  ;;  %v9875_v61 = vld [vmem:[%s14625_s4 + $0x1a8] sm:$0xff]  }
 0x431   : > { %15419 = vst [vmem:[#allocation89_spill] sm:$0xff] %v13338_v44  ;;  %v13345_v27 = vpop.f32.mrb[105].mxu1  ;;  %v5034_v52 = vpop.f32.mrb[91].mxu0  ;;  %6440 = vmatprep.subr.bf16.mxu0 %v15413_v7  ;;  %v13349_v56 = vadd.f32 %v13250_v3, %v5032_v17  ;;  %v15422_v44 = vld [vmem:[#allocation11_spill] sm:$0xff] }
 0x432   : > { %v13351_v0 = vpop.f32.mrb[106].mxu1 }
 0x433   : > { %15420 = vst [vmem:[#allocation4_spill] sm:$0xff] %v13349_v56  ;;  %v13353_v5 = vpop.f32.mrb[107].mxu1  ;;  %9443 = vmatmul.mubr.bf16.gmra.mrb[196].mxu0 %v15421_v18 }
 0x434   : > { %9446 = vmatprep.mubr.bf16.mxu0 %v15422_v44  ;;  %6441 = vmatpush1.bf16.msra.mxu0 %v9873_v51  ;;  %v9876_v51 = vld [vmem:[%s14625_s4 + $0x1b0] sm:$0xff]  }
 0x435   : > { %5838 = vmatmul.mubr.bf16.gmra.mrb[212].mxu1 %v12756_v16  ;;  %6442 = vmatprep.subr.bf16.mxu0 %v15413_v7 }
 0x436   : > { %v5037_v52 = vpop.f32.mrb[92].mxu0  ;;  %5845 = vmatprep.mubr.bf16.mxu1 %v15317_v2 }
 0x437   : > { %v5039_v3 = vpop.f32.mrb[93].mxu0  ;;  %v13364_v17 = vadd.f32 %v13272_v22, %v5037_v52  ;;  %v15425_v52 = vld [vmem:[#allocation53_spill] sm:$0xff] }
 0x438   : > { %v13366_v56 = vpop.f32.mrb[108].mxu1  ;;  %v5040_v18 = vpop.f32.mrb[94].mxu0  ;;  %6443 = vmatpush1.bf16.msra.mxu0 %v9875_v61  ;;  %v9877_v61 = vld [vmem:[%s14625_s4 + $0x1b8] sm:$0xff]  }
 0x439   : > { %15423 = vst [vmem:[#allocation5_spill] sm:$0xff] %v13364_v17  ;;  %v13371_v44 = vpop.f32.mrb[109].mxu1  ;;  %v5042_v16 = vpop.f32.mrb[95].mxu0  ;;  %6444 = vmatprep.subr.bf16.mxu0 %v15413_v7  ;;  %v13375_v11 = vadd.f32 %v13278_v1, %v5040_v18  ;;  %v15426_v17 = vld [vmem:[#allocation15_spill] sm:$0xff] }
 0x43a   : > { %v13377_v3 = vpop.f32.mrb[110].mxu1 }
 0x43b   : > { %15424 = vst [vmem:[#allocation49_spill] sm:$0xff] %v13375_v11  ;;  %v13379_v22 = vpop.f32.mrb[111].mxu1  ;;  %9447 = vmatmul.mubr.bf16.gmra.mrb[200].mxu0 %v15425_v52 }
 0x43c   : > { %9450 = vmatprep.mubr.bf16.mxu0 %v15426_v17  ;;  %6445 = vmatpush1.bf16.msra.mxu0 %v9876_v51  ;;  %v9878_v51 = vld [vmem:[%s14625_s4 + $0x1c0] sm:$0xff]  }
 0x43d   : > { %5846 = vmatmul.mubr.bf16.gmra.mrb[216].mxu1 %v13115_v26  ;;  %6446 = vmatprep.subr.bf16.mxu0 %v15413_v7 }
 0x43e   : > { %5853 = vmatprep.mubr.bf16.mxu1 %v12793_v62  ;;  %v5045_v16 = vpop.f32.mrb[96].mxu0 }
 0x43f   : > { %v5047_v1 = vpop.f32.mrb[97].mxu0  ;;  %v13390_v18 = vadd.f32 %v13263_v58, %v5045_v16  ;;  %v15429_v16 = vld [vmem:[#allocation55_spill] sm:$0xff] }
 0x440   : > { %v13392_v11 = vpop.f32.mrb[112].mxu1  ;;  %v5048_v52 = vpop.f32.mrb[98].mxu0  ;;  %6447 = vmatpush1.bf16.msra.mxu0 %v9877_v61  ;;  %v9880_v61 = vld [vmem:[%s14625_s4 + $0x1c8] sm:$0xff]  }
 0x441   : > { %15427 = vst [vmem:[#allocation6_spill] sm:$0xff] %v13390_v18  ;;  %v13397_v17 = vpop.f32.mrb[113].mxu1  ;;  %v5050_v26 = vpop.f32.mrb[99].mxu0  ;;  %6448 = vmatprep.subr.bf16.mxu0 %v15413_v7  ;;  %v13401_v62 = vadd.f32 %v13276_v6, %v5048_v52  ;;  %v15430_v18 = vld [vmem:[#allocation57_spill] sm:$0xff] }
 0x442   : > { %v13403_v1 = vpop.f32.mrb[114].mxu1 }
 0x443   : > { %15428 = vst [vmem:[#allocation17_spill] sm:$0xff] %v13401_v62  ;;  %v13405_v58 = vpop.f32.mrb[115].mxu1  ;;  %9451 = vmatmul.mubr.bf16.gmra.mrb[204].mxu0 %v15429_v16 }
 0x444   : > { %9454 = vmatprep.mubr.bf16.mxu0 %v15430_v18  ;;  %6449 = vmatpush1.bf16.msra.mxu0 %v9878_v51  ;;  %v9881_v51 = vld [vmem:[%s14625_s4 + $0x1d0] sm:$0xff]  }
 0x445   : > { %5854 = vmatmul.mubr.bf16.gmra.mrb[220].mxu1 %v12807_v48  ;;  %6450 = vmatprep.subr.bf16.mxu0 %v15413_v7 }
 0x446   : > { %v5053_v26 = vpop.f32.mrb[100].mxu0  ;;  %5861 = vmatprep.mubr.bf16.mxu1 %v15317_v2 }
 0x447   : > { %v5055_v6 = vpop.f32.mrb[101].mxu0  ;;  %v13416_v52 = vadd.f32 %v13291_v35, %v5053_v26  ;;  %v15433_v26 = vld [vmem:[#allocation23_spill] sm:$0xff] }
 0x448   : > { %v13418_v62 = vpop.f32.mrb[116].mxu1  ;;  %v5056_v16 = vpop.f32.mrb[102].mxu0  ;;  %6451 = vmatpush1.bf16.msra.mxu0 %v9880_v61  ;;  %v9882_v61 = vld [vmem:[%s14625_s4 + $0x1d8] sm:$0xff]  }
 0x449   : > { %15431 = vst [vmem:[#allocation7_spill] sm:$0xff] %v13416_v52  ;;  %v13423_v18 = vpop.f32.mrb[117].mxu1  ;;  %v5058_v48 = vpop.f32.mrb[103].mxu0  ;;  %6452 = vmatprep.subr.bf16.mxu0 %v15413_v7  ;;  %v13427_v33 = vadd.f32 %v13297_v20, %v5056_v16  ;;  %v15434_v52 = vld [vmem:[#allocation59_spill] sm:$0xff] }
 0x44a   : > { %v13429_v6 = vpop.f32.mrb[118].mxu1 }
 0x44b   : > { %15432 = vst [vmem:[#allocation51_spill] sm:$0xff] %v13427_v33  ;;  %v13431_v35 = vpop.f32.mrb[119].mxu1  ;;  %9455 = vmatmul.mubr.bf16.gmra.mrb[208].mxu0 %v15433_v26 }
 0x44c   : > { %9458 = vmatprep.mubr.bf16.mxu0 %v15434_v52  ;;  %6453 = vmatpush1.bf16.msra.mxu0 %v9881_v51  ;;  %v9883_v51 = vld [vmem:[%s14625_s4 + $0x1e0] sm:$0xff]  }
 0x44d   : > { %5862 = vmatmul.mubr.bf16.gmra.mrb[224].mxu1 %v13137_v53  ;;  %6454 = vmatprep.subr.bf16.mxu0 %v15413_v7 }
 0x44e   : > { %5869 = vmatprep.mubr.bf16.mxu1 %v12839_v24  ;;  %v5061_v48 = vpop.f32.mrb[104].mxu0 }
 0x44f   : > { %v5063_v20 = vpop.f32.mrb[105].mxu0  ;;  %v13442_v16 = vadd.f32 %v13286_v29, %v5061_v48  ;;  %v15438_v48 = vld [vmem:[#allocation27_spill] sm:$0xff] }
 0x450   : > { %v13444_v33 = vpop.f32.mrb[120].mxu1  ;;  %v5064_v26 = vpop.f32.mrb[106].mxu0  ;;  %6455 = vmatpush1.bf16.msra.mxu0 %v9882_v61  ;;  %v9885_v61 = vld [vmem:[%s14625_s4 + $0x1e8] sm:$0xff]  }
 0x451   : > { %15435 = vst [vmem:[#allocation8_spill] sm:$0xff] %v13442_v16  ;;  %v13449_v52 = vpop.f32.mrb[121].mxu1  ;;  %v5066_v53 = vpop.f32.mrb[107].mxu0  ;;  %6456 = vmatprep.subr.bf16.mxu0 %v15413_v7  ;;  %v13453_v24 = vadd.f32 %v13295_v59, %v5064_v26  ;;  %v15439_v16 = vld [vmem:[#allocation104_spill] sm:$0xff] }
 0x452   : > { %v13455_v20 = vpop.f32.mrb[122].mxu1 }
 0x453   : > { %15436 = vst [vmem:[#allocation119_spill] sm:$0xff] %v13453_v24  ;;  %15437 = vst [vmem:[#allocation120_spill] sm:$0xff] %v13455_v20  ;;  %v13457_v29 = vpop.f32.mrb[123].mxu1  ;;  %9459 = vmatmul.mubr.bf16.gmra.mrb[212].mxu0 %v15438_v48 }
 0x454   : > { %9462 = vmatprep.mubr.bf16.mxu0 %v15439_v16  ;;  %6457 = vmatpush1.bf16.msra.mxu0 %v9883_v51  ;;  %v9886_v51 = vld [vmem:[%s14625_s4 + $0x1f0] sm:$0xff]  }
 0x455   : > { %5870 = vmatmul.mubr.bf16.gmra.mrb[228].mxu1 %v12850_v19  ;;  %6458 = vmatprep.subr.bf16.mxu0 %v15413_v7 }
 0x456   : > { %v5069_v53 = vpop.f32.mrb[108].mxu0  ;;  %5877 = vmatprep.mubr.bf16.mxu1 %v15317_v2 }
 0x457   : > { %v5071_v59 = vpop.f32.mrb[109].mxu0  ;;  %v13468_v26 = vadd.f32 %v13314_v42, %v5069_v53  ;;  %v15443_v53 = vld [vmem:[#allocation33_spill] sm:$0xff] }
 0x458   : > { %v13470_v24 = vpop.f32.mrb[124].mxu1  ;;  %v5072_v48 = vpop.f32.mrb[110].mxu0  ;;  %6459 = vmatpush1.bf16.msra.mxu0 %v9885_v61  ;;  %v9887_v61 = vld [vmem:[%s14625_s4 + $0x1f8] sm:$0xff]  }
 0x459   : > { %15440 = vst [vmem:[#allocation121_spill] sm:$0xff] %v13468_v26  ;;  %v13475_v16 = vpop.f32.mrb[125].mxu1  ;;  %v5074_v19 = vpop.f32.mrb[111].mxu0  ;;  %6460 = vmatprep.subr.bf16.mxu0 %v15413_v7  ;;  %v13479_v20 = vadd.f32 %v13326_v8, %v5072_v48  ;;  %v15444_v26 = vld [vmem:[#allocation65_spill] sm:$0xff] }
 0x45a   : > { %v13481_v59 = vpop.f32.mrb[126].mxu1 }
 0x45b   : > { %15441 = vst [vmem:[#allocation122_spill] sm:$0xff] %v13479_v20  ;;  %15442 = vst [vmem:[#allocation123_spill] sm:$0xff] %v13481_v59  ;;  %v13483_v42 = vpop.f32.mrb[127].mxu1  ;;  %9463 = vmatmul.mubr.bf16.gmra.mrb[216].mxu0 %v15443_v53 }
 0x45c   : > { %9466 = vmatprep.mubr.bf16.mxu0 %v15444_v26  ;;  %6461 = vmatpush1.bf16.msra.mxu0 %v9886_v51 }
 0x45d   : > { %5878 = vmatmul.mubr.bf16.gmra.mrb[232].mxu1 %v13153_v21  ;;  %6462 = vmatprep.subr.bf16.mxu0 %v15413_v7 }
 0x45e   : > { %5885 = vmatprep.mubr.bf16.mxu1 %v12883_v15  ;;  %v5077_v19 = vpop.f32.mrb[112].mxu0  ;;  %v15448_v15 = vld [vmem:[#allocation67_spill] sm:$0xff] }
 0x45f   : > { %v5079_v8 = vpop.f32.mrb[113].mxu0  ;;  %v13494_v48 = vadd.f32 %v13309_v25, %v5077_v19 }
 0x460   : > { %v13496_v20 = vpop.f32.mrb[128].mxu1  ;;  %v5080_v53 = vpop.f32.mrb[114].mxu0  ;;  %6463 = vmatpush1.bf16.msra.mxu0 %v9887_v61  ;;  %v15449_v8 = vld [vmem:[#allocation90_spill] sm:$0xff] }
 0x461   : > { %15445 = vst [vmem:[#allocation124_spill] sm:$0xff] %v13494_v48  ;;  %v13498_v51 = vpop.f32.mrb[129].mxu1  ;;  %v5082_v26 = vpop.f32.mrb[115].mxu0  ;;  %v13501_v59 = vadd.f32 %v13324_v9, %v5080_v53 }
 0x462   : > { %v13503_v21 = vpop.f32.mrb[130].mxu1 }
 0x463   : > { %15446 = vst [vmem:[#allocation125_spill] sm:$0xff] %v13501_v59  ;;  %15447 = vst [vmem:[#allocation126_spill] sm:$0xff] %v13503_v21  ;;  %v13505_v7 = vpop.f32.mrb[131].mxu1  ;;  %9467 = vmatmul.mubr.bf16.gmra.mrb[220].mxu0 %v15448_v15  ;;  %v15455_v21 = vld [vmem:[#allocation114_spill] sm:$0xff] }
 0x464   : > { %9470 = vmatprep.mubr.bf16.mxu0 %v15449_v8 }
 0x465   : > { %5886 = vmatmul.mubr.bf16.gmra.mrb[236].mxu1 %v12897_v13  ;;  %v15454_v13 = vld [vmem:[#allocation92_spill] sm:$0xff] }
 0x466   : > { %v5085_v25 = vpop.f32.mrb[116].mxu0  ;;  %5893 = vmatprep.mubr.bf16.mxu1 %v15317_v2 }
 0x467   : > { %v5087_v61 = vpop.f32.mrb[117].mxu0  ;;  %v13512_v19 = vadd.f32 %v13345_v27, %v5085_v25 }
 0x468   : > { %v13514_v26 = vpop.f32.mrb[132].mxu1  ;;  %v5088_v9 = vpop.f32.mrb[118].mxu0 }
 0x469   : > { %15450 = vst [vmem:[#allocation127_spill] sm:$0xff] %v13512_v19  ;;  %15451 = vst [vmem:[#allocation128_spill] sm:$0xff] %v13514_v26  ;;  %v13516_v53 = vpop.f32.mrb[133].mxu1  ;;  %v5090_v59 = vpop.f32.mrb[119].mxu0  ;;  %v13519_v48 = vadd.f32 %v13353_v5, %v5088_v9 }
 0x46a   : > { %v13521_v15 = vpop.f32.mrb[134].mxu1 }
 0x46b   : > { %15452 = vst [vmem:[#allocation129_spill] sm:$0xff] %v13519_v48  ;;  %15453 = vst [vmem:[#allocation130_spill] sm:$0xff] %v13521_v15  ;;  %v13523_v8 = vpop.f32.mrb[135].mxu1  ;;  %9471 = vmatmul.mubr.bf16.gmra.mrb[224].mxu0 %v15454_v13 }
 0x46c   : > { %9474 = vmatprep.mubr.bf16.mxu0 %v15455_v21 }
 0x46d   : > { %5894 = vmatmul.mubr.bf16.gmra.mrb[240].mxu1 %v13172_v10  ;;  %v15462_v10 = vld [vmem:[#allocation75_spill] sm:$0xff] }
 0x46e   : > { %5901 = vmatprep.mubr.bf16.mxu1 %v12929_v60  ;;  %v5093_v27 = vpop.f32.mrb[120].mxu0  ;;  %v15463_v60 = vld [vmem:[#allocation117_spill] sm:$0xff] }
 0x46f   : > { %v5095_v25 = vpop.f32.mrb[121].mxu0  ;;  %v13530_v61 = vadd.f32 %v13340_v49, %v5093_v27 }
 0x470   : > { %v13532_v59 = vpop.f32.mrb[136].mxu1  ;;  %v5096_v5 = vpop.f32.mrb[122].mxu0 }
 0x471   : > { %15456 = vst [vmem:[#allocation92_spill] sm:$0xff] %v13530_v61  ;;  %15457 = vst [vmem:[#allocation114_spill] sm:$0xff] %v13532_v59  ;;  %v13534_v9 = vpop.f32.mrb[137].mxu1  ;;  %v5098_v48 = vpop.f32.mrb[123].mxu0  ;;  %v13537_v19 = vadd.f32 %v13351_v0, %v5096_v5 }
 0x472   : > { %15458 = vst [vmem:[#allocation131_spill] sm:$0xff] %v13534_v9  ;;  %v13539_v15 = vpop.f32.mrb[138].mxu1 }
 0x473   : > { %15459 = vst [vmem:[#allocation132_spill] sm:$0xff] %v13537_v19  ;;  %15460 = vst [vmem:[#allocation133_spill] sm:$0xff] %v13539_v15  ;;  %v13541_v26 = vpop.f32.mrb[139].mxu1  ;;  %9475 = vmatmul.mubr.bf16.gmra.mrb[228].mxu0 %v15462_v10 }
 0x474   : > { %15461 = vst [vmem:[#allocation134_spill] sm:$0xff] %v13541_v26  ;;  %9478 = vmatprep.mubr.bf16.mxu0 %v15463_v60  ;;  %v15464_v26 = vld [vmem:[#allocation118_spill] sm:$0xff] }
 0x475   : > { %5902 = vmatmul.mubr.bf16.gmra.mrb[244].mxu1 %v12940_v41 }
 0x476   : > { %v5101_v49 = vpop.f32.mrb[124].mxu0  ;;  %5909 = vmatprep.mubr.bf16.mxu1 %v15317_v2 }
 0x477   : > { %v13548_v27 = vadd.f32 %v13371_v44, %v5101_v49  ;;  %v5103_v48 = vpop.f32.mrb[125].mxu0  ;;  %v15465_v44 = vld [vmem:[#allocation80_spill] sm:$0xff] }
 0x478   : > { %v5695_v25 = vpop.f32.mrb[140].mxu1  ;;  %v5104_v0 = vpop.f32.mrb[126].mxu0 }
 0x479   : > { %v13551_v5 = vadd.f32 %v5695_v25, %v13209_v23  ;;  %v13554_v19 = vadd.f32 %v13379_v22, %v5104_v0  ;;  %v5697_v15 = vpop.f32.mrb[141].mxu1  ;;  %v5106_v61 = vpop.f32.mrb[127].mxu0 }
 0x47a   : > { %v5698_v59 = vpop.f32.mrb[142].mxu1 }
 0x47b   : > { %v13557_v41 = vadd.f32 %v5698_v59, %v13213_v14  ;;  %9479 = vmatmul.mubr.bf16.gmra.mrb[232].mxu0 %v15464_v26  ;;  %v5700_v9 = vpop.f32.mrb[143].mxu1 }
 0x47c   : > { %9482 = vmatprep.mubr.bf16.mxu0 %v15465_v44 }
 0x47d   : > { %5910 = vmatmul.mubr.bf16.gmra.mrb[248].mxu1 %v13188_v30 }
 0x47e   : > { %5917 = vmatprep.mubr.bf16.mxu1 %v12981_v36  ;;  %v5109_v23 = vpop.f32.mrb[128].mxu0  ;;  %v15467_v36 = vld [vmem:[#allocation112_spill] sm:$0xff] }
 0x47f   : > { %v13564_v49 = vadd.f32 %v13366_v56, %v5109_v23  ;;  %v5111_v22 = vpop.f32.mrb[129].mxu0  ;;  %v15468_v56 = vld [vmem:[#allocation115_spill] sm:$0xff] }
 0x480   : > { %v5703_v15 = vpop.f32.mrb[144].mxu1  ;;  %v5112_v61 = vpop.f32.mrb[130].mxu0 }
 0x481   : > { %v13567_v48 = vadd.f32 %v5703_v15, %v13217_v50  ;;  %v13570_v14 = vadd.f32 %v13377_v3, %v5112_v61  ;;  %v5705_v59 = vpop.f32.mrb[145].mxu1  ;;  %v5114_v9 = vpop.f32.mrb[131].mxu0 }
 0x482   : > { %v5706_v25 = vpop.f32.mrb[146].mxu1 }
 0x483   : > { %15466 = vst [vmem:[#allocation75_spill] sm:$0xff] %v13570_v14  ;;  %v13573_v0 = vadd.f32 %v5706_v25, %v13219_v57  ;;  %9483 = vmatmul.mubr.bf16.gmra.mrb[236].mxu0 %v15467_v36  ;;  %v5708_v30 = vpop.f32.mrb[147].mxu1  ;;  %v15469_v14 = vld [vmem:[#allocation116_spill] sm:$0xff] }
 0x484   : > { %9486 = vmatprep.mubr.bf16.mxu0 %v15468_v56 }
 0x485   : > { %5918 = vmatmul.mubr.bf16.gmra.mrb[252].mxu1 %v12996_v12 }
 0x486   : > { %v5117_v23 = vpop.f32.mrb[132].mxu0  ;;  %5925 = vmatprep.mubr.bf16.mxu1 %v15317_v2 }
 0x487   : > { %v13580_v50 = vadd.f32 %v13397_v17, %v5117_v23  ;;  %v5119_v3 = vpop.f32.mrb[133].mxu0 }
 0x488   : > { %v5711_v22 = vpop.f32.mrb[148].mxu1  ;;  %v5120_v15 = vpop.f32.mrb[134].mxu0 }
 0x489   : > { %v13583_v61 = vadd.f32 %v5711_v22, %v13230_v4  ;;  %v13586_v57 = vadd.f32 %v13405_v58, %v5120_v15  ;;  %v5713_v30 = vpop.f32.mrb[149].mxu1  ;;  %v5122_v59 = vpop.f32.mrb[135].mxu0 }
 0x48a   : > { %v5714_v9 = vpop.f32.mrb[150].mxu1 }
 0x48b   : > { %v13589_v25 = vadd.f32 %v5714_v9, %v13238_v46  ;;  %v5716_v12 = vpop.f32.mrb[151].mxu1  ;;  %9487 = vmatmul.mubr.bf16.gmra.mrb[240].mxu0 %v15469_v14 }
 0x48c   : > { %9490 = vmatprep.mubr.bf16.mxu0 %v13004_v47 }
 0x48d   : > { %5926 = vmatmul.mubr.bf16.gmra.mrb[0].mxu1 %v13207_v38 }
 0x48e   : > { %5933 = vmatprep.mubr.bf16.mxu1 %v13024_v32  ;;  %v5125_v4 = vpop.f32.mrb[136].mxu0  ;;  %v15470_v32 = vld [vmem:[#allocation99_spill] sm:$0xff] }
 0x48f   : > { %v13596_v17 = vadd.f32 %v13392_v11, %v5125_v4  ;;  %v5127_v58 = vpop.f32.mrb[137].mxu0 }
 0x490   : > { %v5719_v23 = vpop.f32.mrb[152].mxu1  ;;  %v5128_v3 = vpop.f32.mrb[138].mxu0 }
 0x491   : > { %v13599_v22 = vadd.f32 %v5719_v23, %v13244_v43  ;;  %v13602_v46 = vadd.f32 %v13403_v1, %v5128_v3  ;;  %v5721_v12 = vpop.f32.mrb[153].mxu1  ;;  %v5130_v15 = vpop.f32.mrb[139].mxu0 }
 0x492   : > { %v5722_v30 = vpop.f32.mrb[154].mxu1 }
 0x493   : > { %v13605_v59 = vadd.f32 %v5722_v30, %v13248_v54  ;;  %v5724_v9 = vpop.f32.mrb[155].mxu1  ;;  %9491 = vmatmul.mubr.bf16.gmra.mrb[244].mxu0 %v15470_v32 }
 0x494   : > { %9494 = vmatprep.mubr.bf16.mxu0 %v13043_v28 }
 0x495   : > { %5934 = vmatmul.mubr.bf16.gmra.mrb[4].mxu1 %v13035_v63  ;;  %v9891_v63 = vld [vmem:[%s14627_s6 + $0x18] sm:$0xff]  }
 0x496   : > { %v5133_v11 = vpop.f32.mrb[140].mxu0  ;;  %5941 = vmatprep.mubr.bf16.mxu1 %v15317_v2 }
 0x497   : > { %v13612_v43 = vadd.f32 %v13423_v18, %v5133_v11  ;;  %v5135_v1 = vpop.f32.mrb[141].mxu0 }
 0x498   : > { %v5727_v4 = vpop.f32.mrb[156].mxu1  ;;  %v5136_v58 = vpop.f32.mrb[142].mxu0 }
 0x499   : > { %v13615_v23 = vadd.f32 %v5727_v4, %v13261_v45  ;;  %v13618_v54 = vadd.f32 %v13431_v35, %v5136_v58  ;;  %v5729_v3 = vpop.f32.mrb[157].mxu1  ;;  %v5138_v12 = vpop.f32.mrb[143].mxu0 }
 0x49a   : > { %v5730_v15 = vpop.f32.mrb[158].mxu1  ;;  %v15472_v12 = vld [vmem:[#allocation46_spill] sm:$0xff] }
 0x49b   : > { %v13621_v30 = vadd.f32 %v5730_v15, %v13274_v39  ;;  %v5732_v9 = vpop.f32.mrb[159].mxu1  ;;  %9495 = vmatmul.mubr.bf16.gmra.mrb[248].mxu0 %v13047_v37 }
 0x49c   : > { %6464 = vmatprep.mubr.bf16.mxu0 %v15395_v34  ;;  %v15473_v9 = vld [vmem:[#allocation19_spill] sm:$0xff] }
 0x49d   : > { %5942 = vmatmul.mubr.bf16.gmra.mrb[8].mxu1 %v13233_v55  ;;  %v15481_v55 = vld [vmem:[#allocation97_spill] sm:$0xff] }
 0x49e   : > { %9514 = vmatprep.mubr.bf16.mxu1 %v15418_v31  ;;  %v5141_v45 = vpop.f32.mrb[144].mxu0 }
 0x49f   : > { %v13628_v18 = vadd.f32 %v13418_v62, %v5141_v45  ;;  %v5143_v35 = vpop.f32.mrb[145].mxu0  ;;  %v9889_v62 = vld [vmem:[%s14627_s6 + $0x8] sm:$0xff]  }
 0x4a0   : > { %v5735_v11 = vpop.f32.mrb[160].mxu1  ;;  %v5144_v1 = vpop.f32.mrb[146].mxu0  ;;  %v15475_v45 = vld [vmem:[#allocation11_spill] sm:$0xff] }
 0x4a1   : > { %v13631_v4 = vadd.f32 %v5735_v11, %v13284_v40  ;;  %v13634_v39 = vadd.f32 %v13429_v6, %v5144_v1  ;;  %v5737_v58 = vpop.f32.mrb[161].mxu1  ;;  %v5146_v3 = vpop.f32.mrb[147].mxu0  ;;  %v15474_v40 = vld [vmem:[#allocation9_spill] sm:$0xff]  ;;  %v15476_v35 = vld [vmem:[#allocation47_spill] sm:$0xff] }
 0x4a2   : > { %v5738_v34 = vpop.f32.mrb[162].mxu1  ;;  %v9890_v58 = vld [vmem:[%s14627_s6 + $0x10] sm:$0xff]  }
 0x4a3   : > { %15471 = vst [vmem:[#allocation117_spill] sm:$0xff] %v13634_v39  ;;  %v13637_v15 = vadd.f32 %v5738_v34, %v15472_v12  ;;  %v5740_v31 = vpop.f32.mrb[163].mxu1  ;;  %6465 = vmatmul.mubr.bf16.vlgmr.msra.gmra.mrb[252].mxu0 %v15473_v9  ;;  %v15478_v12 = vld [vmem:[#allocation3_spill] sm:$0xff] }
 0x4a4   : > { %6472 = vmatprep.mubr.bf16.mxu0 %v15317_v2 }
 0x4a5   : > { %9515 = vmatmul.mubr.bf16.vlgmr.msra.gmra.mrb[12].mxu1 %v15474_v40 }
 0x4a6   : > { %9518 = vmatprep.mubr.bf16.mxu1 %v15475_v45  ;;  %v5149_v6 = vpop.f32.mrb[148].mxu0  ;;  %9579 = vmatpush3.bf16.msra.mxu1 %v15476_v35 }
 0x4a7   : > { %v13648_v11 = vadd.f32 %v13449_v52, %v5149_v6  ;;  %v5151_v1 = vpop.f32.mrb[149].mxu0  ;;  %9580 = vmatprep.subr.bf16.mxu1 %v9889_v62  ;;  %v15480_v52 = vld [vmem:[#allocation88_spill] sm:$0xff] }
 0x4a8   : > { %v5743_v3 = vpop.f32.mrb[164].mxu1  ;;  %v5152_v34 = vpop.f32.mrb[150].mxu0 }
 0x4a9   : > { %15477 = vst [vmem:[#allocation118_spill] sm:$0xff] %v13648_v11  ;;  %v13654_v31 = vadd.f32 %v5743_v3, %v15478_v12  ;;  %v13657_v9 = vadd.f32 %v13457_v29, %v5152_v34  ;;  %v5745_v40 = vpop.f32.mrb[165].mxu1  ;;  %v5154_v45 = vpop.f32.mrb[151].mxu0  ;;  %v15482_v3 = vld [vmem:[#allocation52_spill] sm:$0xff]  ;;  %v15483_v12 = vld [vmem:[#allocation53_spill] sm:$0xff]  ;;  %v15484_v29 = vld [vmem:[#allocation15_spill] sm:$0xff] }
 0x4aa   : > { %v5746_v35 = vpop.f32.mrb[166].mxu1  ;;  %9581 = vmatpush3.bf16.msra.mxu1 %v9889_v62 }
 0x4ab   : > { %15479 = vst [vmem:[#allocation80_spill] sm:$0xff] %v13657_v9  ;;  %v13660_v6 = vadd.f32 %v5746_v35, %v15480_v52  ;;  %v5748_v1 = vpop.f32.mrb[167].mxu1  ;;  %6473 = vmatmul.mubr.bf16.gmra.mrb[0].mxu0 %v15481_v55  ;;  %9582 = vmatprep.subr.bf16.mxu1 %v9890_v58  ;;  %v9892_v55 = vld [vmem:[%s14627_s6 + $0x20] sm:$0xff]   ;;  %v15486_v52 = vld [vmem:[#allocation89_spill] sm:$0xff]  ;;  %v9893_v9 = vld [vmem:[%s14627_s6 + $0x28] sm:$0xff]  }
 0x4ac   : > { %6480 = vmatprep.mubr.bf16.mxu0 %v15482_v3  ;;  %v15487_v3 = vld [vmem:[#allocation120_spill] sm:$0xff] }
 0x4ad   : > { %9519 = vmatmul.mubr.bf16.gmra.mrb[16].mxu1 %v15483_v12 }
 0x4ae   : > { %9522 = vmatprep.mubr.bf16.mxu1 %v15484_v29  ;;  %v5157_v34 = vpop.f32.mrb[152].mxu0  ;;  %9583 = vmatpush3.bf16.msra.mxu1 %v9890_v58 }
 0x4af   : > { %v13670_v62 = vadd.f32 %v13444_v33, %v5157_v34  ;;  %v5159_v40 = vpop.f32.mrb[153].mxu0  ;;  %9584 = vmatprep.subr.bf16.mxu1 %v9891_v63  ;;  %v15489_v33 = vld [vmem:[#allocation4_spill] sm:$0xff] }
 0x4b0   : > { %v5751_v45 = vpop.f32.mrb[168].mxu1  ;;  %v5160_v35 = vpop.f32.mrb[154].mxu0 }
 0x4b1   : > { %15485 = vst [vmem:[#allocation112_spill] sm:$0xff] %v13670_v62  ;;  %v13676_v1 = vadd.f32 %v5751_v45, %v15486_v52  ;;  %v13679_v12 = vadd.f32 %v15487_v3, %v5160_v35  ;;  %v5753_v29 = vpop.f32.mrb[169].mxu1  ;;  %v5162_v38 = vpop.f32.mrb[155].mxu0  ;;  %v15490_v62 = vld [vmem:[#allocation10_spill] sm:$0xff]  ;;  %v15491_v45 = vld [vmem:[#allocation55_spill] sm:$0xff]  ;;  %v15492_v35 = vld [vmem:[#allocation57_spill] sm:$0xff] }
 0x4b2   : > { %v5754_v58 = vpop.f32.mrb[170].mxu1  ;;  %9585 = vmatpush3.bf16.msra.mxu1 %v9891_v63 }
 0x4b3   : > { %15488 = vst [vmem:[#allocation115_spill] sm:$0xff] %v13679_v12  ;;  %v13682_v34 = vadd.f32 %v5754_v58, %v15489_v33  ;;  %v5756_v40 = vpop.f32.mrb[171].mxu1  ;;  %6481 = vmatmul.mubr.bf16.gmra.mrb[4].mxu0 %v15490_v62  ;;  %9586 = vmatprep.subr.bf16.mxu1 %v9892_v55  ;;  %v9894_v62 = vld [vmem:[%s14627_s6 + $0x30] sm:$0xff]   ;;  %v15494_v58 = vld [vmem:[#allocation5_spill] sm:$0xff] }
 0x4b4   : > { %6488 = vmatprep.mubr.bf16.mxu0 %v15317_v2  ;;  %v9895_v12 = vld [vmem:[%s14627_s6 + $0x38] sm:$0xff]  }
 0x4b5   : > { %9523 = vmatmul.mubr.bf16.gmra.mrb[20].mxu1 %v15491_v45 }
 0x4b6   : > { %9526 = vmatprep.mubr.bf16.mxu1 %v15492_v35  ;;  %v5165_v38 = vpop.f32.mrb[156].mxu0  ;;  %9587 = vmatpush3.bf16.msra.mxu1 %v9892_v55 }
 0x4b7   : > { %v13692_v63 = vadd.f32 %v13475_v16, %v5165_v38  ;;  %v5167_v52 = vpop.f32.mrb[157].mxu0  ;;  %9588 = vmatprep.subr.bf16.mxu1 %v9893_v9  ;;  %v15496_v16 = vld [vmem:[#allocation49_spill] sm:$0xff] }
 0x4b8   : > { %v5759_v3 = vpop.f32.mrb[172].mxu1  ;;  %v5168_v29 = vpop.f32.mrb[158].mxu0 }
 0x4b9   : > { %15493 = vst [vmem:[#allocation116_spill] sm:$0xff] %v13692_v63  ;;  %v13698_v33 = vadd.f32 %v5759_v3, %v15494_v58  ;;  %v13701_v40 = vadd.f32 %v13483_v42, %v5168_v29  ;;  %v5761_v45 = vpop.f32.mrb[173].mxu1  ;;  %v5170_v35 = vpop.f32.mrb[159].mxu0  ;;  %v15497_v63 = vld [vmem:[#allocation22_spill] sm:$0xff]  ;;  %v15498_v3 = vld [vmem:[#allocation96_spill] sm:$0xff]  ;;  %v15499_v58 = vld [vmem:[#allocation23_spill] sm:$0xff] }
 0x4ba   : > { %v5762_v55 = vpop.f32.mrb[174].mxu1  ;;  %9589 = vmatpush3.bf16.msra.mxu1 %v9893_v9  ;;  %v15500_v42 = vld [vmem:[#allocation59_spill] sm:$0xff] }
 0x4bb   : > { %15495 = vst [vmem:[#allocation99_spill] sm:$0xff] %v13701_v40  ;;  %v13704_v38 = vadd.f32 %v5762_v55, %v15496_v16  ;;  %v5764_v52 = vpop.f32.mrb[175].mxu1  ;;  %6489 = vmatmul.mubr.bf16.gmra.mrb[8].mxu0 %v15497_v63  ;;  %9590 = vmatprep.subr.bf16.mxu1 %v9894_v62  ;;  %v15502_v55 = vld [vmem:[#allocation6_spill] sm:$0xff] }
 0x4bc   : > { %6496 = vmatprep.mubr.bf16.mxu0 %v15498_v3  ;;  %v15503_v52 = vld [vmem:[#allocation123_spill] sm:$0xff] }
 0x4bd   : > { %9527 = vmatmul.mubr.bf16.gmra.mrb[24].mxu1 %v15499_v58 }
 0x4be   : > { %9530 = vmatprep.mubr.bf16.mxu1 %v15500_v42  ;;  %v5173_v29 = vpop.f32.mrb[160].mxu0  ;;  %9591 = vmatpush3.bf16.msra.mxu1 %v9894_v62  ;;  %v15505_v42 = vld [vmem:[#allocation17_spill] sm:$0xff] }
 0x4bf   : > { %v13714_v9 = vadd.f32 %v13470_v24, %v5173_v29  ;;  %v5175_v45 = vpop.f32.mrb[161].mxu0  ;;  %9592 = vmatprep.subr.bf16.mxu1 %v9895_v12  ;;  %v15506_v24 = vld [vmem:[#allocation14_spill] sm:$0xff]  ;;  %v15507_v29 = vld [vmem:[#allocation27_spill] sm:$0xff] }
 0x4c0   : > { %v5767_v35 = vpop.f32.mrb[176].mxu1  ;;  %v5176_v63 = vpop.f32.mrb[162].mxu0  ;;  %v15508_v45 = vld [vmem:[#allocation104_spill] sm:$0xff] }
 0x4c1   : > { %15501 = vst [vmem:[#allocation46_spill] sm:$0xff] %v13714_v9  ;;  %v13717_v16 = vadd.f32 %v5767_v35, %v15502_v55  ;;  %v13720_v40 = vadd.f32 %v15503_v52, %v5176_v63  ;;  %v5769_v3 = vpop.f32.mrb[177].mxu1  ;;  %v5178_v11 = vpop.f32.mrb[163].mxu0  ;;  %v15514_v9 = vld [vmem:[#allocation63_spill] sm:$0xff] }
 0x4c2   : > { %v5770_v58 = vpop.f32.mrb[178].mxu1  ;;  %9593 = vmatpush3.bf16.msra.mxu1 %v9895_v12  ;;  %v15510_v12 = vld [vmem:[#allocation7_spill] sm:$0xff] }
 0x4c3   : > { %15504 = vst [vmem:[#allocation19_spill] sm:$0xff] %v13720_v40  ;;  %v13723_v39 = vadd.f32 %v5770_v58, %v15505_v42  ;;  %v5772_v62 = vpop.f32.mrb[179].mxu1  ;;  %6497 = vmatmul.mubr.bf16.gmra.mrb[12].mxu0 %v15506_v24  ;;  %v15512_v40 = vld [vmem:[#allocation51_spill] sm:$0xff] }
 0x4c4   : > { %6504 = vmatprep.mubr.bf16.mxu0 %v15317_v2 }
 0x4c5   : > { %9531 = vmatmul.mubr.bf16.gmra.mrb[28].mxu1 %v15507_v29 }
 0x4c6   : > { %9534 = vmatprep.mubr.bf16.mxu1 %v15508_v45  ;;  %v5181_v35 = vpop.f32.mrb[164].mxu0 }
 0x4c7   : > { %v13730_v63 = vadd.f32 %v13498_v51, %v5181_v35  ;;  %v5183_v55 = vpop.f32.mrb[165].mxu0  ;;  %v15515_v51 = vld [vmem:[#allocation16_spill] sm:$0xff]  ;;  %v15516_v35 = vld [vmem:[#allocation33_spill] sm:$0xff] }
 0x4c8   : > { %v5775_v11 = vpop.f32.mrb[180].mxu1  ;;  %v5184_v52 = vpop.f32.mrb[166].mxu0  ;;  %v15517_v55 = vld [vmem:[#allocation65_spill] sm:$0xff] }
 0x4c9   : > { %15509 = vst [vmem:[#allocation9_spill] sm:$0xff] %v13730_v63  ;;  %v13733_v3 = vadd.f32 %v5775_v11, %v15510_v12  ;;  %v13736_v58 = vadd.f32 %v13505_v7, %v5184_v52  ;;  %v5777_v42 = vpop.f32.mrb[181].mxu1  ;;  %v5186_v62 = vpop.f32.mrb[167].mxu0  ;;  %v15522_v63 = vld [vmem:[#allocation119_spill] sm:$0xff] }
 0x4ca   : > { %v5778_v24 = vpop.f32.mrb[182].mxu1  ;;  %v15519_v62 = vld [vmem:[#allocation8_spill] sm:$0xff] }
 0x4cb   : > { %15511 = vst [vmem:[#allocation11_spill] sm:$0xff] %v13736_v58  ;;  %v13739_v29 = vadd.f32 %v5778_v24, %v15512_v40  ;;  %v5780_v45 = vpop.f32.mrb[183].mxu1  ;;  %6505 = vmatmul.mubr.bf16.gmra.mrb[16].mxu0 %v15514_v9  ;;  %v15520_v40 = vld [vmem:[#allocation126_spill] sm:$0xff] }
 0x4cc   : > { %6512 = vmatprep.mubr.bf16.mxu0 %v15515_v51 }
 0x4cd   : > { %15513 = vst [vmem:[#allocation47_spill] sm:$0xff] %v13739_v29  ;;  %9535 = vmatmul.mubr.bf16.gmra.mrb[32].mxu1 %v15516_v35  ;;  %v15523_v29 = vld [vmem:[#allocation18_spill] sm:$0xff] }
 0x4ce   : > { %9538 = vmatprep.mubr.bf16.mxu1 %v15517_v55  ;;  %v5189_v11 = vpop.f32.mrb[168].mxu0 }
 0x4cf   : > { %v13746_v12 = vadd.f32 %v13496_v20, %v5189_v11  ;;  %v5191_v7 = vpop.f32.mrb[169].mxu0  ;;  %v15524_v20 = vld [vmem:[#allocation67_spill] sm:$0xff]  ;;  %v15525_v11 = vld [vmem:[#allocation90_spill] sm:$0xff] }
 0x4d0   : > { %v5783_v52 = vpop.f32.mrb[184].mxu1  ;;  %v5192_v42 = vpop.f32.mrb[170].mxu0 }
 0x4d1   : > { %15518 = vst [vmem:[#allocation3_spill] sm:$0xff] %v13746_v12  ;;  %v13749_v58 = vadd.f32 %v5783_v52, %v15519_v62  ;;  %v13752_v24 = vadd.f32 %v15520_v40, %v5192_v42  ;;  %v5785_v9 = vpop.f32.mrb[185].mxu1  ;;  %v5194_v45 = vpop.f32.mrb[171].mxu0  ;;  %v15530_v12 = vld [vmem:[#allocation98_spill] sm:$0xff] }
 0x4d2   : > { %v5786_v51 = vpop.f32.mrb[186].mxu1  ;;  %v15527_v9 = vld [vmem:[#allocation121_spill] sm:$0xff] }
 0x4d3   : > { %15521 = vst [vmem:[#allocation88_spill] sm:$0xff] %v13752_v24  ;;  %v13755_v35 = vadd.f32 %v5786_v51, %v15522_v63  ;;  %v5788_v55 = vpop.f32.mrb[187].mxu1  ;;  %6513 = vmatmul.mubr.bf16.gmra.mrb[20].mxu0 %v15523_v29  ;;  %v15529_v24 = vld [vmem:[#allocation122_spill] sm:$0xff] }
 0x4d4   : > { %6520 = vmatprep.mubr.bf16.mxu0 %v15317_v2 }
 0x4d5   : > { %9539 = vmatmul.mubr.bf16.gmra.mrb[36].mxu1 %v15524_v20 }
 0x4d6   : > { %9542 = vmatprep.mubr.bf16.mxu1 %v15525_v11  ;;  %v5197_v7 = vpop.f32.mrb[172].mxu0 }
 0x4d7   : > { %v13762_v52 = vadd.f32 %v13516_v53, %v5197_v7  ;;  %v5199_v42 = vpop.f32.mrb[173].mxu0  ;;  %v15531_v53 = vld [vmem:[#allocation24_spill] sm:$0xff] }
 0x4d8   : > { %v5791_v62 = vpop.f32.mrb[188].mxu1  ;;  %v5200_v40 = vpop.f32.mrb[174].mxu0  ;;  %v15532_v42 = vld [vmem:[#allocation128_spill] sm:$0xff] }
 0x4d9   : > { %15526 = vst [vmem:[#allocation97_spill] sm:$0xff] %v13762_v52  ;;  %v13765_v45 = vadd.f32 %v5791_v62, %v15527_v9  ;;  %v13768_v63 = vadd.f32 %v13523_v8, %v5200_v40  ;;  %v5793_v29 = vpop.f32.mrb[189].mxu1  ;;  %v5202_v51 = vpop.f32.mrb[175].mxu0  ;;  %v15538_v52 = vld [vmem:[#allocation26_spill] sm:$0xff] }
 0x4da   : > { %v5794_v55 = vpop.f32.mrb[190].mxu1  ;;  %v15534_v29 = vld [vmem:[#allocation124_spill] sm:$0xff] }
 0x4db   : > { %15528 = vst [vmem:[#allocation52_spill] sm:$0xff] %v13768_v63  ;;  %v13771_v20 = vadd.f32 %v5794_v55, %v15529_v24  ;;  %v5796_v11 = vpop.f32.mrb[191].mxu1  ;;  %6521 = vmatmul.mubr.bf16.gmra.mrb[24].mxu0 %v15530_v12  ;;  %v15535_v24 = vld [vmem:[#allocation130_spill] sm:$0xff]  ;;  %v15537_v63 = vld [vmem:[#allocation125_spill] sm:$0xff] }
 0x4dc   : > { %6528 = vmatprep.mubr.bf16.mxu0 %v15531_v53 }
 0x4dd   : > { %9543 = vmatmul.mubr.bf16.gmra.mrb[40].mxu1 %v15454_v13 }
 0x4de   : > { %9546 = vmatprep.mubr.bf16.mxu1 %v15455_v21  ;;  %v5205_v7 = vpop.f32.mrb[176].mxu0 }
 0x4df   : > { %v13778_v62 = vadd.f32 %v15532_v42, %v5205_v7  ;;  %v5207_v8 = vpop.f32.mrb[177].mxu0  ;;  %v15539_v42 = vld [vmem:[#allocation131_spill] sm:$0xff] }
 0x4e0   : > { %v5799_v40 = vpop.f32.mrb[192].mxu1  ;;  %v5208_v9 = vpop.f32.mrb[178].mxu0 }
 0x4e1   : > { %15533 = vst [vmem:[#allocation53_spill] sm:$0xff] %v13778_v62  ;;  %v13781_v51 = vadd.f32 %v5799_v40, %v15534_v29  ;;  %v13784_v55 = vadd.f32 %v15535_v24, %v5208_v9  ;;  %v5801_v12 = vpop.f32.mrb[193].mxu1  ;;  %v5210_v11 = vpop.f32.mrb[179].mxu0  ;;  %v15541_v24 = vld [vmem:[#allocation127_spill] sm:$0xff]  ;;  %v15545_v62 = vld [vmem:[#allocation109_spill] sm:$0xff] }
 0x4e2   : > { %v5802_v53 = vpop.f32.mrb[194].mxu1 }
 0x4e3   : > { %15536 = vst [vmem:[#allocation15_spill] sm:$0xff] %v13784_v55  ;;  %v13787_v13 = vadd.f32 %v5802_v53, %v15537_v63  ;;  %v5804_v21 = vpop.f32.mrb[195].mxu1  ;;  %6529 = vmatmul.mubr.bf16.gmra.mrb[28].mxu0 %v15538_v52  ;;  %v15542_v63 = vld [vmem:[#allocation134_spill] sm:$0xff]  ;;  %v15544_v55 = vld [vmem:[#allocation129_spill] sm:$0xff] }
 0x4e4   : > { %6536 = vmatprep.mubr.bf16.mxu0 %v15317_v2 }
 0x4e5   : > { %9547 = vmatmul.mubr.bf16.gmra.mrb[44].mxu1 %v15462_v10 }
 0x4e6   : > { %9550 = vmatprep.mubr.bf16.mxu1 %v15463_v60  ;;  %v5213_v7 = vpop.f32.mrb[180].mxu0 }
 0x4e7   : > { %v13794_v8 = vadd.f32 %v15539_v42, %v5213_v7  ;;  %v5215_v40 = vpop.f32.mrb[181].mxu0  ;;  %v15546_v7 = vld [vmem:[#allocation61_spill] sm:$0xff] }
 0x4e8   : > { %v5807_v9 = vpop.f32.mrb[196].mxu1  ;;  %v5216_v29 = vpop.f32.mrb[182].mxu0  ;;  %v15547_v40 = vld [vmem:[#allocation114_spill] sm:$0xff] }
 0x4e9   : > { %15540 = vst [vmem:[#allocation89_spill] sm:$0xff] %v13794_v8  ;;  %v13797_v12 = vadd.f32 %v5807_v9, %v15541_v24  ;;  %v13800_v11 = vadd.f32 %v15542_v63, %v5216_v29  ;;  %v5809_v52 = vpop.f32.mrb[197].mxu1  ;;  %v5218_v53 = vpop.f32.mrb[183].mxu0  ;;  %v15551_v8 = vld [vmem:[#allocation103_spill] sm:$0xff] }
 0x4ea   : > { %v5810_v21 = vpop.f32.mrb[198].mxu1  ;;  %v15548_v52 = vld [vmem:[#allocation92_spill] sm:$0xff] }
 0x4eb   : > { %15543 = vst [vmem:[#allocation120_spill] sm:$0xff] %v13800_v11  ;;  %v13803_v10 = vadd.f32 %v5810_v21, %v15544_v55  ;;  %v5812_v60 = vpop.f32.mrb[199].mxu1  ;;  %6537 = vmatmul.mubr.bf16.gmra.mrb[32].mxu0 %v15545_v62  ;;  %v15549_v55 = vld [vmem:[#allocation133_spill] sm:$0xff]  ;;  %v15550_v11 = vld [vmem:[#allocation132_spill] sm:$0xff] }
 0x4ec   : > { %6544 = vmatprep.mubr.bf16.mxu0 %v15546_v7 }
 0x4ed   : > { %9551 = vmatmul.mubr.bf16.gmra.mrb[48].mxu1 %v15464_v26 }
 0x4ee   : > { %9554 = vmatprep.mubr.bf16.mxu1 %v15465_v44  ;;  %v5221_v42 = vpop.f32.mrb[184].mxu0 }
 0x4ef   : > { %v13810_v9 = vadd.f32 %v15547_v40, %v5221_v42  ;;  %v5223_v29 = vpop.f32.mrb[185].mxu0 }
 0x4f0   : > { %v5815_v24 = vpop.f32.mrb[200].mxu1  ;;  %v5224_v63 = vpop.f32.mrb[186].mxu0 }
 0x4f1   : > { %v13813_v53 = vadd.f32 %v5815_v24, %v15548_v52  ;;  %v13816_v21 = vadd.f32 %v15549_v55, %v5224_v63  ;;  %v5817_v62 = vpop.f32.mrb[201].mxu1  ;;  %v5226_v60 = vpop.f32.mrb[187].mxu0 }
 0x4f2   : > { %v5818_v7 = vpop.f32.mrb[202].mxu1 }
 0x4f3   : > { %v13819_v26 = vadd.f32 %v5818_v7, %v15550_v11  ;;  %v5820_v44 = vpop.f32.mrb[203].mxu1  ;;  %6545 = vmatmul.mubr.bf16.gmra.mrb[36].mxu0 %v15551_v8  ;;  %v15552_v7 = vld [vmem:[#allocation91_spill] sm:$0xff] }
 0x4f4   : > { %6552 = vmatprep.mubr.bf16.mxu0 %v15317_v2 }
 0x4f5   : > { %9555 = vmatmul.mubr.bf16.gmra.mrb[52].mxu1 %v15467_v36 }
 0x4f6   : > { %9558 = vmatprep.mubr.bf16.mxu1 %v15468_v56  ;;  %v9436_v42 = vpop.f32.mrb[188].mxu0 }
 0x4f7   : > { %v13826_v40 = vadd.f32 %v9436_v42, %v13567_v48  ;;  %v5984_v29 = vpop.f32.mrb[189].mxu0 }
 0x4f8   : > { %v5823_v24 = vpop.f32.mrb[204].mxu1  ;;  %v13829_v63 = vadd.f32 %v5984_v29, %v13551_v5  ;;  %v9437_v11 = vpop.f32.mrb[190].mxu0  ;;  %v15553_v5 = vld [vmem:[#allocation35_spill] sm:$0xff] }
 0x4f9   : > { %v13832_v52 = vadd.f32 %v5823_v24, %v13548_v27  ;;  %v5825_v8 = vpop.f32.mrb[205].mxu1  ;;  %v13835_v55 = vadd.f32 %v9437_v11, %v13573_v0  ;;  %v5987_v36 = vpop.f32.mrb[191].mxu0 }
 0x4fa   : > { %v5826_v62 = vpop.f32.mrb[206].mxu1  ;;  %v13838_v56 = vadd.f32 %v5987_v36, %v13557_v41 }
 0x4fb   : > { %v13841_v48 = vadd.f32 %v5826_v62, %v13554_v19  ;;  %v5828_v60 = vpop.f32.mrb[207].mxu1  ;;  %6553 = vmatmul.mubr.bf16.gmra.mrb[40].mxu0 %v15552_v7 }
 0x4fc   : > { %6560 = vmatprep.mubr.bf16.mxu0 %v15553_v5  ;;  %v15555_v60 = vld [vmem:[#allocation38_spill] sm:$0xff] }
 0x4fd   : > { %9559 = vmatmul.mubr.bf16.gmra.mrb[56].mxu1 %v15469_v14 }
 0x4fe   : > { %9562 = vmatprep.mubr.bf16.mxu1 %v13004_v47  ;;  %v9440_v27 = vpop.f32.mrb[192].mxu0 }
 0x4ff   : > { %v13848_v0 = vadd.f32 %v9440_v27, %v13599_v22  ;;  %v6000_v44 = vpop.f32.mrb[193].mxu0  ;;  %v15554_v22 = vld [vmem:[#allocation75_spill] sm:$0xff] }
 0x500   : > { %v5831_v42 = vpop.f32.mrb[208].mxu1  ;;  %v13851_v41 = vadd.f32 %v6000_v44, %v13583_v61  ;;  %v9441_v19 = vpop.f32.mrb[194].mxu0 }
 0x501   : > { %v13854_v29 = vadd.f32 %v5831_v42, %v13564_v49  ;;  %v5833_v24 = vpop.f32.mrb[209].mxu1  ;;  %v13857_v11 = vadd.f32 %v9441_v19, %v13605_v59  ;;  %v6003_v14 = vpop.f32.mrb[195].mxu0 }
 0x502   : > { %v5834_v8 = vpop.f32.mrb[210].mxu1  ;;  %v13860_v47 = vadd.f32 %v6003_v14, %v13589_v25  ;;  %v15556_v14 = vld [vmem:[#allocation29_spill] sm:$0xff] }
 0x503   : > { %v13863_v36 = vadd.f32 %v5834_v8, %v15554_v22  ;;  %v5836_v62 = vpop.f32.mrb[211].mxu1  ;;  %6561 = vmatmul.mubr.bf16.gmra.mrb[44].mxu0 %v15555_v60 }
 0x504   : > { %6568 = vmatprep.mubr.bf16.mxu0 %v15317_v2 }
 0x505   : > { %9563 = vmatmul.mubr.bf16.gmra.mrb[60].mxu1 %v15470_v32 }
 0x506   : > { %9566 = vmatprep.mubr.bf16.mxu1 %v13043_v28  ;;  %v9444_v49 = vpop.f32.mrb[196].mxu0 }
 0x507   : > { %v13870_v61 = vadd.f32 %v9444_v49, %v13631_v4  ;;  %v6016_v59 = vpop.f32.mrb[197].mxu0 }
 0x508   : > { %v5839_v7 = vpop.f32.mrb[212].mxu1  ;;  %v13873_v25 = vadd.f32 %v6016_v59, %v13615_v23  ;;  %v9445_v5 = vpop.f32.mrb[198].mxu0  ;;  %v15557_v23 = vld [vmem:[#allocation69_spill] sm:$0xff] }
 0x509   : > { %v13876_v27 = vadd.f32 %v5839_v7, %v13580_v50  ;;  %v5841_v44 = vpop.f32.mrb[213].mxu1  ;;  %v13879_v42 = vadd.f32 %v9445_v5, %v13637_v15  ;;  %v6019_v32 = vpop.f32.mrb[199].mxu0  ;;  %v15558_v50 = vld [vmem:[#allocation39_spill] sm:$0xff] }
 0x50a   : > { %v5842_v19 = vpop.f32.mrb[214].mxu1  ;;  %v13882_v28 = vadd.f32 %v6019_v32, %v13621_v30  ;;  %v15559_v32 = vld [vmem:[#allocation71_spill] sm:$0xff] }
 0x50b   : > { %v13885_v4 = vadd.f32 %v5842_v19, %v13586_v57  ;;  %v5844_v24 = vpop.f32.mrb[215].mxu1  ;;  %6569 = vmatmul.mubr.bf16.gmra.mrb[48].mxu0 %v15556_v14  ;;  %v15561_v19 = vld [vmem:[#allocation85_spill] sm:$0xff] }
 0x50c   : > { %6576 = vmatprep.mubr.bf16.mxu0 %v15557_v23 }
 0x50d   : > { %9567 = vmatmul.mubr.bf16.gmra.mrb[64].mxu1 %v13047_v37 }
 0x50e   : > { %9570 = vmatprep.mubr.bf16.mxu1 %v15558_v50  ;;  %v9448_v8 = vpop.f32.mrb[200].mxu0 }
 0x50f   : > { %v13892_v15 = vadd.f32 %v9448_v8, %v13676_v1  ;;  %v6032_v22 = vpop.f32.mrb[201].mxu0 }
 0x510   : > { %v5847_v62 = vpop.f32.mrb[216].mxu1  ;;  %v13895_v30 = vadd.f32 %v6032_v22, %v13654_v31  ;;  %v9449_v57 = vpop.f32.mrb[202].mxu0  ;;  %v15560_v31 = vld [vmem:[#allocation110_spill] sm:$0xff] }
 0x511   : > { %v13898_v60 = vadd.f32 %v5847_v62, %v13596_v17  ;;  %v5849_v49 = vpop.f32.mrb[217].mxu1  ;;  %v13901_v59 = vadd.f32 %v9449_v57, %v13682_v34  ;;  %v6035_v37 = vpop.f32.mrb[203].mxu0 }
 0x512   : > { %v5850_v7 = vpop.f32.mrb[218].mxu1  ;;  %v13904_v5 = vadd.f32 %v6035_v37, %v13660_v6  ;;  %v15562_v37 = vld [vmem:[#allocation79_spill] sm:$0xff] }
 0x513   : > { %v13907_v1 = vadd.f32 %v5850_v7, %v13602_v46  ;;  %v5852_v44 = vpop.f32.mrb[219].mxu1  ;;  %6577 = vmatmul.mubr.bf16.gmra.mrb[52].mxu0 %v15559_v32  ;;  %v15564_v7 = vld [vmem:[#allocation12_spill] sm:$0xff] }
 0x514   : > { %6584 = vmatprep.mubr.bf16.mxu0 %v15317_v2 }
 0x515   : > { %9571 = vmatmul.mubr.bf16.gmra.mrb[68].mxu1 %v15560_v31 }
 0x516   : > { %v9452_v17 = vpop.f32.mrb[204].mxu0  ;;  %9574 = vmatprep.mubr.bf16.mxu1 %v15561_v19 }
 0x517   : > { %v13914_v34 = vadd.f32 %v9452_v17, %v13717_v16  ;;  %v6048_v24 = vpop.f32.mrb[205].mxu0 }
 0x518   : > { %v5855_v14 = vpop.f32.mrb[220].mxu1  ;;  %v13917_v6 = vadd.f32 %v6048_v24, %v13698_v33  ;;  %v9453_v46 = vpop.f32.mrb[206].mxu0  ;;  %v15563_v33 = vld [vmem:[#allocation73_spill] sm:$0xff] }
 0x519   : > { %v13920_v23 = vadd.f32 %v5855_v14, %v13612_v43  ;;  %v5857_v50 = vpop.f32.mrb[221].mxu1  ;;  %v13923_v8 = vadd.f32 %v9453_v46, %v13723_v39  ;;  %v6051_v22 = vpop.f32.mrb[207].mxu0  ;;  %v15565_v46 = vld [vmem:[#allocation47_spill] sm:$0xff] }
 0x51a   : > { %v5858_v62 = vpop.f32.mrb[222].mxu1  ;;  %v13926_v57 = vadd.f32 %v6051_v22, %v13704_v38 }
 0x51b   : > { %v13929_v16 = vadd.f32 %v5858_v62, %v13618_v54  ;;  %v5860_v49 = vpop.f32.mrb[223].mxu1  ;;  %6585 = vmatmul.mubr.bf16.gmra.mrb[56].mxu0 %v15562_v37  ;;  %v15569_v37 = vld [vmem:[#allocation20_spill] sm:$0xff] }
 0x51c   : > { %6592 = vmatprep.mubr.bf16.mxu0 %v15563_v33  ;;  %v15567_v49 = vld [vmem:[#allocation100_spill] sm:$0xff] }
 0x51d   : > { %9575 = vmatmul.mubr.bf16.gmra.mrb[72].mxu1 %v15561_v19 }
 0x51e   : > { %v9456_v43 = vpop.f32.mrb[208].mxu0  ;;  %9594 = vmatprep.mubr.bf16.mxu1 %v15564_v7 }
 0x51f   : > { %v13936_v39 = vadd.f32 %v9456_v43, %v13749_v58  ;;  %v6064_v44 = vpop.f32.mrb[209].mxu0  ;;  %v15566_v58 = vld [vmem:[#allocation117_spill] sm:$0xff] }
 0x520   : > { %v5863_v32 = vpop.f32.mrb[224].mxu1  ;;  %v13939_v38 = vadd.f32 %v6064_v44, %v13733_v3  ;;  %v9457_v54 = vpop.f32.mrb[210].mxu0  ;;  %v15568_v3 = vld [vmem:[#allocation13_spill] sm:$0xff] }
 0x521   : > { %v13942_v31 = vadd.f32 %v5863_v32, %v13628_v18  ;;  %v5865_v17 = vpop.f32.mrb[225].mxu1  ;;  %v13945_v24 = vadd.f32 %v9457_v54, %v13755_v35  ;;  %v6067_v19 = vpop.f32.mrb[211].mxu0  ;;  %v15570_v32 = vld [vmem:[#allocation118_spill] sm:$0xff] }
 0x522   : > { %v5866_v14 = vpop.f32.mrb[226].mxu1  ;;  %v13948_v50 = vadd.f32 %v6067_v19, %v15565_v46 }
 0x523   : > { %v13951_v22 = vadd.f32 %v5866_v14, %v15566_v58  ;;  %v5868_v62 = vpop.f32.mrb[227].mxu1  ;;  %6593 = vmatmul.mubr.bf16.gmra.mrb[60].mxu0 %v15567_v49 }
 0x524   : > { %6600 = vmatprep.mubr.bf16.mxu0 %v15317_v2 }
 0x525   : > { %9595 = vmatmul.mubr.bf16.vlgmr.msra.gmra.mrb[76].mxu1 %v15568_v3  ;;  %v15572_v3 = vld [vmem:[#allocation31_spill] sm:$0xff] }
 0x526   : > { %v9460_v18 = vpop.f32.mrb[212].mxu0  ;;  %9598 = vmatprep.mubr.bf16.mxu1 %v15569_v37 }
 0x527   : > { %v13958_v35 = vadd.f32 %v9460_v18, %v13781_v51  ;;  %v6080_v33 = vpop.f32.mrb[213].mxu0  ;;  %v15571_v51 = vld [vmem:[#allocation80_spill] sm:$0xff]  ;;  %v15574_v18 = vld [vmem:[#allocation21_spill] sm:$0xff] }
 0x528   : > { %v5871_v43 = vpop.f32.mrb[228].mxu1  ;;  %v13961_v7 = vadd.f32 %v6080_v33, %v13765_v45  ;;  %v9461_v44 = vpop.f32.mrb[214].mxu0  ;;  %v15573_v45 = vld [vmem:[#allocation105_spill] sm:$0xff]  ;;  %v15575_v33 = vld [vmem:[#allocation32_spill] sm:$0xff] }
 0x529   : > { %v13964_v54 = vadd.f32 %v5871_v43, %v15570_v32  ;;  %v5873_v17 = vpop.f32.mrb[229].mxu1  ;;  %v13967_v19 = vadd.f32 %v9461_v44, %v13787_v13  ;;  %v6083_v14 = vpop.f32.mrb[215].mxu0 }
 0x52a   : > { %v5874_v46 = vpop.f32.mrb[230].mxu1  ;;  %v13970_v58 = vadd.f32 %v6083_v14, %v13771_v20  ;;  %v15576_v17 = vld [vmem:[#allocation112_spill] sm:$0xff] }
 0x52b   : > { %v13973_v62 = vadd.f32 %v5874_v46, %v15571_v51  ;;  %v5876_v49 = vpop.f32.mrb[231].mxu1  ;;  %6601 = vmatmul.mubr.bf16.gmra.mrb[64].mxu0 %v15572_v3 }
 0x52c   : > { %6608 = vmatprep.mubr.bf16.mxu0 %v15573_v45 }
 0x52d   : > { %9599 = vmatmul.mubr.bf16.gmra.mrb[80].mxu1 %v15574_v18 }
 0x52e   : > { %v9464_v37 = vpop.f32.mrb[216].mxu0  ;;  %9602 = vmatprep.mubr.bf16.mxu1 %v15575_v33  ;;  %v15579_v33 = vld [vmem:[#allocation107_spill] sm:$0xff] }
 0x52f   : > { %v13980_v13 = vadd.f32 %v9464_v37, %v13813_v53  ;;  %v6096_v43 = vpop.f32.mrb[217].mxu0  ;;  %v15578_v53 = vld [vmem:[#allocation115_spill] sm:$0xff] }
 0x530   : > { %v5879_v44 = vpop.f32.mrb[232].mxu1  ;;  %v13983_v20 = vadd.f32 %v6096_v43, %v13797_v12  ;;  %v9465_v32 = vpop.f32.mrb[218].mxu0  ;;  %v15580_v12 = vld [vmem:[#allocation34_spill] sm:$0xff] }
 0x531   : > { %v13986_v14 = vadd.f32 %v5879_v44, %v15576_v17  ;;  %v5881_v46 = vpop.f32.mrb[233].mxu1  ;;  %v13989_v51 = vadd.f32 %v9465_v32, %v13819_v26  ;;  %v6099_v49 = vpop.f32.mrb[219].mxu0  ;;  %v15581_v44 = vld [vmem:[#allocation37_spill] sm:$0xff] }
 0x532   : > { %v5882_v3 = vpop.f32.mrb[234].mxu1  ;;  %v13992_v45 = vadd.f32 %v6099_v49, %v13803_v10  ;;  %v15583_v49 = vld [vmem:[#allocation116_spill] sm:$0xff] }
 0x533   : > { %15577 = vst [vmem:[#allocation4_spill] sm:$0xff] %v13989_v51  ;;  %v13995_v18 = vadd.f32 %v5882_v3, %v15578_v53  ;;  %v5884_v37 = vpop.f32.mrb[235].mxu1  ;;  %6609 = vmatmul.mubr.bf16.gmra.mrb[68].mxu0 %v15579_v33  ;;  %v15586_v51 = vld [vmem:[#allocation42_spill] sm:$0xff] }
 0x534   : > { %6616 = vmatprep.mubr.bf16.mxu0 %v15317_v2 }
 0x535   : > { %9603 = vmatmul.mubr.bf16.gmra.mrb[84].mxu1 %v15580_v12 }
 0x536   : > { %v9468_v43 = vpop.f32.mrb[220].mxu0  ;;  %9606 = vmatprep.mubr.bf16.mxu1 %v15581_v44 }
 0x537   : > { %v14002_v26 = vadd.f32 %v9468_v43, %v13854_v29  ;;  %v6112_v32 = vpop.f32.mrb[221].mxu0  ;;  %v15585_v29 = vld [vmem:[#allocation99_spill] sm:$0xff] }
 0x538   : > { %v5887_v17 = vpop.f32.mrb[236].mxu1  ;;  %v14005_v10 = vadd.f32 %v6112_v32, %v13832_v52  ;;  %v9469_v46 = vpop.f32.mrb[222].mxu0  ;;  %v15587_v52 = vld [vmem:[#allocation77_spill] sm:$0xff]  ;;  %v15588_v32 = vld [vmem:[#allocation40_spill] sm:$0xff] }
 0x539   : > { %15582 = vst [vmem:[#allocation10_spill] sm:$0xff] %v14002_v26  ;;  %v14008_v3 = vadd.f32 %v5887_v17, %v15583_v49  ;;  %v5889_v53 = vpop.f32.mrb[237].mxu1  ;;  %v14011_v37 = vadd.f32 %v9469_v46, %v13863_v36  ;;  %v6115_v33 = vpop.f32.mrb[223].mxu0  ;;  %v15589_v49 = vld [vmem:[#allocation43_spill] sm:$0xff] }
 0x53a   : > { %v5890_v12 = vpop.f32.mrb[238].mxu1  ;;  %v14014_v44 = vadd.f32 %v6115_v33, %v13841_v48 }
 0x53b   : > { %15584 = vst [vmem:[#allocation55_spill] sm:$0xff] %v14011_v37  ;;  %v14017_v43 = vadd.f32 %v5890_v12, %v15585_v29  ;;  %v5892_v26 = vpop.f32.mrb[239].mxu1  ;;  %6617 = vmatmul.mubr.bf16.gmra.mrb[72].mxu0 %v15586_v51  ;;  %v15591_v12 = vld [vmem:[#allocation46_spill] sm:$0xff] }
 0x53c   : > { %6624 = vmatprep.mubr.bf16.mxu0 %v15587_v52 }
 0x53d   : > { %9607 = vmatmul.mubr.bf16.gmra.mrb[88].mxu1 %v15588_v32 }
 0x53e   : > { %v9472_v17 = vpop.f32.mrb[224].mxu0  ;;  %9610 = vmatprep.mubr.bf16.mxu1 %v15589_v49  ;;  %v15594_v49 = vld [vmem:[#allocation19_spill] sm:$0xff] }
 0x53f   : > { %v14024_v36 = vadd.f32 %v9472_v17, %v13898_v60  ;;  %v6128_v46 = vpop.f32.mrb[225].mxu0 }
 0x540   : > { %v5895_v53 = vpop.f32.mrb[240].mxu1  ;;  %v14027_v48 = vadd.f32 %v6128_v46, %v13876_v27  ;;  %v9473_v33 = vpop.f32.mrb[226].mxu0  ;;  %v15596_v27 = vld [vmem:[#allocation45_spill] sm:$0xff] }
 0x541   : > { %15590 = vst [vmem:[#allocation57_spill] sm:$0xff] %v14024_v36  ;;  %v5896_v26 = vadd.f32 %v5895_v53, %v15591_v12  ;;  %v5897_v29 = vpop.f32.mrb[241].mxu1  ;;  %v14031_v51 = vadd.f32 %v9473_v33, %v13907_v1  ;;  %v6131_v52 = vpop.f32.mrb[227].mxu0  ;;  %v15595_v36 = vld [vmem:[#allocation111_spill] sm:$0xff]  ;;  %v15597_v53 = vld [vmem:[#allocation48_spill] sm:$0xff] }
 0x542   : > { %v5898_v32 = vpop.f32.mrb[242].mxu1  ;;  %v14034_v37 = vadd.f32 %v6131_v52, %v13885_v4  ;;  %v15600_v52 = vld [vmem:[#allocation9_spill] sm:$0xff] }
 0x543   : > { %15592 = vst [vmem:[#allocation5_spill] sm:$0xff] %v14031_v51  ;;  %v5899_v60 = vadd.f32 %v5898_v32, %v15594_v49  ;;  %v5900_v17 = vpop.f32.mrb[243].mxu1  ;;  %6625 = vmatmul.mubr.bf16.gmra.mrb[76].mxu0 %v15595_v36 }
 0x544   : > { %15593 = vst [vmem:[#allocation49_spill] sm:$0xff] %v14034_v37  ;;  %6632 = vmatprep.mubr.bf16.mxu0 %v15317_v2  ;;  %v15605_v37 = vld [vmem:[#allocation113_spill] sm:$0xff] }
 0x545   : > { %9611 = vmatmul.mubr.bf16.gmra.mrb[92].mxu1 %v15596_v27 }
 0x546   : > { %v9476_v46 = vpop.f32.mrb[228].mxu0  ;;  %9614 = vmatprep.mubr.bf16.mxu1 %v15597_v53  ;;  %v15603_v53 = vld [vmem:[#allocation11_spill] sm:$0xff] }
 0x547   : > { %v14042_v1 = vadd.f32 %v9476_v46, %v13942_v31  ;;  %v6144_v33 = vpop.f32.mrb[229].mxu0 }
 0x548   : > { %v5903_v12 = vpop.f32.mrb[244].mxu1  ;;  %v14045_v4 = vadd.f32 %v6144_v33, %v13920_v23  ;;  %v9477_v29 = vpop.f32.mrb[230].mxu0  ;;  %v15606_v23 = vld [vmem:[#allocation50_spill] sm:$0xff] }
 0x549   : > { %15598 = vst [vmem:[#allocation22_spill] sm:$0xff] %v14042_v1  ;;  %v5904_v32 = vadd.f32 %v5903_v12, %v15600_v52  ;;  %v5905_v49 = vpop.f32.mrb[245].mxu1  ;;  %v14049_v36 = vadd.f32 %v9477_v29, %v13951_v22  ;;  %v6147_v17 = vpop.f32.mrb[231].mxu0  ;;  %v15604_v1 = vld [vmem:[#allocation36_spill] sm:$0xff]  ;;  %v15607_v12 = vld [vmem:[#allocation54_spill] sm:$0xff] }
 0x54a   : > { %15599 = vst [vmem:[#allocation96_spill] sm:$0xff] %v14045_v4  ;;  %v5906_v27 = vpop.f32.mrb[246].mxu1  ;;  %v14052_v51 = vadd.f32 %v6147_v17, %v13929_v16  ;;  %v15610_v17 = vld [vmem:[#allocation3_spill] sm:$0xff] }
 0x54b   : > { %15601 = vst [vmem:[#allocation23_spill] sm:$0xff] %v14049_v36  ;;  %v5907_v31 = vadd.f32 %v5906_v27, %v15603_v53  ;;  %v5908_v46 = vpop.f32.mrb[247].mxu1  ;;  %6633 = vmatmul.mubr.bf16.gmra.mrb[80].mxu0 %v15604_v1 }
 0x54c   : > { %15602 = vst [vmem:[#allocation59_spill] sm:$0xff] %v14052_v51  ;;  %6640 = vmatprep.mubr.bf16.mxu0 %v15605_v37 }
 0x54d   : > { %9615 = vmatmul.mubr.bf16.gmra.mrb[96].mxu1 %v15606_v23 }
 0x54e   : > { %v9480_v33 = vpop.f32.mrb[232].mxu0  ;;  %9618 = vmatprep.mubr.bf16.mxu1 %v15607_v12  ;;  %v15613_v12 = vld [vmem:[#allocation88_spill] sm:$0xff] }
 0x54f   : > { %v14060_v22 = vadd.f32 %v9480_v33, %v13986_v14  ;;  %v6160_v29 = vpop.f32.mrb[233].mxu0 }
 0x550   : > { %v5911_v52 = vpop.f32.mrb[248].mxu1  ;;  %v14063_v16 = vadd.f32 %v6160_v29, %v13964_v54  ;;  %v9481_v49 = vpop.f32.mrb[234].mxu0  ;;  %v15615_v54 = vld [vmem:[#allocation56_spill] sm:$0xff] }
 0x551   : > { %15608 = vst [vmem:[#allocation6_spill] sm:$0xff] %v14060_v22  ;;  %v5912_v27 = vadd.f32 %v5911_v52, %v15610_v17  ;;  %v5913_v53 = vpop.f32.mrb[249].mxu1  ;;  %v14067_v1 = vadd.f32 %v9481_v49, %v13995_v18  ;;  %v6163_v37 = vpop.f32.mrb[235].mxu0  ;;  %v15614_v22 = vld [vmem:[#allocation83_spill] sm:$0xff]  ;;  %v15616_v52 = vld [vmem:[#allocation58_spill] sm:$0xff] }
 0x552   : > { %15609 = vst [vmem:[#allocation123_spill] sm:$0xff] %v14063_v16  ;;  %v5914_v46 = vpop.f32.mrb[250].mxu1  ;;  %v14070_v23 = vadd.f32 %v6163_v37, %v13973_v62  ;;  %v15619_v37 = vld [vmem:[#allocation97_spill] sm:$0xff] }
 0x553   : > { %15611 = vst [vmem:[#allocation17_spill] sm:$0xff] %v14067_v1  ;;  %v5915_v14 = vadd.f32 %v5914_v46, %v15613_v12  ;;  %v5916_v33 = vpop.f32.mrb[251].mxu1  ;;  %6641 = vmatmul.mubr.bf16.gmra.mrb[84].mxu0 %v15614_v22 }
 0x554   : > { %15612 = vst [vmem:[#allocation14_spill] sm:$0xff] %v14070_v23  ;;  %6648 = vmatprep.mubr.bf16.mxu0 %v15317_v2  ;;  %v15622_v23 = vld [vmem:[#allocation52_spill] sm:$0xff] }
 0x555   : > { %9619 = vmatmul.mubr.bf16.gmra.mrb[100].mxu1 %v15615_v54 }
 0x556   : > { %v9484_v29 = vpop.f32.mrb[236].mxu0  ;;  %9622 = vmatprep.mubr.bf16.mxu1 %v15616_v52 }
 0x557   : > { %v14077_v17 = vadd.f32 %v9484_v29, %v5896_v26  ;;  %v6176_v18 = vpop.f32.mrb[237].mxu0  ;;  %v15623_v29 = vld [vmem:[#allocation82_spill] sm:$0xff] }
 0x558   : > { %v5919_v49 = vpop.f32.mrb[252].mxu1  ;;  %v14080_v53 = vadd.f32 %v6176_v18, %v14008_v3  ;;  %v9485_v62 = vpop.f32.mrb[238].mxu0  ;;  %v15625_v3 = vld [vmem:[#allocation60_spill] sm:$0xff] }
 0x559   : > { %15617 = vst [vmem:[#allocation27_spill] sm:$0xff] %v14077_v17  ;;  %v5920_v46 = vadd.f32 %v5919_v49, %v15619_v37  ;;  %v5921_v12 = vpop.f32.mrb[253].mxu1  ;;  %v14083_v33 = vadd.f32 %v9485_v62, %v5899_v60  ;;  %v6179_v22 = vpop.f32.mrb[239].mxu0  ;;  %v15624_v17 = vld [vmem:[#allocation86_spill] sm:$0xff] }
 0x55a   : > { %15618 = vst [vmem:[#allocation104_spill] sm:$0xff] %v14080_v53  ;;  %v5922_v1 = vpop.f32.mrb[254].mxu1  ;;  %v14086_v54 = vadd.f32 %v6179_v22, %v14017_v43  ;;  %v15626_v53 = vld [vmem:[#allocation62_spill] sm:$0xff]  ;;  %v15629_v12 = vld [vmem:[#allocation53_spill] sm:$0xff] }
 0x55b   : > { %15620 = vst [vmem:[#allocation7_spill] sm:$0xff] %v14083_v33  ;;  %v5923_v52 = vadd.f32 %v5922_v1, %v15622_v23  ;;  %v5924_v26 = vpop.f32.mrb[255].mxu1  ;;  %6649 = vmatmul.mubr.bf16.gmra.mrb[88].mxu0 %v15623_v29 }
 0x55c   : > { %15621 = vst [vmem:[#allocation51_spill] sm:$0xff] %v14086_v54  ;;  %6656 = vmatprep.mubr.bf16.mxu0 %v15624_v17 }
 0x55d   : > { %9623 = vmatmul.mubr.bf16.gmra.mrb[104].mxu1 %v15625_v3  ;;  %v15632_v3 = vld [vmem:[#allocation15_spill] sm:$0xff] }
 0x55e   : > { %v9488_v18 = vpop.f32.mrb[240].mxu0  ;;  %9626 = vmatprep.mubr.bf16.mxu1 %v15626_v53  ;;  %v15633_v53 = vld [vmem:[#allocation94_spill] sm:$0xff] }
 0x55f   : > { %v14093_v49 = vadd.f32 %v9488_v18, %v5912_v27  ;;  %v6192_v60 = vpop.f32.mrb[241].mxu0  ;;  %v15634_v27 = vld [vmem:[#allocation64_spill] sm:$0xff]  ;;  %v15635_v18 = vld [vmem:[#allocation66_spill] sm:$0xff] }
 0x560   : > { %v5927_v62 = vpop.f32.mrb[0].mxu1  ;;  %v14095_v37 = vadd.f32 %v6192_v60, %v5904_v32  ;;  %v9489_v43 = vpop.f32.mrb[242].mxu0 }
 0x561   : > { %15627 = vst [vmem:[#allocation63_spill] sm:$0xff] %v14093_v49  ;;  %v5928_v22 = vadd.f32 %v5927_v62, %v15629_v12  ;;  %v5929_v1 = vpop.f32.mrb[1].mxu1  ;;  %v14098_v23 = vadd.f32 %v9489_v43, %v5915_v14  ;;  %v6195_v26 = vpop.f32.mrb[243].mxu0  ;;  %v15638_v12 = vld [vmem:[#allocation89_spill] sm:$0xff] }
 0x562   : > { %15628 = vst [vmem:[#allocation16_spill] sm:$0xff] %v14095_v37  ;;  %v5930_v29 = vpop.f32.mrb[2].mxu1  ;;  %v14100_v17 = vadd.f32 %v6195_v26, %v5907_v31 }
 0x563   : > { %15630 = vst [vmem:[#allocation33_spill] sm:$0xff] %v14098_v23  ;;  %v5931_v33 = vadd.f32 %v5930_v29, %v15632_v3  ;;  %v5932_v54 = vpop.f32.mrb[3].mxu1  ;;  %6657 = vmatmul.mubr.bf16.gmra.mrb[92].mxu0 %v15633_v53 }
 0x564   : > { %15631 = vst [vmem:[#allocation65_spill] sm:$0xff] %v14100_v17  ;;  %6664 = vmatprep.mubr.bf16.mxu0 %v15317_v2 }
 0x565   : > { %9627 = vmatmul.mubr.bf16.gmra.mrb[108].mxu1 %v15634_v27  ;;  %v15641_v27 = vld [vmem:[#allocation120_spill] sm:$0xff] }
 0x566   : > { %v9492_v32 = vpop.f32.mrb[244].mxu0  ;;  %9630 = vmatprep.mubr.bf16.mxu1 %v15635_v18  ;;  %v15642_v18 = vld [vmem:[#allocation41_spill] sm:$0xff] }
 0x567   : > { %v14107_v60 = vadd.f32 %v9492_v32, %v5928_v22  ;;  %v6208_v14 = vpop.f32.mrb[245].mxu0  ;;  %v15643_v22 = vld [vmem:[#allocation28_spill] sm:$0xff] }
 0x568   : > { %v5935_v62 = vpop.f32.mrb[4].mxu1  ;;  %v14109_v43 = vadd.f32 %v6208_v14, %v5920_v46  ;;  %v9493_v31 = vpop.f32.mrb[246].mxu0  ;;  %v15644_v32 = vld [vmem:[#allocation68_spill] sm:$0xff]  ;;  %v15645_v14 = vld [vmem:[#allocation70_spill] sm:$0xff] }
 0x569   : > { %15636 = vst [vmem:[#allocation8_spill] sm:$0xff] %v14107_v60  ;;  %v5936_v1 = vadd.f32 %v5935_v62, %v15638_v12  ;;  %v5937_v26 = vpop.f32.mrb[5].mxu1  ;;  %v14112_v54 = vadd.f32 %v9493_v31, %v5931_v33  ;;  %v6211_v29 = vpop.f32.mrb[247].mxu0  ;;  %v15663_v60 = vld [vmem:[#allocation2_spill] sm:$0xff] }
 0x56a   : > { %15637 = vst [vmem:[#allocation126_spill] sm:$0xff] %v14109_v43  ;;  %v5938_v3 = vpop.f32.mrb[6].mxu1  ;;  %v14114_v53 = vadd.f32 %v6211_v29, %v5923_v52 }
 0x56b   : > { %15639 = vst [vmem:[#allocation119_spill] sm:$0xff] %v14112_v54  ;;  %v5939_v23 = vadd.f32 %v5938_v3, %v15641_v27  ;;  %v5940_v49 = vpop.f32.mrb[7].mxu1  ;;  %6665 = vmatmul.mubr.bf16.gmra.mrb[96].mxu0 %v15642_v18 }
 0x56c   : > { %15640 = vst [vmem:[#allocation18_spill] sm:$0xff] %v14114_v53  ;;  %6672 = vmatprep.mubr.bf16.mxu0 %v15643_v22 }
 0x56d   : > { %9631 = vmatmul.mubr.bf16.gmra.mrb[112].mxu1 %v15644_v32  ;;  %v15649_v32 = vld [vmem:[#allocation106_spill] sm:$0xff] }
 0x56e   : > { %v9496_v46 = vpop.f32.mrb[248].mxu0  ;;  %9634 = vmatprep.mubr.bf16.mxu1 %v15645_v14 }
 0x56f   : > { %v6224_v62 = vpop.f32.mrb[249].mxu0 }
 0x570   : > { %v5943_v12 = vpop.f32.mrb[8].mxu1  ;;  %v14121_v33 = vadd.f32 %v6224_v62, %v5936_v1  ;;  %v9497_v31 = vpop.f32.mrb[250].mxu0  ;;  %v15651_v1 = vld [vmem:[#allocation72_spill] sm:$0xff] }
 0x571   : > { %v5944_v52 = vadd.f32 %v5943_v12, %v13810_v9  ;;  %v5945_v26 = vpop.f32.mrb[9].mxu1  ;;  %v6227_v29 = vpop.f32.mrb[251].mxu0  ;;  %v15652_v9 = vld [vmem:[#allocation74_spill] sm:$0xff] }
 0x572   : > { %15646 = vst [vmem:[#allocation67_spill] sm:$0xff] %v14121_v33  ;;  %v5946_v3 = vpop.f32.mrb[10].mxu1  ;;  %v14124_v49 = vadd.f32 %v6227_v29, %v5939_v23  ;;  %v15660_v33 = vld [vmem:[#allocation25_spill] sm:$0xff] }
 0x573   : > { %v14126_v27 = vadd.f32 %v9496_v46, %v5944_v52  ;;  %v5947_v18 = vadd.f32 %v5946_v3, %v13816_v21  ;;  %v5948_v22 = vpop.f32.mrb[11].mxu1  ;;  %6673 = vmatmul.mubr.bf16.gmra.mrb[100].mxu0 %v15649_v32  ;;  %v15653_v3 = vld [vmem:[#allocation44_spill] sm:$0xff] }
 0x574   : > { %15647 = vst [vmem:[#allocation90_spill] sm:$0xff] %v14124_v49  ;;  %6680 = vmatprep.mubr.bf16.mxu0 %v15317_v2  ;;  %v15655_v32 = vld [vmem:[#allocation76_spill] sm:$0xff] }
 0x575   : > { %15648 = vst [vmem:[#allocation121_spill] sm:$0xff] %v14126_v27  ;;  %v14131_v14 = vadd.f32 %v9497_v31, %v5947_v18  ;;  %9635 = vmatmul.mubr.bf16.gmra.mrb[116].mxu1 %v15651_v1  ;;  %v15654_v18 = vld [vmem:[#allocation108_spill] sm:$0xff] }
 0x576   : > { %v6466_v62 = vpop.f32.mrb[252].mxu0  ;;  %9638 = vmatprep.mubr.bf16.mxu1 %v15652_v9 }
 0x577   : > { %15650 = vst [vmem:[#allocation122_spill] sm:$0xff] %v14131_v14  ;;  %v6468_v12 = vpop.f32.mrb[253].mxu0 }
 0x578   : > { %v9516_v26 = vpop.f32.mrb[12].mxu1  ;;  %v6469_v23 = vpop.f32.mrb[254].mxu0  ;;  %v15656_v12 = vld [vmem:[#allocation78_spill] sm:$0xff] }
 0x579   : > { %v6755_v29 = vpop.f32.mrb[13].mxu1  ;;  %v6471_v46 = vpop.f32.mrb[255].mxu0 }
 0x57a   : > { %v6756_v52 = vadd.f32 %v6755_v29, %v6466_v62  ;;  %v9517_v27 = vpop.f32.mrb[14].mxu1 }
 0x57b   : > { %v6758_v21 = vpop.f32.mrb[15].mxu1  ;;  %6681 = vmatmul.mubr.bf16.gmra.mrb[104].mxu0 %v15653_v3 }
 0x57c   : > { %v14137_v22 = vadd.f32 %v6756_v52, %v13829_v63  ;;  %v6759_v31 = vadd.f32 %v6758_v21, %v6469_v23  ;;  %6688 = vmatprep.mubr.bf16.mxu0 %v15654_v18 }
 0x57d   : > { %9639 = vmatmul.mubr.bf16.gmra.mrb[120].mxu1 %v15655_v32 }
 0x57e   : > { %v14142_v1 = vadd.f32 %v6759_v31, %v13838_v56  ;;  %v6474_v9 = vpop.f32.mrb[0].mxu0  ;;  %9642 = vmatprep.mubr.bf16.mxu1 %v15656_v12  ;;  %v15657_v56 = vld [vmem:[#allocation30_spill] sm:$0xff]  ;;  %v15658_v31 = vld [vmem:[#allocation81_spill] sm:$0xff] }
 0x57f   : > { %v6764_v46 = vadd.f32 %v9516_v26, %v6474_v9  ;;  %v6476_v62 = vpop.f32.mrb[1].mxu0  ;;  %v15659_v9 = vld [vmem:[#allocation84_spill] sm:$0xff] }
 0x580   : > { %v9520_v29 = vpop.f32.mrb[16].mxu1  ;;  %v6477_v14 = vpop.f32.mrb[2].mxu0 }
 0x581   : > { %v14146_v3 = vadd.f32 %v6764_v46, %v13826_v40  ;;  %v6767_v63 = vadd.f32 %v9517_v27, %v6477_v14  ;;  %v6771_v52 = vpop.f32.mrb[17].mxu1  ;;  %v6479_v23 = vpop.f32.mrb[3].mxu0 }
 0x582   : > { %v9521_v21 = vpop.f32.mrb[18].mxu1 }
 0x583   : > { %v14149_v18 = vadd.f32 %v6767_v63, %v13835_v55  ;;  %v6774_v32 = vpop.f32.mrb[19].mxu1  ;;  %6689 = vmatmul.mubr.bf16.gmra.mrb[108].mxu0 %v15657_v56 }
 0x584   : > { %6696 = vmatprep.mubr.bf16.mxu0 %v15317_v2 }
 0x585   : > { %9643 = vmatmul.mubr.bf16.gmra.mrb[124].mxu1 %v15658_v31  ;;  %v15661_v31 = vld [vmem:[#allocation87_spill] sm:$0xff] }
 0x586   : > { %v6482_v26 = vpop.f32.mrb[4].mxu0  ;;  %9646 = vmatprep.mubr.bf16.mxu1 %v15659_v9 }
 0x587   : > { %v6772_v12 = vadd.f32 %v6771_v52, %v6482_v26  ;;  %v6484_v40 = vpop.f32.mrb[5].mxu0  ;;  %v15662_v26 = vld [vmem:[#allocation93_spill] sm:$0xff] }
 0x588   : > { %v9524_v46 = vpop.f32.mrb[20].mxu1  ;;  %v6485_v27 = vpop.f32.mrb[6].mxu0 }
 0x589   : > { %v14156_v14 = vadd.f32 %v6772_v12, %v13851_v41  ;;  %v6775_v62 = vadd.f32 %v6774_v32, %v6485_v27  ;;  %v6787_v55 = vpop.f32.mrb[21].mxu1  ;;  %v6487_v63 = vpop.f32.mrb[7].mxu0 }
 0x58a   : > { %v9525_v23 = vpop.f32.mrb[22].mxu1 }
 0x58b   : > { %v14159_v56 = vadd.f32 %v6775_v62, %v13860_v47  ;;  %v6790_v49 = vpop.f32.mrb[23].mxu1  ;;  %6697 = vmatmul.mubr.bf16.gmra.mrb[112].mxu0 %v15660_v33 }
 0x58c   : > { %6704 = vmatprep.mubr.bf16.mxu0 %v15317_v2 }
 0x58d   : > { %9647 = vmatmul.mubr.bf16.gmra.mrb[128].mxu1 %v15661_v31  ;;  %v15664_v31 = vld [vmem:[#allocation95_spill] sm:$0xff] }
 0x58e   : > { %v6490_v52 = vpop.f32.mrb[8].mxu0  ;;  %9650 = vmatprep.mubr.bf16.mxu1 %v15662_v26 }
 0x58f   : > { %v6780_v9 = vadd.f32 %v9520_v29, %v6490_v52  ;;  %v6492_v41 = vpop.f32.mrb[9].mxu0  ;;  %v15665_v52 = vld [vmem:[#allocation101_spill] sm:$0xff] }
 0x590   : > { %v9528_v12 = vpop.f32.mrb[24].mxu1  ;;  %v6493_v32 = vpop.f32.mrb[10].mxu0 }
 0x591   : > { %v14166_v40 = vadd.f32 %v6780_v9, %v13848_v0  ;;  %v6783_v27 = vadd.f32 %v9521_v21, %v6493_v32  ;;  %v6803_v47 = vpop.f32.mrb[25].mxu1  ;;  %v6495_v62 = vpop.f32.mrb[11].mxu0 }
 0x592   : > { %v9529_v63 = vpop.f32.mrb[26].mxu1 }
 0x593   : > { %v14169_v33 = vadd.f32 %v6783_v27, %v13857_v11  ;;  %v6806_v54 = vpop.f32.mrb[27].mxu1  ;;  %6705 = vmatmul.mubr.bf16.gmra.mrb[116].mxu0 %v15663_v60 }
 0x594   : > { %6712 = vmatprep.mubr.bf16.mxu0 %v15317_v2 }
 0x595   : > { %9651 = vmatmul.mubr.bf16.gmra.mrb[132].mxu1 %v15664_v31  ;;  %v15666_v31 = vld [vmem:[#allocation102_spill] sm:$0xff] }
 0x596   : > { %v6498_v29 = vpop.f32.mrb[12].mxu0  ;;  %9654 = vmatprep.mubr.bf16.mxu1 %v15665_v52 }
 0x597   : > { %v6788_v26 = vadd.f32 %v6787_v55, %v6498_v29  ;;  %v6500_v0 = vpop.f32.mrb[13].mxu0 }
 0x598   : > { %v9532_v9 = vpop.f32.mrb[28].mxu1  ;;  %v6501_v21 = vpop.f32.mrb[14].mxu0 }
 0x599   : > { %v14176_v41 = vadd.f32 %v6788_v26, %v13873_v25  ;;  %v6791_v32 = vadd.f32 %v6790_v49, %v6501_v21  ;;  %v6819_v11 = vpop.f32.mrb[29].mxu1  ;;  %v6503_v27 = vpop.f32.mrb[15].mxu0 }
 0x59a   : > { %v9533_v62 = vpop.f32.mrb[30].mxu1 }
 0x59b   : > { %v14179_v53 = vadd.f32 %v6791_v32, %v13882_v28  ;;  %v6822_v2 = vpop.f32.mrb[31].mxu1  ;;  %6713 = vmatmul.mubr.bf16.gmra.mrb[120].mxu0 %v15663_v60 }
 0x59d   : > { %9655 = vmatmul.mubr.bf16.gmra.mrb[136].mxu1 %v15666_v31 }
 0x59e   : > { %v6506_v52 = vpop.f32.mrb[16].mxu0 }
 0x59f   : > { %v6796_v55 = vadd.f32 %v9524_v46, %v6506_v52  ;;  %v6508_v29 = vpop.f32.mrb[17].mxu0 }
 0x5a0   : > { %v14183_v0 = vpop.f32.mrb[32].mxu1  ;;  %v6509_v43 = vpop.f32.mrb[18].mxu0 }
 0x5a1   : > { %v14186_v25 = vadd.f32 %v6796_v55, %v13870_v61  ;;  %v6799_v49 = vadd.f32 %v9525_v23, %v6509_v43  ;;  %v6835_v26 = vpop.f32.mrb[33].mxu1  ;;  %v6511_v21 = vpop.f32.mrb[19].mxu0 }
 0x5a2   : > { %v14188_v27 = vpop.f32.mrb[34].mxu1 }
 0x5a3   : > { %v14191_v28 = vadd.f32 %v6799_v49, %v13879_v42  ;;  %v6838_v60 = vpop.f32.mrb[35].mxu1 }
 0x5a6   : > { %v6514_v32 = vpop.f32.mrb[20].mxu0 }
 0x5a7   : > { %v6804_v31 = vadd.f32 %v6803_v47, %v6514_v32  ;;  %v6516_v17 = vpop.f32.mrb[21].mxu0 }
 0x5a8   : > { %v14193_v46 = vpop.f32.mrb[36].mxu1  ;;  %v6517_v52 = vpop.f32.mrb[22].mxu0 }
 0x5a9   : > { %v14196_v29 = vadd.f32 %v6804_v31, %v13895_v30  ;;  %v6807_v61 = vadd.f32 %v6806_v54, %v6517_v52  ;;  %v14198_v55 = vpop.f32.mrb[37].mxu1  ;;  %v6519_v43 = vpop.f32.mrb[23].mxu0 }
 0x5aa   : > { %v14200_v23 = vpop.f32.mrb[38].mxu1 }
 0x5ab   : > { %v14203_v21 = vadd.f32 %v6807_v61, %v13904_v5  ;;  %v14205_v42 = vpop.f32.mrb[39].mxu1 }
 0x5ae   : > { %v6522_v49 = vpop.f32.mrb[24].mxu0 }
 0x5af   : > { %v6812_v47 = vadd.f32 %v9528_v12, %v6522_v49  ;;  %v6524_v17 = vpop.f32.mrb[25].mxu0 }
 0x5b0   : > { %v14207_v32 = vpop.f32.mrb[40].mxu1  ;;  %v6525_v37 = vpop.f32.mrb[26].mxu0 }
 0x5b1   : > { %v14210_v30 = vadd.f32 %v6812_v47, %v13892_v15  ;;  %v6815_v54 = vadd.f32 %v9529_v63, %v6525_v37  ;;  %v14212_v31 = vpop.f32.mrb[41].mxu1  ;;  %v6527_v52 = vpop.f32.mrb[27].mxu0 }
 0x5b2   : > { %v14214_v43 = vpop.f32.mrb[42].mxu1 }
 0x5b3   : > { %v14217_v5 = vadd.f32 %v6815_v54, %v13901_v59  ;;  %v14219_v61 = vpop.f32.mrb[43].mxu1 }
 0x5b6   : > { %v6530_v16 = vpop.f32.mrb[28].mxu0 }
 0x5b7   : > { %v6820_v12 = vadd.f32 %v6819_v11, %v6530_v16  ;;  %v6532_v49 = vpop.f32.mrb[29].mxu0 }
 0x5b8   : > { %v14221_v17 = vpop.f32.mrb[44].mxu1  ;;  %v6533_v36 = vpop.f32.mrb[30].mxu0 }
 0x5b9   : > { %v14224_v15 = vadd.f32 %v6820_v12, %v13917_v6  ;;  %v6823_v37 = vadd.f32 %v6822_v2, %v6533_v36  ;;  %v14226_v63 = vpop.f32.mrb[45].mxu1  ;;  %v6535_v47 = vpop.f32.mrb[31].mxu0 }
 0x5ba   : > { %v14228_v52 = vpop.f32.mrb[46].mxu1 }
 0x5bb   : > { %15667 = vst [vmem:[#allocation98_spill] sm:$0xff] %v14224_v15  ;;  %v14231_v59 = vadd.f32 %v6823_v37, %v13926_v57  ;;  %v14233_v54 = vpop.f32.mrb[47].mxu1 }
 0x5bd   : > { %15668 = vst [vmem:[#allocation24_spill] sm:$0xff] %v14231_v59 }
 0x5be   : > { %v6538_v51 = vpop.f32.mrb[32].mxu0 }
 0x5bf   : > { %v6828_v16 = vadd.f32 %v9532_v9, %v6538_v51  ;;  %v6540_v11 = vpop.f32.mrb[33].mxu0 }
 0x5c0   : > { %v14235_v49 = vpop.f32.mrb[48].mxu1  ;;  %v6541_v4 = vpop.f32.mrb[34].mxu0 }
 0x5c1   : > { %v14238_v6 = vadd.f32 %v6828_v16, %v13914_v34  ;;  %v6831_v36 = vadd.f32 %v9533_v62, %v6541_v4  ;;  %v14240_v2 = vpop.f32.mrb[49].mxu1  ;;  %v6543_v12 = vpop.f32.mrb[35].mxu0 }
 0x5c2   : > { %v14242_v47 = vpop.f32.mrb[50].mxu1 }
 0x5c3   : > { %v14245_v57 = vadd.f32 %v6831_v36, %v13923_v8  ;;  %v14247_v37 = vpop.f32.mrb[51].mxu1 }
 0x5c5   : > { %15669 = vst [vmem:[#allocation128_spill] sm:$0xff] %v14245_v57 }
 0x5c6   : > { %v6546_v59 = vpop.f32.mrb[36].mxu0 }
 0x5c7   : > { %v6836_v51 = vadd.f32 %v6835_v26, %v6546_v59  ;;  %v6548_v9 = vpop.f32.mrb[37].mxu0 }
 0x5c8   : > { %v14249_v11 = vpop.f32.mrb[52].mxu1  ;;  %v6549_v15 = vpop.f32.mrb[38].mxu0 }
 0x5c9   : > { %15670 = vst [vmem:[#allocation124_spill] sm:$0xff] %v14249_v11  ;;  %v14252_v34 = vadd.f32 %v6836_v51, %v13939_v38  ;;  %v6839_v4 = vadd.f32 %v6838_v60, %v6549_v15  ;;  %v14254_v62 = vpop.f32.mrb[53].mxu1  ;;  %v6551_v16 = vpop.f32.mrb[39].mxu0 }
 0x5ca   : > { %v14256_v12 = vpop.f32.mrb[54].mxu1 }
 0x5cb   : > { %v14259_v8 = vadd.f32 %v6839_v4, %v13948_v50  ;;  %v14261_v36 = vpop.f32.mrb[55].mxu1 }
 0x5ce   : > { %v6554_v57 = vpop.f32.mrb[40].mxu0 }
 0x5cf   : > { %v6844_v26 = vadd.f32 %v14183_v0, %v6554_v57  ;;  %v6556_v59 = vpop.f32.mrb[41].mxu0 }
 0x5d0   : > { %v14264_v9 = vpop.f32.mrb[56].mxu1  ;;  %v6557_v11 = vpop.f32.mrb[42].mxu0 }
 0x5d1   : > { %15671 = vst [vmem:[#allocation130_spill] sm:$0xff] %v14264_v9  ;;  %v14267_v38 = vadd.f32 %v6844_v26, %v13936_v39  ;;  %v6847_v60 = vadd.f32 %v14188_v27, %v6557_v11  ;;  %v14270_v15 = vpop.f32.mrb[57].mxu1  ;;  %v6559_v51 = vpop.f32.mrb[43].mxu0 }
 0x5d2   : > { %v14272_v16 = vpop.f32.mrb[58].mxu1 }
 0x5d3   : > { %15672 = vst [vmem:[#allocation125_spill] sm:$0xff] %v14272_v16  ;;  %v14275_v50 = vadd.f32 %v6847_v60, %v13945_v24  ;;  %v14277_v4 = vpop.f32.mrb[59].mxu1 }
 0x5d6   : > { %v6562_v0 = vpop.f32.mrb[44].mxu0 }
 0x5d7   : > { %v6852_v57 = vadd.f32 %v14198_v55, %v6562_v0  ;;  %v6564_v59 = vpop.f32.mrb[45].mxu0 }
 0x5d8   : > { %v14280_v9 = vpop.f32.mrb[60].mxu1  ;;  %v6565_v39 = vpop.f32.mrb[46].mxu0 }
 0x5d9   : > { %15673 = vst [vmem:[#allocation26_spill] sm:$0xff] %v14280_v9  ;;  %v14283_v26 = vadd.f32 %v6852_v57, %v13961_v7  ;;  %v6855_v27 = vadd.f32 %v14205_v42, %v6565_v39  ;;  %v14286_v11 = vpop.f32.mrb[61].mxu1  ;;  %v6567_v51 = vpop.f32.mrb[47].mxu0 }
 0x5da   : > { %v14288_v16 = vpop.f32.mrb[62].mxu1 }
 0x5db   : > { %15674 = vst [vmem:[#allocation131_spill] sm:$0xff] %v14288_v16  ;;  %v14291_v24 = vadd.f32 %v6855_v27, %v13970_v58  ;;  %v14293_v60 = vpop.f32.mrb[63].mxu1 }
 0x5de   : > { %v6570_v55 = vpop.f32.mrb[48].mxu0 }
 0x5df   : > { %v6860_v0 = vadd.f32 %v14193_v46, %v6570_v55  ;;  %v6572_v59 = vpop.f32.mrb[49].mxu0 }
 0x5e0   : > { %v14296_v9 = vpop.f32.mrb[64].mxu1  ;;  %v6573_v7 = vpop.f32.mrb[50].mxu0 }
 0x5e1   : > { %15675 = vst [vmem:[#allocation127_spill] sm:$0xff] %v14296_v9  ;;  %v14299_v57 = vadd.f32 %v6860_v0, %v13958_v35  ;;  %v6863_v42 = vadd.f32 %v14200_v23, %v6573_v7  ;;  %v14302_v39 = vpop.f32.mrb[65].mxu1  ;;  %v6575_v51 = vpop.f32.mrb[51].mxu0 }
 0x5e2   : > { %v14304_v16 = vpop.f32.mrb[66].mxu1 }
 0x5e3   : > { %15676 = vst [vmem:[#allocation134_spill] sm:$0xff] %v14304_v16  ;;  %v14307_v58 = vadd.f32 %v6863_v42, %v13967_v19  ;;  %v14309_v27 = vpop.f32.mrb[67].mxu1 }
 0x5e4   : > { %15677 = vst [vmem:[#allocation129_spill] sm:$0xff] %v14309_v27 }
 0x5e6   : > { %v6578_v46 = vpop.f32.mrb[52].mxu0 }
 0x5e7   : > { %v6868_v55 = vadd.f32 %v14212_v31, %v6578_v46  ;;  %v6580_v59 = vpop.f32.mrb[53].mxu0 }
 0x5e8   : > { %v14312_v9 = vpop.f32.mrb[68].mxu1  ;;  %v6581_v35 = vpop.f32.mrb[54].mxu0 }
 0x5e9   : > { %15678 = vst [vmem:[#allocation109_spill] sm:$0xff] %v14312_v9  ;;  %v14315_v0 = vadd.f32 %v6868_v55, %v13983_v20  ;;  %v6871_v23 = vadd.f32 %v14219_v61, %v6581_v35  ;;  %v14318_v7 = vpop.f32.mrb[69].mxu1  ;;  %v6583_v51 = vpop.f32.mrb[55].mxu0 }
 0x5ea   : > { %v14320_v16 = vpop.f32.mrb[70].mxu1 }
 0x5eb   : > { %15679 = vst [vmem:[#allocation61_spill] sm:$0xff] %v14320_v16  ;;  %v14323_v19 = vadd.f32 %v6871_v23, %v13992_v45  ;;  %v14325_v42 = vpop.f32.mrb[71].mxu1  ;;  %v15683_v45 = vld [vmem:[#allocation4_spill] sm:$0xff] }
 0x5ee   : > { %v6586_v31 = vpop.f32.mrb[56].mxu0 }
 0x5ef   : > { %v6876_v46 = vadd.f32 %v14207_v32, %v6586_v31  ;;  %v6588_v59 = vpop.f32.mrb[57].mxu0  ;;  %v14346_v32 = vld [vmem:[%s14626_s5] ss:$0 sm:$0xff] }
 0x5f0   : > { %v6589_v9 = vpop.f32.mrb[58].mxu0  ;;  %v14328_v27 = vpop.f32.mrb[72].mxu1 }
 0x5f1   : > { %15680 = vst [vmem:[#allocation114_spill] sm:$0xff] %v14328_v27  ;;  %v14331_v20 = vadd.f32 %v6876_v46, %v13980_v13  ;;  %v6879_v61 = vadd.f32 %v14214_v43, %v6589_v9  ;;  %v6591_v55 = vpop.f32.mrb[59].mxu0  ;;  %v14334_v35 = vpop.f32.mrb[73].mxu1  ;;  %v7083_v9 = vadd.f32 %v14346_v32, %v14146_v3  ;;  %v7082_v3 = vadd.f32 %v14346_v32, %v14142_v1 }
 0x5f2   : > { %15681 = vst [vmem:[#allocation92_spill] sm:$0xff] %v14334_v35  ;;  %v14336_v51 = vpop.f32.mrb[74].mxu1 }
 0x5f3   : > { %15682 = vst [vmem:[#allocation133_spill] sm:$0xff] %v14336_v51  ;;  %v14339_v23 = vadd.f32 %v6879_v61, %v15683_v45  ;;  %v14341_v16 = vpop.f32.mrb[75].mxu1  ;;  %v7081_v61 = vadd.f32 %v14346_v32, %v14137_v22 }
 0x5f4   : > { %15684 = vst [vmem:[#allocation132_spill] sm:$0xff] %v14341_v16 }
 0x5f6   : > { %v6594_v31 = vpop.f32.mrb[60].mxu0 }
 0x5f7   : > { %v6884_v13 = vadd.f32 %v14226_v63, %v6594_v31  ;;  %v6596_v43 = vpop.f32.mrb[61].mxu0  ;;  %v7084_v63 = vadd.f32 %v14346_v32, %v14149_v18 }
 0x5f8   : > { %v9596_v46 = vpop.f32.mrb[76].mxu1  ;;  %v6597_v59 = vpop.f32.mrb[62].mxu0 }
 0x5f9   : > { %v14354_v55 = vadd.f32 %v6884_v13, %v14005_v10  ;;  %v7500_v45 = vadd.f32 %v9596_v46, %v7083_v9  ;;  %v6887_v51 = vadd.f32 %v14233_v54, %v6597_v59  ;;  %v7243_v27 = vpop.f32.mrb[77].mxu1  ;;  %v6599_v16 = vpop.f32.mrb[63].mxu0 }
 0x5fa   : > { %v7498_v31 = vadd.f32 %v7243_v27, %v7081_v61  ;;  %v9597_v43 = vpop.f32.mrb[78].mxu1 }
 0x5fb   : > { %v14362_v35 = vadd.f32 %v6887_v51, %v14014_v44  ;;  %v7501_v22 = vadd.f32 %v9597_v43, %v7084_v63  ;;  %v7246_v10 = vpop.f32.mrb[79].mxu1  ;;  %v7564_v9 = vmax.f32 %v7500_v45, 0.0  ;;  %v7087_v51 = vadd.f32 %v14346_v32, %v14166_v40 }
 0x5fc   : > { %v7499_v13 = vadd.f32 %v7246_v10, %v7082_v3  ;;  %v7562_v54 = vmax.f32 %v7498_v31, 0.0  ;;  %v7085_v63 = vadd.f32 %v14346_v32, %v14156_v14  ;;  %v15685_v31 = vld [vmem:[#allocation10_spill] sm:$0xff] }
 0x5fd   : > { %v7565_v46 = vmax.f32 %v7501_v22, 0.0 }
 0x5fe   : > { %v7563_v18 = vmax.f32 %v7499_v13, 0.0  ;;  %v6602_v16 = vpop.f32.mrb[64].mxu0 }
 0x5ff   : > { %v8599_v1 = vpack.c.bf16 %v7565_v46, %v7564_v9  ;;  %v6892_v44 = vadd.f32 %v14221_v17, %v6602_v16  ;;  %v6604_v27 = vpop.f32.mrb[65].mxu0  ;;  %v7088_v17 = vadd.f32 %v14346_v32, %v14169_v33  ;;  %v7086_v46 = vadd.f32 %v14346_v32, %v14159_v56 }
 0x600   : > { %v8594_v59 = vpack.c.bf16 %v7563_v18, %v7562_v54  ;;  %v9600_v61 = vpop.f32.mrb[80].mxu1  ;;  %v6605_v45 = vpop.f32.mrb[66].mxu0  ;;  %v15686_v54 = vld [vmem:[#allocation55_spill] sm:$0xff]  ;;  %v7091_v56 = vadd.f32 %v14346_v32, %v14186_v25 }
 0x601   : > { %8751 = vst [vmem:[%s14368_s16 + $0x8] sm:$0xff] %v8599_v1   ;;  %v14377_v43 = vadd.f32 %v6892_v44, %v15685_v31  ;;  %v7504_v3 = vadd.f32 %v9600_v61, %v7087_v51  ;;  %v6895_v22 = vadd.f32 %v14228_v52, %v6605_v45  ;;  %v7259_v10 = vpop.f32.mrb[81].mxu1  ;;  %v6607_v13 = vpop.f32.mrb[67].mxu0 }
 0x602   : > { %8595 = vst [vmem:[%s14368_s16] sm:$0xff] %v8594_v59   ;;  %v7502_v40 = vadd.f32 %v7259_v10, %v7085_v63  ;;  %v9601_v9 = vpop.f32.mrb[82].mxu1  ;;  %v7089_v10 = vadd.f32 %v14346_v32, %v14176_v41 }
 0x603   : > { %v14386_v14 = vadd.f32 %v6895_v22, %v15686_v54  ;;  %v7505_v18 = vadd.f32 %v9601_v9, %v7088_v17  ;;  %v7262_v16 = vpop.f32.mrb[83].mxu1  ;;  %v7568_v44 = vmax.f32 %v7504_v3, 0.0  ;;  %v7090_v54 = vadd.f32 %v14346_v32, %v14179_v53 }
 0x604   : > { %v7503_v1 = vadd.f32 %v7262_v16, %v7086_v46  ;;  %v7566_v27 = vmax.f32 %v7502_v40, 0.0  ;;  %v7095_v53 = vadd.f32 %v14346_v32, %v14210_v30 }
 0x605   : > { %v7569_v52 = vmax.f32 %v7505_v18, 0.0  ;;  %v15687_v18 = vld [vmem:[#allocation49_spill] sm:$0xff] }
 0x606   : > { %v7567_v51 = vmax.f32 %v7503_v1, 0.0  ;;  %v6610_v61 = vpop.f32.mrb[68].mxu0 }
 0x607   : > { %v8609_v33 = vpack.c.bf16 %v7569_v52, %v7568_v44  ;;  %v6900_v59 = vadd.f32 %v14240_v2, %v6610_v61  ;;  %v6612_v45 = vpop.f32.mrb[69].mxu0  ;;  %v7092_v2 = vadd.f32 %v14346_v32, %v14191_v28 }
 0x608   : > { %v8604_v63 = vpack.c.bf16 %v7567_v51, %v7566_v27  ;;  %v9604_v31 = vpop.f32.mrb[84].mxu1  ;;  %v6613_v22 = vpop.f32.mrb[70].mxu0 }
 0x609   : > { %8753 = vst [vmem:[%s14368_s16 + $0x18] sm:$0xff] %v8609_v33   ;;  %v14395_v3 = vadd.f32 %v6900_v59, %v14027_v48  ;;  %v7508_v13 = vadd.f32 %v9604_v31, %v7091_v56  ;;  %v6903_v17 = vadd.f32 %v14247_v37, %v6613_v22  ;;  %v7275_v40 = vpop.f32.mrb[85].mxu1  ;;  %v6615_v9 = vpop.f32.mrb[71].mxu0  ;;  %v15688_v31 = vld [vmem:[#allocation57_spill] sm:$0xff] }
 0x60a   : > { %8752 = vst [vmem:[%s14368_s16 + $0x10] sm:$0xff] %v8604_v63   ;;  %v7506_v25 = vadd.f32 %v7275_v40, %v7089_v10  ;;  %v9605_v46 = vpop.f32.mrb[86].mxu1  ;;  %v7093_v63 = vadd.f32 %v14346_v32, %v14196_v29 }
 0x60b   : > { %v14404_v41 = vadd.f32 %v6903_v17, %v15687_v18  ;;  %v7509_v16 = vadd.f32 %v9605_v46, %v7092_v2  ;;  %v7278_v48 = vpop.f32.mrb[87].mxu1  ;;  %v7572_v44 = vmax.f32 %v7508_v13, 0.0  ;;  %v7094_v2 = vadd.f32 %v14346_v32, %v14203_v21 }
 0x60c   : > { %v7507_v1 = vadd.f32 %v7278_v48, %v7090_v54  ;;  %v7570_v52 = vmax.f32 %v7506_v25, 0.0  ;;  %v15689_v25 = vld [vmem:[#allocation5_spill] sm:$0xff]  ;;  %v7099_v21 = vadd.f32 %v14346_v32, %v14238_v6 }
 0x60d   : > { %v7573_v37 = vmax.f32 %v7509_v16, 0.0 }
 0x60e   : > { %v7571_v27 = vmax.f32 %v7507_v1, 0.0  ;;  %v6618_v51 = vpop.f32.mrb[72].mxu0 }
 0x60f   : > { %v8619_v28 = vpack.c.bf16 %v7573_v37, %v7572_v44  ;;  %v6908_v61 = vadd.f32 %v14235_v49, %v6618_v51  ;;  %v6620_v33 = vpop.f32.mrb[73].mxu0  ;;  %v7096_v49 = vadd.f32 %v14346_v32, %v14217_v5 }
 0x610   : > { %v8614_v59 = vpack.c.bf16 %v7571_v27, %v7570_v52  ;;  %v9608_v45 = vpop.f32.mrb[88].mxu1  ;;  %v6621_v56 = vpop.f32.mrb[74].mxu0 }
 0x611   : > { %8755 = vst [vmem:[%s14368_s16 + $0x28] sm:$0xff] %v8619_v28   ;;  %v14413_v22 = vadd.f32 %v6908_v61, %v15688_v31  ;;  %v7512_v10 = vadd.f32 %v9608_v45, %v7095_v53  ;;  %v6911_v13 = vadd.f32 %v14242_v47, %v6621_v56  ;;  %v7291_v17 = vpop.f32.mrb[89].mxu1  ;;  %v6623_v40 = vpop.f32.mrb[75].mxu0  ;;  %v15690_v61 = vld [vmem:[#allocation98_spill] sm:$0xff]  ;;  %v15691_v53 = vld [vmem:[#allocation96_spill] sm:$0xff] }
 0x612   : > { %8754 = vst [vmem:[%s14368_s16 + $0x20] sm:$0xff] %v8614_v59   ;;  %v7510_v30 = vadd.f32 %v7291_v17, %v7093_v63  ;;  %v9609_v9 = vpop.f32.mrb[90].mxu1  ;;  %v7097_v33 = vadd.f32 %v14346_v32, %v15690_v61  ;;  %v15693_v17 = vld [vmem:[#allocation24_spill] sm:$0xff] }
 0x613   : > { %v14422_v29 = vadd.f32 %v6911_v13, %v15689_v25  ;;  %v7513_v46 = vadd.f32 %v9609_v9, %v7096_v49  ;;  %v7294_v54 = vpop.f32.mrb[91].mxu1  ;;  %v7576_v16 = vmax.f32 %v7512_v10, 0.0  ;;  %v7098_v40 = vadd.f32 %v14346_v32, %v15693_v17  ;;  %v15694_v49 = vld [vmem:[#allocation59_spill] sm:$0xff] }
 0x614   : > { %v7511_v18 = vadd.f32 %v7294_v54, %v7094_v2  ;;  %v7574_v48 = vmax.f32 %v7510_v30, 0.0 }
 0x615   : > { %v7577_v47 = vmax.f32 %v7513_v46, 0.0 }
 0x616   : > { %v7575_v1 = vmax.f32 %v7511_v18, 0.0  ;;  %v6626_v44 = vpop.f32.mrb[76].mxu0 }
 0x617   : > { %v8629_v5 = vpack.c.bf16 %v7577_v47, %v7576_v16  ;;  %v6916_v37 = vadd.f32 %v14254_v62, %v6626_v44  ;;  %v6628_v52 = vpop.f32.mrb[77].mxu0  ;;  %v15692_v62 = vld [vmem:[#allocation128_spill] sm:$0xff] }
 0x618   : > { %v8624_v27 = vpack.c.bf16 %v7575_v1, %v7574_v48  ;;  %v9612_v51 = vpop.f32.mrb[92].mxu1  ;;  %v6629_v28 = vpop.f32.mrb[78].mxu0  ;;  %v7100_v10 = vadd.f32 %v14346_v32, %v15692_v62  ;;  %v15695_v48 = vld [vmem:[#allocation124_spill] sm:$0xff]  ;;  %v15697_v62 = vld [vmem:[#allocation23_spill] sm:$0xff] }
 0x619   : > { %8757 = vst [vmem:[%s14368_s16 + $0x38] sm:$0xff] %v8629_v5   ;;  %v14431_v59 = vadd.f32 %v6916_v37, %v15691_v53  ;;  %v7516_v45 = vadd.f32 %v9612_v51, %v7099_v21  ;;  %v6919_v56 = vadd.f32 %v14261_v36, %v6629_v28  ;;  %v7307_v63 = vpop.f32.mrb[93].mxu1  ;;  %v6631_v31 = vpop.f32.mrb[79].mxu0  ;;  %v7103_v5 = vadd.f32 %v14346_v32, %v14267_v38  ;;  %v15696_v51 = vld [vmem:[#allocation22_spill] sm:$0xff] }
 0x61a   : > { %8756 = vst [vmem:[%s14368_s16 + $0x30] sm:$0xff] %v8624_v27   ;;  %v7514_v6 = vadd.f32 %v7307_v63, %v7097_v33  ;;  %v9613_v13 = vpop.f32.mrb[94].mxu1  ;;  %v7101_v27 = vadd.f32 %v14346_v32, %v14252_v34  ;;  %v7102_v31 = vadd.f32 %v14346_v32, %v14259_v8  ;;  %v7107_v8 = vadd.f32 %v14346_v32, %v14299_v57 }
 0x61b   : > { %v14440_v30 = vadd.f32 %v6919_v56, %v15694_v49  ;;  %v7517_v9 = vadd.f32 %v9613_v13, %v7100_v10  ;;  %v7310_v2 = vpop.f32.mrb[95].mxu1  ;;  %v7580_v46 = vmax.f32 %v7516_v45, 0.0  ;;  %v7104_v56 = vadd.f32 %v14346_v32, %v14275_v50 }
 0x61c   : > { %v7515_v25 = vadd.f32 %v7310_v2, %v7098_v40  ;;  %v7578_v54 = vmax.f32 %v7514_v6, 0.0 }
 0x61d   : > { %v7581_v36 = vmax.f32 %v7517_v9, 0.0 }
 0x61e   : > { %v7579_v18 = vmax.f32 %v7515_v25, 0.0  ;;  %v6634_v16 = vpop.f32.mrb[80].mxu0 }
 0x61f   : > { %v8639_v47 = vpack.c.bf16 %v7581_v36, %v7580_v46  ;;  %v6924_v1 = vadd.f32 %v15695_v48, %v6634_v16  ;;  %v6636_v44 = vpop.f32.mrb[81].mxu0  ;;  %v15698_v16 = vld [vmem:[#allocation123_spill] sm:$0xff] }
 0x620   : > { %v8634_v37 = vpack.c.bf16 %v7579_v18, %v7578_v54  ;;  %v9616_v52 = vpop.f32.mrb[96].mxu1  ;;  %v6637_v21 = vpop.f32.mrb[82].mxu0  ;;  %v7105_v18 = vadd.f32 %v14346_v32, %v14283_v26 }
 0x621   : > { %8759 = vst [vmem:[%s14368_s16 + $0x48] sm:$0xff] %v8639_v47   ;;  %v14449_v28 = vadd.f32 %v6924_v1, %v15696_v51  ;;  %v7520_v61 = vadd.f32 %v9616_v52, %v7103_v5  ;;  %v6927_v33 = vadd.f32 %v14256_v12, %v6637_v21  ;;  %v7323_v53 = vpop.f32.mrb[97].mxu1  ;;  %v6639_v45 = vpop.f32.mrb[83].mxu0  ;;  %v7106_v52 = vadd.f32 %v14346_v32, %v14291_v24  ;;  %v15699_v21 = vld [vmem:[#allocation14_spill] sm:$0xff] }
 0x622   : > { %8758 = vst [vmem:[%s14368_s16 + $0x40] sm:$0xff] %v8634_v37   ;;  %v7518_v38 = vadd.f32 %v7323_v53, %v7101_v27  ;;  %v9617_v63 = vpop.f32.mrb[98].mxu1  ;;  %v7111_v24 = vadd.f32 %v14346_v32, %v14331_v20 }
 0x623   : > { %v14458_v34 = vadd.f32 %v6927_v33, %v15697_v62  ;;  %v7521_v10 = vadd.f32 %v9617_v63, %v7104_v56  ;;  %v7326_v6 = vpop.f32.mrb[99].mxu1  ;;  %v7584_v17 = vmax.f32 %v7520_v61, 0.0 }
 0x624   : > { %v7519_v13 = vadd.f32 %v7326_v6, %v7102_v31  ;;  %v7582_v40 = vmax.f32 %v7518_v38, 0.0  ;;  %v15700_v38 = vld [vmem:[#allocation130_spill] sm:$0xff] }
 0x625   : > { %v7585_v12 = vmax.f32 %v7521_v10, 0.0 }
 0x626   : > { %v7583_v49 = vmax.f32 %v7519_v13, 0.0  ;;  %v6642_v9 = vpop.f32.mrb[84].mxu0  ;;  %v7109_v13 = vadd.f32 %v14346_v32, %v14315_v0 }
 0x627   : > { %v8649_v50 = vpack.c.bf16 %v7585_v12, %v7584_v17  ;;  %v6932_v2 = vadd.f32 %v14270_v15, %v6642_v9  ;;  %v6644_v25 = vpop.f32.mrb[85].mxu0  ;;  %v7108_v15 = vadd.f32 %v14346_v32, %v14307_v58  ;;  %v15701_v17 = vld [vmem:[#allocation6_spill] sm:$0xff] }
 0x628   : > { %v8644_v46 = vpack.c.bf16 %v7583_v49, %v7582_v40  ;;  %v9620_v36 = vpop.f32.mrb[100].mxu1  ;;  %v6645_v54 = vpop.f32.mrb[86].mxu0  ;;  %v15702_v49 = vld [vmem:[#allocation125_spill] sm:$0xff]  ;;  %v7112_v25 = vadd.f32 %v14346_v32, %v14339_v23 }
 0x629   : > { %8761 = vst [vmem:[%s14368_s16 + $0x58] sm:$0xff] %v8649_v50   ;;  %v14467_v47 = vadd.f32 %v6932_v2, %v15698_v16  ;;  %v7524_v48 = vadd.f32 %v9620_v36, %v7107_v8  ;;  %v6935_v1 = vadd.f32 %v14277_v4, %v6645_v54  ;;  %v7339_v44 = vpop.f32.mrb[101].mxu1  ;;  %v6647_v5 = vpop.f32.mrb[87].mxu0  ;;  %v15703_v36 = vld [vmem:[#allocation17_spill] sm:$0xff] }
 0x62a   : > { %8760 = vst [vmem:[%s14368_s16 + $0x50] sm:$0xff] %v8644_v46   ;;  %v7522_v57 = vadd.f32 %v7339_v44, %v7105_v18  ;;  %v9621_v37 = vpop.f32.mrb[102].mxu1  ;;  %v7110_v46 = vadd.f32 %v14346_v32, %v14323_v19  ;;  %v7115_v19 = vadd.f32 %v14346_v32, %v14377_v43 }
 0x62b   : > { %v14476_v26 = vadd.f32 %v6935_v1, %v15699_v21  ;;  %v7525_v27 = vadd.f32 %v9621_v37, %v7108_v15  ;;  %v7342_v51 = vpop.f32.mrb[103].mxu1  ;;  %v7588_v33 = vmax.f32 %v7524_v48, 0.0 }
 0x62c   : > { %v7523_v61 = vadd.f32 %v7342_v51, %v7106_v52  ;;  %v7586_v53 = vmax.f32 %v7522_v57, 0.0  ;;  %v7113_v51 = vadd.f32 %v14346_v32, %v14354_v55 }
 0x62d   : > { %v7589_v4 = vmax.f32 %v7525_v27, 0.0 }
 0x62e   : > { %v7587_v45 = vmax.f32 %v7523_v61, 0.0  ;;  %v6650_v56 = vpop.f32.mrb[88].mxu0  ;;  %v15704_v61 = vld [vmem:[#allocation104_spill] sm:$0xff] }
 0x62f   : > { %v8659_v58 = vpack.c.bf16 %v7589_v4, %v7588_v33  ;;  %v6940_v63 = vadd.f32 %v15700_v38, %v6650_v56  ;;  %v6652_v31 = vpop.f32.mrb[89].mxu0  ;;  %v7114_v38 = vadd.f32 %v14346_v32, %v14362_v35  ;;  %v7119_v35 = vadd.f32 %v14346_v32, %v14413_v22 }
 0x630   : > { %v8654_v62 = vpack.c.bf16 %v7587_v45, %v7586_v53  ;;  %v9624_v10 = vpop.f32.mrb[104].mxu1  ;;  %v6653_v6 = vpop.f32.mrb[90].mxu0 }
 0x631   : > { %8763 = vst [vmem:[%s14368_s16 + $0x68] sm:$0xff] %v8659_v58   ;;  %v14485_v12 = vadd.f32 %v6940_v63, %v15701_v17  ;;  %v7528_v40 = vadd.f32 %v9624_v10, %v7111_v24  ;;  %v6943_v9 = vadd.f32 %v15702_v49, %v6653_v6  ;;  %v7355_v50 = vpop.f32.mrb[105].mxu1  ;;  %v6655_v2 = vpop.f32.mrb[91].mxu0  ;;  %v15705_v63 = vld [vmem:[#allocation51_spill] sm:$0xff] }
 0x632   : > { %8762 = vst [vmem:[%s14368_s16 + $0x60] sm:$0xff] %v8654_v62   ;;  %v7526_v20 = vadd.f32 %v7355_v50, %v7109_v13  ;;  %v9625_v8 = vpop.f32.mrb[106].mxu1 }
 0x633   : > { %v14494_v0 = vadd.f32 %v6943_v9, %v15703_v36  ;;  %v7529_v54 = vadd.f32 %v9625_v8, %v7112_v25  ;;  %v7358_v18 = vpop.f32.mrb[107].mxu1  ;;  %v7592_v48 = vmax.f32 %v7528_v40, 0.0  ;;  %v15706_v40 = vld [vmem:[#allocation26_spill] sm:$0xff]  ;;  %v15707_v8 = vld [vmem:[#allocation27_spill] sm:$0xff] }
 0x634   : > { %v7527_v16 = vadd.f32 %v7358_v18, %v7110_v46  ;;  %v7590_v44 = vmax.f32 %v7526_v20, 0.0  ;;  %v7117_v20 = vadd.f32 %v14346_v32, %v14395_v3 }
 0x635   : > { %v7593_v1 = vmax.f32 %v7529_v54, 0.0  ;;  %v15708_v54 = vld [vmem:[#allocation131_spill] sm:$0xff] }
 0x636   : > { %v7591_v5 = vmax.f32 %v7527_v16, 0.0  ;;  %v6658_v15 = vpop.f32.mrb[92].mxu0 }
 0x637   : > { %v8669_v23 = vpack.c.bf16 %v7593_v1, %v7592_v48  ;;  %v6948_v57 = vadd.f32 %v14286_v11, %v6658_v15  ;;  %v6660_v37 = vpop.f32.mrb[93].mxu0  ;;  %v7116_v11 = vadd.f32 %v14346_v32, %v14386_v14  ;;  %v7120_v1 = vadd.f32 %v14346_v32, %v14422_v29  ;;  %v15709_v15 = vld [vmem:[#allocation7_spill] sm:$0xff] }
 0x638   : > { %v8664_v52 = vpack.c.bf16 %v7591_v5, %v7590_v44  ;;  %v9628_v21 = vpop.f32.mrb[108].mxu1  ;;  %v6661_v27 = vpop.f32.mrb[94].mxu0  ;;  %v7118_v5 = vadd.f32 %v14346_v32, %v14404_v41  ;;  %v7123_v41 = vadd.f32 %v14346_v32, %v14449_v28 }
 0x639   : > { %8765 = vst [vmem:[%s14368_s16 + $0x78] sm:$0xff] %v8669_v23   ;;  %v14503_v33 = vadd.f32 %v6948_v57, %v15704_v61  ;;  %v7532_v4 = vadd.f32 %v9628_v21, %v7115_v19  ;;  %v6951_v53 = vadd.f32 %v14293_v60, %v6661_v27  ;;  %v7371_v45 = vpop.f32.mrb[109].mxu1  ;;  %v6663_v56 = vpop.f32.mrb[95].mxu0 }
 0x63a   : > { %8764 = vst [vmem:[%s14368_s16 + $0x70] sm:$0xff] %v8664_v52   ;;  %v7530_v43 = vadd.f32 %v7371_v45, %v7113_v51  ;;  %v9629_v58 = vpop.f32.mrb[110].mxu1 }
 0x63b   : > { %v14512_v55 = vadd.f32 %v6951_v53, %v15705_v63  ;;  %v7533_v31 = vadd.f32 %v9629_v58, %v7116_v11  ;;  %v7374_v24 = vpop.f32.mrb[111].mxu1  ;;  %v7596_v10 = vmax.f32 %v7532_v4, 0.0  ;;  %v7121_v11 = vadd.f32 %v14346_v32, %v14431_v59  ;;  %v15711_v63 = vld [vmem:[#allocation129_spill] sm:$0xff] }
 0x63c   : > { %v7531_v62 = vadd.f32 %v7374_v24, %v7114_v38  ;;  %v7594_v6 = vmax.f32 %v7530_v43, 0.0  ;;  %v15710_v43 = vld [vmem:[#allocation16_spill] sm:$0xff] }
 0x63d   : > { %v7597_v60 = vmax.f32 %v7533_v31, 0.0 }
 0x63e   : > { %v7595_v13 = vmax.f32 %v7531_v62, 0.0  ;;  %v6666_v17 = vpop.f32.mrb[96].mxu0 }
 0x63f   : > { %v8679_v14 = vpack.c.bf16 %v7597_v60, %v7596_v10  ;;  %v6956_v49 = vadd.f32 %v15706_v40, %v6666_v17  ;;  %v6668_v9 = vpop.f32.mrb[97].mxu0  ;;  %v7122_v60 = vadd.f32 %v14346_v32, %v14440_v30  ;;  %v7127_v30 = vadd.f32 %v14346_v32, %v14485_v12 }
 0x640   : > { %v8674_v50 = vpack.c.bf16 %v7595_v13, %v7594_v6  ;;  %v9632_v2 = vpop.f32.mrb[112].mxu1  ;;  %v6669_v25 = vpop.f32.mrb[98].mxu0  ;;  %v15712_v6 = vld [vmem:[#allocation65_spill] sm:$0xff] }
 0x641   : > { %8767 = vst [vmem:[%s14368_s16 + $0x88] sm:$0xff] %v8679_v14   ;;  %v14521_v46 = vadd.f32 %v6956_v49, %v15707_v8  ;;  %v7536_v36 = vadd.f32 %v9632_v2, %v7119_v35  ;;  %v6959_v18 = vadd.f32 %v15708_v54, %v6669_v25  ;;  %v7387_v16 = vpop.f32.mrb[113].mxu1  ;;  %v6671_v48 = vpop.f32.mrb[99].mxu0  ;;  %v15713_v2 = vld [vmem:[#allocation127_spill] sm:$0xff] }
 0x642   : > { %8766 = vst [vmem:[%s14368_s16 + $0x80] sm:$0xff] %v8674_v50   ;;  %v7534_v22 = vadd.f32 %v7387_v16, %v7117_v20  ;;  %v9633_v44 = vpop.f32.mrb[114].mxu1  ;;  %v15714_v16 = vld [vmem:[#allocation63_spill] sm:$0xff] }
 0x643   : > { %v14530_v3 = vadd.f32 %v6959_v18, %v15709_v15  ;;  %v7537_v23 = vadd.f32 %v9633_v44, %v7120_v1  ;;  %v7390_v57 = vpop.f32.mrb[115].mxu1  ;;  %v7600_v19 = vmax.f32 %v7536_v36, 0.0  ;;  %v7125_v18 = vadd.f32 %v14346_v32, %v14467_v47 }
 0x644   : > { %v7535_v37 = vadd.f32 %v7390_v57, %v7118_v5  ;;  %v7598_v21 = vmax.f32 %v7534_v22, 0.0  ;;  %v15715_v22 = vld [vmem:[#allocation134_spill] sm:$0xff] }
 0x645   : > { %v7601_v52 = vmax.f32 %v7537_v23, 0.0  ;;  %v7128_v23 = vadd.f32 %v14346_v32, %v14494_v0 }
 0x646   : > { %v7599_v27 = vmax.f32 %v7535_v37, 0.0  ;;  %v6674_v51 = vpop.f32.mrb[100].mxu0  ;;  %v7126_v37 = vadd.f32 %v14346_v32, %v14476_v26 }
 0x647   : > { %v8689_v29 = vpack.c.bf16 %v7601_v52, %v7600_v19  ;;  %v6964_v61 = vadd.f32 %v14302_v39, %v6674_v51  ;;  %v6676_v4 = vpop.f32.mrb[101].mxu0  ;;  %v7124_v39 = vadd.f32 %v14346_v32, %v14458_v34  ;;  %v15716_v19 = vld [vmem:[#allocation33_spill] sm:$0xff] }
 0x648   : > { %v8684_v53 = vpack.c.bf16 %v7599_v27, %v7598_v21  ;;  %v9636_v45 = vpop.f32.mrb[116].mxu1  ;;  %v6677_v56 = vpop.f32.mrb[102].mxu0 }
 0x649   : > { %8769 = vst [vmem:[%s14368_s16 + $0x98] sm:$0xff] %v8689_v29   ;;  %v14539_v58 = vadd.f32 %v6964_v61, %v15710_v43  ;;  %v7540_v38 = vadd.f32 %v9636_v45, %v7123_v41  ;;  %v6967_v31 = vadd.f32 %v15711_v63, %v6677_v56  ;;  %v7403_v24 = vpop.f32.mrb[117].mxu1  ;;  %v6679_v62 = vpop.f32.mrb[103].mxu0  ;;  %v7131_v56 = vadd.f32 %v14346_v32, %v14521_v46  ;;  %v15717_v63 = vld [vmem:[#allocation126_spill] sm:$0xff] }
 0x64a   : > { %8768 = vst [vmem:[%s14368_s16 + $0x90] sm:$0xff] %v8684_v53   ;;  %v7538_v28 = vadd.f32 %v7403_v24, %v7121_v11  ;;  %v9637_v10 = vpop.f32.mrb[118].mxu1 }
 0x64b   : > { %v14548_v59 = vadd.f32 %v6967_v31, %v15712_v6  ;;  %v7541_v13 = vadd.f32 %v9637_v10, %v7124_v39  ;;  %v7406_v17 = vpop.f32.mrb[119].mxu1  ;;  %v7604_v40 = vmax.f32 %v7540_v38, 0.0  ;;  %v7129_v38 = vadd.f32 %v14346_v32, %v14503_v33  ;;  %v15718_v6 = vld [vmem:[#allocation18_spill] sm:$0xff] }
 0x64c   : > { %v7539_v14 = vadd.f32 %v7406_v17, %v7122_v60  ;;  %v7602_v9 = vmax.f32 %v7538_v28, 0.0  ;;  %v7130_v60 = vadd.f32 %v14346_v32, %v14512_v55 }
 0x64d   : > { %v7605_v49 = vmax.f32 %v7541_v13, 0.0 }
 0x64e   : > { %v7603_v35 = vmax.f32 %v7539_v14, 0.0  ;;  %v6682_v50 = vpop.f32.mrb[104].mxu0 }
 0x64f   : > { %v8699_v34 = vpack.c.bf16 %v7605_v49, %v7604_v40  ;;  %v6972_v25 = vadd.f32 %v15713_v2, %v6682_v50  ;;  %v6684_v20 = vpop.f32.mrb[105].mxu0 }
 0x650   : > { %v8694_v8 = vpack.c.bf16 %v7603_v35, %v7602_v9  ;;  %v9640_v36 = vpop.f32.mrb[120].mxu1  ;;  %v6685_v54 = vpop.f32.mrb[106].mxu0 }
 0x651   : > { %8771 = vst [vmem:[%s14368_s16 + $0xa8] sm:$0xff] %v8699_v34   ;;  %v7064_v48 = vadd.f32 %v6972_v25, %v15714_v16  ;;  %v7544_v1 = vadd.f32 %v9640_v36, %v7127_v30  ;;  %v6975_v44 = vadd.f32 %v15715_v22, %v6685_v54  ;;  %v7419_v5 = vpop.f32.mrb[121].mxu1  ;;  %v6687_v15 = vpop.f32.mrb[107].mxu0  ;;  %v15720_v36 = vld [vmem:[#allocation8_spill] sm:$0xff]  ;;  %v15721_v16 = vld [vmem:[#allocation61_spill] sm:$0xff] }
 0x652   : > { %8770 = vst [vmem:[%s14368_s16 + $0xa0] sm:$0xff] %v8694_v8   ;;  %v7542_v57 = vadd.f32 %v7419_v5, %v7125_v18  ;;  %v9641_v12 = vpop.f32.mrb[122].mxu1  ;;  %v7133_v8 = vadd.f32 %v14346_v32, %v14539_v58 }
 0x653   : > { %v7065_v52 = vadd.f32 %v6975_v44, %v15716_v19  ;;  %v7545_v47 = vadd.f32 %v9641_v12, %v7128_v23  ;;  %v7422_v21 = vpop.f32.mrb[123].mxu1  ;;  %v7608_v51 = vmax.f32 %v7544_v1, 0.0  ;;  %v7135_v25 = vadd.f32 %v14346_v32, %v7064_v48 }
 0x654   : > { %v7543_v27 = vadd.f32 %v7422_v21, %v7126_v37  ;;  %v7606_v61 = vmax.f32 %v7542_v57, 0.0  ;;  %v7134_v48 = vadd.f32 %v14346_v32, %v14548_v59  ;;  %v15722_v57 = vld [vmem:[#allocation119_spill] sm:$0xff] }
 0x655   : > { %v7609_v29 = vmax.f32 %v7545_v47, 0.0  ;;  %v7136_v5 = vadd.f32 %v14346_v32, %v7065_v52  ;;  %v15723_v52 = vld [vmem:[#allocation92_spill] sm:$0xff] }
 0x656   : > { %v7607_v4 = vmax.f32 %v7543_v27, 0.0  ;;  %v6690_v41 = vpop.f32.mrb[108].mxu0 }
 0x657   : > { %v8709_v53 = vpack.c.bf16 %v7609_v29, %v7608_v51  ;;  %v6980_v0 = vadd.f32 %v14318_v7, %v6690_v41  ;;  %v6692_v45 = vpop.f32.mrb[109].mxu0  ;;  %v7132_v7 = vadd.f32 %v14346_v32, %v14530_v3  ;;  %v15719_v3 = vld [vmem:[#allocation109_spill] sm:$0xff] }
 0x658   : > { %v8704_v26 = vpack.c.bf16 %v7607_v4, %v7606_v61  ;;  %v9644_v11 = vpop.f32.mrb[124].mxu1  ;;  %v6693_v43 = vpop.f32.mrb[110].mxu0 }
 0x659   : > { %8773 = vst [vmem:[%s14368_s16 + $0xb8] sm:$0xff] %v8709_v53   ;;  %v7066_v31 = vadd.f32 %v6980_v0, %v15717_v63  ;;  %v7548_v24 = vadd.f32 %v9644_v11, %v7131_v56  ;;  %v6983_v62 = vadd.f32 %v14325_v42, %v6693_v43  ;;  %v7435_v39 = vpop.f32.mrb[125].mxu1  ;;  %v6695_v28 = vpop.f32.mrb[111].mxu0 }
 0x65a   : > { %8772 = vst [vmem:[%s14368_s16 + $0xb0] sm:$0xff] %v8704_v26   ;;  %v7546_v10 = vadd.f32 %v7435_v39, %v7129_v38  ;;  %v9645_v46 = vpop.f32.mrb[126].mxu1  ;;  %v15724_v26 = vld [vmem:[#allocation67_spill] sm:$0xff]  ;;  %v15725_v38 = vld [vmem:[#allocation132_spill] sm:$0xff] }
 0x65b   : > { %v7067_v13 = vadd.f32 %v6983_v62, %v15718_v6  ;;  %v7549_v33 = vadd.f32 %v9645_v46, %v7132_v7  ;;  %v7438_v17 = vpop.f32.mrb[127].mxu1  ;;  %v7612_v40 = vmax.f32 %v7548_v24, 0.0  ;;  %v7137_v56 = vadd.f32 %v14346_v32, %v7066_v31  ;;  %v15726_v46 = vld [vmem:[#allocation90_spill] sm:$0xff] }
 0x65c   : > { %v7547_v14 = vadd.f32 %v7438_v17, %v7130_v60  ;;  %v7610_v42 = vmax.f32 %v7546_v10, 0.0 }
 0x65d   : > { %v7613_v49 = vmax.f32 %v7549_v33, 0.0  ;;  %v7138_v10 = vadd.f32 %v14346_v32, %v7067_v13 }
 0x65e   : > { %v7611_v9 = vmax.f32 %v7547_v14, 0.0  ;;  %v6698_v35 = vpop.f32.mrb[112].mxu0 }
 0x65f   : > { %v8719_v50 = vpack.c.bf16 %v7613_v49, %v7612_v40  ;;  %v6988_v34 = vadd.f32 %v15719_v3, %v6698_v35  ;;  %v6700_v2 = vpop.f32.mrb[113].mxu0  ;;  %v15727_v35 = vld [vmem:[#allocation114_spill] sm:$0xff] }
 0x660   : > { %v8714_v20 = vpack.c.bf16 %v7611_v9, %v7610_v42  ;;  %v9648_v55 = vpop.f32.mrb[128].mxu1  ;;  %v6701_v30 = vpop.f32.mrb[114].mxu0 }
 0x661   : > { %8775 = vst [vmem:[%s14368_s16 + $0xc8] sm:$0xff] %v8719_v50   ;;  %v7068_v54 = vadd.f32 %v6988_v34, %v15720_v36  ;;  %v7552_v18 = vadd.f32 %v9648_v55, %v7135_v25  ;;  %v6991_v1 = vadd.f32 %v15721_v16, %v6701_v30  ;;  %v7451_v22 = vpop.f32.mrb[129].mxu1  ;;  %v6703_v44 = vpop.f32.mrb[115].mxu0  ;;  %v15729_v30 = vld [vmem:[#allocation133_spill] sm:$0xff] }
 0x662   : > { %8774 = vst [vmem:[%s14368_s16 + $0xc0] sm:$0xff] %v8714_v20   ;;  %v7550_v15 = vadd.f32 %v7451_v22, %v7133_v8  ;;  %v9649_v23 = vpop.f32.mrb[130].mxu1  ;;  %v15728_v20 = vld [vmem:[#allocation121_spill] sm:$0xff]  ;;  %v15730_v44 = vld [vmem:[#allocation122_spill] sm:$0xff] }
 0x663   : > { %v7069_v12 = vadd.f32 %v6991_v1, %v15722_v57  ;;  %v7553_v37 = vadd.f32 %v9649_v23, %v7136_v5  ;;  %v7454_v58 = vpop.f32.mrb[131].mxu1  ;;  %v7616_v47 = vmax.f32 %v7552_v18, 0.0  ;;  %v7139_v53 = vadd.f32 %v14346_v32, %v7068_v54 }
 0x664   : > { %v7551_v19 = vadd.f32 %v7454_v58, %v7134_v48  ;;  %v7614_v27 = vmax.f32 %v7550_v15, 0.0 }
 0x665   : > { %v7617_v21 = vmax.f32 %v7553_v37, 0.0  ;;  %v7140_v39 = vadd.f32 %v14346_v32, %v7069_v12 }
 0x666   : > { %v7615_v51 = vmax.f32 %v7551_v19, 0.0  ;;  %v6706_v29 = vpop.f32.mrb[116].mxu0 }
 0x667   : > { %v8729_v61 = vpack.c.bf16 %v7617_v21, %v7616_v47  ;;  %v6996_v4 = vadd.f32 %v15723_v52, %v6706_v29  ;;  %v6708_v41 = vpop.f32.mrb[117].mxu0 }
 0x668   : > { %v8724_v0 = vpack.c.bf16 %v7615_v51, %v7614_v27  ;;  %v9652_v59 = vpop.f32.mrb[132].mxu1  ;;  %v6709_v45 = vpop.f32.mrb[118].mxu0 }
 0x669   : > { %8777 = vst [vmem:[%s14368_s16 + $0xd8] sm:$0xff] %v8729_v61   ;;  %v7070_v11 = vadd.f32 %v6996_v4, %v15724_v26  ;;  %v7556_v43 = vadd.f32 %v9652_v59, %v7139_v53  ;;  %v6999_v63 = vadd.f32 %v15725_v38, %v6709_v45  ;;  %v7467_v24 = vpop.f32.mrb[133].mxu1  ;;  %v6711_v62 = vpop.f32.mrb[119].mxu0 }
 0x66a   : > { %8776 = vst [vmem:[%s14368_s16 + $0xd0] sm:$0xff] %v8724_v0   ;;  %v7554_v28 = vadd.f32 %v7467_v24, %v7137_v56  ;;  %v9653_v7 = vpop.f32.mrb[134].mxu1 }
 0x66b   : > { %v7071_v60 = vadd.f32 %v6999_v63, %v15726_v46  ;;  %v7557_v6 = vadd.f32 %v9653_v7, %v7140_v39  ;;  %v7470_v31 = vpop.f32.mrb[135].mxu1  ;;  %v7620_v17 = vmax.f32 %v7556_v43, 0.0  ;;  %v7141_v13 = vadd.f32 %v14346_v32, %v7070_v11 }
 0x66c   : > { %v7555_v33 = vadd.f32 %v7470_v31, %v7138_v10  ;;  %v7618_v40 = vmax.f32 %v7554_v28, 0.0 }
 0x66d   : > { %v7621_v14 = vmax.f32 %v7557_v6, 0.0  ;;  %v7142_v1 = vadd.f32 %v14346_v32, %v7071_v60 }
 0x66e   : > { %v7619_v49 = vmax.f32 %v7555_v33, 0.0  ;;  %v6714_v42 = vpop.f32.mrb[120].mxu0 }
 0x66f   : > { %v8739_v9 = vpack.c.bf16 %v7621_v14, %v7620_v17  ;;  %v7004_v50 = vadd.f32 %v15727_v35, %v6714_v42  ;;  %v6716_v3 = vpop.f32.mrb[121].mxu0 }
 0x670   : > { %v8734_v34 = vpack.c.bf16 %v7619_v49, %v7618_v40  ;;  %v9656_v2 = vpop.f32.mrb[136].mxu1  ;;  %v6717_v25 = vpop.f32.mrb[122].mxu0 }
 0x671   : > { %8779 = vst [vmem:[%s14368_s16 + $0xe8] sm:$0xff] %v8739_v9   ;;  %v7072_v55 = vadd.f32 %v7004_v50, %v15728_v20  ;;  %v7007_v8 = vadd.f32 %v15729_v30, %v6717_v25  ;;  %v7483_v36 = vpop.f32.mrb[137].mxu1  ;;  %v6719_v54 = vpop.f32.mrb[123].mxu0 }
 0x672   : > { %8778 = vst [vmem:[%s14368_s16 + $0xe0] sm:$0xff] %v8734_v34   ;;  %v7558_v18 = vadd.f32 %v7483_v36, %v7141_v13  ;;  %v9657_v16 = vpop.f32.mrb[138].mxu1 }
 0x673   : > { %v7143_v22 = vadd.f32 %v14346_v32, %v7072_v55  ;;  %v7073_v5 = vadd.f32 %v7007_v8, %v15730_v44  ;;  %v7486_v15 = vpop.f32.mrb[139].mxu1 }
 0x674   : > { %v7559_v23 = vadd.f32 %v7486_v15, %v7142_v1  ;;  %v7622_v12 = vmax.f32 %v7558_v18, 0.0 }
 0x675   : > { %v7560_v48 = vadd.f32 %v9656_v2, %v7143_v22  ;;  %v7144_v57 = vadd.f32 %v14346_v32, %v7073_v5 }
 0x676   : > { %v7623_v37 = vmax.f32 %v7559_v23, 0.0 }
 0x677   : > { %v7561_v58 = vadd.f32 %v9657_v16, %v7144_v57  ;;  %v7624_v47 = vmax.f32 %v7560_v48, 0.0 }
 0x678   : > { %v8744_v19 = vpack.c.bf16 %v7623_v37, %v7622_v12 }
 0x679   : > { %v7625_v21 = vmax.f32 %v7561_v58, 0.0 }
 0x67a   : > { %8780 = vst [vmem:[%s14368_s16 + $0xf0] sm:$0xff] %v8744_v19  }
 0x67b   : > { %v8749_v27 = vpack.c.bf16 %v7625_v21, %v7624_v47 }
 0x67d   : > { %8781 = vst [vmem:[%s14368_s16 + $0xf8] sm:$0xff] %v8749_v27  }
 0x67e PF: > { %s17_s26 = sadd.s32 1, %s9981_s26   ;;  %s15731_s24 = smov %s9977_s25 }
 0x67f   : > { %p14_p5 = scmp.ge.s32.totalorder %s17_s26, 4   ;;  %s15732_s25 = smov %s15734_s27 }
 0x681   :  { %16 = sbr.rel (!%p14_p5) target bundleno = 2 (0x2), region = 85 }

</bundles_post_ra>
